<compile_context>
chip_gen: v6e
topology: v6e:2x2x1
jax: 0.10.0
libtpu: 0.0.40
codegen_flags: <defaults>
</compile_context>

<pallas_src>
import functools
import math

import jax
import jax.numpy as jnp
from jax.experimental import pallas as pl
from jax.experimental.pallas import tpu as pltpu

KERNEL_SIZE = 3                 # default kernel_size=[3, 3] in CRFLayer
_P = KERNEL_SIZE // 2


def _neighbor_offsets(k):
    """Offsets in GaussianMask's one-hot-kernel order (row-major, center skipped)."""
    p = k // 2
    offs = []
    for idx in range(k * k):
        if idx == (k * k) // 2:
            continue
        dy, dx = divmod(idx, k)
        offs.append((dy - p, dx - p))
    return tuple(offs)


OFFSETS = _neighbor_offsets(KERNEL_SIZE)
N_OFF = len(OFFSETS)


def _spatial_weights(bandwidth):
    """exp(-(dy^2+dx^2)/(2*bw^2)) per neighbour offset (center excluded), Python floats."""
    return tuple(
        math.exp(-(dy * dy + dx * dx) / (2.0 * bandwidth * bandwidth))
        for dy, dx in OFFSETS
    )


def _crf_kernel(u_ref, i_ref, msk_ref, wf_ref, cw_ref, out_ref, *,
                n_iter, n_classes, in_channels, W,
                theta_alpha, theta_beta, theta_gamma):
    U = u_ref[0].astype(jnp.float32)          # (n_classes, L)   L = padded H*W (lanes)
    I = i_ref[0].astype(jnp.float32)          # (in_channels, L)
    L = U.shape[-1]

    n_bil = len(theta_alpha)
    n_sp = len(theta_gamma)
    n_filters = n_bil * in_channels + n_sp

    shifts = [dy * W + dx for (dy, dx) in OFFSETS]          # flattened-axis shifts
    sw_bil = [_spatial_weights(a) for a in theta_alpha]     # python-float constants
    sw_sp = [_spatial_weights(g) for g in theta_gamma]
    inv2tb2 = [1.0 / (2.0 * b * b) for b in theta_beta]

    # Precomputed boundary masks (also zero out padded lanes): one (1, L) per offset.
    masks = [msk_ref[o:o + 1, :] for o in range(N_OFF)]

    # Hoisted SMEM scalar parameter reads (out of the n_iter loop).
    wf_s = [[wf_ref[f, c] for c in range(n_classes)] for f in range(n_filters)]
    if n_classes > 1:
        cw_s = [[cw_ref[c, cp] for cp in range(n_classes)] for c in range(n_classes)]

    def appearance_K(b, o):
        # K_o = exp(-(I(j) - I(i))^2 / (2*theta_beta^2)) with zero-padded I(j)
        Ij = masks[o] * jnp.roll(I, -shifts[o], axis=-1)
        d = Ij - I
        return jnp.exp(-(d * d) * inv2tb2[b])

    # ---- iteration-invariant normalisation reciprocals (divisions hoisted) -----
    inv_bnorm = []                                           # per bilateral: (in_channels, L)
    for b in range(n_bil):
        norm = jnp.zeros((in_channels, L), jnp.float32)
        for o in range(N_OFF):
            norm = norm + sw_bil[b][o] * appearance_K(b, o)
        inv_bnorm.append(1.0 / norm)
    inv_snorm = []                                           # per spatial: (1, L)
    for g in range(n_sp):
        norm = jnp.zeros((1, L), jnp.float32)
        for o in range(N_OFF):
            norm = norm + sw_sp[g][o] * masks[o]
        inv_snorm.append(jnp.where(norm > 0.0, 1.0 / norm, 0.0))

    # ---- iteration-invariant per-offset gain planes G_o (n_classes, L) ---------
    # Folds spatial kernel weights, appearance kernels K (recomputed, not cached),
    # normalisation reciprocals, the zero-padding mask of the shifted Q, and the
    # weightfiltering parameters.  Qsum = sum_o roll(Qn, off) * G_o.
    G = []
    for o in range(N_OFF):
        rows = [jnp.zeros((1, L), jnp.float32) for _ in range(n_classes)]
        for b in range(n_bil):
            coef = (sw_bil[b][o] * appearance_K(b, o)) * inv_bnorm[b]   # (in_channels, L)
            for ci in range(in_channels):
                f = b * in_channels + ci
                row_f = coef[ci:ci + 1, :]
                for c in range(n_classes):
                    rows[c] = rows[c] + wf_s[f][c] * row_f
        for g in range(n_sp):
            f = n_bil * in_channels + g
            row_f = sw_sp[g][o] * inv_snorm[g]
            for c in range(n_classes):
                rows[c] = rows[c] + wf_s[f][c] * row_f
        G.append(masks[o] * jnp.concatenate(rows, axis=0))

    # ---- mean-field iterations (lean hot loop) ---------------------------------
    Q = U
    for _ in range(n_iter):
        # normalize_
        if n_classes == 1:
            Qn = jax.nn.sigmoid(Q)
        else:
            mx = jnp.max(Q, axis=0, keepdims=True)
            e = jnp.exp(Q - mx)
            Qn = e * (1.0 / jnp.sum(e, axis=0, keepdims=True))

        # message passing + weightfiltering, fused: 8 roll + FMA passes
        Qsum = jnp.zeros((n_classes, L), jnp.float32)
        for o in range(N_OFF):
            Qsum = Qsum + jnp.roll(Qn, -shifts[o], axis=-1) * G[o]

        # compatibility transform minus its diagonal contribution
        if n_classes > 1:
            rows = []
            for c in range(n_classes):
                acc = jnp.zeros((1, L), jnp.float32)
                for cp in range(n_classes):
                    if cp == c:           # diagonal is subtracted off exactly
                        continue
                    acc = acc + cw_s[c][cp] * Qsum[cp:cp + 1, :]
                rows.append(acc)
            Qcomp = jnp.concatenate(rows, axis=0)
        else:
            Qcomp = Qsum

        Q = U - Qcomp

    out_ref[0] = Q.astype(out_ref.dtype)      # returns == 'logits'


def _make_shift_masks(H, W, L):
    """(N_OFF, L) f32 validity masks for each neighbour offset on the flattened,
    lane-padded spatial axis (also zeroes the padded lanes)."""
    p = jnp.arange(L, dtype=jnp.int32)
    hh = p // W
    ww = p % W
    inb = p < H * W
    ms = []
    for dy, dx in OFFSETS:
        ms.append((hh + dy >= 0) & (hh + dy < H)
                  & (ww + dx >= 0) & (ww + dx < W) & inb)
    return jnp.stack(ms, axis=0).astype(jnp.float32)


def crf_layer_pallas(U, I, wf, cw, *, n_iter, theta_alpha, theta_beta, theta_gamma):
    B, n_classes, H, W = U.shape
    in_channels = I.shape[1]
    HW = H * W
    L = max(128, ((HW + 127) // 128) * 128)   # lane-dense padded spatial length

    Uf = U.reshape(B, n_classes, HW).astype(jnp.float32)
    If = I.reshape(B, in_channels, HW).astype(jnp.float32)
    if L != HW:
        pad = ((0, 0), (0, 0), (0, L - HW))
        Uf = jnp.pad(Uf, pad)
        If = jnp.pad(If, pad)
    masks = _make_shift_masks(H, W, L)

    kernel = functools.partial(
        _crf_kernel,
        n_iter=n_iter, n_classes=n_classes, in_channels=in_channels, W=W,
        theta_alpha=tuple(theta_alpha), theta_beta=tuple(theta_beta),
        theta_gamma=tuple(theta_gamma))

    out = pl.pallas_call(
        kernel,
        out_shape=jax.ShapeDtypeStruct((B, n_classes, L), jnp.float32),
        grid=(B,),
        in_specs=[
            pl.BlockSpec((1, n_classes, L), lambda b: (b, 0, 0)),
            pl.BlockSpec((1, in_channels, L), lambda b: (b, 0, 0)),
            pl.BlockSpec((N_OFF, L), lambda b: (0, 0)),                # boundary masks (VMEM)
            pl.BlockSpec(memory_space=pltpu.MemorySpace.SMEM),         # weightfiltering (nf, nc)
            pl.BlockSpec(memory_space=pltpu.MemorySpace.SMEM),         # compat 1x1 weight (nc, nc)
        ],
        out_specs=pl.BlockSpec((1, n_classes, L), lambda b: (b, 0, 0)),
        compiler_params=pltpu.CompilerParams(dimension_semantics=("parallel",)),
    )(Uf, If, masks, wf, cw)
    # TODO(synk): for realistic (e.g. 512^2) images on v7x's 64 MiB VMEM, add a
    # spatial tiling grid axis with a +/-1-row halo instead of keeping one full
    # image resident per grid step.
    return out[:, :, :HW].reshape(B, n_classes, H, W)


# ------------------------- pure-JAX reference (for checking) -------------------------
def _shift2d_ref(x, dy, dx):
    B, C, H, W = x.shape
    xp = jnp.pad(x, ((0, 0), (0, 0), (_P, _P), (_P, _P)))
    return xp[:, :, _P + dy:_P + dy + H, _P + dx:_P + dx + W]


def crf_layer_reference(U, I, wf, cw, *, n_iter, theta_alpha, theta_beta, theta_gamma):
    B, nc, H, W = U.shape
    Q = U
    for _ in range(n_iter):
        Qn = jax.nn.sigmoid(Q) if nc == 1 else jax.nn.softmax(Q, axis=1)
        Qj = jnp.stack([_shift2d_ref(Qn, dy, dx) for dy, dx in OFFSETS], axis=2)   # (B,nc,8,H,W)
        filt = []
        for ta, tb in zip(theta_alpha, theta_beta):
            sw = jnp.asarray(_spatial_weights(ta), jnp.float32)[None, None, :, None, None]
            Ij = jnp.stack([_shift2d_ref(I, dy, dx) for dy, dx in OFFSETS], axis=2)  # (B,cin,8,H,W)
            K = jnp.exp(-((Ij - I[:, :, None]) ** 2) / (2.0 * tb * tb))
            Qt = (K[:, :, None] * Qj[:, None] * sw[:, :, None]).sum(axis=3)         # (B,cin,nc,H,W)
            norm = (K * sw).sum(axis=2)                                              # (B,cin,H,W)
            filt.append(Qt / norm[:, :, None])
        for tg in theta_gamma:
            sw = jnp.asarray(_spatial_weights(tg), jnp.float32)[None, None, :, None, None]
            onesj = jnp.stack([_shift2d_ref(jnp.ones_like(Qn), dy, dx) for dy, dx in OFFSETS],
                              axis=2)
            Qt = (Qj * sw).sum(axis=2)
            norm = (onesj * sw).sum(axis=2)
            filt.append((Qt / norm)[:, None])
        Qcat = jnp.concatenate(filt, axis=1)                       # (B, n_filters, nc, H, W)
        Qs = (Qcat * wf[None, :, :, None, None]).sum(axis=1)       # (B, nc, H, W)
        if nc > 1:
            Qc = jnp.einsum('oc,bchw->bohw', cw, Qs)
            Qc = Qc - Qs * jnp.diag(cw)[None, :, None, None]
        else:
            Qc = Qs
        Q = U - Qc
    return Q


if __name__ == "__main__":
    key = jax.random.PRNGKey(0)
    B, in_channels, n_classes, H, W = 2, 3, 4, 16, 16
    n_iter = 3
    theta_alpha = (1.5, 2.5)
    theta_beta = (1.5, 2.5)
    theta_gamma = (1.5,)
    n_filters = in_channels * len(theta_alpha) + len(theta_gamma)   # 7

    ku, ki, kw, kc = jax.random.split(key, 4)
    U = jax.random.normal(ku, (B, n_classes, H, W), jnp.float32)         # unary logits
    I = jax.random.uniform(ki, (B, in_channels, H, W), jnp.float32)      # input image

    # Deterministic synthetic parameters (kaiming-normal-style scale).
    # Conceptual shapes: weightfiltering (1, n_filters, n_classes, 1, 1),
    # compatibilitytransf.weight (n_classes, n_classes, 1, 1) — stored squeezed here.
    wf = jax.random.normal(kw, (n_filters, n_classes), jnp.float32) * math.sqrt(2.0 / n_filters)
    cw = jax.random.normal(kc, (n_classes, n_classes), jnp.float32) * math.sqrt(2.0 / n_classes)

    out = crf_layer_pallas(U, I, wf, cw, n_iter=n_iter, theta_alpha=theta_alpha,
                           theta_beta=theta_beta, theta_gamma=theta_gamma)
    out = jax.block_until_ready(out)

    ref = crf_layer_reference(U, I, wf, cw, n_iter=n_iter, theta_alpha=theta_alpha,
                              theta_beta=theta_beta, theta_gamma=theta_gamma)
    assert out.shape == (B, n_classes, H, W)
    err = float(jnp.max(jnp.abs(out - ref)))
    assert jnp.allclose(out, ref, rtol=1e-3, atol=1e-3), err
    print("KERNEL_OK")
</pallas_src>

<mosaic_0001>
module attributes {stable_mosaic.version = 11 : i64} {
  func.func @_crf_kernel(%arg0: i32, %arg1: memref<1x4x256xf32, #tpu.memory_space<vmem>>, %arg2: memref<1x3x256xf32, #tpu.memory_space<vmem>>, %arg3: memref<8x256xf32, #tpu.memory_space<vmem>>, %arg4: memref<7x4xf32, #tpu.memory_space<smem>>, %arg5: memref<4x4xf32, #tpu.memory_space<smem>>, %arg6: memref<1x4x256xf32, #tpu.memory_space<vmem>>) attributes {dimension_semantics = [#tpu.dimension_semantics<parallel>], iteration_bounds = array<i64: 2>, scalar_prefetch = 0 : i64, scratch_operands = 0 : i64, tpu.core_type = #tpu.core_type<tc>, window_params = [{transform_indices = @transform_0, window_bounds = array<i64: 1, 4, 256>}, {transform_indices = @transform_1, window_bounds = array<i64: 1, 3, 256>}, {pipeline_mode = #tpu.pipeline_mode<synchronous>, transform_indices = @transform_2, window_bounds = array<i64: 8, 256>}, {transform_indices = @transform_3, window_bounds = array<i64: 7, 4>}, {transform_indices = @transform_4, window_bounds = array<i64: 4, 4>}, {transform_indices = @transform_5, window_bounds = array<i64: 1, 4, 256>}]} {
    %c0 = arith.constant 0 : index
    %c0_0 = arith.constant 0 : index
    %c0_1 = arith.constant 0 : index
    %0 = vector.load %arg1[%c0, %c0_0, %c0_1] : memref<1x4x256xf32, #tpu.memory_space<vmem>>, vector<1x4x256xf32>
    %1 = vector.shape_cast %0 : vector<1x4x256xf32> to vector<4x256xf32>
    %c0_2 = arith.constant 0 : index
    %c0_3 = arith.constant 0 : index
    %c0_4 = arith.constant 0 : index
    %2 = vector.load %arg2[%c0_2, %c0_3, %c0_4] : memref<1x3x256xf32, #tpu.memory_space<vmem>>, vector<1x3x256xf32>
    %3 = vector.shape_cast %2 : vector<1x3x256xf32> to vector<3x256xf32>
    %c0_5 = arith.constant 0 : index
    %c0_6 = arith.constant 0 : index
    %4 = vector.load %arg3[%c0_5, %c0_6] : memref<8x256xf32, #tpu.memory_space<vmem>>, vector<1x256xf32>
    %c1 = arith.constant 1 : index
    %c0_7 = arith.constant 0 : index
    %5 = vector.load %arg3[%c1, %c0_7] : memref<8x256xf32, #tpu.memory_space<vmem>>, vector<1x256xf32>
    %c2 = arith.constant 2 : index
    %c0_8 = arith.constant 0 : index
    %6 = vector.load %arg3[%c2, %c0_8] : memref<8x256xf32, #tpu.memory_space<vmem>>, vector<1x256xf32>
    %c3 = arith.constant 3 : index
    %c0_9 = arith.constant 0 : index
    %7 = vector.load %arg3[%c3, %c0_9] : memref<8x256xf32, #tpu.memory_space<vmem>>, vector<1x256xf32>
    %c4 = arith.constant 4 : index
    %c0_10 = arith.constant 0 : index
    %8 = vector.load %arg3[%c4, %c0_10] : memref<8x256xf32, #tpu.memory_space<vmem>>, vector<1x256xf32>
    %c5 = arith.constant 5 : index
    %c0_11 = arith.constant 0 : index
    %9 = vector.load %arg3[%c5, %c0_11] : memref<8x256xf32, #tpu.memory_space<vmem>>, vector<1x256xf32>
    %c6 = arith.constant 6 : index
    %c0_12 = arith.constant 0 : index
    %10 = vector.load %arg3[%c6, %c0_12] : memref<8x256xf32, #tpu.memory_space<vmem>>, vector<1x256xf32>
    %c7 = arith.constant 7 : index
    %c0_13 = arith.constant 0 : index
    %11 = vector.load %arg3[%c7, %c0_13] : memref<8x256xf32, #tpu.memory_space<vmem>>, vector<1x256xf32>
    %c0_14 = arith.constant 0 : index
    %c0_15 = arith.constant 0 : index
    %12 = memref.load %arg4[%c0_14, %c0_15] : memref<7x4xf32, #tpu.memory_space<smem>>
    %c0_16 = arith.constant 0 : index
    %c1_17 = arith.constant 1 : index
    %13 = memref.load %arg4[%c0_16, %c1_17] : memref<7x4xf32, #tpu.memory_space<smem>>
    %c0_18 = arith.constant 0 : index
    %c2_19 = arith.constant 2 : index
    %14 = memref.load %arg4[%c0_18, %c2_19] : memref<7x4xf32, #tpu.memory_space<smem>>
    %c0_20 = arith.constant 0 : index
    %c3_21 = arith.constant 3 : index
    %15 = memref.load %arg4[%c0_20, %c3_21] : memref<7x4xf32, #tpu.memory_space<smem>>
    %c1_22 = arith.constant 1 : index
    %c0_23 = arith.constant 0 : index
    %16 = memref.load %arg4[%c1_22, %c0_23] : memref<7x4xf32, #tpu.memory_space<smem>>
    %c1_24 = arith.constant 1 : index
    %c1_25 = arith.constant 1 : index
    %17 = memref.load %arg4[%c1_24, %c1_25] : memref<7x4xf32, #tpu.memory_space<smem>>
    %c1_26 = arith.constant 1 : index
    %c2_27 = arith.constant 2 : index
    %18 = memref.load %arg4[%c1_26, %c2_27] : memref<7x4xf32, #tpu.memory_space<smem>>
    %c1_28 = arith.constant 1 : index
    %c3_29 = arith.constant 3 : index
    %19 = memref.load %arg4[%c1_28, %c3_29] : memref<7x4xf32, #tpu.memory_space<smem>>
    %c2_30 = arith.constant 2 : index
    %c0_31 = arith.constant 0 : index
    %20 = memref.load %arg4[%c2_30, %c0_31] : memref<7x4xf32, #tpu.memory_space<smem>>
    %c2_32 = arith.constant 2 : index
    %c1_33 = arith.constant 1 : index
    %21 = memref.load %arg4[%c2_32, %c1_33] : memref<7x4xf32, #tpu.memory_space<smem>>
    %c2_34 = arith.constant 2 : index
    %c2_35 = arith.constant 2 : index
    %22 = memref.load %arg4[%c2_34, %c2_35] : memref<7x4xf32, #tpu.memory_space<smem>>
    %c2_36 = arith.constant 2 : index
    %c3_37 = arith.constant 3 : index
    %23 = memref.load %arg4[%c2_36, %c3_37] : memref<7x4xf32, #tpu.memory_space<smem>>
    %c3_38 = arith.constant 3 : index
    %c0_39 = arith.constant 0 : index
    %24 = memref.load %arg4[%c3_38, %c0_39] : memref<7x4xf32, #tpu.memory_space<smem>>
    %c3_40 = arith.constant 3 : index
    %c1_41 = arith.constant 1 : index
    %25 = memref.load %arg4[%c3_40, %c1_41] : memref<7x4xf32, #tpu.memory_space<smem>>
    %c3_42 = arith.constant 3 : index
    %c2_43 = arith.constant 2 : index
    %26 = memref.load %arg4[%c3_42, %c2_43] : memref<7x4xf32, #tpu.memory_space<smem>>
    %c3_44 = arith.constant 3 : index
    %c3_45 = arith.constant 3 : index
    %27 = memref.load %arg4[%c3_44, %c3_45] : memref<7x4xf32, #tpu.memory_space<smem>>
    %c4_46 = arith.constant 4 : index
    %c0_47 = arith.constant 0 : index
    %28 = memref.load %arg4[%c4_46, %c0_47] : memref<7x4xf32, #tpu.memory_space<smem>>
    %c4_48 = arith.constant 4 : index
    %c1_49 = arith.constant 1 : index
    %29 = memref.load %arg4[%c4_48, %c1_49] : memref<7x4xf32, #tpu.memory_space<smem>>
    %c4_50 = arith.constant 4 : index
    %c2_51 = arith.constant 2 : index
    %30 = memref.load %arg4[%c4_50, %c2_51] : memref<7x4xf32, #tpu.memory_space<smem>>
    %c4_52 = arith.constant 4 : index
    %c3_53 = arith.constant 3 : index
    %31 = memref.load %arg4[%c4_52, %c3_53] : memref<7x4xf32, #tpu.memory_space<smem>>
    %c5_54 = arith.constant 5 : index
    %c0_55 = arith.constant 0 : index
    %32 = memref.load %arg4[%c5_54, %c0_55] : memref<7x4xf32, #tpu.memory_space<smem>>
    %c5_56 = arith.constant 5 : index
    %c1_57 = arith.constant 1 : index
    %33 = memref.load %arg4[%c5_56, %c1_57] : memref<7x4xf32, #tpu.memory_space<smem>>
    %c5_58 = arith.constant 5 : index
    %c2_59 = arith.constant 2 : index
    %34 = memref.load %arg4[%c5_58, %c2_59] : memref<7x4xf32, #tpu.memory_space<smem>>
    %c5_60 = arith.constant 5 : index
    %c3_61 = arith.constant 3 : index
    %35 = memref.load %arg4[%c5_60, %c3_61] : memref<7x4xf32, #tpu.memory_space<smem>>
    %c6_62 = arith.constant 6 : index
    %c0_63 = arith.constant 0 : index
    %36 = memref.load %arg4[%c6_62, %c0_63] : memref<7x4xf32, #tpu.memory_space<smem>>
    %c6_64 = arith.constant 6 : index
    %c1_65 = arith.constant 1 : index
    %37 = memref.load %arg4[%c6_64, %c1_65] : memref<7x4xf32, #tpu.memory_space<smem>>
    %c6_66 = arith.constant 6 : index
    %c2_67 = arith.constant 2 : index
    %38 = memref.load %arg4[%c6_66, %c2_67] : memref<7x4xf32, #tpu.memory_space<smem>>
    %c6_68 = arith.constant 6 : index
    %c3_69 = arith.constant 3 : index
    %39 = memref.load %arg4[%c6_68, %c3_69] : memref<7x4xf32, #tpu.memory_space<smem>>
    %c0_70 = arith.constant 0 : index
    %c1_71 = arith.constant 1 : index
    %40 = memref.load %arg5[%c0_70, %c1_71] : memref<4x4xf32, #tpu.memory_space<smem>>
    %c0_72 = arith.constant 0 : index
    %c2_73 = arith.constant 2 : index
    %41 = memref.load %arg5[%c0_72, %c2_73] : memref<4x4xf32, #tpu.memory_space<smem>>
    %c0_74 = arith.constant 0 : index
    %c3_75 = arith.constant 3 : index
    %42 = memref.load %arg5[%c0_74, %c3_75] : memref<4x4xf32, #tpu.memory_space<smem>>
    %c1_76 = arith.constant 1 : index
    %c0_77 = arith.constant 0 : index
    %43 = memref.load %arg5[%c1_76, %c0_77] : memref<4x4xf32, #tpu.memory_space<smem>>
    %c1_78 = arith.constant 1 : index
    %c2_79 = arith.constant 2 : index
    %44 = memref.load %arg5[%c1_78, %c2_79] : memref<4x4xf32, #tpu.memory_space<smem>>
    %c1_80 = arith.constant 1 : index
    %c3_81 = arith.constant 3 : index
    %45 = memref.load %arg5[%c1_80, %c3_81] : memref<4x4xf32, #tpu.memory_space<smem>>
    %c2_82 = arith.constant 2 : index
    %c0_83 = arith.constant 0 : index
    %46 = memref.load %arg5[%c2_82, %c0_83] : memref<4x4xf32, #tpu.memory_space<smem>>
    %c2_84 = arith.constant 2 : index
    %c1_85 = arith.constant 1 : index
    %47 = memref.load %arg5[%c2_84, %c1_85] : memref<4x4xf32, #tpu.memory_space<smem>>
    %c2_86 = arith.constant 2 : index
    %c3_87 = arith.constant 3 : index
    %48 = memref.load %arg5[%c2_86, %c3_87] : memref<4x4xf32, #tpu.memory_space<smem>>
    %c3_88 = arith.constant 3 : index
    %c0_89 = arith.constant 0 : index
    %49 = memref.load %arg5[%c3_88, %c0_89] : memref<4x4xf32, #tpu.memory_space<smem>>
    %c3_90 = arith.constant 3 : index
    %c1_91 = arith.constant 1 : index
    %50 = memref.load %arg5[%c3_90, %c1_91] : memref<4x4xf32, #tpu.memory_space<smem>>
    %c3_92 = arith.constant 3 : index
    %c2_93 = arith.constant 2 : index
    %51 = memref.load %arg5[%c3_92, %c2_93] : memref<4x4xf32, #tpu.memory_space<smem>>
    %cst = arith.constant 0.000000e+00 : f32
    %52 = vector.broadcast %cst : f32 to vector<3x256xf32>
    %53 = vector.extract_strided_slice %3 {offsets = [0, 239], sizes = [3, 17], strides = [1, 1]} : vector<3x256xf32> to vector<3x17xf32>
    %54 = vector.extract_strided_slice %3 {offsets = [0, 0], sizes = [3, 239], strides = [1, 1]} : vector<3x256xf32> to vector<3x239xf32>
    %55 = tpu.concatenate %53, %54 in 1 : vector<3x17xf32>, vector<3x239xf32> -> vector<3x256xf32>
    %56 = vector.broadcast %4 : vector<1x256xf32> to vector<3x256xf32>
    %57 = arith.mulf %56, %55 : vector<3x256xf32>
    %58 = arith.subf %57, %3 : vector<3x256xf32>
    %59 = arith.mulf %58, %58 : vector<3x256xf32>
    %cst_94 = arith.constant 0.000000e+00 : f32
    %60 = vector.broadcast %cst_94 : f32 to vector<3x256xf32>
    %61 = arith.subf %60, %59 : vector<3x256xf32>
    %cst_95 = arith.constant 0.222222224 : f32
    %62 = vector.broadcast %cst_95 : f32 to vector<3x256xf32>
    %63 = arith.mulf %61, %62 : vector<3x256xf32>
    %64 = math.exp %63 : vector<3x256xf32>
    %cst_96 = arith.constant 0.641180396 : f32
    %65 = vector.broadcast %cst_96 : f32 to vector<3x256xf32>
    %66 = arith.mulf %65, %64 : vector<3x256xf32>
    %67 = arith.addf %52, %66 : vector<3x256xf32>
    %68 = vector.extract_strided_slice %3 {offsets = [0, 240], sizes = [3, 16], strides = [1, 1]} : vector<3x256xf32> to vector<3x16xf32>
    %69 = vector.extract_strided_slice %3 {offsets = [0, 0], sizes = [3, 240], strides = [1, 1]} : vector<3x256xf32> to vector<3x240xf32>
    %70 = tpu.concatenate %68, %69 in 1 : vector<3x16xf32>, vector<3x240xf32> -> vector<3x256xf32>
    %71 = vector.broadcast %5 : vector<1x256xf32> to vector<3x256xf32>
    %72 = arith.mulf %71, %70 : vector<3x256xf32>
    %73 = arith.subf %72, %3 : vector<3x256xf32>
    %74 = arith.mulf %73, %73 : vector<3x256xf32>
    %cst_97 = arith.constant 0.000000e+00 : f32
    %75 = vector.broadcast %cst_97 : f32 to vector<3x256xf32>
    %76 = arith.subf %75, %74 : vector<3x256xf32>
    %cst_98 = arith.constant 0.222222224 : f32
    %77 = vector.broadcast %cst_98 : f32 to vector<3x256xf32>
    %78 = arith.mulf %76, %77 : vector<3x256xf32>
    %79 = math.exp %78 : vector<3x256xf32>
    %cst_99 = arith.constant 0.800737381 : f32
    %80 = vector.broadcast %cst_99 : f32 to vector<3x256xf32>
    %81 = arith.mulf %80, %79 : vector<3x256xf32>
    %82 = arith.addf %67, %81 : vector<3x256xf32>
    %83 = vector.extract_strided_slice %3 {offsets = [0, 241], sizes = [3, 15], strides = [1, 1]} : vector<3x256xf32> to vector<3x15xf32>
    %84 = vector.extract_strided_slice %3 {offsets = [0, 0], sizes = [3, 241], strides = [1, 1]} : vector<3x256xf32> to vector<3x241xf32>
    %85 = tpu.concatenate %83, %84 in 1 : vector<3x15xf32>, vector<3x241xf32> -> vector<3x256xf32>
    %86 = vector.broadcast %6 : vector<1x256xf32> to vector<3x256xf32>
    %87 = arith.mulf %86, %85 : vector<3x256xf32>
    %88 = arith.subf %87, %3 : vector<3x256xf32>
    %89 = arith.mulf %88, %88 : vector<3x256xf32>
    %cst_100 = arith.constant 0.000000e+00 : f32
    %90 = vector.broadcast %cst_100 : f32 to vector<3x256xf32>
    %91 = arith.subf %90, %89 : vector<3x256xf32>
    %cst_101 = arith.constant 0.222222224 : f32
    %92 = vector.broadcast %cst_101 : f32 to vector<3x256xf32>
    %93 = arith.mulf %91, %92 : vector<3x256xf32>
    %94 = math.exp %93 : vector<3x256xf32>
    %cst_102 = arith.constant 0.641180396 : f32
    %95 = vector.broadcast %cst_102 : f32 to vector<3x256xf32>
    %96 = arith.mulf %95, %94 : vector<3x256xf32>
    %97 = arith.addf %82, %96 : vector<3x256xf32>
    %98 = vector.extract_strided_slice %3 {offsets = [0, 255], sizes = [3, 1], strides = [1, 1]} : vector<3x256xf32> to vector<3x1xf32>
    %99 = vector.extract_strided_slice %3 {offsets = [0, 0], sizes = [3, 255], strides = [1, 1]} : vector<3x256xf32> to vector<3x255xf32>
    %100 = tpu.concatenate %98, %99 in 1 : vector<3x1xf32>, vector<3x255xf32> -> vector<3x256xf32>
    %101 = vector.broadcast %7 : vector<1x256xf32> to vector<3x256xf32>
    %102 = arith.mulf %101, %100 : vector<3x256xf32>
    %103 = arith.subf %102, %3 : vector<3x256xf32>
    %104 = arith.mulf %103, %103 : vector<3x256xf32>
    %cst_103 = arith.constant 0.000000e+00 : f32
    %105 = vector.broadcast %cst_103 : f32 to vector<3x256xf32>
    %106 = arith.subf %105, %104 : vector<3x256xf32>
    %cst_104 = arith.constant 0.222222224 : f32
    %107 = vector.broadcast %cst_104 : f32 to vector<3x256xf32>
    %108 = arith.mulf %106, %107 : vector<3x256xf32>
    %109 = math.exp %108 : vector<3x256xf32>
    %cst_105 = arith.constant 0.800737381 : f32
    %110 = vector.broadcast %cst_105 : f32 to vector<3x256xf32>
    %111 = arith.mulf %110, %109 : vector<3x256xf32>
    %112 = arith.addf %97, %111 : vector<3x256xf32>
    %113 = vector.extract_strided_slice %3 {offsets = [0, 1], sizes = [3, 255], strides = [1, 1]} : vector<3x256xf32> to vector<3x255xf32>
    %114 = vector.extract_strided_slice %3 {offsets = [0, 0], sizes = [3, 1], strides = [1, 1]} : vector<3x256xf32> to vector<3x1xf32>
    %115 = tpu.concatenate %113, %114 in 1 : vector<3x255xf32>, vector<3x1xf32> -> vector<3x256xf32>
    %116 = vector.broadcast %8 : vector<1x256xf32> to vector<3x256xf32>
    %117 = arith.mulf %116, %115 : vector<3x256xf32>
    %118 = arith.subf %117, %3 : vector<3x256xf32>
    %119 = arith.mulf %118, %118 : vector<3x256xf32>
    %cst_106 = arith.constant 0.000000e+00 : f32
    %120 = vector.broadcast %cst_106 : f32 to vector<3x256xf32>
    %121 = arith.subf %120, %119 : vector<3x256xf32>
    %cst_107 = arith.constant 0.222222224 : f32
    %122 = vector.broadcast %cst_107 : f32 to vector<3x256xf32>
    %123 = arith.mulf %121, %122 : vector<3x256xf32>
    %124 = math.exp %123 : vector<3x256xf32>
    %cst_108 = arith.constant 0.800737381 : f32
    %125 = vector.broadcast %cst_108 : f32 to vector<3x256xf32>
    %126 = arith.mulf %125, %124 : vector<3x256xf32>
    %127 = arith.addf %112, %126 : vector<3x256xf32>
    %128 = vector.extract_strided_slice %3 {offsets = [0, 15], sizes = [3, 241], strides = [1, 1]} : vector<3x256xf32> to vector<3x241xf32>
    %129 = vector.extract_strided_slice %3 {offsets = [0, 0], sizes = [3, 15], strides = [1, 1]} : vector<3x256xf32> to vector<3x15xf32>
    %130 = tpu.concatenate %128, %129 in 1 : vector<3x241xf32>, vector<3x15xf32> -> vector<3x256xf32>
    %131 = vector.broadcast %9 : vector<1x256xf32> to vector<3x256xf32>
    %132 = arith.mulf %131, %130 : vector<3x256xf32>
    %133 = arith.subf %132, %3 : vector<3x256xf32>
    %134 = arith.mulf %133, %133 : vector<3x256xf32>
    %cst_109 = arith.constant 0.000000e+00 : f32
    %135 = vector.broadcast %cst_109 : f32 to vector<3x256xf32>
    %136 = arith.subf %135, %134 : vector<3x256xf32>
    %cst_110 = arith.constant 0.222222224 : f32
    %137 = vector.broadcast %cst_110 : f32 to vector<3x256xf32>
    %138 = arith.mulf %136, %137 : vector<3x256xf32>
    %139 = math.exp %138 : vector<3x256xf32>
    %cst_111 = arith.constant 0.641180396 : f32
    %140 = vector.broadcast %cst_111 : f32 to vector<3x256xf32>
    %141 = arith.mulf %140, %139 : vector<3x256xf32>
    %142 = arith.addf %127, %141 : vector<3x256xf32>
    %143 = vector.extract_strided_slice %3 {offsets = [0, 16], sizes = [3, 240], strides = [1, 1]} : vector<3x256xf32> to vector<3x240xf32>
    %144 = vector.extract_strided_slice %3 {offsets = [0, 0], sizes = [3, 16], strides = [1, 1]} : vector<3x256xf32> to vector<3x16xf32>
    %145 = tpu.concatenate %143, %144 in 1 : vector<3x240xf32>, vector<3x16xf32> -> vector<3x256xf32>
    %146 = vector.broadcast %10 : vector<1x256xf32> to vector<3x256xf32>
    %147 = arith.mulf %146, %145 : vector<3x256xf32>
    %148 = arith.subf %147, %3 : vector<3x256xf32>
    %149 = arith.mulf %148, %148 : vector<3x256xf32>
    %cst_112 = arith.constant 0.000000e+00 : f32
    %150 = vector.broadcast %cst_112 : f32 to vector<3x256xf32>
    %151 = arith.subf %150, %149 : vector<3x256xf32>
    %cst_113 = arith.constant 0.222222224 : f32
    %152 = vector.broadcast %cst_113 : f32 to vector<3x256xf32>
    %153 = arith.mulf %151, %152 : vector<3x256xf32>
    %154 = math.exp %153 : vector<3x256xf32>
    %cst_114 = arith.constant 0.800737381 : f32
    %155 = vector.broadcast %cst_114 : f32 to vector<3x256xf32>
    %156 = arith.mulf %155, %154 : vector<3x256xf32>
    %157 = arith.addf %142, %156 : vector<3x256xf32>
    %158 = vector.extract_strided_slice %3 {offsets = [0, 17], sizes = [3, 239], strides = [1, 1]} : vector<3x256xf32> to vector<3x239xf32>
    %159 = vector.extract_strided_slice %3 {offsets = [0, 0], sizes = [3, 17], strides = [1, 1]} : vector<3x256xf32> to vector<3x17xf32>
    %160 = tpu.concatenate %158, %159 in 1 : vector<3x239xf32>, vector<3x17xf32> -> vector<3x256xf32>
    %161 = vector.broadcast %11 : vector<1x256xf32> to vector<3x256xf32>
    %162 = arith.mulf %161, %160 : vector<3x256xf32>
    %163 = arith.subf %162, %3 : vector<3x256xf32>
    %164 = arith.mulf %163, %163 : vector<3x256xf32>
    %cst_115 = arith.constant 0.000000e+00 : f32
    %165 = vector.broadcast %cst_115 : f32 to vector<3x256xf32>
    %166 = arith.subf %165, %164 : vector<3x256xf32>
    %cst_116 = arith.constant 0.222222224 : f32
    %167 = vector.broadcast %cst_116 : f32 to vector<3x256xf32>
    %168 = arith.mulf %166, %167 : vector<3x256xf32>
    %169 = math.exp %168 : vector<3x256xf32>
    %cst_117 = arith.constant 0.641180396 : f32
    %170 = vector.broadcast %cst_117 : f32 to vector<3x256xf32>
    %171 = arith.mulf %170, %169 : vector<3x256xf32>
    %172 = arith.addf %157, %171 : vector<3x256xf32>
    %cst_118 = arith.constant 1.000000e+00 : f32
    %173 = vector.broadcast %cst_118 : f32 to vector<3x256xf32>
    %174 = arith.divf %173, %172 : vector<3x256xf32>
    %cst_119 = arith.constant 0.000000e+00 : f32
    %175 = vector.broadcast %cst_119 : f32 to vector<3x256xf32>
    %176 = vector.extract_strided_slice %3 {offsets = [0, 239], sizes = [3, 17], strides = [1, 1]} : vector<3x256xf32> to vector<3x17xf32>
    %177 = vector.extract_strided_slice %3 {offsets = [0, 0], sizes = [3, 239], strides = [1, 1]} : vector<3x256xf32> to vector<3x239xf32>
    %178 = tpu.concatenate %176, %177 in 1 : vector<3x17xf32>, vector<3x239xf32> -> vector<3x256xf32>
    %179 = vector.broadcast %4 : vector<1x256xf32> to vector<3x256xf32>
    %180 = arith.mulf %179, %178 : vector<3x256xf32>
    %181 = arith.subf %180, %3 : vector<3x256xf32>
    %182 = arith.mulf %181, %181 : vector<3x256xf32>
    %cst_120 = arith.constant 0.000000e+00 : f32
    %183 = vector.broadcast %cst_120 : f32 to vector<3x256xf32>
    %184 = arith.subf %183, %182 : vector<3x256xf32>
    %cst_121 = arith.constant 8.000000e-02 : f32
    %185 = vector.broadcast %cst_121 : f32 to vector<3x256xf32>
    %186 = arith.mulf %184, %185 : vector<3x256xf32>
    %187 = math.exp %186 : vector<3x256xf32>
    %cst_122 = arith.constant 0.852143764 : f32
    %188 = vector.broadcast %cst_122 : f32 to vector<3x256xf32>
    %189 = arith.mulf %188, %187 : vector<3x256xf32>
    %190 = arith.addf %175, %189 : vector<3x256xf32>
    %191 = vector.extract_strided_slice %3 {offsets = [0, 240], sizes = [3, 16], strides = [1, 1]} : vector<3x256xf32> to vector<3x16xf32>
    %192 = vector.extract_strided_slice %3 {offsets = [0, 0], sizes = [3, 240], strides = [1, 1]} : vector<3x256xf32> to vector<3x240xf32>
    %193 = tpu.concatenate %191, %192 in 1 : vector<3x16xf32>, vector<3x240xf32> -> vector<3x256xf32>
    %194 = vector.broadcast %5 : vector<1x256xf32> to vector<3x256xf32>
    %195 = arith.mulf %194, %193 : vector<3x256xf32>
    %196 = arith.subf %195, %3 : vector<3x256xf32>
    %197 = arith.mulf %196, %196 : vector<3x256xf32>
    %cst_123 = arith.constant 0.000000e+00 : f32
    %198 = vector.broadcast %cst_123 : f32 to vector<3x256xf32>
    %199 = arith.subf %198, %197 : vector<3x256xf32>
    %cst_124 = arith.constant 8.000000e-02 : f32
    %200 = vector.broadcast %cst_124 : f32 to vector<3x256xf32>
    %201 = arith.mulf %199, %200 : vector<3x256xf32>
    %202 = math.exp %201 : vector<3x256xf32>
    %cst_125 = arith.constant 0.923116326 : f32
    %203 = vector.broadcast %cst_125 : f32 to vector<3x256xf32>
    %204 = arith.mulf %203, %202 : vector<3x256xf32>
    %205 = arith.addf %190, %204 : vector<3x256xf32>
    %206 = vector.extract_strided_slice %3 {offsets = [0, 241], sizes = [3, 15], strides = [1, 1]} : vector<3x256xf32> to vector<3x15xf32>
    %207 = vector.extract_strided_slice %3 {offsets = [0, 0], sizes = [3, 241], strides = [1, 1]} : vector<3x256xf32> to vector<3x241xf32>
    %208 = tpu.concatenate %206, %207 in 1 : vector<3x15xf32>, vector<3x241xf32> -> vector<3x256xf32>
    %209 = vector.broadcast %6 : vector<1x256xf32> to vector<3x256xf32>
    %210 = arith.mulf %209, %208 : vector<3x256xf32>
    %211 = arith.subf %210, %3 : vector<3x256xf32>
    %212 = arith.mulf %211, %211 : vector<3x256xf32>
    %cst_126 = arith.constant 0.000000e+00 : f32
    %213 = vector.broadcast %cst_126 : f32 to vector<3x256xf32>
    %214 = arith.subf %213, %212 : vector<3x256xf32>
    %cst_127 = arith.constant 8.000000e-02 : f32
    %215 = vector.broadcast %cst_127 : f32 to vector<3x256xf32>
    %216 = arith.mulf %214, %215 : vector<3x256xf32>
    %217 = math.exp %216 : vector<3x256xf32>
    %cst_128 = arith.constant 0.852143764 : f32
    %218 = vector.broadcast %cst_128 : f32 to vector<3x256xf32>
    %219 = arith.mulf %218, %217 : vector<3x256xf32>
    %220 = arith.addf %205, %219 : vector<3x256xf32>
    %221 = vector.extract_strided_slice %3 {offsets = [0, 255], sizes = [3, 1], strides = [1, 1]} : vector<3x256xf32> to vector<3x1xf32>
    %222 = vector.extract_strided_slice %3 {offsets = [0, 0], sizes = [3, 255], strides = [1, 1]} : vector<3x256xf32> to vector<3x255xf32>
    %223 = tpu.concatenate %221, %222 in 1 : vector<3x1xf32>, vector<3x255xf32> -> vector<3x256xf32>
    %224 = vector.broadcast %7 : vector<1x256xf32> to vector<3x256xf32>
    %225 = arith.mulf %224, %223 : vector<3x256xf32>
    %226 = arith.subf %225, %3 : vector<3x256xf32>
    %227 = arith.mulf %226, %226 : vector<3x256xf32>
    %cst_129 = arith.constant 0.000000e+00 : f32
    %228 = vector.broadcast %cst_129 : f32 to vector<3x256xf32>
    %229 = arith.subf %228, %227 : vector<3x256xf32>
    %cst_130 = arith.constant 8.000000e-02 : f32
    %230 = vector.broadcast %cst_130 : f32 to vector<3x256xf32>
    %231 = arith.mulf %229, %230 : vector<3x256xf32>
    %232 = math.exp %231 : vector<3x256xf32>
    %cst_131 = arith.constant 0.923116326 : f32
    %233 = vector.broadcast %cst_131 : f32 to vector<3x256xf32>
    %234 = arith.mulf %233, %232 : vector<3x256xf32>
    %235 = arith.addf %220, %234 : vector<3x256xf32>
    %236 = vector.extract_strided_slice %3 {offsets = [0, 1], sizes = [3, 255], strides = [1, 1]} : vector<3x256xf32> to vector<3x255xf32>
    %237 = vector.extract_strided_slice %3 {offsets = [0, 0], sizes = [3, 1], strides = [1, 1]} : vector<3x256xf32> to vector<3x1xf32>
    %238 = tpu.concatenate %236, %237 in 1 : vector<3x255xf32>, vector<3x1xf32> -> vector<3x256xf32>
    %239 = vector.broadcast %8 : vector<1x256xf32> to vector<3x256xf32>
    %240 = arith.mulf %239, %238 : vector<3x256xf32>
    %241 = arith.subf %240, %3 : vector<3x256xf32>
    %242 = arith.mulf %241, %241 : vector<3x256xf32>
    %cst_132 = arith.constant 0.000000e+00 : f32
    %243 = vector.broadcast %cst_132 : f32 to vector<3x256xf32>
    %244 = arith.subf %243, %242 : vector<3x256xf32>
    %cst_133 = arith.constant 8.000000e-02 : f32
    %245 = vector.broadcast %cst_133 : f32 to vector<3x256xf32>
    %246 = arith.mulf %244, %245 : vector<3x256xf32>
    %247 = math.exp %246 : vector<3x256xf32>
    %cst_134 = arith.constant 0.923116326 : f32
    %248 = vector.broadcast %cst_134 : f32 to vector<3x256xf32>
    %249 = arith.mulf %248, %247 : vector<3x256xf32>
    %250 = arith.addf %235, %249 : vector<3x256xf32>
    %251 = vector.extract_strided_slice %3 {offsets = [0, 15], sizes = [3, 241], strides = [1, 1]} : vector<3x256xf32> to vector<3x241xf32>
    %252 = vector.extract_strided_slice %3 {offsets = [0, 0], sizes = [3, 15], strides = [1, 1]} : vector<3x256xf32> to vector<3x15xf32>
    %253 = tpu.concatenate %251, %252 in 1 : vector<3x241xf32>, vector<3x15xf32> -> vector<3x256xf32>
    %254 = vector.broadcast %9 : vector<1x256xf32> to vector<3x256xf32>
    %255 = arith.mulf %254, %253 : vector<3x256xf32>
    %256 = arith.subf %255, %3 : vector<3x256xf32>
    %257 = arith.mulf %256, %256 : vector<3x256xf32>
    %cst_135 = arith.constant 0.000000e+00 : f32
    %258 = vector.broadcast %cst_135 : f32 to vector<3x256xf32>
    %259 = arith.subf %258, %257 : vector<3x256xf32>
    %cst_136 = arith.constant 8.000000e-02 : f32
    %260 = vector.broadcast %cst_136 : f32 to vector<3x256xf32>
    %261 = arith.mulf %259, %260 : vector<3x256xf32>
    %262 = math.exp %261 : vector<3x256xf32>
    %cst_137 = arith.constant 0.852143764 : f32
    %263 = vector.broadcast %cst_137 : f32 to vector<3x256xf32>
    %264 = arith.mulf %263, %262 : vector<3x256xf32>
    %265 = arith.addf %250, %264 : vector<3x256xf32>
    %266 = vector.extract_strided_slice %3 {offsets = [0, 16], sizes = [3, 240], strides = [1, 1]} : vector<3x256xf32> to vector<3x240xf32>
    %267 = vector.extract_strided_slice %3 {offsets = [0, 0], sizes = [3, 16], strides = [1, 1]} : vector<3x256xf32> to vector<3x16xf32>
    %268 = tpu.concatenate %266, %267 in 1 : vector<3x240xf32>, vector<3x16xf32> -> vector<3x256xf32>
    %269 = vector.broadcast %10 : vector<1x256xf32> to vector<3x256xf32>
    %270 = arith.mulf %269, %268 : vector<3x256xf32>
    %271 = arith.subf %270, %3 : vector<3x256xf32>
    %272 = arith.mulf %271, %271 : vector<3x256xf32>
    %cst_138 = arith.constant 0.000000e+00 : f32
    %273 = vector.broadcast %cst_138 : f32 to vector<3x256xf32>
    %274 = arith.subf %273, %272 : vector<3x256xf32>
    %cst_139 = arith.constant 8.000000e-02 : f32
    %275 = vector.broadcast %cst_139 : f32 to vector<3x256xf32>
    %276 = arith.mulf %274, %275 : vector<3x256xf32>
    %277 = math.exp %276 : vector<3x256xf32>
    %cst_140 = arith.constant 0.923116326 : f32
    %278 = vector.broadcast %cst_140 : f32 to vector<3x256xf32>
    %279 = arith.mulf %278, %277 : vector<3x256xf32>
    %280 = arith.addf %265, %279 : vector<3x256xf32>
    %281 = vector.extract_strided_slice %3 {offsets = [0, 17], sizes = [3, 239], strides = [1, 1]} : vector<3x256xf32> to vector<3x239xf32>
    %282 = vector.extract_strided_slice %3 {offsets = [0, 0], sizes = [3, 17], strides = [1, 1]} : vector<3x256xf32> to vector<3x17xf32>
    %283 = tpu.concatenate %281, %282 in 1 : vector<3x239xf32>, vector<3x17xf32> -> vector<3x256xf32>
    %284 = vector.broadcast %11 : vector<1x256xf32> to vector<3x256xf32>
    %285 = arith.mulf %284, %283 : vector<3x256xf32>
    %286 = arith.subf %285, %3 : vector<3x256xf32>
    %287 = arith.mulf %286, %286 : vector<3x256xf32>
    %cst_141 = arith.constant 0.000000e+00 : f32
    %288 = vector.broadcast %cst_141 : f32 to vector<3x256xf32>
    %289 = arith.subf %288, %287 : vector<3x256xf32>
    %cst_142 = arith.constant 8.000000e-02 : f32
    %290 = vector.broadcast %cst_142 : f32 to vector<3x256xf32>
    %291 = arith.mulf %289, %290 : vector<3x256xf32>
    %292 = math.exp %291 : vector<3x256xf32>
    %cst_143 = arith.constant 0.852143764 : f32
    %293 = vector.broadcast %cst_143 : f32 to vector<3x256xf32>
    %294 = arith.mulf %293, %292 : vector<3x256xf32>
    %295 = arith.addf %280, %294 : vector<3x256xf32>
    %cst_144 = arith.constant 1.000000e+00 : f32
    %296 = vector.broadcast %cst_144 : f32 to vector<3x256xf32>
    %297 = arith.divf %296, %295 : vector<3x256xf32>
    %cst_145 = arith.constant 0.000000e+00 : f32
    %298 = vector.broadcast %cst_145 : f32 to vector<1x256xf32>
    %cst_146 = arith.constant 0.641180396 : f32
    %299 = vector.broadcast %cst_146 : f32 to vector<1x256xf32>
    %300 = arith.mulf %299, %4 : vector<1x256xf32>
    %301 = arith.addf %298, %300 : vector<1x256xf32>
    %cst_147 = arith.constant 0.800737381 : f32
    %302 = vector.broadcast %cst_147 : f32 to vector<1x256xf32>
    %303 = arith.mulf %302, %5 : vector<1x256xf32>
    %304 = arith.addf %301, %303 : vector<1x256xf32>
    %cst_148 = arith.constant 0.641180396 : f32
    %305 = vector.broadcast %cst_148 : f32 to vector<1x256xf32>
    %306 = arith.mulf %305, %6 : vector<1x256xf32>
    %307 = arith.addf %304, %306 : vector<1x256xf32>
    %cst_149 = arith.constant 0.800737381 : f32
    %308 = vector.broadcast %cst_149 : f32 to vector<1x256xf32>
    %309 = arith.mulf %308, %7 : vector<1x256xf32>
    %310 = arith.addf %307, %309 : vector<1x256xf32>
    %cst_150 = arith.constant 0.800737381 : f32
    %311 = vector.broadcast %cst_150 : f32 to vector<1x256xf32>
    %312 = arith.mulf %311, %8 : vector<1x256xf32>
    %313 = arith.addf %310, %312 : vector<1x256xf32>
    %cst_151 = arith.constant 0.641180396 : f32
    %314 = vector.broadcast %cst_151 : f32 to vector<1x256xf32>
    %315 = arith.mulf %314, %9 : vector<1x256xf32>
    %316 = arith.addf %313, %315 : vector<1x256xf32>
    %cst_152 = arith.constant 0.800737381 : f32
    %317 = vector.broadcast %cst_152 : f32 to vector<1x256xf32>
    %318 = arith.mulf %317, %10 : vector<1x256xf32>
    %319 = arith.addf %316, %318 : vector<1x256xf32>
    %cst_153 = arith.constant 0.641180396 : f32
    %320 = vector.broadcast %cst_153 : f32 to vector<1x256xf32>
    %321 = arith.mulf %320, %11 : vector<1x256xf32>
    %322 = arith.addf %319, %321 : vector<1x256xf32>
    %cst_154 = arith.constant 0.000000e+00 : f32
    %323 = vector.broadcast %cst_154 : f32 to vector<1x256xf32>
    %324 = arith.cmpf ogt, %322, %323 : vector<1x256xf32>
    %cst_155 = arith.constant 1.000000e+00 : f32
    %325 = vector.broadcast %cst_155 : f32 to vector<1x256xf32>
    %326 = arith.divf %325, %322 : vector<1x256xf32>
    %cst_156 = arith.constant 0.000000e+00 : f32
    %327 = vector.broadcast %cst_156 : f32 to vector<1x256xf32>
    %328 = arith.select %324, %326, %327 : vector<1x256xi1>, vector<1x256xf32>
    %cst_157 = arith.constant 0.000000e+00 : f32
    %329 = vector.broadcast %cst_157 : f32 to vector<1x256xf32>
    %cst_158 = arith.constant 0.000000e+00 : f32
    %330 = vector.broadcast %cst_158 : f32 to vector<1x256xf32>
    %cst_159 = arith.constant 0.000000e+00 : f32
    %331 = vector.broadcast %cst_159 : f32 to vector<1x256xf32>
    %cst_160 = arith.constant 0.000000e+00 : f32
    %332 = vector.broadcast %cst_160 : f32 to vector<1x256xf32>
    %333 = vector.extract_strided_slice %3 {offsets = [0, 239], sizes = [3, 17], strides = [1, 1]} : vector<3x256xf32> to vector<3x17xf32>
    %334 = vector.extract_strided_slice %3 {offsets = [0, 0], sizes = [3, 239], strides = [1, 1]} : vector<3x256xf32> to vector<3x239xf32>
    %335 = tpu.concatenate %333, %334 in 1 : vector<3x17xf32>, vector<3x239xf32> -> vector<3x256xf32>
    %336 = vector.broadcast %4 : vector<1x256xf32> to vector<3x256xf32>
    %337 = arith.mulf %336, %335 : vector<3x256xf32>
    %338 = arith.subf %337, %3 : vector<3x256xf32>
    %339 = arith.mulf %338, %338 : vector<3x256xf32>
    %cst_161 = arith.constant 0.000000e+00 : f32
    %340 = vector.broadcast %cst_161 : f32 to vector<3x256xf32>
    %341 = arith.subf %340, %339 : vector<3x256xf32>
    %cst_162 = arith.constant 0.222222224 : f32
    %342 = vector.broadcast %cst_162 : f32 to vector<3x256xf32>
    %343 = arith.mulf %341, %342 : vector<3x256xf32>
    %344 = math.exp %343 : vector<3x256xf32>
    %cst_163 = arith.constant 0.641180396 : f32
    %345 = vector.broadcast %cst_163 : f32 to vector<3x256xf32>
    %346 = arith.mulf %345, %344 : vector<3x256xf32>
    %347 = arith.mulf %346, %174 : vector<3x256xf32>
    %348 = vector.extract_strided_slice %347 {offsets = [0, 0], sizes = [1, 256], strides = [1, 1]} : vector<3x256xf32> to vector<1x256xf32>
    %349 = vector.broadcast %12 : f32 to vector<1x256xf32>
    %350 = arith.mulf %349, %348 : vector<1x256xf32>
    %351 = arith.addf %329, %350 : vector<1x256xf32>
    %352 = vector.broadcast %13 : f32 to vector<1x256xf32>
    %353 = arith.mulf %352, %348 : vector<1x256xf32>
    %354 = arith.addf %330, %353 : vector<1x256xf32>
    %355 = vector.broadcast %14 : f32 to vector<1x256xf32>
    %356 = arith.mulf %355, %348 : vector<1x256xf32>
    %357 = arith.addf %331, %356 : vector<1x256xf32>
    %358 = vector.broadcast %15 : f32 to vector<1x256xf32>
    %359 = arith.mulf %358, %348 : vector<1x256xf32>
    %360 = arith.addf %332, %359 : vector<1x256xf32>
    %361 = vector.extract_strided_slice %347 {offsets = [1, 0], sizes = [1, 256], strides = [1, 1]} : vector<3x256xf32> to vector<1x256xf32>
    %362 = vector.broadcast %16 : f32 to vector<1x256xf32>
    %363 = arith.mulf %362, %361 : vector<1x256xf32>
    %364 = arith.addf %351, %363 : vector<1x256xf32>
    %365 = vector.broadcast %17 : f32 to vector<1x256xf32>
    %366 = arith.mulf %365, %361 : vector<1x256xf32>
    %367 = arith.addf %354, %366 : vector<1x256xf32>
    %368 = vector.broadcast %18 : f32 to vector<1x256xf32>
    %369 = arith.mulf %368, %361 : vector<1x256xf32>
    %370 = arith.addf %357, %369 : vector<1x256xf32>
    %371 = vector.broadcast %19 : f32 to vector<1x256xf32>
    %372 = arith.mulf %371, %361 : vector<1x256xf32>
    %373 = arith.addf %360, %372 : vector<1x256xf32>
    %374 = vector.extract_strided_slice %347 {offsets = [2, 0], sizes = [1, 256], strides = [1, 1]} : vector<3x256xf32> to vector<1x256xf32>
    %375 = vector.broadcast %20 : f32 to vector<1x256xf32>
    %376 = arith.mulf %375, %374 : vector<1x256xf32>
    %377 = arith.addf %364, %376 : vector<1x256xf32>
    %378 = vector.broadcast %21 : f32 to vector<1x256xf32>
    %379 = arith.mulf %378, %374 : vector<1x256xf32>
    %380 = arith.addf %367, %379 : vector<1x256xf32>
    %381 = vector.broadcast %22 : f32 to vector<1x256xf32>
    %382 = arith.mulf %381, %374 : vector<1x256xf32>
    %383 = arith.addf %370, %382 : vector<1x256xf32>
    %384 = vector.broadcast %23 : f32 to vector<1x256xf32>
    %385 = arith.mulf %384, %374 : vector<1x256xf32>
    %386 = arith.addf %373, %385 : vector<1x256xf32>
    %387 = vector.extract_strided_slice %3 {offsets = [0, 239], sizes = [3, 17], strides = [1, 1]} : vector<3x256xf32> to vector<3x17xf32>
    %388 = vector.extract_strided_slice %3 {offsets = [0, 0], sizes = [3, 239], strides = [1, 1]} : vector<3x256xf32> to vector<3x239xf32>
    %389 = tpu.concatenate %387, %388 in 1 : vector<3x17xf32>, vector<3x239xf32> -> vector<3x256xf32>
    %390 = vector.broadcast %4 : vector<1x256xf32> to vector<3x256xf32>
    %391 = arith.mulf %390, %389 : vector<3x256xf32>
    %392 = arith.subf %391, %3 : vector<3x256xf32>
    %393 = arith.mulf %392, %392 : vector<3x256xf32>
    %cst_164 = arith.constant 0.000000e+00 : f32
    %394 = vector.broadcast %cst_164 : f32 to vector<3x256xf32>
    %395 = arith.subf %394, %393 : vector<3x256xf32>
    %cst_165 = arith.constant 8.000000e-02 : f32
    %396 = vector.broadcast %cst_165 : f32 to vector<3x256xf32>
    %397 = arith.mulf %395, %396 : vector<3x256xf32>
    %398 = math.exp %397 : vector<3x256xf32>
    %cst_166 = arith.constant 0.852143764 : f32
    %399 = vector.broadcast %cst_166 : f32 to vector<3x256xf32>
    %400 = arith.mulf %399, %398 : vector<3x256xf32>
    %401 = arith.mulf %400, %297 : vector<3x256xf32>
    %402 = vector.extract_strided_slice %401 {offsets = [0, 0], sizes = [1, 256], strides = [1, 1]} : vector<3x256xf32> to vector<1x256xf32>
    %403 = vector.broadcast %24 : f32 to vector<1x256xf32>
    %404 = arith.mulf %403, %402 : vector<1x256xf32>
    %405 = arith.addf %377, %404 : vector<1x256xf32>
    %406 = vector.broadcast %25 : f32 to vector<1x256xf32>
    %407 = arith.mulf %406, %402 : vector<1x256xf32>
    %408 = arith.addf %380, %407 : vector<1x256xf32>
    %409 = vector.broadcast %26 : f32 to vector<1x256xf32>
    %410 = arith.mulf %409, %402 : vector<1x256xf32>
    %411 = arith.addf %383, %410 : vector<1x256xf32>
    %412 = vector.broadcast %27 : f32 to vector<1x256xf32>
    %413 = arith.mulf %412, %402 : vector<1x256xf32>
    %414 = arith.addf %386, %413 : vector<1x256xf32>
    %415 = vector.extract_strided_slice %401 {offsets = [1, 0], sizes = [1, 256], strides = [1, 1]} : vector<3x256xf32> to vector<1x256xf32>
    %416 = vector.broadcast %28 : f32 to vector<1x256xf32>
    %417 = arith.mulf %416, %415 : vector<1x256xf32>
    %418 = arith.addf %405, %417 : vector<1x256xf32>
    %419 = vector.broadcast %29 : f32 to vector<1x256xf32>
    %420 = arith.mulf %419, %415 : vector<1x256xf32>
    %421 = arith.addf %408, %420 : vector<1x256xf32>
    %422 = vector.broadcast %30 : f32 to vector<1x256xf32>
    %423 = arith.mulf %422, %415 : vector<1x256xf32>
    %424 = arith.addf %411, %423 : vector<1x256xf32>
    %425 = vector.broadcast %31 : f32 to vector<1x256xf32>
    %426 = arith.mulf %425, %415 : vector<1x256xf32>
    %427 = arith.addf %414, %426 : vector<1x256xf32>
    %428 = vector.extract_strided_slice %401 {offsets = [2, 0], sizes = [1, 256], strides = [1, 1]} : vector<3x256xf32> to vector<1x256xf32>
    %429 = vector.broadcast %32 : f32 to vector<1x256xf32>
    %430 = arith.mulf %429, %428 : vector<1x256xf32>
    %431 = arith.addf %418, %430 : vector<1x256xf32>
    %432 = vector.broadcast %33 : f32 to vector<1x256xf32>
    %433 = arith.mulf %432, %428 : vector<1x256xf32>
    %434 = arith.addf %421, %433 : vector<1x256xf32>
    %435 = vector.broadcast %34 : f32 to vector<1x256xf32>
    %436 = arith.mulf %435, %428 : vector<1x256xf32>
    %437 = arith.addf %424, %436 : vector<1x256xf32>
    %438 = vector.broadcast %35 : f32 to vector<1x256xf32>
    %439 = arith.mulf %438, %428 : vector<1x256xf32>
    %440 = arith.addf %427, %439 : vector<1x256xf32>
    %cst_167 = arith.constant 0.641180396 : f32
    %441 = vector.broadcast %cst_167 : f32 to vector<1x256xf32>
    %442 = arith.mulf %441, %328 : vector<1x256xf32>
    %443 = vector.broadcast %36 : f32 to vector<1x256xf32>
    %444 = arith.mulf %443, %442 : vector<1x256xf32>
    %445 = arith.addf %431, %444 : vector<1x256xf32>
    %446 = vector.broadcast %37 : f32 to vector<1x256xf32>
    %447 = arith.mulf %446, %442 : vector<1x256xf32>
    %448 = arith.addf %434, %447 : vector<1x256xf32>
    %449 = vector.broadcast %38 : f32 to vector<1x256xf32>
    %450 = arith.mulf %449, %442 : vector<1x256xf32>
    %451 = arith.addf %437, %450 : vector<1x256xf32>
    %452 = vector.broadcast %39 : f32 to vector<1x256xf32>
    %453 = arith.mulf %452, %442 : vector<1x256xf32>
    %454 = arith.addf %440, %453 : vector<1x256xf32>
    %455 = tpu.concatenate %445, %448, %451, %454 in 0 : vector<1x256xf32>, vector<1x256xf32>, vector<1x256xf32>, vector<1x256xf32> -> vector<4x256xf32>
    %456 = vector.broadcast %4 : vector<1x256xf32> to vector<4x256xf32>
    %457 = arith.mulf %456, %455 : vector<4x256xf32>
    %cst_168 = arith.constant 0.000000e+00 : f32
    %458 = vector.broadcast %cst_168 : f32 to vector<1x256xf32>
    %cst_169 = arith.constant 0.000000e+00 : f32
    %459 = vector.broadcast %cst_169 : f32 to vector<1x256xf32>
    %cst_170 = arith.constant 0.000000e+00 : f32
    %460 = vector.broadcast %cst_170 : f32 to vector<1x256xf32>
    %cst_171 = arith.constant 0.000000e+00 : f32
    %461 = vector.broadcast %cst_171 : f32 to vector<1x256xf32>
    %462 = vector.extract_strided_slice %3 {offsets = [0, 240], sizes = [3, 16], strides = [1, 1]} : vector<3x256xf32> to vector<3x16xf32>
    %463 = vector.extract_strided_slice %3 {offsets = [0, 0], sizes = [3, 240], strides = [1, 1]} : vector<3x256xf32> to vector<3x240xf32>
    %464 = tpu.concatenate %462, %463 in 1 : vector<3x16xf32>, vector<3x240xf32> -> vector<3x256xf32>
    %465 = vector.broadcast %5 : vector<1x256xf32> to vector<3x256xf32>
    %466 = arith.mulf %465, %464 : vector<3x256xf32>
    %467 = arith.subf %466, %3 : vector<3x256xf32>
    %468 = arith.mulf %467, %467 : vector<3x256xf32>
    %cst_172 = arith.constant 0.000000e+00 : f32
    %469 = vector.broadcast %cst_172 : f32 to vector<3x256xf32>
    %470 = arith.subf %469, %468 : vector<3x256xf32>
    %cst_173 = arith.constant 0.222222224 : f32
    %471 = vector.broadcast %cst_173 : f32 to vector<3x256xf32>
    %472 = arith.mulf %470, %471 : vector<3x256xf32>
    %473 = math.exp %472 : vector<3x256xf32>
    %cst_174 = arith.constant 0.800737381 : f32
    %474 = vector.broadcast %cst_174 : f32 to vector<3x256xf32>
    %475 = arith.mulf %474, %473 : vector<3x256xf32>
    %476 = arith.mulf %475, %174 : vector<3x256xf32>
    %477 = vector.extract_strided_slice %476 {offsets = [0, 0], sizes = [1, 256], strides = [1, 1]} : vector<3x256xf32> to vector<1x256xf32>
    %478 = vector.broadcast %12 : f32 to vector<1x256xf32>
    %479 = arith.mulf %478, %477 : vector<1x256xf32>
    %480 = arith.addf %458, %479 : vector<1x256xf32>
    %481 = vector.broadcast %13 : f32 to vector<1x256xf32>
    %482 = arith.mulf %481, %477 : vector<1x256xf32>
    %483 = arith.addf %459, %482 : vector<1x256xf32>
    %484 = vector.broadcast %14 : f32 to vector<1x256xf32>
    %485 = arith.mulf %484, %477 : vector<1x256xf32>
    %486 = arith.addf %460, %485 : vector<1x256xf32>
    %487 = vector.broadcast %15 : f32 to vector<1x256xf32>
    %488 = arith.mulf %487, %477 : vector<1x256xf32>
    %489 = arith.addf %461, %488 : vector<1x256xf32>
    %490 = vector.extract_strided_slice %476 {offsets = [1, 0], sizes = [1, 256], strides = [1, 1]} : vector<3x256xf32> to vector<1x256xf32>
    %491 = vector.broadcast %16 : f32 to vector<1x256xf32>
    %492 = arith.mulf %491, %490 : vector<1x256xf32>
    %493 = arith.addf %480, %492 : vector<1x256xf32>
    %494 = vector.broadcast %17 : f32 to vector<1x256xf32>
    %495 = arith.mulf %494, %490 : vector<1x256xf32>
    %496 = arith.addf %483, %495 : vector<1x256xf32>
    %497 = vector.broadcast %18 : f32 to vector<1x256xf32>
    %498 = arith.mulf %497, %490 : vector<1x256xf32>
    %499 = arith.addf %486, %498 : vector<1x256xf32>
    %500 = vector.broadcast %19 : f32 to vector<1x256xf32>
    %501 = arith.mulf %500, %490 : vector<1x256xf32>
    %502 = arith.addf %489, %501 : vector<1x256xf32>
    %503 = vector.extract_strided_slice %476 {offsets = [2, 0], sizes = [1, 256], strides = [1, 1]} : vector<3x256xf32> to vector<1x256xf32>
    %504 = vector.broadcast %20 : f32 to vector<1x256xf32>
    %505 = arith.mulf %504, %503 : vector<1x256xf32>
    %506 = arith.addf %493, %505 : vector<1x256xf32>
    %507 = vector.broadcast %21 : f32 to vector<1x256xf32>
    %508 = arith.mulf %507, %503 : vector<1x256xf32>
    %509 = arith.addf %496, %508 : vector<1x256xf32>
    %510 = vector.broadcast %22 : f32 to vector<1x256xf32>
    %511 = arith.mulf %510, %503 : vector<1x256xf32>
    %512 = arith.addf %499, %511 : vector<1x256xf32>
    %513 = vector.broadcast %23 : f32 to vector<1x256xf32>
    %514 = arith.mulf %513, %503 : vector<1x256xf32>
    %515 = arith.addf %502, %514 : vector<1x256xf32>
    %516 = vector.extract_strided_slice %3 {offsets = [0, 240], sizes = [3, 16], strides = [1, 1]} : vector<3x256xf32> to vector<3x16xf32>
    %517 = vector.extract_strided_slice %3 {offsets = [0, 0], sizes = [3, 240], strides = [1, 1]} : vector<3x256xf32> to vector<3x240xf32>
    %518 = tpu.concatenate %516, %517 in 1 : vector<3x16xf32>, vector<3x240xf32> -> vector<3x256xf32>
    %519 = vector.broadcast %5 : vector<1x256xf32> to vector<3x256xf32>
    %520 = arith.mulf %519, %518 : vector<3x256xf32>
    %521 = arith.subf %520, %3 : vector<3x256xf32>
    %522 = arith.mulf %521, %521 : vector<3x256xf32>
    %cst_175 = arith.constant 0.000000e+00 : f32
    %523 = vector.broadcast %cst_175 : f32 to vector<3x256xf32>
    %524 = arith.subf %523, %522 : vector<3x256xf32>
    %cst_176 = arith.constant 8.000000e-02 : f32
    %525 = vector.broadcast %cst_176 : f32 to vector<3x256xf32>
    %526 = arith.mulf %524, %525 : vector<3x256xf32>
    %527 = math.exp %526 : vector<3x256xf32>
    %cst_177 = arith.constant 0.923116326 : f32
    %528 = vector.broadcast %cst_177 : f32 to vector<3x256xf32>
    %529 = arith.mulf %528, %527 : vector<3x256xf32>
    %530 = arith.mulf %529, %297 : vector<3x256xf32>
    %531 = vector.extract_strided_slice %530 {offsets = [0, 0], sizes = [1, 256], strides = [1, 1]} : vector<3x256xf32> to vector<1x256xf32>
    %532 = vector.broadcast %24 : f32 to vector<1x256xf32>
    %533 = arith.mulf %532, %531 : vector<1x256xf32>
    %534 = arith.addf %506, %533 : vector<1x256xf32>
    %535 = vector.broadcast %25 : f32 to vector<1x256xf32>
    %536 = arith.mulf %535, %531 : vector<1x256xf32>
    %537 = arith.addf %509, %536 : vector<1x256xf32>
    %538 = vector.broadcast %26 : f32 to vector<1x256xf32>
    %539 = arith.mulf %538, %531 : vector<1x256xf32>
    %540 = arith.addf %512, %539 : vector<1x256xf32>
    %541 = vector.broadcast %27 : f32 to vector<1x256xf32>
    %542 = arith.mulf %541, %531 : vector<1x256xf32>
    %543 = arith.addf %515, %542 : vector<1x256xf32>
    %544 = vector.extract_strided_slice %530 {offsets = [1, 0], sizes = [1, 256], strides = [1, 1]} : vector<3x256xf32> to vector<1x256xf32>
    %545 = vector.broadcast %28 : f32 to vector<1x256xf32>
    %546 = arith.mulf %545, %544 : vector<1x256xf32>
    %547 = arith.addf %534, %546 : vector<1x256xf32>
    %548 = vector.broadcast %29 : f32 to vector<1x256xf32>
    %549 = arith.mulf %548, %544 : vector<1x256xf32>
    %550 = arith.addf %537, %549 : vector<1x256xf32>
    %551 = vector.broadcast %30 : f32 to vector<1x256xf32>
    %552 = arith.mulf %551, %544 : vector<1x256xf32>
    %553 = arith.addf %540, %552 : vector<1x256xf32>
    %554 = vector.broadcast %31 : f32 to vector<1x256xf32>
    %555 = arith.mulf %554, %544 : vector<1x256xf32>
    %556 = arith.addf %543, %555 : vector<1x256xf32>
    %557 = vector.extract_strided_slice %530 {offsets = [2, 0], sizes = [1, 256], strides = [1, 1]} : vector<3x256xf32> to vector<1x256xf32>
    %558 = vector.broadcast %32 : f32 to vector<1x256xf32>
    %559 = arith.mulf %558, %557 : vector<1x256xf32>
    %560 = arith.addf %547, %559 : vector<1x256xf32>
    %561 = vector.broadcast %33 : f32 to vector<1x256xf32>
    %562 = arith.mulf %561, %557 : vector<1x256xf32>
    %563 = arith.addf %550, %562 : vector<1x256xf32>
    %564 = vector.broadcast %34 : f32 to vector<1x256xf32>
    %565 = arith.mulf %564, %557 : vector<1x256xf32>
    %566 = arith.addf %553, %565 : vector<1x256xf32>
    %567 = vector.broadcast %35 : f32 to vector<1x256xf32>
    %568 = arith.mulf %567, %557 : vector<1x256xf32>
    %569 = arith.addf %556, %568 : vector<1x256xf32>
    %cst_178 = arith.constant 0.800737381 : f32
    %570 = vector.broadcast %cst_178 : f32 to vector<1x256xf32>
    %571 = arith.mulf %570, %328 : vector<1x256xf32>
    %572 = vector.broadcast %36 : f32 to vector<1x256xf32>
    %573 = arith.mulf %572, %571 : vector<1x256xf32>
    %574 = arith.addf %560, %573 : vector<1x256xf32>
    %575 = vector.broadcast %37 : f32 to vector<1x256xf32>
    %576 = arith.mulf %575, %571 : vector<1x256xf32>
    %577 = arith.addf %563, %576 : vector<1x256xf32>
    %578 = vector.broadcast %38 : f32 to vector<1x256xf32>
    %579 = arith.mulf %578, %571 : vector<1x256xf32>
    %580 = arith.addf %566, %579 : vector<1x256xf32>
    %581 = vector.broadcast %39 : f32 to vector<1x256xf32>
    %582 = arith.mulf %581, %571 : vector<1x256xf32>
    %583 = arith.addf %569, %582 : vector<1x256xf32>
    %584 = tpu.concatenate %574, %577, %580, %583 in 0 : vector<1x256xf32>, vector<1x256xf32>, vector<1x256xf32>, vector<1x256xf32> -> vector<4x256xf32>
    %585 = vector.broadcast %5 : vector<1x256xf32> to vector<4x256xf32>
    %586 = arith.mulf %585, %584 : vector<4x256xf32>
    %cst_179 = arith.constant 0.000000e+00 : f32
    %587 = vector.broadcast %cst_179 : f32 to vector<1x256xf32>
    %cst_180 = arith.constant 0.000000e+00 : f32
    %588 = vector.broadcast %cst_180 : f32 to vector<1x256xf32>
    %cst_181 = arith.constant 0.000000e+00 : f32
    %589 = vector.broadcast %cst_181 : f32 to vector<1x256xf32>
    %cst_182 = arith.constant 0.000000e+00 : f32
    %590 = vector.broadcast %cst_182 : f32 to vector<1x256xf32>
    %591 = vector.extract_strided_slice %3 {offsets = [0, 241], sizes = [3, 15], strides = [1, 1]} : vector<3x256xf32> to vector<3x15xf32>
    %592 = vector.extract_strided_slice %3 {offsets = [0, 0], sizes = [3, 241], strides = [1, 1]} : vector<3x256xf32> to vector<3x241xf32>
    %593 = tpu.concatenate %591, %592 in 1 : vector<3x15xf32>, vector<3x241xf32> -> vector<3x256xf32>
    %594 = vector.broadcast %6 : vector<1x256xf32> to vector<3x256xf32>
    %595 = arith.mulf %594, %593 : vector<3x256xf32>
    %596 = arith.subf %595, %3 : vector<3x256xf32>
    %597 = arith.mulf %596, %596 : vector<3x256xf32>
    %cst_183 = arith.constant 0.000000e+00 : f32
    %598 = vector.broadcast %cst_183 : f32 to vector<3x256xf32>
    %599 = arith.subf %598, %597 : vector<3x256xf32>
    %cst_184 = arith.constant 0.222222224 : f32
    %600 = vector.broadcast %cst_184 : f32 to vector<3x256xf32>
    %601 = arith.mulf %599, %600 : vector<3x256xf32>
    %602 = math.exp %601 : vector<3x256xf32>
    %cst_185 = arith.constant 0.641180396 : f32
    %603 = vector.broadcast %cst_185 : f32 to vector<3x256xf32>
    %604 = arith.mulf %603, %602 : vector<3x256xf32>
    %605 = arith.mulf %604, %174 : vector<3x256xf32>
    %606 = vector.extract_strided_slice %605 {offsets = [0, 0], sizes = [1, 256], strides = [1, 1]} : vector<3x256xf32> to vector<1x256xf32>
    %607 = vector.broadcast %12 : f32 to vector<1x256xf32>
    %608 = arith.mulf %607, %606 : vector<1x256xf32>
    %609 = arith.addf %587, %608 : vector<1x256xf32>
    %610 = vector.broadcast %13 : f32 to vector<1x256xf32>
    %611 = arith.mulf %610, %606 : vector<1x256xf32>
    %612 = arith.addf %588, %611 : vector<1x256xf32>
    %613 = vector.broadcast %14 : f32 to vector<1x256xf32>
    %614 = arith.mulf %613, %606 : vector<1x256xf32>
    %615 = arith.addf %589, %614 : vector<1x256xf32>
    %616 = vector.broadcast %15 : f32 to vector<1x256xf32>
    %617 = arith.mulf %616, %606 : vector<1x256xf32>
    %618 = arith.addf %590, %617 : vector<1x256xf32>
    %619 = vector.extract_strided_slice %605 {offsets = [1, 0], sizes = [1, 256], strides = [1, 1]} : vector<3x256xf32> to vector<1x256xf32>
    %620 = vector.broadcast %16 : f32 to vector<1x256xf32>
    %621 = arith.mulf %620, %619 : vector<1x256xf32>
    %622 = arith.addf %609, %621 : vector<1x256xf32>
    %623 = vector.broadcast %17 : f32 to vector<1x256xf32>
    %624 = arith.mulf %623, %619 : vector<1x256xf32>
    %625 = arith.addf %612, %624 : vector<1x256xf32>
    %626 = vector.broadcast %18 : f32 to vector<1x256xf32>
    %627 = arith.mulf %626, %619 : vector<1x256xf32>
    %628 = arith.addf %615, %627 : vector<1x256xf32>
    %629 = vector.broadcast %19 : f32 to vector<1x256xf32>
    %630 = arith.mulf %629, %619 : vector<1x256xf32>
    %631 = arith.addf %618, %630 : vector<1x256xf32>
    %632 = vector.extract_strided_slice %605 {offsets = [2, 0], sizes = [1, 256], strides = [1, 1]} : vector<3x256xf32> to vector<1x256xf32>
    %633 = vector.broadcast %20 : f32 to vector<1x256xf32>
    %634 = arith.mulf %633, %632 : vector<1x256xf32>
    %635 = arith.addf %622, %634 : vector<1x256xf32>
    %636 = vector.broadcast %21 : f32 to vector<1x256xf32>
    %637 = arith.mulf %636, %632 : vector<1x256xf32>
    %638 = arith.addf %625, %637 : vector<1x256xf32>
    %639 = vector.broadcast %22 : f32 to vector<1x256xf32>
    %640 = arith.mulf %639, %632 : vector<1x256xf32>
    %641 = arith.addf %628, %640 : vector<1x256xf32>
    %642 = vector.broadcast %23 : f32 to vector<1x256xf32>
    %643 = arith.mulf %642, %632 : vector<1x256xf32>
    %644 = arith.addf %631, %643 : vector<1x256xf32>
    %645 = vector.extract_strided_slice %3 {offsets = [0, 241], sizes = [3, 15], strides = [1, 1]} : vector<3x256xf32> to vector<3x15xf32>
    %646 = vector.extract_strided_slice %3 {offsets = [0, 0], sizes = [3, 241], strides = [1, 1]} : vector<3x256xf32> to vector<3x241xf32>
    %647 = tpu.concatenate %645, %646 in 1 : vector<3x15xf32>, vector<3x241xf32> -> vector<3x256xf32>
    %648 = vector.broadcast %6 : vector<1x256xf32> to vector<3x256xf32>
    %649 = arith.mulf %648, %647 : vector<3x256xf32>
    %650 = arith.subf %649, %3 : vector<3x256xf32>
    %651 = arith.mulf %650, %650 : vector<3x256xf32>
    %cst_186 = arith.constant 0.000000e+00 : f32
    %652 = vector.broadcast %cst_186 : f32 to vector<3x256xf32>
    %653 = arith.subf %652, %651 : vector<3x256xf32>
    %cst_187 = arith.constant 8.000000e-02 : f32
    %654 = vector.broadcast %cst_187 : f32 to vector<3x256xf32>
    %655 = arith.mulf %653, %654 : vector<3x256xf32>
    %656 = math.exp %655 : vector<3x256xf32>
    %cst_188 = arith.constant 0.852143764 : f32
    %657 = vector.broadcast %cst_188 : f32 to vector<3x256xf32>
    %658 = arith.mulf %657, %656 : vector<3x256xf32>
    %659 = arith.mulf %658, %297 : vector<3x256xf32>
    %660 = vector.extract_strided_slice %659 {offsets = [0, 0], sizes = [1, 256], strides = [1, 1]} : vector<3x256xf32> to vector<1x256xf32>
    %661 = vector.broadcast %24 : f32 to vector<1x256xf32>
    %662 = arith.mulf %661, %660 : vector<1x256xf32>
    %663 = arith.addf %635, %662 : vector<1x256xf32>
    %664 = vector.broadcast %25 : f32 to vector<1x256xf32>
    %665 = arith.mulf %664, %660 : vector<1x256xf32>
    %666 = arith.addf %638, %665 : vector<1x256xf32>
    %667 = vector.broadcast %26 : f32 to vector<1x256xf32>
    %668 = arith.mulf %667, %660 : vector<1x256xf32>
    %669 = arith.addf %641, %668 : vector<1x256xf32>
    %670 = vector.broadcast %27 : f32 to vector<1x256xf32>
    %671 = arith.mulf %670, %660 : vector<1x256xf32>
    %672 = arith.addf %644, %671 : vector<1x256xf32>
    %673 = vector.extract_strided_slice %659 {offsets = [1, 0], sizes = [1, 256], strides = [1, 1]} : vector<3x256xf32> to vector<1x256xf32>
    %674 = vector.broadcast %28 : f32 to vector<1x256xf32>
    %675 = arith.mulf %674, %673 : vector<1x256xf32>
    %676 = arith.addf %663, %675 : vector<1x256xf32>
    %677 = vector.broadcast %29 : f32 to vector<1x256xf32>
    %678 = arith.mulf %677, %673 : vector<1x256xf32>
    %679 = arith.addf %666, %678 : vector<1x256xf32>
    %680 = vector.broadcast %30 : f32 to vector<1x256xf32>
    %681 = arith.mulf %680, %673 : vector<1x256xf32>
    %682 = arith.addf %669, %681 : vector<1x256xf32>
    %683 = vector.broadcast %31 : f32 to vector<1x256xf32>
    %684 = arith.mulf %683, %673 : vector<1x256xf32>
    %685 = arith.addf %672, %684 : vector<1x256xf32>
    %686 = vector.extract_strided_slice %659 {offsets = [2, 0], sizes = [1, 256], strides = [1, 1]} : vector<3x256xf32> to vector<1x256xf32>
    %687 = vector.broadcast %32 : f32 to vector<1x256xf32>
    %688 = arith.mulf %687, %686 : vector<1x256xf32>
    %689 = arith.addf %676, %688 : vector<1x256xf32>
    %690 = vector.broadcast %33 : f32 to vector<1x256xf32>
    %691 = arith.mulf %690, %686 : vector<1x256xf32>
    %692 = arith.addf %679, %691 : vector<1x256xf32>
    %693 = vector.broadcast %34 : f32 to vector<1x256xf32>
    %694 = arith.mulf %693, %686 : vector<1x256xf32>
    %695 = arith.addf %682, %694 : vector<1x256xf32>
    %696 = vector.broadcast %35 : f32 to vector<1x256xf32>
    %697 = arith.mulf %696, %686 : vector<1x256xf32>
    %698 = arith.addf %685, %697 : vector<1x256xf32>
    %cst_189 = arith.constant 0.641180396 : f32
    %699 = vector.broadcast %cst_189 : f32 to vector<1x256xf32>
    %700 = arith.mulf %699, %328 : vector<1x256xf32>
    %701 = vector.broadcast %36 : f32 to vector<1x256xf32>
    %702 = arith.mulf %701, %700 : vector<1x256xf32>
    %703 = arith.addf %689, %702 : vector<1x256xf32>
    %704 = vector.broadcast %37 : f32 to vector<1x256xf32>
    %705 = arith.mulf %704, %700 : vector<1x256xf32>
    %706 = arith.addf %692, %705 : vector<1x256xf32>
    %707 = vector.broadcast %38 : f32 to vector<1x256xf32>
    %708 = arith.mulf %707, %700 : vector<1x256xf32>
    %709 = arith.addf %695, %708 : vector<1x256xf32>
    %710 = vector.broadcast %39 : f32 to vector<1x256xf32>
    %711 = arith.mulf %710, %700 : vector<1x256xf32>
    %712 = arith.addf %698, %711 : vector<1x256xf32>
    %713 = tpu.concatenate %703, %706, %709, %712 in 0 : vector<1x256xf32>, vector<1x256xf32>, vector<1x256xf32>, vector<1x256xf32> -> vector<4x256xf32>
    %714 = vector.broadcast %6 : vector<1x256xf32> to vector<4x256xf32>
    %715 = arith.mulf %714, %713 : vector<4x256xf32>
    %cst_190 = arith.constant 0.000000e+00 : f32
    %716 = vector.broadcast %cst_190 : f32 to vector<1x256xf32>
    %cst_191 = arith.constant 0.000000e+00 : f32
    %717 = vector.broadcast %cst_191 : f32 to vector<1x256xf32>
    %cst_192 = arith.constant 0.000000e+00 : f32
    %718 = vector.broadcast %cst_192 : f32 to vector<1x256xf32>
    %cst_193 = arith.constant 0.000000e+00 : f32
    %719 = vector.broadcast %cst_193 : f32 to vector<1x256xf32>
    %720 = vector.extract_strided_slice %3 {offsets = [0, 255], sizes = [3, 1], strides = [1, 1]} : vector<3x256xf32> to vector<3x1xf32>
    %721 = vector.extract_strided_slice %3 {offsets = [0, 0], sizes = [3, 255], strides = [1, 1]} : vector<3x256xf32> to vector<3x255xf32>
    %722 = tpu.concatenate %720, %721 in 1 : vector<3x1xf32>, vector<3x255xf32> -> vector<3x256xf32>
    %723 = vector.broadcast %7 : vector<1x256xf32> to vector<3x256xf32>
    %724 = arith.mulf %723, %722 : vector<3x256xf32>
    %725 = arith.subf %724, %3 : vector<3x256xf32>
    %726 = arith.mulf %725, %725 : vector<3x256xf32>
    %cst_194 = arith.constant 0.000000e+00 : f32
    %727 = vector.broadcast %cst_194 : f32 to vector<3x256xf32>
    %728 = arith.subf %727, %726 : vector<3x256xf32>
    %cst_195 = arith.constant 0.222222224 : f32
    %729 = vector.broadcast %cst_195 : f32 to vector<3x256xf32>
    %730 = arith.mulf %728, %729 : vector<3x256xf32>
    %731 = math.exp %730 : vector<3x256xf32>
    %cst_196 = arith.constant 0.800737381 : f32
    %732 = vector.broadcast %cst_196 : f32 to vector<3x256xf32>
    %733 = arith.mulf %732, %731 : vector<3x256xf32>
    %734 = arith.mulf %733, %174 : vector<3x256xf32>
    %735 = vector.extract_strided_slice %734 {offsets = [0, 0], sizes = [1, 256], strides = [1, 1]} : vector<3x256xf32> to vector<1x256xf32>
    %736 = vector.broadcast %12 : f32 to vector<1x256xf32>
    %737 = arith.mulf %736, %735 : vector<1x256xf32>
    %738 = arith.addf %716, %737 : vector<1x256xf32>
    %739 = vector.broadcast %13 : f32 to vector<1x256xf32>
    %740 = arith.mulf %739, %735 : vector<1x256xf32>
    %741 = arith.addf %717, %740 : vector<1x256xf32>
    %742 = vector.broadcast %14 : f32 to vector<1x256xf32>
    %743 = arith.mulf %742, %735 : vector<1x256xf32>
    %744 = arith.addf %718, %743 : vector<1x256xf32>
    %745 = vector.broadcast %15 : f32 to vector<1x256xf32>
    %746 = arith.mulf %745, %735 : vector<1x256xf32>
    %747 = arith.addf %719, %746 : vector<1x256xf32>
    %748 = vector.extract_strided_slice %734 {offsets = [1, 0], sizes = [1, 256], strides = [1, 1]} : vector<3x256xf32> to vector<1x256xf32>
    %749 = vector.broadcast %16 : f32 to vector<1x256xf32>
    %750 = arith.mulf %749, %748 : vector<1x256xf32>
    %751 = arith.addf %738, %750 : vector<1x256xf32>
    %752 = vector.broadcast %17 : f32 to vector<1x256xf32>
    %753 = arith.mulf %752, %748 : vector<1x256xf32>
    %754 = arith.addf %741, %753 : vector<1x256xf32>
    %755 = vector.broadcast %18 : f32 to vector<1x256xf32>
    %756 = arith.mulf %755, %748 : vector<1x256xf32>
    %757 = arith.addf %744, %756 : vector<1x256xf32>
    %758 = vector.broadcast %19 : f32 to vector<1x256xf32>
    %759 = arith.mulf %758, %748 : vector<1x256xf32>
    %760 = arith.addf %747, %759 : vector<1x256xf32>
    %761 = vector.extract_strided_slice %734 {offsets = [2, 0], sizes = [1, 256], strides = [1, 1]} : vector<3x256xf32> to vector<1x256xf32>
    %762 = vector.broadcast %20 : f32 to vector<1x256xf32>
    %763 = arith.mulf %762, %761 : vector<1x256xf32>
    %764 = arith.addf %751, %763 : vector<1x256xf32>
    %765 = vector.broadcast %21 : f32 to vector<1x256xf32>
    %766 = arith.mulf %765, %761 : vector<1x256xf32>
    %767 = arith.addf %754, %766 : vector<1x256xf32>
    %768 = vector.broadcast %22 : f32 to vector<1x256xf32>
    %769 = arith.mulf %768, %761 : vector<1x256xf32>
    %770 = arith.addf %757, %769 : vector<1x256xf32>
    %771 = vector.broadcast %23 : f32 to vector<1x256xf32>
    %772 = arith.mulf %771, %761 : vector<1x256xf32>
    %773 = arith.addf %760, %772 : vector<1x256xf32>
    %774 = vector.extract_strided_slice %3 {offsets = [0, 255], sizes = [3, 1], strides = [1, 1]} : vector<3x256xf32> to vector<3x1xf32>
    %775 = vector.extract_strided_slice %3 {offsets = [0, 0], sizes = [3, 255], strides = [1, 1]} : vector<3x256xf32> to vector<3x255xf32>
    %776 = tpu.concatenate %774, %775 in 1 : vector<3x1xf32>, vector<3x255xf32> -> vector<3x256xf32>
    %777 = vector.broadcast %7 : vector<1x256xf32> to vector<3x256xf32>
    %778 = arith.mulf %777, %776 : vector<3x256xf32>
    %779 = arith.subf %778, %3 : vector<3x256xf32>
    %780 = arith.mulf %779, %779 : vector<3x256xf32>
    %cst_197 = arith.constant 0.000000e+00 : f32
    %781 = vector.broadcast %cst_197 : f32 to vector<3x256xf32>
    %782 = arith.subf %781, %780 : vector<3x256xf32>
    %cst_198 = arith.constant 8.000000e-02 : f32
    %783 = vector.broadcast %cst_198 : f32 to vector<3x256xf32>
    %784 = arith.mulf %782, %783 : vector<3x256xf32>
    %785 = math.exp %784 : vector<3x256xf32>
    %cst_199 = arith.constant 0.923116326 : f32
    %786 = vector.broadcast %cst_199 : f32 to vector<3x256xf32>
    %787 = arith.mulf %786, %785 : vector<3x256xf32>
    %788 = arith.mulf %787, %297 : vector<3x256xf32>
    %789 = vector.extract_strided_slice %788 {offsets = [0, 0], sizes = [1, 256], strides = [1, 1]} : vector<3x256xf32> to vector<1x256xf32>
    %790 = vector.broadcast %24 : f32 to vector<1x256xf32>
    %791 = arith.mulf %790, %789 : vector<1x256xf32>
    %792 = arith.addf %764, %791 : vector<1x256xf32>
    %793 = vector.broadcast %25 : f32 to vector<1x256xf32>
    %794 = arith.mulf %793, %789 : vector<1x256xf32>
    %795 = arith.addf %767, %794 : vector<1x256xf32>
    %796 = vector.broadcast %26 : f32 to vector<1x256xf32>
    %797 = arith.mulf %796, %789 : vector<1x256xf32>
    %798 = arith.addf %770, %797 : vector<1x256xf32>
    %799 = vector.broadcast %27 : f32 to vector<1x256xf32>
    %800 = arith.mulf %799, %789 : vector<1x256xf32>
    %801 = arith.addf %773, %800 : vector<1x256xf32>
    %802 = vector.extract_strided_slice %788 {offsets = [1, 0], sizes = [1, 256], strides = [1, 1]} : vector<3x256xf32> to vector<1x256xf32>
    %803 = vector.broadcast %28 : f32 to vector<1x256xf32>
    %804 = arith.mulf %803, %802 : vector<1x256xf32>
    %805 = arith.addf %792, %804 : vector<1x256xf32>
    %806 = vector.broadcast %29 : f32 to vector<1x256xf32>
    %807 = arith.mulf %806, %802 : vector<1x256xf32>
    %808 = arith.addf %795, %807 : vector<1x256xf32>
    %809 = vector.broadcast %30 : f32 to vector<1x256xf32>
    %810 = arith.mulf %809, %802 : vector<1x256xf32>
    %811 = arith.addf %798, %810 : vector<1x256xf32>
    %812 = vector.broadcast %31 : f32 to vector<1x256xf32>
    %813 = arith.mulf %812, %802 : vector<1x256xf32>
    %814 = arith.addf %801, %813 : vector<1x256xf32>
    %815 = vector.extract_strided_slice %788 {offsets = [2, 0], sizes = [1, 256], strides = [1, 1]} : vector<3x256xf32> to vector<1x256xf32>
    %816 = vector.broadcast %32 : f32 to vector<1x256xf32>
    %817 = arith.mulf %816, %815 : vector<1x256xf32>
    %818 = arith.addf %805, %817 : vector<1x256xf32>
    %819 = vector.broadcast %33 : f32 to vector<1x256xf32>
    %820 = arith.mulf %819, %815 : vector<1x256xf32>
    %821 = arith.addf %808, %820 : vector<1x256xf32>
    %822 = vector.broadcast %34 : f32 to vector<1x256xf32>
    %823 = arith.mulf %822, %815 : vector<1x256xf32>
    %824 = arith.addf %811, %823 : vector<1x256xf32>
    %825 = vector.broadcast %35 : f32 to vector<1x256xf32>
    %826 = arith.mulf %825, %815 : vector<1x256xf32>
    %827 = arith.addf %814, %826 : vector<1x256xf32>
    %cst_200 = arith.constant 0.800737381 : f32
    %828 = vector.broadcast %cst_200 : f32 to vector<1x256xf32>
    %829 = arith.mulf %828, %328 : vector<1x256xf32>
    %830 = vector.broadcast %36 : f32 to vector<1x256xf32>
    %831 = arith.mulf %830, %829 : vector<1x256xf32>
    %832 = arith.addf %818, %831 : vector<1x256xf32>
    %833 = vector.broadcast %37 : f32 to vector<1x256xf32>
    %834 = arith.mulf %833, %829 : vector<1x256xf32>
    %835 = arith.addf %821, %834 : vector<1x256xf32>
    %836 = vector.broadcast %38 : f32 to vector<1x256xf32>
    %837 = arith.mulf %836, %829 : vector<1x256xf32>
    %838 = arith.addf %824, %837 : vector<1x256xf32>
    %839 = vector.broadcast %39 : f32 to vector<1x256xf32>
    %840 = arith.mulf %839, %829 : vector<1x256xf32>
    %841 = arith.addf %827, %840 : vector<1x256xf32>
    %842 = tpu.concatenate %832, %835, %838, %841 in 0 : vector<1x256xf32>, vector<1x256xf32>, vector<1x256xf32>, vector<1x256xf32> -> vector<4x256xf32>
    %843 = vector.broadcast %7 : vector<1x256xf32> to vector<4x256xf32>
    %844 = arith.mulf %843, %842 : vector<4x256xf32>
    %cst_201 = arith.constant 0.000000e+00 : f32
    %845 = vector.broadcast %cst_201 : f32 to vector<1x256xf32>
    %cst_202 = arith.constant 0.000000e+00 : f32
    %846 = vector.broadcast %cst_202 : f32 to vector<1x256xf32>
    %cst_203 = arith.constant 0.000000e+00 : f32
    %847 = vector.broadcast %cst_203 : f32 to vector<1x256xf32>
    %cst_204 = arith.constant 0.000000e+00 : f32
    %848 = vector.broadcast %cst_204 : f32 to vector<1x256xf32>
    %849 = vector.extract_strided_slice %3 {offsets = [0, 1], sizes = [3, 255], strides = [1, 1]} : vector<3x256xf32> to vector<3x255xf32>
    %850 = vector.extract_strided_slice %3 {offsets = [0, 0], sizes = [3, 1], strides = [1, 1]} : vector<3x256xf32> to vector<3x1xf32>
    %851 = tpu.concatenate %849, %850 in 1 : vector<3x255xf32>, vector<3x1xf32> -> vector<3x256xf32>
    %852 = vector.broadcast %8 : vector<1x256xf32> to vector<3x256xf32>
    %853 = arith.mulf %852, %851 : vector<3x256xf32>
    %854 = arith.subf %853, %3 : vector<3x256xf32>
    %855 = arith.mulf %854, %854 : vector<3x256xf32>
    %cst_205 = arith.constant 0.000000e+00 : f32
    %856 = vector.broadcast %cst_205 : f32 to vector<3x256xf32>
    %857 = arith.subf %856, %855 : vector<3x256xf32>
    %cst_206 = arith.constant 0.222222224 : f32
    %858 = vector.broadcast %cst_206 : f32 to vector<3x256xf32>
    %859 = arith.mulf %857, %858 : vector<3x256xf32>
    %860 = math.exp %859 : vector<3x256xf32>
    %cst_207 = arith.constant 0.800737381 : f32
    %861 = vector.broadcast %cst_207 : f32 to vector<3x256xf32>
    %862 = arith.mulf %861, %860 : vector<3x256xf32>
    %863 = arith.mulf %862, %174 : vector<3x256xf32>
    %864 = vector.extract_strided_slice %863 {offsets = [0, 0], sizes = [1, 256], strides = [1, 1]} : vector<3x256xf32> to vector<1x256xf32>
    %865 = vector.broadcast %12 : f32 to vector<1x256xf32>
    %866 = arith.mulf %865, %864 : vector<1x256xf32>
    %867 = arith.addf %845, %866 : vector<1x256xf32>
    %868 = vector.broadcast %13 : f32 to vector<1x256xf32>
    %869 = arith.mulf %868, %864 : vector<1x256xf32>
    %870 = arith.addf %846, %869 : vector<1x256xf32>
    %871 = vector.broadcast %14 : f32 to vector<1x256xf32>
    %872 = arith.mulf %871, %864 : vector<1x256xf32>
    %873 = arith.addf %847, %872 : vector<1x256xf32>
    %874 = vector.broadcast %15 : f32 to vector<1x256xf32>
    %875 = arith.mulf %874, %864 : vector<1x256xf32>
    %876 = arith.addf %848, %875 : vector<1x256xf32>
    %877 = vector.extract_strided_slice %863 {offsets = [1, 0], sizes = [1, 256], strides = [1, 1]} : vector<3x256xf32> to vector<1x256xf32>
    %878 = vector.broadcast %16 : f32 to vector<1x256xf32>
    %879 = arith.mulf %878, %877 : vector<1x256xf32>
    %880 = arith.addf %867, %879 : vector<1x256xf32>
    %881 = vector.broadcast %17 : f32 to vector<1x256xf32>
    %882 = arith.mulf %881, %877 : vector<1x256xf32>
    %883 = arith.addf %870, %882 : vector<1x256xf32>
    %884 = vector.broadcast %18 : f32 to vector<1x256xf32>
    %885 = arith.mulf %884, %877 : vector<1x256xf32>
    %886 = arith.addf %873, %885 : vector<1x256xf32>
    %887 = vector.broadcast %19 : f32 to vector<1x256xf32>
    %888 = arith.mulf %887, %877 : vector<1x256xf32>
    %889 = arith.addf %876, %888 : vector<1x256xf32>
    %890 = vector.extract_strided_slice %863 {offsets = [2, 0], sizes = [1, 256], strides = [1, 1]} : vector<3x256xf32> to vector<1x256xf32>
    %891 = vector.broadcast %20 : f32 to vector<1x256xf32>
    %892 = arith.mulf %891, %890 : vector<1x256xf32>
    %893 = arith.addf %880, %892 : vector<1x256xf32>
    %894 = vector.broadcast %21 : f32 to vector<1x256xf32>
    %895 = arith.mulf %894, %890 : vector<1x256xf32>
    %896 = arith.addf %883, %895 : vector<1x256xf32>
    %897 = vector.broadcast %22 : f32 to vector<1x256xf32>
    %898 = arith.mulf %897, %890 : vector<1x256xf32>
    %899 = arith.addf %886, %898 : vector<1x256xf32>
    %900 = vector.broadcast %23 : f32 to vector<1x256xf32>
    %901 = arith.mulf %900, %890 : vector<1x256xf32>
    %902 = arith.addf %889, %901 : vector<1x256xf32>
    %903 = vector.extract_strided_slice %3 {offsets = [0, 1], sizes = [3, 255], strides = [1, 1]} : vector<3x256xf32> to vector<3x255xf32>
    %904 = vector.extract_strided_slice %3 {offsets = [0, 0], sizes = [3, 1], strides = [1, 1]} : vector<3x256xf32> to vector<3x1xf32>
    %905 = tpu.concatenate %903, %904 in 1 : vector<3x255xf32>, vector<3x1xf32> -> vector<3x256xf32>
    %906 = vector.broadcast %8 : vector<1x256xf32> to vector<3x256xf32>
    %907 = arith.mulf %906, %905 : vector<3x256xf32>
    %908 = arith.subf %907, %3 : vector<3x256xf32>
    %909 = arith.mulf %908, %908 : vector<3x256xf32>
    %cst_208 = arith.constant 0.000000e+00 : f32
    %910 = vector.broadcast %cst_208 : f32 to vector<3x256xf32>
    %911 = arith.subf %910, %909 : vector<3x256xf32>
    %cst_209 = arith.constant 8.000000e-02 : f32
    %912 = vector.broadcast %cst_209 : f32 to vector<3x256xf32>
    %913 = arith.mulf %911, %912 : vector<3x256xf32>
    %914 = math.exp %913 : vector<3x256xf32>
    %cst_210 = arith.constant 0.923116326 : f32
    %915 = vector.broadcast %cst_210 : f32 to vector<3x256xf32>
    %916 = arith.mulf %915, %914 : vector<3x256xf32>
    %917 = arith.mulf %916, %297 : vector<3x256xf32>
    %918 = vector.extract_strided_slice %917 {offsets = [0, 0], sizes = [1, 256], strides = [1, 1]} : vector<3x256xf32> to vector<1x256xf32>
    %919 = vector.broadcast %24 : f32 to vector<1x256xf32>
    %920 = arith.mulf %919, %918 : vector<1x256xf32>
    %921 = arith.addf %893, %920 : vector<1x256xf32>
    %922 = vector.broadcast %25 : f32 to vector<1x256xf32>
    %923 = arith.mulf %922, %918 : vector<1x256xf32>
    %924 = arith.addf %896, %923 : vector<1x256xf32>
    %925 = vector.broadcast %26 : f32 to vector<1x256xf32>
    %926 = arith.mulf %925, %918 : vector<1x256xf32>
    %927 = arith.addf %899, %926 : vector<1x256xf32>
    %928 = vector.broadcast %27 : f32 to vector<1x256xf32>
    %929 = arith.mulf %928, %918 : vector<1x256xf32>
    %930 = arith.addf %902, %929 : vector<1x256xf32>
    %931 = vector.extract_strided_slice %917 {offsets = [1, 0], sizes = [1, 256], strides = [1, 1]} : vector<3x256xf32> to vector<1x256xf32>
    %932 = vector.broadcast %28 : f32 to vector<1x256xf32>
    %933 = arith.mulf %932, %931 : vector<1x256xf32>
    %934 = arith.addf %921, %933 : vector<1x256xf32>
    %935 = vector.broadcast %29 : f32 to vector<1x256xf32>
    %936 = arith.mulf %935, %931 : vector<1x256xf32>
    %937 = arith.addf %924, %936 : vector<1x256xf32>
    %938 = vector.broadcast %30 : f32 to vector<1x256xf32>
    %939 = arith.mulf %938, %931 : vector<1x256xf32>
    %940 = arith.addf %927, %939 : vector<1x256xf32>
    %941 = vector.broadcast %31 : f32 to vector<1x256xf32>
    %942 = arith.mulf %941, %931 : vector<1x256xf32>
    %943 = arith.addf %930, %942 : vector<1x256xf32>
    %944 = vector.extract_strided_slice %917 {offsets = [2, 0], sizes = [1, 256], strides = [1, 1]} : vector<3x256xf32> to vector<1x256xf32>
    %945 = vector.broadcast %32 : f32 to vector<1x256xf32>
    %946 = arith.mulf %945, %944 : vector<1x256xf32>
    %947 = arith.addf %934, %946 : vector<1x256xf32>
    %948 = vector.broadcast %33 : f32 to vector<1x256xf32>
    %949 = arith.mulf %948, %944 : vector<1x256xf32>
    %950 = arith.addf %937, %949 : vector<1x256xf32>
    %951 = vector.broadcast %34 : f32 to vector<1x256xf32>
    %952 = arith.mulf %951, %944 : vector<1x256xf32>
    %953 = arith.addf %940, %952 : vector<1x256xf32>
    %954 = vector.broadcast %35 : f32 to vector<1x256xf32>
    %955 = arith.mulf %954, %944 : vector<1x256xf32>
    %956 = arith.addf %943, %955 : vector<1x256xf32>
    %cst_211 = arith.constant 0.800737381 : f32
    %957 = vector.broadcast %cst_211 : f32 to vector<1x256xf32>
    %958 = arith.mulf %957, %328 : vector<1x256xf32>
    %959 = vector.broadcast %36 : f32 to vector<1x256xf32>
    %960 = arith.mulf %959, %958 : vector<1x256xf32>
    %961 = arith.addf %947, %960 : vector<1x256xf32>
    %962 = vector.broadcast %37 : f32 to vector<1x256xf32>
    %963 = arith.mulf %962, %958 : vector<1x256xf32>
    %964 = arith.addf %950, %963 : vector<1x256xf32>
    %965 = vector.broadcast %38 : f32 to vector<1x256xf32>
    %966 = arith.mulf %965, %958 : vector<1x256xf32>
    %967 = arith.addf %953, %966 : vector<1x256xf32>
    %968 = vector.broadcast %39 : f32 to vector<1x256xf32>
    %969 = arith.mulf %968, %958 : vector<1x256xf32>
    %970 = arith.addf %956, %969 : vector<1x256xf32>
    %971 = tpu.concatenate %961, %964, %967, %970 in 0 : vector<1x256xf32>, vector<1x256xf32>, vector<1x256xf32>, vector<1x256xf32> -> vector<4x256xf32>
    %972 = vector.broadcast %8 : vector<1x256xf32> to vector<4x256xf32>
    %973 = arith.mulf %972, %971 : vector<4x256xf32>
    %cst_212 = arith.constant 0.000000e+00 : f32
    %974 = vector.broadcast %cst_212 : f32 to vector<1x256xf32>
    %cst_213 = arith.constant 0.000000e+00 : f32
    %975 = vector.broadcast %cst_213 : f32 to vector<1x256xf32>
    %cst_214 = arith.constant 0.000000e+00 : f32
    %976 = vector.broadcast %cst_214 : f32 to vector<1x256xf32>
    %cst_215 = arith.constant 0.000000e+00 : f32
    %977 = vector.broadcast %cst_215 : f32 to vector<1x256xf32>
    %978 = vector.extract_strided_slice %3 {offsets = [0, 15], sizes = [3, 241], strides = [1, 1]} : vector<3x256xf32> to vector<3x241xf32>
    %979 = vector.extract_strided_slice %3 {offsets = [0, 0], sizes = [3, 15], strides = [1, 1]} : vector<3x256xf32> to vector<3x15xf32>
    %980 = tpu.concatenate %978, %979 in 1 : vector<3x241xf32>, vector<3x15xf32> -> vector<3x256xf32>
    %981 = vector.broadcast %9 : vector<1x256xf32> to vector<3x256xf32>
    %982 = arith.mulf %981, %980 : vector<3x256xf32>
    %983 = arith.subf %982, %3 : vector<3x256xf32>
    %984 = arith.mulf %983, %983 : vector<3x256xf32>
    %cst_216 = arith.constant 0.000000e+00 : f32
    %985 = vector.broadcast %cst_216 : f32 to vector<3x256xf32>
    %986 = arith.subf %985, %984 : vector<3x256xf32>
    %cst_217 = arith.constant 0.222222224 : f32
    %987 = vector.broadcast %cst_217 : f32 to vector<3x256xf32>
    %988 = arith.mulf %986, %987 : vector<3x256xf32>
    %989 = math.exp %988 : vector<3x256xf32>
    %cst_218 = arith.constant 0.641180396 : f32
    %990 = vector.broadcast %cst_218 : f32 to vector<3x256xf32>
    %991 = arith.mulf %990, %989 : vector<3x256xf32>
    %992 = arith.mulf %991, %174 : vector<3x256xf32>
    %993 = vector.extract_strided_slice %992 {offsets = [0, 0], sizes = [1, 256], strides = [1, 1]} : vector<3x256xf32> to vector<1x256xf32>
    %994 = vector.broadcast %12 : f32 to vector<1x256xf32>
    %995 = arith.mulf %994, %993 : vector<1x256xf32>
    %996 = arith.addf %974, %995 : vector<1x256xf32>
    %997 = vector.broadcast %13 : f32 to vector<1x256xf32>
    %998 = arith.mulf %997, %993 : vector<1x256xf32>
    %999 = arith.addf %975, %998 : vector<1x256xf32>
    %1000 = vector.broadcast %14 : f32 to vector<1x256xf32>
    %1001 = arith.mulf %1000, %993 : vector<1x256xf32>
    %1002 = arith.addf %976, %1001 : vector<1x256xf32>
    %1003 = vector.broadcast %15 : f32 to vector<1x256xf32>
    %1004 = arith.mulf %1003, %993 : vector<1x256xf32>
    %1005 = arith.addf %977, %1004 : vector<1x256xf32>
    %1006 = vector.extract_strided_slice %992 {offsets = [1, 0], sizes = [1, 256], strides = [1, 1]} : vector<3x256xf32> to vector<1x256xf32>
    %1007 = vector.broadcast %16 : f32 to vector<1x256xf32>
    %1008 = arith.mulf %1007, %1006 : vector<1x256xf32>
    %1009 = arith.addf %996, %1008 : vector<1x256xf32>
    %1010 = vector.broadcast %17 : f32 to vector<1x256xf32>
    %1011 = arith.mulf %1010, %1006 : vector<1x256xf32>
    %1012 = arith.addf %999, %1011 : vector<1x256xf32>
    %1013 = vector.broadcast %18 : f32 to vector<1x256xf32>
    %1014 = arith.mulf %1013, %1006 : vector<1x256xf32>
    %1015 = arith.addf %1002, %1014 : vector<1x256xf32>
    %1016 = vector.broadcast %19 : f32 to vector<1x256xf32>
    %1017 = arith.mulf %1016, %1006 : vector<1x256xf32>
    %1018 = arith.addf %1005, %1017 : vector<1x256xf32>
    %1019 = vector.extract_strided_slice %992 {offsets = [2, 0], sizes = [1, 256], strides = [1, 1]} : vector<3x256xf32> to vector<1x256xf32>
    %1020 = vector.broadcast %20 : f32 to vector<1x256xf32>
    %1021 = arith.mulf %1020, %1019 : vector<1x256xf32>
    %1022 = arith.addf %1009, %1021 : vector<1x256xf32>
    %1023 = vector.broadcast %21 : f32 to vector<1x256xf32>
    %1024 = arith.mulf %1023, %1019 : vector<1x256xf32>
    %1025 = arith.addf %1012, %1024 : vector<1x256xf32>
    %1026 = vector.broadcast %22 : f32 to vector<1x256xf32>
    %1027 = arith.mulf %1026, %1019 : vector<1x256xf32>
    %1028 = arith.addf %1015, %1027 : vector<1x256xf32>
    %1029 = vector.broadcast %23 : f32 to vector<1x256xf32>
    %1030 = arith.mulf %1029, %1019 : vector<1x256xf32>
    %1031 = arith.addf %1018, %1030 : vector<1x256xf32>
    %1032 = vector.extract_strided_slice %3 {offsets = [0, 15], sizes = [3, 241], strides = [1, 1]} : vector<3x256xf32> to vector<3x241xf32>
    %1033 = vector.extract_strided_slice %3 {offsets = [0, 0], sizes = [3, 15], strides = [1, 1]} : vector<3x256xf32> to vector<3x15xf32>
    %1034 = tpu.concatenate %1032, %1033 in 1 : vector<3x241xf32>, vector<3x15xf32> -> vector<3x256xf32>
    %1035 = vector.broadcast %9 : vector<1x256xf32> to vector<3x256xf32>
    %1036 = arith.mulf %1035, %1034 : vector<3x256xf32>
    %1037 = arith.subf %1036, %3 : vector<3x256xf32>
    %1038 = arith.mulf %1037, %1037 : vector<3x256xf32>
    %cst_219 = arith.constant 0.000000e+00 : f32
    %1039 = vector.broadcast %cst_219 : f32 to vector<3x256xf32>
    %1040 = arith.subf %1039, %1038 : vector<3x256xf32>
    %cst_220 = arith.constant 8.000000e-02 : f32
    %1041 = vector.broadcast %cst_220 : f32 to vector<3x256xf32>
    %1042 = arith.mulf %1040, %1041 : vector<3x256xf32>
    %1043 = math.exp %1042 : vector<3x256xf32>
    %cst_221 = arith.constant 0.852143764 : f32
    %1044 = vector.broadcast %cst_221 : f32 to vector<3x256xf32>
    %1045 = arith.mulf %1044, %1043 : vector<3x256xf32>
    %1046 = arith.mulf %1045, %297 : vector<3x256xf32>
    %1047 = vector.extract_strided_slice %1046 {offsets = [0, 0], sizes = [1, 256], strides = [1, 1]} : vector<3x256xf32> to vector<1x256xf32>
    %1048 = vector.broadcast %24 : f32 to vector<1x256xf32>
    %1049 = arith.mulf %1048, %1047 : vector<1x256xf32>
    %1050 = arith.addf %1022, %1049 : vector<1x256xf32>
    %1051 = vector.broadcast %25 : f32 to vector<1x256xf32>
    %1052 = arith.mulf %1051, %1047 : vector<1x256xf32>
    %1053 = arith.addf %1025, %1052 : vector<1x256xf32>
    %1054 = vector.broadcast %26 : f32 to vector<1x256xf32>
    %1055 = arith.mulf %1054, %1047 : vector<1x256xf32>
    %1056 = arith.addf %1028, %1055 : vector<1x256xf32>
    %1057 = vector.broadcast %27 : f32 to vector<1x256xf32>
    %1058 = arith.mulf %1057, %1047 : vector<1x256xf32>
    %1059 = arith.addf %1031, %1058 : vector<1x256xf32>
    %1060 = vector.extract_strided_slice %1046 {offsets = [1, 0], sizes = [1, 256], strides = [1, 1]} : vector<3x256xf32> to vector<1x256xf32>
    %1061 = vector.broadcast %28 : f32 to vector<1x256xf32>
    %1062 = arith.mulf %1061, %1060 : vector<1x256xf32>
    %1063 = arith.addf %1050, %1062 : vector<1x256xf32>
    %1064 = vector.broadcast %29 : f32 to vector<1x256xf32>
    %1065 = arith.mulf %1064, %1060 : vector<1x256xf32>
    %1066 = arith.addf %1053, %1065 : vector<1x256xf32>
    %1067 = vector.broadcast %30 : f32 to vector<1x256xf32>
    %1068 = arith.mulf %1067, %1060 : vector<1x256xf32>
    %1069 = arith.addf %1056, %1068 : vector<1x256xf32>
    %1070 = vector.broadcast %31 : f32 to vector<1x256xf32>
    %1071 = arith.mulf %1070, %1060 : vector<1x256xf32>
    %1072 = arith.addf %1059, %1071 : vector<1x256xf32>
    %1073 = vector.extract_strided_slice %1046 {offsets = [2, 0], sizes = [1, 256], strides = [1, 1]} : vector<3x256xf32> to vector<1x256xf32>
    %1074 = vector.broadcast %32 : f32 to vector<1x256xf32>
    %1075 = arith.mulf %1074, %1073 : vector<1x256xf32>
    %1076 = arith.addf %1063, %1075 : vector<1x256xf32>
    %1077 = vector.broadcast %33 : f32 to vector<1x256xf32>
    %1078 = arith.mulf %1077, %1073 : vector<1x256xf32>
    %1079 = arith.addf %1066, %1078 : vector<1x256xf32>
    %1080 = vector.broadcast %34 : f32 to vector<1x256xf32>
    %1081 = arith.mulf %1080, %1073 : vector<1x256xf32>
    %1082 = arith.addf %1069, %1081 : vector<1x256xf32>
    %1083 = vector.broadcast %35 : f32 to vector<1x256xf32>
    %1084 = arith.mulf %1083, %1073 : vector<1x256xf32>
    %1085 = arith.addf %1072, %1084 : vector<1x256xf32>
    %cst_222 = arith.constant 0.641180396 : f32
    %1086 = vector.broadcast %cst_222 : f32 to vector<1x256xf32>
    %1087 = arith.mulf %1086, %328 : vector<1x256xf32>
    %1088 = vector.broadcast %36 : f32 to vector<1x256xf32>
    %1089 = arith.mulf %1088, %1087 : vector<1x256xf32>
    %1090 = arith.addf %1076, %1089 : vector<1x256xf32>
    %1091 = vector.broadcast %37 : f32 to vector<1x256xf32>
    %1092 = arith.mulf %1091, %1087 : vector<1x256xf32>
    %1093 = arith.addf %1079, %1092 : vector<1x256xf32>
    %1094 = vector.broadcast %38 : f32 to vector<1x256xf32>
    %1095 = arith.mulf %1094, %1087 : vector<1x256xf32>
    %1096 = arith.addf %1082, %1095 : vector<1x256xf32>
    %1097 = vector.broadcast %39 : f32 to vector<1x256xf32>
    %1098 = arith.mulf %1097, %1087 : vector<1x256xf32>
    %1099 = arith.addf %1085, %1098 : vector<1x256xf32>
    %1100 = tpu.concatenate %1090, %1093, %1096, %1099 in 0 : vector<1x256xf32>, vector<1x256xf32>, vector<1x256xf32>, vector<1x256xf32> -> vector<4x256xf32>
    %1101 = vector.broadcast %9 : vector<1x256xf32> to vector<4x256xf32>
    %1102 = arith.mulf %1101, %1100 : vector<4x256xf32>
    %cst_223 = arith.constant 0.000000e+00 : f32
    %1103 = vector.broadcast %cst_223 : f32 to vector<1x256xf32>
    %cst_224 = arith.constant 0.000000e+00 : f32
    %1104 = vector.broadcast %cst_224 : f32 to vector<1x256xf32>
    %cst_225 = arith.constant 0.000000e+00 : f32
    %1105 = vector.broadcast %cst_225 : f32 to vector<1x256xf32>
    %cst_226 = arith.constant 0.000000e+00 : f32
    %1106 = vector.broadcast %cst_226 : f32 to vector<1x256xf32>
    %1107 = vector.extract_strided_slice %3 {offsets = [0, 16], sizes = [3, 240], strides = [1, 1]} : vector<3x256xf32> to vector<3x240xf32>
    %1108 = vector.extract_strided_slice %3 {offsets = [0, 0], sizes = [3, 16], strides = [1, 1]} : vector<3x256xf32> to vector<3x16xf32>
    %1109 = tpu.concatenate %1107, %1108 in 1 : vector<3x240xf32>, vector<3x16xf32> -> vector<3x256xf32>
    %1110 = vector.broadcast %10 : vector<1x256xf32> to vector<3x256xf32>
    %1111 = arith.mulf %1110, %1109 : vector<3x256xf32>
    %1112 = arith.subf %1111, %3 : vector<3x256xf32>
    %1113 = arith.mulf %1112, %1112 : vector<3x256xf32>
    %cst_227 = arith.constant 0.000000e+00 : f32
    %1114 = vector.broadcast %cst_227 : f32 to vector<3x256xf32>
    %1115 = arith.subf %1114, %1113 : vector<3x256xf32>
    %cst_228 = arith.constant 0.222222224 : f32
    %1116 = vector.broadcast %cst_228 : f32 to vector<3x256xf32>
    %1117 = arith.mulf %1115, %1116 : vector<3x256xf32>
    %1118 = math.exp %1117 : vector<3x256xf32>
    %cst_229 = arith.constant 0.800737381 : f32
    %1119 = vector.broadcast %cst_229 : f32 to vector<3x256xf32>
    %1120 = arith.mulf %1119, %1118 : vector<3x256xf32>
    %1121 = arith.mulf %1120, %174 : vector<3x256xf32>
    %1122 = vector.extract_strided_slice %1121 {offsets = [0, 0], sizes = [1, 256], strides = [1, 1]} : vector<3x256xf32> to vector<1x256xf32>
    %1123 = vector.broadcast %12 : f32 to vector<1x256xf32>
    %1124 = arith.mulf %1123, %1122 : vector<1x256xf32>
    %1125 = arith.addf %1103, %1124 : vector<1x256xf32>
    %1126 = vector.broadcast %13 : f32 to vector<1x256xf32>
    %1127 = arith.mulf %1126, %1122 : vector<1x256xf32>
    %1128 = arith.addf %1104, %1127 : vector<1x256xf32>
    %1129 = vector.broadcast %14 : f32 to vector<1x256xf32>
    %1130 = arith.mulf %1129, %1122 : vector<1x256xf32>
    %1131 = arith.addf %1105, %1130 : vector<1x256xf32>
    %1132 = vector.broadcast %15 : f32 to vector<1x256xf32>
    %1133 = arith.mulf %1132, %1122 : vector<1x256xf32>
    %1134 = arith.addf %1106, %1133 : vector<1x256xf32>
    %1135 = vector.extract_strided_slice %1121 {offsets = [1, 0], sizes = [1, 256], strides = [1, 1]} : vector<3x256xf32> to vector<1x256xf32>
    %1136 = vector.broadcast %16 : f32 to vector<1x256xf32>
    %1137 = arith.mulf %1136, %1135 : vector<1x256xf32>
    %1138 = arith.addf %1125, %1137 : vector<1x256xf32>
    %1139 = vector.broadcast %17 : f32 to vector<1x256xf32>
    %1140 = arith.mulf %1139, %1135 : vector<1x256xf32>
    %1141 = arith.addf %1128, %1140 : vector<1x256xf32>
    %1142 = vector.broadcast %18 : f32 to vector<1x256xf32>
    %1143 = arith.mulf %1142, %1135 : vector<1x256xf32>
    %1144 = arith.addf %1131, %1143 : vector<1x256xf32>
    %1145 = vector.broadcast %19 : f32 to vector<1x256xf32>
    %1146 = arith.mulf %1145, %1135 : vector<1x256xf32>
    %1147 = arith.addf %1134, %1146 : vector<1x256xf32>
    %1148 = vector.extract_strided_slice %1121 {offsets = [2, 0], sizes = [1, 256], strides = [1, 1]} : vector<3x256xf32> to vector<1x256xf32>
    %1149 = vector.broadcast %20 : f32 to vector<1x256xf32>
    %1150 = arith.mulf %1149, %1148 : vector<1x256xf32>
    %1151 = arith.addf %1138, %1150 : vector<1x256xf32>
    %1152 = vector.broadcast %21 : f32 to vector<1x256xf32>
    %1153 = arith.mulf %1152, %1148 : vector<1x256xf32>
    %1154 = arith.addf %1141, %1153 : vector<1x256xf32>
    %1155 = vector.broadcast %22 : f32 to vector<1x256xf32>
    %1156 = arith.mulf %1155, %1148 : vector<1x256xf32>
    %1157 = arith.addf %1144, %1156 : vector<1x256xf32>
    %1158 = vector.broadcast %23 : f32 to vector<1x256xf32>
    %1159 = arith.mulf %1158, %1148 : vector<1x256xf32>
    %1160 = arith.addf %1147, %1159 : vector<1x256xf32>
    %1161 = vector.extract_strided_slice %3 {offsets = [0, 16], sizes = [3, 240], strides = [1, 1]} : vector<3x256xf32> to vector<3x240xf32>
    %1162 = vector.extract_strided_slice %3 {offsets = [0, 0], sizes = [3, 16], strides = [1, 1]} : vector<3x256xf32> to vector<3x16xf32>
    %1163 = tpu.concatenate %1161, %1162 in 1 : vector<3x240xf32>, vector<3x16xf32> -> vector<3x256xf32>
    %1164 = vector.broadcast %10 : vector<1x256xf32> to vector<3x256xf32>
    %1165 = arith.mulf %1164, %1163 : vector<3x256xf32>
    %1166 = arith.subf %1165, %3 : vector<3x256xf32>
    %1167 = arith.mulf %1166, %1166 : vector<3x256xf32>
    %cst_230 = arith.constant 0.000000e+00 : f32
    %1168 = vector.broadcast %cst_230 : f32 to vector<3x256xf32>
    %1169 = arith.subf %1168, %1167 : vector<3x256xf32>
    %cst_231 = arith.constant 8.000000e-02 : f32
    %1170 = vector.broadcast %cst_231 : f32 to vector<3x256xf32>
    %1171 = arith.mulf %1169, %1170 : vector<3x256xf32>
    %1172 = math.exp %1171 : vector<3x256xf32>
    %cst_232 = arith.constant 0.923116326 : f32
    %1173 = vector.broadcast %cst_232 : f32 to vector<3x256xf32>
    %1174 = arith.mulf %1173, %1172 : vector<3x256xf32>
    %1175 = arith.mulf %1174, %297 : vector<3x256xf32>
    %1176 = vector.extract_strided_slice %1175 {offsets = [0, 0], sizes = [1, 256], strides = [1, 1]} : vector<3x256xf32> to vector<1x256xf32>
    %1177 = vector.broadcast %24 : f32 to vector<1x256xf32>
    %1178 = arith.mulf %1177, %1176 : vector<1x256xf32>
    %1179 = arith.addf %1151, %1178 : vector<1x256xf32>
    %1180 = vector.broadcast %25 : f32 to vector<1x256xf32>
    %1181 = arith.mulf %1180, %1176 : vector<1x256xf32>
    %1182 = arith.addf %1154, %1181 : vector<1x256xf32>
    %1183 = vector.broadcast %26 : f32 to vector<1x256xf32>
    %1184 = arith.mulf %1183, %1176 : vector<1x256xf32>
    %1185 = arith.addf %1157, %1184 : vector<1x256xf32>
    %1186 = vector.broadcast %27 : f32 to vector<1x256xf32>
    %1187 = arith.mulf %1186, %1176 : vector<1x256xf32>
    %1188 = arith.addf %1160, %1187 : vector<1x256xf32>
    %1189 = vector.extract_strided_slice %1175 {offsets = [1, 0], sizes = [1, 256], strides = [1, 1]} : vector<3x256xf32> to vector<1x256xf32>
    %1190 = vector.broadcast %28 : f32 to vector<1x256xf32>
    %1191 = arith.mulf %1190, %1189 : vector<1x256xf32>
    %1192 = arith.addf %1179, %1191 : vector<1x256xf32>
    %1193 = vector.broadcast %29 : f32 to vector<1x256xf32>
    %1194 = arith.mulf %1193, %1189 : vector<1x256xf32>
    %1195 = arith.addf %1182, %1194 : vector<1x256xf32>
    %1196 = vector.broadcast %30 : f32 to vector<1x256xf32>
    %1197 = arith.mulf %1196, %1189 : vector<1x256xf32>
    %1198 = arith.addf %1185, %1197 : vector<1x256xf32>
    %1199 = vector.broadcast %31 : f32 to vector<1x256xf32>
    %1200 = arith.mulf %1199, %1189 : vector<1x256xf32>
    %1201 = arith.addf %1188, %1200 : vector<1x256xf32>
    %1202 = vector.extract_strided_slice %1175 {offsets = [2, 0], sizes = [1, 256], strides = [1, 1]} : vector<3x256xf32> to vector<1x256xf32>
    %1203 = vector.broadcast %32 : f32 to vector<1x256xf32>
    %1204 = arith.mulf %1203, %1202 : vector<1x256xf32>
    %1205 = arith.addf %1192, %1204 : vector<1x256xf32>
    %1206 = vector.broadcast %33 : f32 to vector<1x256xf32>
    %1207 = arith.mulf %1206, %1202 : vector<1x256xf32>
    %1208 = arith.addf %1195, %1207 : vector<1x256xf32>
    %1209 = vector.broadcast %34 : f32 to vector<1x256xf32>
    %1210 = arith.mulf %1209, %1202 : vector<1x256xf32>
    %1211 = arith.addf %1198, %1210 : vector<1x256xf32>
    %1212 = vector.broadcast %35 : f32 to vector<1x256xf32>
    %1213 = arith.mulf %1212, %1202 : vector<1x256xf32>
    %1214 = arith.addf %1201, %1213 : vector<1x256xf32>
    %cst_233 = arith.constant 0.800737381 : f32
    %1215 = vector.broadcast %cst_233 : f32 to vector<1x256xf32>
    %1216 = arith.mulf %1215, %328 : vector<1x256xf32>
    %1217 = vector.broadcast %36 : f32 to vector<1x256xf32>
    %1218 = arith.mulf %1217, %1216 : vector<1x256xf32>
    %1219 = arith.addf %1205, %1218 : vector<1x256xf32>
    %1220 = vector.broadcast %37 : f32 to vector<1x256xf32>
    %1221 = arith.mulf %1220, %1216 : vector<1x256xf32>
    %1222 = arith.addf %1208, %1221 : vector<1x256xf32>
    %1223 = vector.broadcast %38 : f32 to vector<1x256xf32>
    %1224 = arith.mulf %1223, %1216 : vector<1x256xf32>
    %1225 = arith.addf %1211, %1224 : vector<1x256xf32>
    %1226 = vector.broadcast %39 : f32 to vector<1x256xf32>
    %1227 = arith.mulf %1226, %1216 : vector<1x256xf32>
    %1228 = arith.addf %1214, %1227 : vector<1x256xf32>
    %1229 = tpu.concatenate %1219, %1222, %1225, %1228 in 0 : vector<1x256xf32>, vector<1x256xf32>, vector<1x256xf32>, vector<1x256xf32> -> vector<4x256xf32>
    %1230 = vector.broadcast %10 : vector<1x256xf32> to vector<4x256xf32>
    %1231 = arith.mulf %1230, %1229 : vector<4x256xf32>
    %cst_234 = arith.constant 0.000000e+00 : f32
    %1232 = vector.broadcast %cst_234 : f32 to vector<1x256xf32>
    %cst_235 = arith.constant 0.000000e+00 : f32
    %1233 = vector.broadcast %cst_235 : f32 to vector<1x256xf32>
    %cst_236 = arith.constant 0.000000e+00 : f32
    %1234 = vector.broadcast %cst_236 : f32 to vector<1x256xf32>
    %cst_237 = arith.constant 0.000000e+00 : f32
    %1235 = vector.broadcast %cst_237 : f32 to vector<1x256xf32>
    %1236 = vector.extract_strided_slice %3 {offsets = [0, 17], sizes = [3, 239], strides = [1, 1]} : vector<3x256xf32> to vector<3x239xf32>
    %1237 = vector.extract_strided_slice %3 {offsets = [0, 0], sizes = [3, 17], strides = [1, 1]} : vector<3x256xf32> to vector<3x17xf32>
    %1238 = tpu.concatenate %1236, %1237 in 1 : vector<3x239xf32>, vector<3x17xf32> -> vector<3x256xf32>
    %1239 = vector.broadcast %11 : vector<1x256xf32> to vector<3x256xf32>
    %1240 = arith.mulf %1239, %1238 : vector<3x256xf32>
    %1241 = arith.subf %1240, %3 : vector<3x256xf32>
    %1242 = arith.mulf %1241, %1241 : vector<3x256xf32>
    %cst_238 = arith.constant 0.000000e+00 : f32
    %1243 = vector.broadcast %cst_238 : f32 to vector<3x256xf32>
    %1244 = arith.subf %1243, %1242 : vector<3x256xf32>
    %cst_239 = arith.constant 0.222222224 : f32
    %1245 = vector.broadcast %cst_239 : f32 to vector<3x256xf32>
    %1246 = arith.mulf %1244, %1245 : vector<3x256xf32>
    %1247 = math.exp %1246 : vector<3x256xf32>
    %cst_240 = arith.constant 0.641180396 : f32
    %1248 = vector.broadcast %cst_240 : f32 to vector<3x256xf32>
    %1249 = arith.mulf %1248, %1247 : vector<3x256xf32>
    %1250 = arith.mulf %1249, %174 : vector<3x256xf32>
    %1251 = vector.extract_strided_slice %1250 {offsets = [0, 0], sizes = [1, 256], strides = [1, 1]} : vector<3x256xf32> to vector<1x256xf32>
    %1252 = vector.broadcast %12 : f32 to vector<1x256xf32>
    %1253 = arith.mulf %1252, %1251 : vector<1x256xf32>
    %1254 = arith.addf %1232, %1253 : vector<1x256xf32>
    %1255 = vector.broadcast %13 : f32 to vector<1x256xf32>
    %1256 = arith.mulf %1255, %1251 : vector<1x256xf32>
    %1257 = arith.addf %1233, %1256 : vector<1x256xf32>
    %1258 = vector.broadcast %14 : f32 to vector<1x256xf32>
    %1259 = arith.mulf %1258, %1251 : vector<1x256xf32>
    %1260 = arith.addf %1234, %1259 : vector<1x256xf32>
    %1261 = vector.broadcast %15 : f32 to vector<1x256xf32>
    %1262 = arith.mulf %1261, %1251 : vector<1x256xf32>
    %1263 = arith.addf %1235, %1262 : vector<1x256xf32>
    %1264 = vector.extract_strided_slice %1250 {offsets = [1, 0], sizes = [1, 256], strides = [1, 1]} : vector<3x256xf32> to vector<1x256xf32>
    %1265 = vector.broadcast %16 : f32 to vector<1x256xf32>
    %1266 = arith.mulf %1265, %1264 : vector<1x256xf32>
    %1267 = arith.addf %1254, %1266 : vector<1x256xf32>
    %1268 = vector.broadcast %17 : f32 to vector<1x256xf32>
    %1269 = arith.mulf %1268, %1264 : vector<1x256xf32>
    %1270 = arith.addf %1257, %1269 : vector<1x256xf32>
    %1271 = vector.broadcast %18 : f32 to vector<1x256xf32>
    %1272 = arith.mulf %1271, %1264 : vector<1x256xf32>
    %1273 = arith.addf %1260, %1272 : vector<1x256xf32>
    %1274 = vector.broadcast %19 : f32 to vector<1x256xf32>
    %1275 = arith.mulf %1274, %1264 : vector<1x256xf32>
    %1276 = arith.addf %1263, %1275 : vector<1x256xf32>
    %1277 = vector.extract_strided_slice %1250 {offsets = [2, 0], sizes = [1, 256], strides = [1, 1]} : vector<3x256xf32> to vector<1x256xf32>
    %1278 = vector.broadcast %20 : f32 to vector<1x256xf32>
    %1279 = arith.mulf %1278, %1277 : vector<1x256xf32>
    %1280 = arith.addf %1267, %1279 : vector<1x256xf32>
    %1281 = vector.broadcast %21 : f32 to vector<1x256xf32>
    %1282 = arith.mulf %1281, %1277 : vector<1x256xf32>
    %1283 = arith.addf %1270, %1282 : vector<1x256xf32>
    %1284 = vector.broadcast %22 : f32 to vector<1x256xf32>
    %1285 = arith.mulf %1284, %1277 : vector<1x256xf32>
    %1286 = arith.addf %1273, %1285 : vector<1x256xf32>
    %1287 = vector.broadcast %23 : f32 to vector<1x256xf32>
    %1288 = arith.mulf %1287, %1277 : vector<1x256xf32>
    %1289 = arith.addf %1276, %1288 : vector<1x256xf32>
    %1290 = vector.extract_strided_slice %3 {offsets = [0, 17], sizes = [3, 239], strides = [1, 1]} : vector<3x256xf32> to vector<3x239xf32>
    %1291 = vector.extract_strided_slice %3 {offsets = [0, 0], sizes = [3, 17], strides = [1, 1]} : vector<3x256xf32> to vector<3x17xf32>
    %1292 = tpu.concatenate %1290, %1291 in 1 : vector<3x239xf32>, vector<3x17xf32> -> vector<3x256xf32>
    %1293 = vector.broadcast %11 : vector<1x256xf32> to vector<3x256xf32>
    %1294 = arith.mulf %1293, %1292 : vector<3x256xf32>
    %1295 = arith.subf %1294, %3 : vector<3x256xf32>
    %1296 = arith.mulf %1295, %1295 : vector<3x256xf32>
    %cst_241 = arith.constant 0.000000e+00 : f32
    %1297 = vector.broadcast %cst_241 : f32 to vector<3x256xf32>
    %1298 = arith.subf %1297, %1296 : vector<3x256xf32>
    %cst_242 = arith.constant 8.000000e-02 : f32
    %1299 = vector.broadcast %cst_242 : f32 to vector<3x256xf32>
    %1300 = arith.mulf %1298, %1299 : vector<3x256xf32>
    %1301 = math.exp %1300 : vector<3x256xf32>
    %cst_243 = arith.constant 0.852143764 : f32
    %1302 = vector.broadcast %cst_243 : f32 to vector<3x256xf32>
    %1303 = arith.mulf %1302, %1301 : vector<3x256xf32>
    %1304 = arith.mulf %1303, %297 : vector<3x256xf32>
    %1305 = vector.extract_strided_slice %1304 {offsets = [0, 0], sizes = [1, 256], strides = [1, 1]} : vector<3x256xf32> to vector<1x256xf32>
    %1306 = vector.broadcast %24 : f32 to vector<1x256xf32>
    %1307 = arith.mulf %1306, %1305 : vector<1x256xf32>
    %1308 = arith.addf %1280, %1307 : vector<1x256xf32>
    %1309 = vector.broadcast %25 : f32 to vector<1x256xf32>
    %1310 = arith.mulf %1309, %1305 : vector<1x256xf32>
    %1311 = arith.addf %1283, %1310 : vector<1x256xf32>
    %1312 = vector.broadcast %26 : f32 to vector<1x256xf32>
    %1313 = arith.mulf %1312, %1305 : vector<1x256xf32>
    %1314 = arith.addf %1286, %1313 : vector<1x256xf32>
    %1315 = vector.broadcast %27 : f32 to vector<1x256xf32>
    %1316 = arith.mulf %1315, %1305 : vector<1x256xf32>
    %1317 = arith.addf %1289, %1316 : vector<1x256xf32>
    %1318 = vector.extract_strided_slice %1304 {offsets = [1, 0], sizes = [1, 256], strides = [1, 1]} : vector<3x256xf32> to vector<1x256xf32>
    %1319 = vector.broadcast %28 : f32 to vector<1x256xf32>
    %1320 = arith.mulf %1319, %1318 : vector<1x256xf32>
    %1321 = arith.addf %1308, %1320 : vector<1x256xf32>
    %1322 = vector.broadcast %29 : f32 to vector<1x256xf32>
    %1323 = arith.mulf %1322, %1318 : vector<1x256xf32>
    %1324 = arith.addf %1311, %1323 : vector<1x256xf32>
    %1325 = vector.broadcast %30 : f32 to vector<1x256xf32>
    %1326 = arith.mulf %1325, %1318 : vector<1x256xf32>
    %1327 = arith.addf %1314, %1326 : vector<1x256xf32>
    %1328 = vector.broadcast %31 : f32 to vector<1x256xf32>
    %1329 = arith.mulf %1328, %1318 : vector<1x256xf32>
    %1330 = arith.addf %1317, %1329 : vector<1x256xf32>
    %1331 = vector.extract_strided_slice %1304 {offsets = [2, 0], sizes = [1, 256], strides = [1, 1]} : vector<3x256xf32> to vector<1x256xf32>
    %1332 = vector.broadcast %32 : f32 to vector<1x256xf32>
    %1333 = arith.mulf %1332, %1331 : vector<1x256xf32>
    %1334 = arith.addf %1321, %1333 : vector<1x256xf32>
    %1335 = vector.broadcast %33 : f32 to vector<1x256xf32>
    %1336 = arith.mulf %1335, %1331 : vector<1x256xf32>
    %1337 = arith.addf %1324, %1336 : vector<1x256xf32>
    %1338 = vector.broadcast %34 : f32 to vector<1x256xf32>
    %1339 = arith.mulf %1338, %1331 : vector<1x256xf32>
    %1340 = arith.addf %1327, %1339 : vector<1x256xf32>
    %1341 = vector.broadcast %35 : f32 to vector<1x256xf32>
    %1342 = arith.mulf %1341, %1331 : vector<1x256xf32>
    %1343 = arith.addf %1330, %1342 : vector<1x256xf32>
    %cst_244 = arith.constant 0.641180396 : f32
    %1344 = vector.broadcast %cst_244 : f32 to vector<1x256xf32>
    %1345 = arith.mulf %1344, %328 : vector<1x256xf32>
    %1346 = vector.broadcast %36 : f32 to vector<1x256xf32>
    %1347 = arith.mulf %1346, %1345 : vector<1x256xf32>
    %1348 = arith.addf %1334, %1347 : vector<1x256xf32>
    %1349 = vector.broadcast %37 : f32 to vector<1x256xf32>
    %1350 = arith.mulf %1349, %1345 : vector<1x256xf32>
    %1351 = arith.addf %1337, %1350 : vector<1x256xf32>
    %1352 = vector.broadcast %38 : f32 to vector<1x256xf32>
    %1353 = arith.mulf %1352, %1345 : vector<1x256xf32>
    %1354 = arith.addf %1340, %1353 : vector<1x256xf32>
    %1355 = vector.broadcast %39 : f32 to vector<1x256xf32>
    %1356 = arith.mulf %1355, %1345 : vector<1x256xf32>
    %1357 = arith.addf %1343, %1356 : vector<1x256xf32>
    %1358 = tpu.concatenate %1348, %1351, %1354, %1357 in 0 : vector<1x256xf32>, vector<1x256xf32>, vector<1x256xf32>, vector<1x256xf32> -> vector<4x256xf32>
    %1359 = vector.broadcast %11 : vector<1x256xf32> to vector<4x256xf32>
    %1360 = arith.mulf %1359, %1358 : vector<4x256xf32>
    %cst_245 = arith.constant dense<0xFF800000> : vector<256xf32>
    %1361 = vector.multi_reduction <maximumf>, %1, %cst_245 [0] : vector<4x256xf32> to vector<256xf32>
    %1362 = vector.shape_cast %1361 : vector<256xf32> to vector<1x256xf32>
    %1363 = vector.broadcast %1362 : vector<1x256xf32> to vector<4x256xf32>
    %1364 = arith.subf %1, %1363 : vector<4x256xf32>
    %1365 = math.exp %1364 : vector<4x256xf32>
    %cst_246 = arith.constant dense<0.000000e+00> : vector<256xf32>
    %1366 = vector.multi_reduction <add>, %1365, %cst_246 [0] : vector<4x256xf32> to vector<256xf32>
    %1367 = vector.shape_cast %1366 : vector<256xf32> to vector<1x256xf32>
    %cst_247 = arith.constant 1.000000e+00 : f32
    %1368 = vector.broadcast %cst_247 : f32 to vector<1x256xf32>
    %1369 = arith.divf %1368, %1367 : vector<1x256xf32>
    %1370 = vector.broadcast %1369 : vector<1x256xf32> to vector<4x256xf32>
    %1371 = arith.mulf %1365, %1370 : vector<4x256xf32>
    %cst_248 = arith.constant 0.000000e+00 : f32
    %1372 = vector.broadcast %cst_248 : f32 to vector<4x256xf32>
    %1373 = vector.extract_strided_slice %1371 {offsets = [0, 239], sizes = [4, 17], strides = [1, 1]} : vector<4x256xf32> to vector<4x17xf32>
    %1374 = vector.extract_strided_slice %1371 {offsets = [0, 0], sizes = [4, 239], strides = [1, 1]} : vector<4x256xf32> to vector<4x239xf32>
    %1375 = tpu.concatenate %1373, %1374 in 1 : vector<4x17xf32>, vector<4x239xf32> -> vector<4x256xf32>
    %1376 = arith.mulf %1375, %457 : vector<4x256xf32>
    %1377 = arith.addf %1372, %1376 : vector<4x256xf32>
    %1378 = vector.extract_strided_slice %1371 {offsets = [0, 240], sizes = [4, 16], strides = [1, 1]} : vector<4x256xf32> to vector<4x16xf32>
    %1379 = vector.extract_strided_slice %1371 {offsets = [0, 0], sizes = [4, 240], strides = [1, 1]} : vector<4x256xf32> to vector<4x240xf32>
    %1380 = tpu.concatenate %1378, %1379 in 1 : vector<4x16xf32>, vector<4x240xf32> -> vector<4x256xf32>
    %1381 = arith.mulf %1380, %586 : vector<4x256xf32>
    %1382 = arith.addf %1377, %1381 : vector<4x256xf32>
    %1383 = vector.extract_strided_slice %1371 {offsets = [0, 241], sizes = [4, 15], strides = [1, 1]} : vector<4x256xf32> to vector<4x15xf32>
    %1384 = vector.extract_strided_slice %1371 {offsets = [0, 0], sizes = [4, 241], strides = [1, 1]} : vector<4x256xf32> to vector<4x241xf32>
    %1385 = tpu.concatenate %1383, %1384 in 1 : vector<4x15xf32>, vector<4x241xf32> -> vector<4x256xf32>
    %1386 = arith.mulf %1385, %715 : vector<4x256xf32>
    %1387 = arith.addf %1382, %1386 : vector<4x256xf32>
    %1388 = vector.extract_strided_slice %1371 {offsets = [0, 255], sizes = [4, 1], strides = [1, 1]} : vector<4x256xf32> to vector<4x1xf32>
    %1389 = vector.extract_strided_slice %1371 {offsets = [0, 0], sizes = [4, 255], strides = [1, 1]} : vector<4x256xf32> to vector<4x255xf32>
    %1390 = tpu.concatenate %1388, %1389 in 1 : vector<4x1xf32>, vector<4x255xf32> -> vector<4x256xf32>
    %1391 = arith.mulf %1390, %844 : vector<4x256xf32>
    %1392 = arith.addf %1387, %1391 : vector<4x256xf32>
    %1393 = vector.extract_strided_slice %1371 {offsets = [0, 1], sizes = [4, 255], strides = [1, 1]} : vector<4x256xf32> to vector<4x255xf32>
    %1394 = vector.extract_strided_slice %1371 {offsets = [0, 0], sizes = [4, 1], strides = [1, 1]} : vector<4x256xf32> to vector<4x1xf32>
    %1395 = tpu.concatenate %1393, %1394 in 1 : vector<4x255xf32>, vector<4x1xf32> -> vector<4x256xf32>
    %1396 = arith.mulf %1395, %973 : vector<4x256xf32>
    %1397 = arith.addf %1392, %1396 : vector<4x256xf32>
    %1398 = vector.extract_strided_slice %1371 {offsets = [0, 15], sizes = [4, 241], strides = [1, 1]} : vector<4x256xf32> to vector<4x241xf32>
    %1399 = vector.extract_strided_slice %1371 {offsets = [0, 0], sizes = [4, 15], strides = [1, 1]} : vector<4x256xf32> to vector<4x15xf32>
    %1400 = tpu.concatenate %1398, %1399 in 1 : vector<4x241xf32>, vector<4x15xf32> -> vector<4x256xf32>
    %1401 = arith.mulf %1400, %1102 : vector<4x256xf32>
    %1402 = arith.addf %1397, %1401 : vector<4x256xf32>
    %1403 = vector.extract_strided_slice %1371 {offsets = [0, 16], sizes = [4, 240], strides = [1, 1]} : vector<4x256xf32> to vector<4x240xf32>
    %1404 = vector.extract_strided_slice %1371 {offsets = [0, 0], sizes = [4, 16], strides = [1, 1]} : vector<4x256xf32> to vector<4x16xf32>
    %1405 = tpu.concatenate %1403, %1404 in 1 : vector<4x240xf32>, vector<4x16xf32> -> vector<4x256xf32>
    %1406 = arith.mulf %1405, %1231 : vector<4x256xf32>
    %1407 = arith.addf %1402, %1406 : vector<4x256xf32>
    %1408 = vector.extract_strided_slice %1371 {offsets = [0, 17], sizes = [4, 239], strides = [1, 1]} : vector<4x256xf32> to vector<4x239xf32>
    %1409 = vector.extract_strided_slice %1371 {offsets = [0, 0], sizes = [4, 17], strides = [1, 1]} : vector<4x256xf32> to vector<4x17xf32>
    %1410 = tpu.concatenate %1408, %1409 in 1 : vector<4x239xf32>, vector<4x17xf32> -> vector<4x256xf32>
    %1411 = arith.mulf %1410, %1360 : vector<4x256xf32>
    %1412 = arith.addf %1407, %1411 : vector<4x256xf32>
    %cst_249 = arith.constant 0.000000e+00 : f32
    %1413 = vector.broadcast %cst_249 : f32 to vector<1x256xf32>
    %1414 = vector.extract_strided_slice %1412 {offsets = [1, 0], sizes = [1, 256], strides = [1, 1]} : vector<4x256xf32> to vector<1x256xf32>
    %1415 = vector.broadcast %40 : f32 to vector<1x256xf32>
    %1416 = arith.mulf %1415, %1414 : vector<1x256xf32>
    %1417 = arith.addf %1413, %1416 : vector<1x256xf32>
    %1418 = vector.extract_strided_slice %1412 {offsets = [2, 0], sizes = [1, 256], strides = [1, 1]} : vector<4x256xf32> to vector<1x256xf32>
    %1419 = vector.broadcast %41 : f32 to vector<1x256xf32>
    %1420 = arith.mulf %1419, %1418 : vector<1x256xf32>
    %1421 = arith.addf %1417, %1420 : vector<1x256xf32>
    %1422 = vector.extract_strided_slice %1412 {offsets = [3, 0], sizes = [1, 256], strides = [1, 1]} : vector<4x256xf32> to vector<1x256xf32>
    %1423 = vector.broadcast %42 : f32 to vector<1x256xf32>
    %1424 = arith.mulf %1423, %1422 : vector<1x256xf32>
    %1425 = arith.addf %1421, %1424 : vector<1x256xf32>
    %cst_250 = arith.constant 0.000000e+00 : f32
    %1426 = vector.broadcast %cst_250 : f32 to vector<1x256xf32>
    %1427 = vector.extract_strided_slice %1412 {offsets = [0, 0], sizes = [1, 256], strides = [1, 1]} : vector<4x256xf32> to vector<1x256xf32>
    %1428 = vector.broadcast %43 : f32 to vector<1x256xf32>
    %1429 = arith.mulf %1428, %1427 : vector<1x256xf32>
    %1430 = arith.addf %1426, %1429 : vector<1x256xf32>
    %1431 = vector.extract_strided_slice %1412 {offsets = [2, 0], sizes = [1, 256], strides = [1, 1]} : vector<4x256xf32> to vector<1x256xf32>
    %1432 = vector.broadcast %44 : f32 to vector<1x256xf32>
    %1433 = arith.mulf %1432, %1431 : vector<1x256xf32>
    %1434 = arith.addf %1430, %1433 : vector<1x256xf32>
    %1435 = vector.extract_strided_slice %1412 {offsets = [3, 0], sizes = [1, 256], strides = [1, 1]} : vector<4x256xf32> to vector<1x256xf32>
    %1436 = vector.broadcast %45 : f32 to vector<1x256xf32>
    %1437 = arith.mulf %1436, %1435 : vector<1x256xf32>
    %1438 = arith.addf %1434, %1437 : vector<1x256xf32>
    %cst_251 = arith.constant 0.000000e+00 : f32
    %1439 = vector.broadcast %cst_251 : f32 to vector<1x256xf32>
    %1440 = vector.extract_strided_slice %1412 {offsets = [0, 0], sizes = [1, 256], strides = [1, 1]} : vector<4x256xf32> to vector<1x256xf32>
    %1441 = vector.broadcast %46 : f32 to vector<1x256xf32>
    %1442 = arith.mulf %1441, %1440 : vector<1x256xf32>
    %1443 = arith.addf %1439, %1442 : vector<1x256xf32>
    %1444 = vector.extract_strided_slice %1412 {offsets = [1, 0], sizes = [1, 256], strides = [1, 1]} : vector<4x256xf32> to vector<1x256xf32>
    %1445 = vector.broadcast %47 : f32 to vector<1x256xf32>
    %1446 = arith.mulf %1445, %1444 : vector<1x256xf32>
    %1447 = arith.addf %1443, %1446 : vector<1x256xf32>
    %1448 = vector.extract_strided_slice %1412 {offsets = [3, 0], sizes = [1, 256], strides = [1, 1]} : vector<4x256xf32> to vector<1x256xf32>
    %1449 = vector.broadcast %48 : f32 to vector<1x256xf32>
    %1450 = arith.mulf %1449, %1448 : vector<1x256xf32>
    %1451 = arith.addf %1447, %1450 : vector<1x256xf32>
    %cst_252 = arith.constant 0.000000e+00 : f32
    %1452 = vector.broadcast %cst_252 : f32 to vector<1x256xf32>
    %1453 = vector.extract_strided_slice %1412 {offsets = [0, 0], sizes = [1, 256], strides = [1, 1]} : vector<4x256xf32> to vector<1x256xf32>
    %1454 = vector.broadcast %49 : f32 to vector<1x256xf32>
    %1455 = arith.mulf %1454, %1453 : vector<1x256xf32>
    %1456 = arith.addf %1452, %1455 : vector<1x256xf32>
    %1457 = vector.extract_strided_slice %1412 {offsets = [1, 0], sizes = [1, 256], strides = [1, 1]} : vector<4x256xf32> to vector<1x256xf32>
    %1458 = vector.broadcast %50 : f32 to vector<1x256xf32>
    %1459 = arith.mulf %1458, %1457 : vector<1x256xf32>
    %1460 = arith.addf %1456, %1459 : vector<1x256xf32>
    %1461 = vector.extract_strided_slice %1412 {offsets = [2, 0], sizes = [1, 256], strides = [1, 1]} : vector<4x256xf32> to vector<1x256xf32>
    %1462 = vector.broadcast %51 : f32 to vector<1x256xf32>
    %1463 = arith.mulf %1462, %1461 : vector<1x256xf32>
    %1464 = arith.addf %1460, %1463 : vector<1x256xf32>
    %1465 = tpu.concatenate %1425, %1438, %1451, %1464 in 0 : vector<1x256xf32>, vector<1x256xf32>, vector<1x256xf32>, vector<1x256xf32> -> vector<4x256xf32>
    %1466 = arith.subf %1, %1465 : vector<4x256xf32>
    %cst_253 = arith.constant dense<0xFF800000> : vector<256xf32>
    %1467 = vector.multi_reduction <maximumf>, %1466, %cst_253 [0] : vector<4x256xf32> to vector<256xf32>
    %1468 = vector.shape_cast %1467 : vector<256xf32> to vector<1x256xf32>
    %1469 = vector.broadcast %1468 : vector<1x256xf32> to vector<4x256xf32>
    %1470 = arith.subf %1466, %1469 : vector<4x256xf32>
    %1471 = math.exp %1470 : vector<4x256xf32>
    %cst_254 = arith.constant dense<0.000000e+00> : vector<256xf32>
    %1472 = vector.multi_reduction <add>, %1471, %cst_254 [0] : vector<4x256xf32> to vector<256xf32>
    %1473 = vector.shape_cast %1472 : vector<256xf32> to vector<1x256xf32>
    %cst_255 = arith.constant 1.000000e+00 : f32
    %1474 = vector.broadcast %cst_255 : f32 to vector<1x256xf32>
    %1475 = arith.divf %1474, %1473 : vector<1x256xf32>
    %1476 = vector.broadcast %1475 : vector<1x256xf32> to vector<4x256xf32>
    %1477 = arith.mulf %1471, %1476 : vector<4x256xf32>
    %cst_256 = arith.constant 0.000000e+00 : f32
    %1478 = vector.broadcast %cst_256 : f32 to vector<4x256xf32>
    %1479 = vector.extract_strided_slice %1477 {offsets = [0, 239], sizes = [4, 17], strides = [1, 1]} : vector<4x256xf32> to vector<4x17xf32>
    %1480 = vector.extract_strided_slice %1477 {offsets = [0, 0], sizes = [4, 239], strides = [1, 1]} : vector<4x256xf32> to vector<4x239xf32>
    %1481 = tpu.concatenate %1479, %1480 in 1 : vector<4x17xf32>, vector<4x239xf32> -> vector<4x256xf32>
    %1482 = arith.mulf %1481, %457 : vector<4x256xf32>
    %1483 = arith.addf %1478, %1482 : vector<4x256xf32>
    %1484 = vector.extract_strided_slice %1477 {offsets = [0, 240], sizes = [4, 16], strides = [1, 1]} : vector<4x256xf32> to vector<4x16xf32>
    %1485 = vector.extract_strided_slice %1477 {offsets = [0, 0], sizes = [4, 240], strides = [1, 1]} : vector<4x256xf32> to vector<4x240xf32>
    %1486 = tpu.concatenate %1484, %1485 in 1 : vector<4x16xf32>, vector<4x240xf32> -> vector<4x256xf32>
    %1487 = arith.mulf %1486, %586 : vector<4x256xf32>
    %1488 = arith.addf %1483, %1487 : vector<4x256xf32>
    %1489 = vector.extract_strided_slice %1477 {offsets = [0, 241], sizes = [4, 15], strides = [1, 1]} : vector<4x256xf32> to vector<4x15xf32>
    %1490 = vector.extract_strided_slice %1477 {offsets = [0, 0], sizes = [4, 241], strides = [1, 1]} : vector<4x256xf32> to vector<4x241xf32>
    %1491 = tpu.concatenate %1489, %1490 in 1 : vector<4x15xf32>, vector<4x241xf32> -> vector<4x256xf32>
    %1492 = arith.mulf %1491, %715 : vector<4x256xf32>
    %1493 = arith.addf %1488, %1492 : vector<4x256xf32>
    %1494 = vector.extract_strided_slice %1477 {offsets = [0, 255], sizes = [4, 1], strides = [1, 1]} : vector<4x256xf32> to vector<4x1xf32>
    %1495 = vector.extract_strided_slice %1477 {offsets = [0, 0], sizes = [4, 255], strides = [1, 1]} : vector<4x256xf32> to vector<4x255xf32>
    %1496 = tpu.concatenate %1494, %1495 in 1 : vector<4x1xf32>, vector<4x255xf32> -> vector<4x256xf32>
    %1497 = arith.mulf %1496, %844 : vector<4x256xf32>
    %1498 = arith.addf %1493, %1497 : vector<4x256xf32>
    %1499 = vector.extract_strided_slice %1477 {offsets = [0, 1], sizes = [4, 255], strides = [1, 1]} : vector<4x256xf32> to vector<4x255xf32>
    %1500 = vector.extract_strided_slice %1477 {offsets = [0, 0], sizes = [4, 1], strides = [1, 1]} : vector<4x256xf32> to vector<4x1xf32>
    %1501 = tpu.concatenate %1499, %1500 in 1 : vector<4x255xf32>, vector<4x1xf32> -> vector<4x256xf32>
    %1502 = arith.mulf %1501, %973 : vector<4x256xf32>
    %1503 = arith.addf %1498, %1502 : vector<4x256xf32>
    %1504 = vector.extract_strided_slice %1477 {offsets = [0, 15], sizes = [4, 241], strides = [1, 1]} : vector<4x256xf32> to vector<4x241xf32>
    %1505 = vector.extract_strided_slice %1477 {offsets = [0, 0], sizes = [4, 15], strides = [1, 1]} : vector<4x256xf32> to vector<4x15xf32>
    %1506 = tpu.concatenate %1504, %1505 in 1 : vector<4x241xf32>, vector<4x15xf32> -> vector<4x256xf32>
    %1507 = arith.mulf %1506, %1102 : vector<4x256xf32>
    %1508 = arith.addf %1503, %1507 : vector<4x256xf32>
    %1509 = vector.extract_strided_slice %1477 {offsets = [0, 16], sizes = [4, 240], strides = [1, 1]} : vector<4x256xf32> to vector<4x240xf32>
    %1510 = vector.extract_strided_slice %1477 {offsets = [0, 0], sizes = [4, 16], strides = [1, 1]} : vector<4x256xf32> to vector<4x16xf32>
    %1511 = tpu.concatenate %1509, %1510 in 1 : vector<4x240xf32>, vector<4x16xf32> -> vector<4x256xf32>
    %1512 = arith.mulf %1511, %1231 : vector<4x256xf32>
    %1513 = arith.addf %1508, %1512 : vector<4x256xf32>
    %1514 = vector.extract_strided_slice %1477 {offsets = [0, 17], sizes = [4, 239], strides = [1, 1]} : vector<4x256xf32> to vector<4x239xf32>
    %1515 = vector.extract_strided_slice %1477 {offsets = [0, 0], sizes = [4, 17], strides = [1, 1]} : vector<4x256xf32> to vector<4x17xf32>
    %1516 = tpu.concatenate %1514, %1515 in 1 : vector<4x239xf32>, vector<4x17xf32> -> vector<4x256xf32>
    %1517 = arith.mulf %1516, %1360 : vector<4x256xf32>
    %1518 = arith.addf %1513, %1517 : vector<4x256xf32>
    %cst_257 = arith.constant 0.000000e+00 : f32
    %1519 = vector.broadcast %cst_257 : f32 to vector<1x256xf32>
    %1520 = vector.extract_strided_slice %1518 {offsets = [1, 0], sizes = [1, 256], strides = [1, 1]} : vector<4x256xf32> to vector<1x256xf32>
    %1521 = vector.broadcast %40 : f32 to vector<1x256xf32>
    %1522 = arith.mulf %1521, %1520 : vector<1x256xf32>
    %1523 = arith.addf %1519, %1522 : vector<1x256xf32>
    %1524 = vector.extract_strided_slice %1518 {offsets = [2, 0], sizes = [1, 256], strides = [1, 1]} : vector<4x256xf32> to vector<1x256xf32>
    %1525 = vector.broadcast %41 : f32 to vector<1x256xf32>
    %1526 = arith.mulf %1525, %1524 : vector<1x256xf32>
    %1527 = arith.addf %1523, %1526 : vector<1x256xf32>
    %1528 = vector.extract_strided_slice %1518 {offsets = [3, 0], sizes = [1, 256], strides = [1, 1]} : vector<4x256xf32> to vector<1x256xf32>
    %1529 = vector.broadcast %42 : f32 to vector<1x256xf32>
    %1530 = arith.mulf %1529, %1528 : vector<1x256xf32>
    %1531 = arith.addf %1527, %1530 : vector<1x256xf32>
    %cst_258 = arith.constant 0.000000e+00 : f32
    %1532 = vector.broadcast %cst_258 : f32 to vector<1x256xf32>
    %1533 = vector.extract_strided_slice %1518 {offsets = [0, 0], sizes = [1, 256], strides = [1, 1]} : vector<4x256xf32> to vector<1x256xf32>
    %1534 = vector.broadcast %43 : f32 to vector<1x256xf32>
    %1535 = arith.mulf %1534, %1533 : vector<1x256xf32>
    %1536 = arith.addf %1532, %1535 : vector<1x256xf32>
    %1537 = vector.extract_strided_slice %1518 {offsets = [2, 0], sizes = [1, 256], strides = [1, 1]} : vector<4x256xf32> to vector<1x256xf32>
    %1538 = vector.broadcast %44 : f32 to vector<1x256xf32>
    %1539 = arith.mulf %1538, %1537 : vector<1x256xf32>
    %1540 = arith.addf %1536, %1539 : vector<1x256xf32>
    %1541 = vector.extract_strided_slice %1518 {offsets = [3, 0], sizes = [1, 256], strides = [1, 1]} : vector<4x256xf32> to vector<1x256xf32>
    %1542 = vector.broadcast %45 : f32 to vector<1x256xf32>
    %1543 = arith.mulf %1542, %1541 : vector<1x256xf32>
    %1544 = arith.addf %1540, %1543 : vector<1x256xf32>
    %cst_259 = arith.constant 0.000000e+00 : f32
    %1545 = vector.broadcast %cst_259 : f32 to vector<1x256xf32>
    %1546 = vector.extract_strided_slice %1518 {offsets = [0, 0], sizes = [1, 256], strides = [1, 1]} : vector<4x256xf32> to vector<1x256xf32>
    %1547 = vector.broadcast %46 : f32 to vector<1x256xf32>
    %1548 = arith.mulf %1547, %1546 : vector<1x256xf32>
    %1549 = arith.addf %1545, %1548 : vector<1x256xf32>
    %1550 = vector.extract_strided_slice %1518 {offsets = [1, 0], sizes = [1, 256], strides = [1, 1]} : vector<4x256xf32> to vector<1x256xf32>
    %1551 = vector.broadcast %47 : f32 to vector<1x256xf32>
    %1552 = arith.mulf %1551, %1550 : vector<1x256xf32>
    %1553 = arith.addf %1549, %1552 : vector<1x256xf32>
    %1554 = vector.extract_strided_slice %1518 {offsets = [3, 0], sizes = [1, 256], strides = [1, 1]} : vector<4x256xf32> to vector<1x256xf32>
    %1555 = vector.broadcast %48 : f32 to vector<1x256xf32>
    %1556 = arith.mulf %1555, %1554 : vector<1x256xf32>
    %1557 = arith.addf %1553, %1556 : vector<1x256xf32>
    %cst_260 = arith.constant 0.000000e+00 : f32
    %1558 = vector.broadcast %cst_260 : f32 to vector<1x256xf32>
    %1559 = vector.extract_strided_slice %1518 {offsets = [0, 0], sizes = [1, 256], strides = [1, 1]} : vector<4x256xf32> to vector<1x256xf32>
    %1560 = vector.broadcast %49 : f32 to vector<1x256xf32>
    %1561 = arith.mulf %1560, %1559 : vector<1x256xf32>
    %1562 = arith.addf %1558, %1561 : vector<1x256xf32>
    %1563 = vector.extract_strided_slice %1518 {offsets = [1, 0], sizes = [1, 256], strides = [1, 1]} : vector<4x256xf32> to vector<1x256xf32>
    %1564 = vector.broadcast %50 : f32 to vector<1x256xf32>
    %1565 = arith.mulf %1564, %1563 : vector<1x256xf32>
    %1566 = arith.addf %1562, %1565 : vector<1x256xf32>
    %1567 = vector.extract_strided_slice %1518 {offsets = [2, 0], sizes = [1, 256], strides = [1, 1]} : vector<4x256xf32> to vector<1x256xf32>
    %1568 = vector.broadcast %51 : f32 to vector<1x256xf32>
    %1569 = arith.mulf %1568, %1567 : vector<1x256xf32>
    %1570 = arith.addf %1566, %1569 : vector<1x256xf32>
    %1571 = tpu.concatenate %1531, %1544, %1557, %1570 in 0 : vector<1x256xf32>, vector<1x256xf32>, vector<1x256xf32>, vector<1x256xf32> -> vector<4x256xf32>
    %1572 = arith.subf %1, %1571 : vector<4x256xf32>
    %cst_261 = arith.constant dense<0xFF800000> : vector<256xf32>
    %1573 = vector.multi_reduction <maximumf>, %1572, %cst_261 [0] : vector<4x256xf32> to vector<256xf32>
    %1574 = vector.shape_cast %1573 : vector<256xf32> to vector<1x256xf32>
    %1575 = vector.broadcast %1574 : vector<1x256xf32> to vector<4x256xf32>
    %1576 = arith.subf %1572, %1575 : vector<4x256xf32>
    %1577 = math.exp %1576 : vector<4x256xf32>
    %cst_262 = arith.constant dense<0.000000e+00> : vector<256xf32>
    %1578 = vector.multi_reduction <add>, %1577, %cst_262 [0] : vector<4x256xf32> to vector<256xf32>
    %1579 = vector.shape_cast %1578 : vector<256xf32> to vector<1x256xf32>
    %cst_263 = arith.constant 1.000000e+00 : f32
    %1580 = vector.broadcast %cst_263 : f32 to vector<1x256xf32>
    %1581 = arith.divf %1580, %1579 : vector<1x256xf32>
    %1582 = vector.broadcast %1581 : vector<1x256xf32> to vector<4x256xf32>
    %1583 = arith.mulf %1577, %1582 : vector<4x256xf32>
    %cst_264 = arith.constant 0.000000e+00 : f32
    %1584 = vector.broadcast %cst_264 : f32 to vector<4x256xf32>
    %1585 = vector.extract_strided_slice %1583 {offsets = [0, 239], sizes = [4, 17], strides = [1, 1]} : vector<4x256xf32> to vector<4x17xf32>
    %1586 = vector.extract_strided_slice %1583 {offsets = [0, 0], sizes = [4, 239], strides = [1, 1]} : vector<4x256xf32> to vector<4x239xf32>
    %1587 = tpu.concatenate %1585, %1586 in 1 : vector<4x17xf32>, vector<4x239xf32> -> vector<4x256xf32>
    %1588 = arith.mulf %1587, %457 : vector<4x256xf32>
    %1589 = arith.addf %1584, %1588 : vector<4x256xf32>
    %1590 = vector.extract_strided_slice %1583 {offsets = [0, 240], sizes = [4, 16], strides = [1, 1]} : vector<4x256xf32> to vector<4x16xf32>
    %1591 = vector.extract_strided_slice %1583 {offsets = [0, 0], sizes = [4, 240], strides = [1, 1]} : vector<4x256xf32> to vector<4x240xf32>
    %1592 = tpu.concatenate %1590, %1591 in 1 : vector<4x16xf32>, vector<4x240xf32> -> vector<4x256xf32>
    %1593 = arith.mulf %1592, %586 : vector<4x256xf32>
    %1594 = arith.addf %1589, %1593 : vector<4x256xf32>
    %1595 = vector.extract_strided_slice %1583 {offsets = [0, 241], sizes = [4, 15], strides = [1, 1]} : vector<4x256xf32> to vector<4x15xf32>
    %1596 = vector.extract_strided_slice %1583 {offsets = [0, 0], sizes = [4, 241], strides = [1, 1]} : vector<4x256xf32> to vector<4x241xf32>
    %1597 = tpu.concatenate %1595, %1596 in 1 : vector<4x15xf32>, vector<4x241xf32> -> vector<4x256xf32>
    %1598 = arith.mulf %1597, %715 : vector<4x256xf32>
    %1599 = arith.addf %1594, %1598 : vector<4x256xf32>
    %1600 = vector.extract_strided_slice %1583 {offsets = [0, 255], sizes = [4, 1], strides = [1, 1]} : vector<4x256xf32> to vector<4x1xf32>
    %1601 = vector.extract_strided_slice %1583 {offsets = [0, 0], sizes = [4, 255], strides = [1, 1]} : vector<4x256xf32> to vector<4x255xf32>
    %1602 = tpu.concatenate %1600, %1601 in 1 : vector<4x1xf32>, vector<4x255xf32> -> vector<4x256xf32>
    %1603 = arith.mulf %1602, %844 : vector<4x256xf32>
    %1604 = arith.addf %1599, %1603 : vector<4x256xf32>
    %1605 = vector.extract_strided_slice %1583 {offsets = [0, 1], sizes = [4, 255], strides = [1, 1]} : vector<4x256xf32> to vector<4x255xf32>
    %1606 = vector.extract_strided_slice %1583 {offsets = [0, 0], sizes = [4, 1], strides = [1, 1]} : vector<4x256xf32> to vector<4x1xf32>
    %1607 = tpu.concatenate %1605, %1606 in 1 : vector<4x255xf32>, vector<4x1xf32> -> vector<4x256xf32>
    %1608 = arith.mulf %1607, %973 : vector<4x256xf32>
    %1609 = arith.addf %1604, %1608 : vector<4x256xf32>
    %1610 = vector.extract_strided_slice %1583 {offsets = [0, 15], sizes = [4, 241], strides = [1, 1]} : vector<4x256xf32> to vector<4x241xf32>
    %1611 = vector.extract_strided_slice %1583 {offsets = [0, 0], sizes = [4, 15], strides = [1, 1]} : vector<4x256xf32> to vector<4x15xf32>
    %1612 = tpu.concatenate %1610, %1611 in 1 : vector<4x241xf32>, vector<4x15xf32> -> vector<4x256xf32>
    %1613 = arith.mulf %1612, %1102 : vector<4x256xf32>
    %1614 = arith.addf %1609, %1613 : vector<4x256xf32>
    %1615 = vector.extract_strided_slice %1583 {offsets = [0, 16], sizes = [4, 240], strides = [1, 1]} : vector<4x256xf32> to vector<4x240xf32>
    %1616 = vector.extract_strided_slice %1583 {offsets = [0, 0], sizes = [4, 16], strides = [1, 1]} : vector<4x256xf32> to vector<4x16xf32>
    %1617 = tpu.concatenate %1615, %1616 in 1 : vector<4x240xf32>, vector<4x16xf32> -> vector<4x256xf32>
    %1618 = arith.mulf %1617, %1231 : vector<4x256xf32>
    %1619 = arith.addf %1614, %1618 : vector<4x256xf32>
    %1620 = vector.extract_strided_slice %1583 {offsets = [0, 17], sizes = [4, 239], strides = [1, 1]} : vector<4x256xf32> to vector<4x239xf32>
    %1621 = vector.extract_strided_slice %1583 {offsets = [0, 0], sizes = [4, 17], strides = [1, 1]} : vector<4x256xf32> to vector<4x17xf32>
    %1622 = tpu.concatenate %1620, %1621 in 1 : vector<4x239xf32>, vector<4x17xf32> -> vector<4x256xf32>
    %1623 = arith.mulf %1622, %1360 : vector<4x256xf32>
    %1624 = arith.addf %1619, %1623 : vector<4x256xf32>
    %cst_265 = arith.constant 0.000000e+00 : f32
    %1625 = vector.broadcast %cst_265 : f32 to vector<1x256xf32>
    %1626 = vector.extract_strided_slice %1624 {offsets = [1, 0], sizes = [1, 256], strides = [1, 1]} : vector<4x256xf32> to vector<1x256xf32>
    %1627 = vector.broadcast %40 : f32 to vector<1x256xf32>
    %1628 = arith.mulf %1627, %1626 : vector<1x256xf32>
    %1629 = arith.addf %1625, %1628 : vector<1x256xf32>
    %1630 = vector.extract_strided_slice %1624 {offsets = [2, 0], sizes = [1, 256], strides = [1, 1]} : vector<4x256xf32> to vector<1x256xf32>
    %1631 = vector.broadcast %41 : f32 to vector<1x256xf32>
    %1632 = arith.mulf %1631, %1630 : vector<1x256xf32>
    %1633 = arith.addf %1629, %1632 : vector<1x256xf32>
    %1634 = vector.extract_strided_slice %1624 {offsets = [3, 0], sizes = [1, 256], strides = [1, 1]} : vector<4x256xf32> to vector<1x256xf32>
    %1635 = vector.broadcast %42 : f32 to vector<1x256xf32>
    %1636 = arith.mulf %1635, %1634 : vector<1x256xf32>
    %1637 = arith.addf %1633, %1636 : vector<1x256xf32>
    %cst_266 = arith.constant 0.000000e+00 : f32
    %1638 = vector.broadcast %cst_266 : f32 to vector<1x256xf32>
    %1639 = vector.extract_strided_slice %1624 {offsets = [0, 0], sizes = [1, 256], strides = [1, 1]} : vector<4x256xf32> to vector<1x256xf32>
    %1640 = vector.broadcast %43 : f32 to vector<1x256xf32>
    %1641 = arith.mulf %1640, %1639 : vector<1x256xf32>
    %1642 = arith.addf %1638, %1641 : vector<1x256xf32>
    %1643 = vector.extract_strided_slice %1624 {offsets = [2, 0], sizes = [1, 256], strides = [1, 1]} : vector<4x256xf32> to vector<1x256xf32>
    %1644 = vector.broadcast %44 : f32 to vector<1x256xf32>
    %1645 = arith.mulf %1644, %1643 : vector<1x256xf32>
    %1646 = arith.addf %1642, %1645 : vector<1x256xf32>
    %1647 = vector.extract_strided_slice %1624 {offsets = [3, 0], sizes = [1, 256], strides = [1, 1]} : vector<4x256xf32> to vector<1x256xf32>
    %1648 = vector.broadcast %45 : f32 to vector<1x256xf32>
    %1649 = arith.mulf %1648, %1647 : vector<1x256xf32>
    %1650 = arith.addf %1646, %1649 : vector<1x256xf32>
    %cst_267 = arith.constant 0.000000e+00 : f32
    %1651 = vector.broadcast %cst_267 : f32 to vector<1x256xf32>
    %1652 = vector.extract_strided_slice %1624 {offsets = [0, 0], sizes = [1, 256], strides = [1, 1]} : vector<4x256xf32> to vector<1x256xf32>
    %1653 = vector.broadcast %46 : f32 to vector<1x256xf32>
    %1654 = arith.mulf %1653, %1652 : vector<1x256xf32>
    %1655 = arith.addf %1651, %1654 : vector<1x256xf32>
    %1656 = vector.extract_strided_slice %1624 {offsets = [1, 0], sizes = [1, 256], strides = [1, 1]} : vector<4x256xf32> to vector<1x256xf32>
    %1657 = vector.broadcast %47 : f32 to vector<1x256xf32>
    %1658 = arith.mulf %1657, %1656 : vector<1x256xf32>
    %1659 = arith.addf %1655, %1658 : vector<1x256xf32>
    %1660 = vector.extract_strided_slice %1624 {offsets = [3, 0], sizes = [1, 256], strides = [1, 1]} : vector<4x256xf32> to vector<1x256xf32>
    %1661 = vector.broadcast %48 : f32 to vector<1x256xf32>
    %1662 = arith.mulf %1661, %1660 : vector<1x256xf32>
    %1663 = arith.addf %1659, %1662 : vector<1x256xf32>
    %cst_268 = arith.constant 0.000000e+00 : f32
    %1664 = vector.broadcast %cst_268 : f32 to vector<1x256xf32>
    %1665 = vector.extract_strided_slice %1624 {offsets = [0, 0], sizes = [1, 256], strides = [1, 1]} : vector<4x256xf32> to vector<1x256xf32>
    %1666 = vector.broadcast %49 : f32 to vector<1x256xf32>
    %1667 = arith.mulf %1666, %1665 : vector<1x256xf32>
    %1668 = arith.addf %1664, %1667 : vector<1x256xf32>
    %1669 = vector.extract_strided_slice %1624 {offsets = [1, 0], sizes = [1, 256], strides = [1, 1]} : vector<4x256xf32> to vector<1x256xf32>
    %1670 = vector.broadcast %50 : f32 to vector<1x256xf32>
    %1671 = arith.mulf %1670, %1669 : vector<1x256xf32>
    %1672 = arith.addf %1668, %1671 : vector<1x256xf32>
    %1673 = vector.extract_strided_slice %1624 {offsets = [2, 0], sizes = [1, 256], strides = [1, 1]} : vector<4x256xf32> to vector<1x256xf32>
    %1674 = vector.broadcast %51 : f32 to vector<1x256xf32>
    %1675 = arith.mulf %1674, %1673 : vector<1x256xf32>
    %1676 = arith.addf %1672, %1675 : vector<1x256xf32>
    %1677 = tpu.concatenate %1637, %1650, %1663, %1676 in 0 : vector<1x256xf32>, vector<1x256xf32>, vector<1x256xf32>, vector<1x256xf32> -> vector<4x256xf32>
    %1678 = arith.subf %1, %1677 : vector<4x256xf32>
    %c0_269 = arith.constant 0 : index
    %c0_270 = arith.constant 0 : index
    %c0_271 = arith.constant 0 : index
    %1679 = vector.load %arg6[%c0_269, %c0_270, %c0_271] : memref<1x4x256xf32, #tpu.memory_space<vmem>>, vector<1x4x256xf32>
    %1680 = vector.shape_cast %1679 : vector<1x4x256xf32> to vector<4x256xf32>
    %1681 = vector.shape_cast %1678 : vector<4x256xf32> to vector<1x4x256xf32>
    tpu.vector_store %arg6[%c0_269, %c0_270, %c0_271], %1681 {strides = array<i32>} : memref<1x4x256xf32, #tpu.memory_space<vmem>>, vector<1x4x256xf32>,
    return
  }
  func.func @transform_0(%arg0: i32) -> (i32, i32, i32) {
    %c0_i32 = arith.constant 0 : i32
    %c0_i32_0 = arith.constant 0 : i32
    %c0_i32_1 = arith.constant 0 : i32
    return %arg0, %c0_i32, %c0_i32_0 : i32, i32, i32
  }
  func.func @transform_1(%arg0: i32) -> (i32, i32, i32) {
    %c0_i32 = arith.constant 0 : i32
    %c0_i32_0 = arith.constant 0 : i32
    %c0_i32_1 = arith.constant 0 : i32
    return %arg0, %c0_i32, %c0_i32_0 : i32, i32, i32
  }
  func.func @transform_2(%arg0: i32) -> (i32, i32) {
    %c0_i32 = arith.constant 0 : i32
    %c0_i32_0 = arith.constant 0 : i32
    %c0_i32_1 = arith.constant 0 : i32
    return %c0_i32, %c0_i32_0 : i32, i32
  }
  func.func @transform_3(%arg0: i32) -> (i32, i32) {
    %c0_i32 = arith.constant 0 : i32
    %c0_i32_0 = arith.constant 0 : i32
    %c0_i32_1 = arith.constant 0 : i32
    return %c0_i32, %c0_i32_0 : i32, i32
  }
  func.func @transform_4(%arg0: i32) -> (i32, i32) {
    %c0_i32 = arith.constant 0 : i32
    %c0_i32_0 = arith.constant 0 : i32
    %c0_i32_1 = arith.constant 0 : i32
    return %c0_i32, %c0_i32_0 : i32, i32
  }
  func.func @transform_5(%arg0: i32) -> (i32, i32, i32) {
    %c0_i32 = arith.constant 0 : i32
    %c0_i32_0 = arith.constant 0 : i32
    %c0_i32_1 = arith.constant 0 : i32
    return %arg0, %c0_i32, %c0_i32_0 : i32, i32, i32
  }
}

</mosaic_0001>

<bundles_post_ra>
// kernel: tpu_custom_call.1
= control target key start
LH: loop header
LB: loop body
LE: loop exit
PB: predicated region body
PF: predicated region fallthrough
CT: control target
= control target key end

     0   :  { %10 = vsyncpa [#allocation4], 0  ;;  %s5938_s0 = inlined_call_operand.vmem [shape: f32[2,4,256], index: 0, kind: input, shape index: {}]   ;;  %s5939_s1 = inlined_call_operand.vmem [shape: f32[2,3,256], index: 1, kind: input, shape index: {}]   ;;  %s5940_s2 = inlined_call_operand.vmem [shape: f32[8,256], index: 2, kind: input, shape index: {}]   ;;  %s5941_s3 = inlined_call_operand.vmem [shape: f32[7,4], index: 3, kind: input, shape index: {}]   ;;  %s5942_s4 = inlined_call_operand.vmem [shape: f32[4,4], index: 4, kind: input, shape index: {}]   ;;  %s5943_s5 = inlined_call_operand.hbm [shape: f32[2,4,256], index: 5, kind: output, shape index: {}]  }
   0x1   :  { %11 = vsyncpa [#allocation6], 0 }
   0x2   :  { %12 = vsyncpa [#allocation3], 0 }
   0x3   :  { %14 = vsyncpa [#allocation3 + $0x1], 0  ;;  %s4073_s18 = smov 0   ;;  %s4075_s19 = smov 0  }
   0x4   :  { %s4077_s20 = smov 0   ;;  %s4079_s21 = smov 0  }
   0x5 LB: > { %s4094_s22 = sadd.s32 4294967295, %s4030_s21   ;;  %s3702_s23 = sadd.s32 4294967294, %s4030_s21   ;;  %s4030_s21 = sphi %s4079_s21, %s6418_s21   ;;  %s4026_s20 = sphi %s4077_s20, %s6417_s20   ;;  %s4022_s19 = sphi %s4075_s19, %s6416_s19   ;;  %s4018_s18 = sphi %s4073_s18, %s6415_s18  }
   0x6   : > { %s4098_s24 = sadd.s32 1, %s4030_s21   ;;  %s142_s25 = sadd.s32 1, %s4026_s20 }
   0x7   : > { %s139_s26 = ssub.s32 %s4030_s21, %s4098_s24  ;;  %p152_p0 = scmp.ne.s32.totalorder %s4026_s20, %s4022_s19 }
   0x8   : > { %p140_p1 = scmp.eq.s32.totalorder %s139_s26, 0  ;;  %p153_p2 = scmp.eq.s32.totalorder %s4094_s22, 1 }
   0x9   : > { %p158_p3 = scmp.ne.s32.totalorder %s4022_s19, %s4018_s18  ;;  %p159_p4 = scmp.eq.s32.totalorder %s3702_s23, 1 }
   0xa   : > { %s4109_s27 = scalar_select %p140_p1, %s4026_s20, %s142_s25  }
   0xb   : > { %p4111_p5 = por %p153_p2, %p152_p0  ;;  %p4115_p6 = por %p159_p4, %p158_p3 }
   0xc   : > { %p3703_p7 = scmp.ge.s32.totalorder %s4030_s21, 1  ;;  %p166_p8 = scmp.lt.s32.totalorder %s4030_s21, 3 }
   0xd   : > { %s6125_s28 = scalar_select %p4111_p5, 1, 0 }
   0xe   : > { %s6126_s29 = scalar_select %p4115_p6, 1, 0 }
   0xf   : > { %p5944_p9 = scmp.eq.s32.totalorder %s4094_s22, 0  ;;  %p4122_p10 = pnand %p3703_p7, %p166_p8 }
  0x10   : > { %s182_s8 = sshll.u32 %s5941_s3, 4  ;;  %s193_s11 = sshll.u32 %s5942_s4, 4  ;;  %s183_s8 = int_to_ptr.vmem [resolvable:$true] %s182_s8  ;;  %s194_s11 = int_to_ptr.vmem [resolvable:$true] %s193_s11 }
  0x11   : > { %s6127_s30 = scalar_select %p4122_p10, 1, 0 }
  0x12   : > { %p3779_p11 = pneg %p4122_p10  ;;  %s3932_s13 = scalar_lea.vmem %s183_s8, 128 }
  0x13   : > { %p3933_p13 = scmp.ne.s32.totalorder %s183_s8, %s3932_s13  ;;  %p3940_p3 = scmp.lt.s32.totalorder %s183_s8, %s183_s8 }
  0x14   : > { %p4136_p12 = pnand %p5944_p9, %p3779_p11  ;;  %p3941_p4 = scmp.lt.s32.totalorder %s3932_s13, %s3932_s13 }
  0x16   : > { %p3934_p0 = pneg %p4136_p12  ;;  %p3942_p7 = por %p3941_p4, %p3940_p3 }
  0x18   : > { %p3935_p1 = pnand %p3934_p0, %p3933_p13 }
  0x1a   : > { %p3936_p2 = pneg %p3935_p1 }
  0x1c   : > { %p3943_p8 = pnand %p3942_p7, %p3936_p2 }
  0x1e   : > { %3946 = shalt.err (!%p3943_p8)
}
  0x1f   : > { %s4032_s14 = smov [#allocation2]   ;;  %s3947_s15 = scalar_lea.vmem %s194_s11, 64 }
  0x20   : > { %3782 = dma.vmem_to_smem (!%p4136_p12), %s183_s8, 128, %s4032_s14, [#allocation4]  }
  0x21   : > { %p3948_p11 = scmp.ne.s32.totalorder %s194_s11, %s3947_s15  ;;  %p3955_p5 = scmp.lt.s32.totalorder %s194_s11, %s194_s11 }
  0x22   : > { %p3956_p10 = scmp.lt.s32.totalorder %s3947_s15, %s3947_s15 }
  0x23   : > { %p3950_p9 = pnand %p3948_p11, %p3934_p0 }
  0x24   : > { %p3957_p13 = por %p3956_p10, %p3955_p5 }
  0x25   : > { %p3951_p6 = pneg %p3950_p9 }
  0x27   : > { %p3958_p1 = pnand %p3957_p13, %p3951_p6 }
  0x29   : > { %3961 = shalt.err (!%p3958_p1)
}
  0x2a   : > { %s4033_s16 = smov [#allocation5]   ;;  %p6129_p2 = scmp.ne.s32.totalorder %s6127_s30, 0 }
  0x2b   : > { %3785 = dma.vmem_to_smem (!%p4136_p12), %s194_s11, 64, %s4033_s16, [#allocation6]  }
  0x2c   : > { %222 = sbr.rel (%p6129_p2) target bundleno = 1093 (0x445), region = 40 }
  0x31   : > { %p6130_p3 = scmp.eq.s32.totalorder %s4094_s22, 0 }
  0x33   : > { %4005 = dma.done.wait (%p6130_p3), [#allocation4], 128   ;;  %p6131_p4 = pmov %p6130_p3 }
  0x34   : > { %p6132_p9 = pmov %p6130_p3 }
  0x35   : > { %4007 = vsyncadd (%p6131_p4), [#allocation4], 4294967168 }
  0x36   : > { %4009 = dma.done.wait (%p6132_p9), [#allocation6], 64   ;;  %p6133_p5 = pmov %p6130_p3 }
  0x38   : > { %4011 = vsyncadd (%p6133_p5), [#allocation6], 4294967232 }
  0x39   : > { %232 = sfence }
  0x3a   : > { %p260_p6 = scmp.lt.s32.totalorder %s4094_s22, 1  ;;  %vm2722_vm0 = vcmask 1043456   ;;  %s5955_s9 = smov 16   ;;  %v340_v42 = vlaneseq  ;;  %v272_v43 = vld [vmem:[%s5940_s2] ss:$8 sm:$0x3] }
  0x3b   : > { %s5959_s10 = smov 17   ;;  %s5953_s11 = smov 15   ;;  %v3715_v44 = vld [vmem:[%s5940_s2 + $0x1] ss:$8 sm:$0x3]  ;;  %vm334_vm1 = vcmask 138240  }
  0x3c   : > { %s261_s17 = scalar_select %p260_p6, %s4094_s22, 1  ;;  %v730_v47 = vmul.f32 0.6411804, %v272_v43  ;;  %v732_v48 = vmul.f32 0.8007374, %v3715_v44  ;;  %v341_v49 = vshrl.u32 %v340_v42, 7 }
  0x3d   : > { %s5951_s12 = smov 1   ;;  %s5961_s13 = smov 127   ;;  %v3716_v50 = vld [vmem:[%s5940_s2 + $0x2] ss:$8 sm:$0x3]  ;;  %vm374_vm2 = vcmask 130048  }
  0x3e   : > { %s3766_s23 = sshll.u32 %s261_s17, 3  ;;  %s5957_s14 = smov 113   ;;  %v733_v53 = vadd.f32 %v732_v48, %v730_v47  ;;  %v734_v54 = vmul.f32 0.6411804, %v3716_v50  ;;  %v4234_v55 = vsub.s32 0, %v341_v49  ;;  %v4236_v56 = vsub.s32 1, %v341_v49 }
  0x3f   : > { %s269_s30 = scalar_lea.vmem %s5939_s1, %s3766_s23  ;;  %s4164_s8 = scalar_lea.vmem %s5938_s0, %s3766_s23  ;;  %v3717_v57 = vld [vmem:[%s5940_s2 + $0x3] ss:$8 sm:$0x3]  ;;  %vm413_vm3 = vcmask 121856   ;;  %vm452_vm4 = vcmask 7168   ;;  %vm490_vm5 = vcmask 1039360  }
  0x40   : > { %v4166_v0 = vld [vmem:[%s269_s30] sm:$0x77]  ;;  %s5949_s15 = smov 112   ;;  %s5947_s16 = smov 111   ;;  %v735_v59 = vadd.f32 %v734_v54, %v733_v53  ;;  %v736_v61 = vmul.f32 0.8007374, %v3717_v57  ;;  %v4242_v62 = vrot.slane %v272_v43, %v4234_v55  ;;  %v4245_v63 = vrot.slane %v272_v43, %v4236_v56 }
  0x41   : > { %v270_v1 = vld [vmem:[%s4164_s8] sm:$0xff]  ;;  %372 = vrot.lane.b32.xlu1 %v4166_v0, %s5955_s9  ;;  %332 = vrot.lane.b32.xlu0 %v4166_v0, %s5959_s10  ;;  %v4175_v3 = vcombine.high %v4166_v0, %v4166_v0  ;;  %vm529_vm6 = vcmask 924672   ;;  %vm568_vm7 = vcmask 916480   ;;  %vm607_vm8 = vcmask 908288   ;;  %s4369_s25 = sld [smem:[#allocation2]]  ;;  %p6413_p12 = scmp.ne.s32.totalorder %s6125_s28, 0 }
  0x42   : > { %v2720_v2 = vcombine.high %v270_v1, %v270_v1  ;;  %v2723_v4 = vsel %vm2722_vm0, %v270_v1, -inf  ;;  %6134 = vst [vmem:[#allocation11_spill] sm:$0xff] %v4242_v62  ;;  %6135 = vst [vmem:[#allocation12_spill] sm:$0xff] %v4245_v63  ;;  %v4302_v42 = vld [vmem:[%s5940_s2 + $0x7] ss:$8 sm:$0x3] }
  0x43   : > { %v2724_v5 = vrot.slane %v2723_v4, 4  ;;  %s4377_s26 = sld [smem:[#allocation2 + $0x1]]  ;;  %vm1049_vm10 = vcmask 1040384   ;;  %vm1052_vm11 = vcmask 1041408   ;;  %vm1055_vm12 = vcmask 1042432  }
  0x44   : > { %v2730_v6 = vsel %vm2722_vm0, %v2720_v2, -inf  ;;  %s4381_s30 = sld [smem:[#allocation2 + $0x2]] }
  0x45   : > { %v2725_v7 = vmax.f32 %v2723_v4, %v2724_v5  ;;  %v2731_v8 = vrot.slane %v2730_v6, 4  ;;  %411 = vrot.lane.b32.xlu1 %v4166_v0, %s5953_s11  ;;  %329 = vrot.lane.b32.xlu0 %v4175_v3, %s5959_s10  ;;  %v3718_v4 = vld [vmem:[%s5940_s2 + $0x4] ss:$8 sm:$0x3]  ;;  %v737_v5 = vadd.f32 %v736_v61, %v735_v59  ;;  %s4385_s6 = sld [smem:[#allocation2 + $0x3]] }
  0x46   : > { %s4388_s7 = sld [smem:[#allocation2 + $0x80]] }
  0x47   : > { %v2726_v9 = vrot.slane %v2725_v7, 2  ;;  %v2732_v10 = vmax.f32 %v2730_v6, %v2731_v8  ;;  %v738_v6 = vmul.f32 0.8007374, %v3718_v4  ;;  %v4254_v8 = vrot.slane %v3715_v44, %v4234_v55  ;;  %s4393_s17 = sld [smem:[#allocation2 + $0x81]] }
  0x48   : > { %s4398_s23 = sld [smem:[#allocation2 + $0x82]] }
  0x49   : > { %v2727_v11 = vmax.f32 %v2725_v7, %v2726_v9  ;;  %v2733_v12 = vrot.slane %v2732_v10, 2  ;;  %369 = vrot.lane.b32.xlu1 %v4175_v3, %s5955_s9  ;;  %408 = vrot.lane.b32.xlu0 %v4175_v3, %s5953_s11  ;;  %6136 = vst [vmem:[#allocation13_spill] sm:$0xff] %v4254_v8 }
  0x4b   : > { %v2728_v13 = vrot.slane %v2727_v11, 1  ;;  %v2734_v14 = vmax.f32 %v2732_v10, %v2733_v12  ;;  %v4258_v12 = vrot.slane %v3715_v44, %v4236_v56 }
  0x4d   : > { %v2729_v15 = vmax.f32 %v2727_v11, %v2728_v13  ;;  %v2735_v16 = vrot.slane %v2734_v14, 1  ;;  %450 = vrot.lane.b32.xlu1 %v4166_v0, %s5951_s12  ;;  %447 = vrot.lane.b32.xlu0 %v4175_v3, %s5951_s12  ;;  %6137 = vst [vmem:[#allocation14_spill] sm:$0xff] %v4258_v12 }
  0x4f   : > { %v2736_v17 = vmax.f32 %v2734_v14, %v2735_v16  ;;  %v739_v16 = vadd.f32 %v738_v6, %v737_v5  ;;  %v4325_v5 = vrot.slane %v4302_v42, %v4234_v55 }
  0x51   : > { %v2739_v18 = vcombine.low %v2729_v15, %v2736_v17  ;;  %488 = vrot.lane.b32.xlu1 %v4175_v3, %s5961_s13  ;;  %486 = vrot.lane.b32.xlu0 %v4166_v0, %s5961_s13  ;;  %v3719_v15 = vld [vmem:[%s5940_s2 + $0x5] ss:$8 sm:$0x3]  ;;  %6148 = vst [vmem:[#allocation25_spill] sm:$0xff] %v4325_v5 }
  0x52   : > { %v740_v17 = vmul.f32 0.6411804, %v3719_v15  ;;  %v4306_v44 = vrot.slane %v3719_v15, %v4236_v56 }
  0x53   : > { %v2741_v19 = vsub.f32 %v270_v1, %v2739_v18 }
  0x54   : > { %6145 = vst [vmem:[#allocation22_spill] sm:$0xff] %v4306_v44 }
  0x55   : > { %v2742_v20 = vmul.f32 1.442695, %v2741_v19  ;;  %527 = vrot.lane.b32.xlu1 %v4175_v3, %s5957_s14  ;;  %525 = vrot.lane.b32.xlu0 %v4166_v0, %s5957_s14 }
  0x57   : > { %3839 = vpow2.f32 %v2742_v20  ;;  %v4268_v20 = vrot.slane %v3716_v50, %v4234_v55 }
  0x59   : > { %566 = vrot.lane.b32.xlu1 %v4175_v3, %s5949_s15  ;;  %564 = vrot.lane.b32.xlu0 %v4166_v0, %s5949_s15  ;;  %6138 = vst [vmem:[#allocation15_spill] sm:$0xff] %v4268_v20 }
  0x5d   : > { %605 = vrot.lane.b32.xlu1 %v4175_v3, %s5947_s16  ;;  %603 = vrot.lane.b32.xlu0 %v4166_v0, %s5947_s16 }
  0x64   : > { %v3840_v21 = vpop.eup %3839 }
  0x65   : > { %v2745_v22 = vcombine.high %v3840_v21, %v3840_v21  ;;  %v2747_v23 = vsel %vm2722_vm0, %v3840_v21, 0.0 }
  0x66   : > { %v2748_v24 = vrot.slane %v2747_v23, 4 }
  0x67   : > { %v2754_v25 = vsel %vm2722_vm0, %v2745_v22, 0.0 }
  0x68   : > { %v2749_v26 = vadd.f32 %v2748_v24, %v2747_v23  ;;  %v2755_v27 = vrot.slane %v2754_v25, 4  ;;  %v4273_v23 = vrot.slane %v3716_v50, %v4236_v56 }
  0x6a   : > { %v2750_v28 = vrot.slane %v2749_v26, 2  ;;  %v2756_v29 = vadd.f32 %v2755_v27, %v2754_v25  ;;  %6139 = vst [vmem:[#allocation16_spill] sm:$0xff] %v4273_v23 }
  0x6c   : > { %v2751_v30 = vadd.f32 %v2750_v28, %v2749_v26  ;;  %v2757_v31 = vrot.slane %v2756_v29, 2  ;;  %v3720_v28 = vld [vmem:[%s5940_s2 + $0x6] ss:$8 sm:$0x3] }
  0x6d   : > { %v4316_v61 = vrot.slane %v3720_v28, %v4234_v55 }
  0x6e   : > { %v2752_v32 = vrot.slane %v2751_v30, 1  ;;  %v2758_v33 = vadd.f32 %v2757_v31, %v2756_v29  ;;  %v4281_v29 = vrot.slane %v3717_v57, %v4234_v55  ;;  %v742_v31 = vmul.f32 0.8007374, %v3720_v28 }
  0x6f   : > { %6146 = vst [vmem:[#allocation23_spill] sm:$0xff] %v4316_v61 }
  0x70   : > { %v2753_v34 = vadd.f32 %v2752_v32, %v2751_v30  ;;  %v2759_v35 = vrot.slane %v2758_v33, 1  ;;  %6140 = vst [vmem:[#allocation17_spill] sm:$0xff] %v4281_v29  ;;  %v741_v30 = vadd.f32 %v740_v17, %v739_v16 }
  0x72   : > { %v2760_v36 = vadd.f32 %v2759_v35, %v2758_v33  ;;  %3841 = vrcp.f32 %v2753_v34  ;;  %v4286_v35 = vrot.slane %v3717_v57, %v4236_v56 }
  0x74   : > { %3843 = vrcp.f32 %v2760_v36  ;;  %6141 = vst [vmem:[#allocation18_spill] sm:$0xff] %v4286_v35 }
  0x7f   : > { %v3842_v37 = vpop.eup %3841 }
  0x81   : > { %v3844_v38 = vpop.eup %3843 }
  0x82   : > { %v2767_v39 = vcombine.low %v3842_v37, %v3844_v38 }
  0x84   : > { %v2769_v40 = vmul.f32 %v3840_v21, %v2767_v39  ;;  %v4291_v39 = vrot.slane %v3718_v4, %v4234_v55 }
  0x86   : > { %2775 = vrot.lane.b32.xlu1 %v2769_v40, %s5959_s10  ;;  %2824 = vrot.lane.b32.xlu0 %v2769_v40, %s5961_s13  ;;  %v2771_v41 = vcombine.high %v2769_v40, %v2769_v40  ;;  %6142 = vst [vmem:[#allocation19_spill] sm:$0xff] %v4291_v39 }
  0x8a   : > { %2788 = vrot.lane.b32.xlu1 %v2769_v40, %s5955_s9  ;;  %2837 = vrot.lane.b32.xlu0 %v2769_v40, %s5957_s14 }
  0x8e   : > { %2801 = vrot.lane.b32.xlu1 %v2769_v40, %s5953_s11  ;;  %2772 = vrot.lane.b32.xlu0 %v2771_v41, %s5959_s10  ;;  %s4459_s10 = sld [smem:[#allocation2 + $0x182]] }
  0x92   : > { %2814 = vrot.lane.b32.xlu1 %v2769_v40, %s5951_s12  ;;  %2785 = vrot.lane.b32.xlu0 %v2771_v41, %s5955_s9  ;;  %s4439_s9 = sld [smem:[#allocation2 + $0x103]] }
  0x96   : > { %2826 = vrot.lane.b32.xlu1 %v2771_v41, %s5961_s13  ;;  %2798 = vrot.lane.b32.xlu0 %v2771_v41, %s5953_s11  ;;  %s4434_s11 = sld [smem:[#allocation2 + $0x102]] }
  0x97   : > { %s4472_s13 = sld [smem:[#allocation2 + $0x183]] }
  0x9a   : > { %2839 = vrot.lane.b32.xlu1 %v2771_v41, %s5957_s14  ;;  %2811 = vrot.lane.b32.xlu0 %v2771_v41, %s5951_s12  ;;  %s4430_s12 = sld [smem:[#allocation2 + $0x101]] }
  0x9b   : > { %s4447_s14 = sld [smem:[#allocation2 + $0x180]] }
  0x9e   : > { %2852 = vrot.lane.b32.xlu1 %v2771_v41, %s5949_s15  ;;  %2850 = vrot.lane.b32.xlu0 %v2769_v40, %s5949_s15  ;;  %s4426_s15 = sld [smem:[#allocation2 + $0x100]] }
  0xa2   : > { %2865 = vrot.lane.b32.xlu1 %v2771_v41, %s5947_s16  ;;  %2863 = vrot.lane.b32.xlu0 %v2769_v40, %s5947_s16  ;;  %v4294_v40 = vrot.slane %v3718_v4, %v4236_v56  ;;  %v4297_v41 = vrot.slane %v3719_v15, %v4234_v55  ;;  %s4408_s16 = sld [smem:[#allocation2 + $0x83]] }
  0xa4   : > { %6143 = vst [vmem:[#allocation20_spill] sm:$0xff] %v4294_v40  ;;  %6144 = vst [vmem:[#allocation21_spill] sm:$0xff] %v4297_v41 }
  0xb3   : > { %v373_v45 = vpop.permute.xlu1 %372  ;;  %v333_v46 = vpop.permute.xlu0 %332 }
  0xb7   : > { %v412_v51 = vpop.permute.xlu1 %411  ;;  %v330_v52 = vpop.permute.xlu0 %329 }
  0xb8   : > { %v338_v1 = vsel %vm334_vm1, %v330_v52, %v333_v46  ;;  %v335_v2 = vsel %vm334_vm1, %v333_v46, %v330_v52  ;;  %v744_v46 = vmul.f32 0.6411804, %v4302_v42 }
  0xb9   : > { %v350_v7 = vmul.f32 %v4242_v62, %v338_v1  ;;  %v351_v11 = vmul.f32 %v4245_v63, %v335_v2  ;;  %v4319_v1 = vrot.slane %v3720_v28, %v4236_v56 }
  0xbb   : > { %v370_v58 = vpop.permute.xlu1 %369  ;;  %v409_v60 = vpop.permute.xlu0 %408  ;;  %v353_v18 = vsub.f32 %v350_v7, %v4166_v0  ;;  %v354_v21 = vsub.f32 %v351_v11, %v4175_v3  ;;  %6147 = vst [vmem:[#allocation24_spill] sm:$0xff] %v4319_v1 }
  0xbc   : > { %v378_v13 = vsel %vm374_vm2, %v370_v58, %v373_v45  ;;  %v375_v14 = vsel %vm374_vm2, %v373_v45, %v370_v58  ;;  %v417_v24 = vsel %vm413_vm3, %v409_v60, %v412_v51  ;;  %v414_v25 = vsel %vm413_vm3, %v412_v51, %v409_v60 }
  0xbd   : > { %v390_v19 = vmul.f32 %v4254_v8, %v378_v13  ;;  %v391_v22 = vmul.f32 %v4258_v12, %v375_v14  ;;  %v355_v32 = vmul.f32 %v353_v18, %v353_v18  ;;  %v429_v34 = vmul.f32 %v4268_v20, %v417_v24 }
  0xbe   : > { %v356_v36 = vmul.f32 %v354_v21, %v354_v21  ;;  %v430_v38 = vmul.f32 %v4273_v23, %v414_v25  ;;  %v743_v45 = vadd.f32 %v742_v31, %v741_v30 }
  0xbf   : > { %v451_v9 = vpop.permute.xlu1 %450  ;;  %v448_v10 = vpop.permute.xlu0 %447  ;;  %v392_v33 = vsub.f32 %v390_v19, %v4166_v0  ;;  %v393_v37 = vsub.f32 %v391_v22, %v4175_v3  ;;  %v357_v47 = vsub.f32 0.0, %v355_v32  ;;  %v431_v49 = vsub.f32 %v429_v34, %v4166_v0 }
  0xc0   : > { %v456_v43 = vsel %vm452_vm4, %v448_v10, %v451_v9  ;;  %v453_v50 = vsel %vm452_vm4, %v451_v9, %v448_v10  ;;  %v358_v53 = vsub.f32 0.0, %v356_v36  ;;  %v432_v57 = vsub.f32 %v430_v38, %v4175_v3 }
  0xc1   : > { %v394_v48 = vmul.f32 %v392_v33, %v392_v33  ;;  %v395_v54 = vmul.f32 %v393_v37, %v393_v37  ;;  %v468_v59 = vmul.f32 %v4281_v29, %v456_v43  ;;  %v469_v2 = vmul.f32 %v4286_v35, %v453_v50 }
  0xc2   : > { %v4327_v6 = vadd.f32 %v744_v46, %v743_v45  ;;  %v359_v7 = vmul.f32 0.22222222, %v357_v47  ;;  %v433_v10 = vmul.f32 %v431_v49, %v431_v49  ;;  %v360_v13 = vmul.f32 0.22222222, %v358_v53 }
  0xc3   : > { %v489_v26 = vpop.permute.xlu1 %488  ;;  %v487_v27 = vpop.permute.xlu0 %486  ;;  %v396_v9 = vsub.f32 0.0, %v394_v48  ;;  %v397_v14 = vsub.f32 0.0, %v395_v54  ;;  %v4330_v15 = vmul.f32 %v432_v57, %v432_v57  ;;  %v646_v17 = vmul.f32 0.08, %v357_v47 }
  0xc4   : > { %v491_v58 = vsel %vm490_vm5, %v487_v27, %v489_v26  ;;  %v495_v60 = vsel %vm490_vm5, %v489_v26, %v487_v27  ;;  %v470_v18 = vsub.f32 %v468_v59, %v4166_v0  ;;  %v647_v22 = vmul.f32 0.08, %v358_v53 }
  0xc5   : > { %v507_v11 = vmul.f32 %v4291_v39, %v491_v58  ;;  %v508_v16 = vmul.f32 %v4294_v40, %v495_v60  ;;  %v471_v24 = vsub.f32 %v469_v2, %v4175_v3  ;;  %3845 = vrcp.f32 %v4327_v6 }
  0xc6   : > { %v361_v26 = vmul.f32 1.442695, %v359_v7  ;;  %v398_v27 = vmul.f32 0.22222222, %v396_v9  ;;  %v435_v28 = vsub.f32 0.0, %v433_v10  ;;  %v436_v33 = vsub.f32 0.0, %v4330_v15 }
  0xc7   : > { %v528_v51 = vpop.permute.xlu1 %527  ;;  %v526_v52 = vpop.permute.xlu0 %525  ;;  %v509_v30 = vsub.f32 %v507_v11, %v4166_v0  ;;  %v363_v31 = vmul.f32 1.442695, %v360_v13  ;;  %v399_v32 = vmul.f32 0.22222222, %v397_v14  ;;  %v510_v34 = vsub.f32 %v508_v16, %v4175_v3 }
  0xc8   : > { %v530_v4 = vsel %vm529_vm6, %v526_v52, %v528_v51  ;;  %v534_v19 = vsel %vm529_vm6, %v528_v51, %v526_v52  ;;  %v648_v36 = vmul.f32 1.442695, %v646_v17  ;;  %v656_v37 = vmul.f32 0.08, %v396_v9 }
  0xc9   : > { %v546_v21 = vmul.f32 %v4297_v41, %v530_v4  ;;  %v547_v25 = vmul.f32 %v4306_v44, %v534_v19  ;;  %v472_v38 = vmul.f32 %v470_v18, %v470_v18  ;;  %v650_v45 = vmul.f32 1.442695, %v647_v22 }
  0xca   : > { %v657_v46 = vmul.f32 0.08, %v397_v14  ;;  %v473_v47 = vmul.f32 %v471_v24, %v471_v24  ;;  %3847 = vpow2.f32 %v361_v26  ;;  %v400_v49 = vmul.f32 1.442695, %v398_v27 }
  0xcb   : > { %v548_v43 = vsub.f32 %v546_v21, %v4166_v0  ;;  %v549_v48 = vsub.f32 %v547_v25, %v4175_v3  ;;  %v437_v50 = vmul.f32 0.22222222, %v435_v28  ;;  %v4344_v51 = vmul.f32 %v509_v30, %v509_v30  ;;  %v567_v60 = vpop.permute.xlu1 %566  ;;  %v565_v2 = vpop.permute.xlu0 %564 }
  0xcc   : > { %3849 = vpow2.f32 %v363_v31  ;;  %v402_v52 = vmul.f32 1.442695, %v399_v32  ;;  %v438_v53 = vmul.f32 0.22222222, %v436_v33  ;;  %v4346_v54 = vmul.f32 %v510_v34, %v510_v34 }
  0xcd   : > { %3851 = vpow2.f32 %v648_v36  ;;  %v658_v57 = vmul.f32 1.442695, %v656_v37  ;;  %v474_v58 = vsub.f32 0.0, %v472_v38  ;;  %v4348_v59 = vmul.f32 %v548_v43, %v548_v43 }
  0xce   : > { %3853 = vpow2.f32 %v650_v45  ;;  %v660_v4 = vmul.f32 1.442695, %v657_v46  ;;  %v475_v7 = vsub.f32 0.0, %v473_v47  ;;  %v4350_v9 = vmul.f32 %v549_v48, %v549_v48 }
  0xcf   : > { %3855 = vpow2.f32 %v400_v49  ;;  %v439_v10 = vmul.f32 1.442695, %v437_v50  ;;  %v666_v11 = vmul.f32 0.08, %v435_v28  ;;  %v513_v13 = vsub.f32 0.0, %v4344_v51  ;;  %v606_v28 = vpop.permute.xlu1 %605  ;;  %v604_v30 = vpop.permute.xlu0 %603 }
  0xd0   : > { %3857 = vpow2.f32 %v402_v52  ;;  %v441_v14 = vmul.f32 1.442695, %v438_v53  ;;  %v514_v15 = vsub.f32 0.0, %v4346_v54  ;;  %v4356_v16 = vrot.slane %v4302_v42, %v4236_v56 }
  0xd1   : > { %3859 = vpow2.f32 %v658_v57  ;;  %v476_v17 = vmul.f32 0.22222222, %v474_v58  ;;  %v552_v18 = vsub.f32 0.0, %v4348_v59  ;;  %v569_v19 = vsel %vm568_vm7, %v565_v2, %v567_v60 }
  0xd2   : > { %6149 = vst [vmem:[#allocation26_spill] sm:$0xff] %v4356_v16  ;;  %3861 = vpow2.f32 %v660_v4  ;;  %v477_v21 = vmul.f32 0.22222222, %v475_v7  ;;  %v553_v22 = vsub.f32 0.0, %v4350_v9  ;;  %v573_v24 = vsel %vm568_vm7, %v567_v60, %v565_v2  ;;  %v4362_v25 = vpop.eup %3845 }
  0xd3   : > { %3863 = vpow2.f32 %v439_v10  ;;  %v667_v26 = vmul.f32 0.08, %v436_v33  ;;  %v668_v27 = vmul.f32 1.442695, %v666_v11  ;;  %v515_v42 = vmul.f32 0.22222222, %v513_v13 }
  0xd4   : > { %3865 = vpow2.f32 %v441_v14  ;;  %v676_v31 = vmul.f32 0.08, %v474_v58  ;;  %v516_v32 = vmul.f32 0.22222222, %v514_v15  ;;  %v585_v34 = vmul.f32 %v4316_v61, %v569_v19 }
  0xd5   : > { %v478_v36 = vmul.f32 1.442695, %v476_v17  ;;  %v677_v37 = vmul.f32 0.08, %v475_v7  ;;  %v554_v33 = vmul.f32 0.22222222, %v552_v18  ;;  %v586_v38 = vmul.f32 %v4319_v1, %v573_v24 }
  0xd6   : > { %v480_v43 = vmul.f32 1.442695, %v477_v21  ;;  %v555_v45 = vmul.f32 0.22222222, %v553_v22  ;;  %v587_v46 = vsub.f32 %v585_v34, %v4166_v0  ;;  %v608_v47 = vsel %vm607_vm8, %v604_v30, %v606_v28 }
  0xd7   : > { %v517_v48 = vmul.f32 1.442695, %v515_v42  ;;  %v588_v49 = vsub.f32 %v586_v38, %v4175_v3  ;;  %v612_v50 = vsel %vm607_vm8, %v606_v28, %v604_v30  ;;  %v624_v52 = vmul.f32 %v4325_v5, %v608_v47  ;;  %v3848_v53 = vpop.eup %3847 }
  0xd8   : > { %3867 = vpow2.f32 %v668_v27  ;;  %v519_v57 = vmul.f32 1.442695, %v516_v32  ;;  %v589_v58 = vmul.f32 %v587_v46, %v587_v46  ;;  %v625_v60 = vmul.f32 %v4356_v16, %v612_v50 }
  0xd9   : > { %v3850_v2 = vpop.eup %3849  ;;  %3869 = vpow2.f32 %v478_v36  ;;  %v556_v4 = vmul.f32 1.442695, %v554_v33  ;;  %v590_v7 = vmul.f32 %v588_v49, %v588_v49  ;;  %v626_v10 = vsub.f32 %v624_v52, %v4166_v0 }
  0xda   : > { %v4391_v11 = vpop.eup %3851  ;;  %3871 = vpow2.f32 %v480_v43  ;;  %v558_v14 = vmul.f32 1.442695, %v555_v45  ;;  %v591_v17 = vsub.f32 0.0, %v589_v58  ;;  %v627_v19 = vsub.f32 %v625_v60, %v4175_v3 }
  0xdb   : > { %v4396_v21 = vpop.eup %3853  ;;  %v670_v24 = vmul.f32 1.442695, %v667_v26  ;;  %3873 = vpow2.f32 %v517_v48  ;;  %v592_v27 = vsub.f32 0.0, %v590_v7  ;;  %v628_v42 = vmul.f32 %v626_v10, %v626_v10 }
  0xdc   : > { %v3856_v28 = vpop.eup %3855  ;;  %v678_v30 = vmul.f32 1.442695, %v676_v31  ;;  %3875 = vpow2.f32 %v519_v57  ;;  %v686_v0 = vmul.f32 0.08, %v513_v13  ;;  %v593_v32 = vmul.f32 0.22222222, %v591_v17 }
  0xdd   : > { %v3858_v34 = vpop.eup %3857  ;;  %v4402_v36 = vmul.f32 0.6411804, %v3848_v53  ;;  %v680_v33 = vmul.f32 1.442695, %v677_v37  ;;  %3877 = vpow2.f32 %v556_v4  ;;  %v594_v3 = vmul.f32 0.22222222, %v592_v27 }
  0xde   : > { %v4404_v38 = vpop.eup %3859  ;;  %v4406_v26 = vmul.f32 0.6411804, %v3850_v2  ;;  %3879 = vpow2.f32 %v558_v14  ;;  %v595_v43 = vmul.f32 1.442695, %v593_v32  ;;  %v629_v31 = vmul.f32 %v627_v19, %v627_v19 }
  0xdf   : > { %v4410_v45 = vpop.eup %3861  ;;  %3881 = vpow2.f32 %v670_v24  ;;  %v687_v51 = vmul.f32 0.08, %v514_v15  ;;  %v597_v13 = vmul.f32 1.442695, %v594_v3  ;;  %v630_v46 = vsub.f32 0.0, %v628_v42 }
  0xe0   : > { %v3864_v37 = vpop.eup %3863  ;;  %v688_v47 = vmul.f32 1.442695, %v686_v0  ;;  %v696_v48 = vmul.f32 0.08, %v552_v18  ;;  %3883 = vpow2.f32 %v595_v43  ;;  %v631_v49 = vsub.f32 0.0, %v629_v31 }
  0xe1   : > { %v3866_v50 = vpop.eup %3865  ;;  %v4416_v52 = vmul.f32 0.8007374, %v3856_v28  ;;  %v697_v53 = vmul.f32 0.08, %v553_v22  ;;  %3885 = vpow2.f32 %v597_v13  ;;  %v632_v57 = vmul.f32 0.22222222, %v630_v46 }
  0xe2   : > { %v4420_v58 = vmul.f32 0.8007374, %v3858_v34  ;;  %3887 = vpow2.f32 %v678_v30  ;;  %v706_v54 = vmul.f32 0.08, %v591_v17  ;;  %v633_v15 = vmul.f32 0.22222222, %v631_v49 }
  0xe3   : > { %3889 = vpow2.f32 %v680_v33  ;;  %v690_v60 = vmul.f32 1.442695, %v687_v51  ;;  %v707_v2 = vmul.f32 0.08, %v592_v27  ;;  %v634_v59 = vmul.f32 1.442695, %v632_v57 }
  0xe4   : > { %3891 = vpow2.f32 %v688_v47  ;;  %v698_v18 = vmul.f32 1.442695, %v696_v48  ;;  %v636_v4 = vmul.f32 1.442695, %v633_v15  ;;  %v716_v7 = vmul.f32 0.08, %v630_v46 }
  0xe5   : > { %v4422_v10 = vpop.eup %3867  ;;  %v406_v9 = vadd.f32 %v4416_v52, %v4402_v36  ;;  %v700_v22 = vmul.f32 1.442695, %v697_v53  ;;  %3893 = vpow2.f32 %v634_v59  ;;  %v717_v14 = vmul.f32 0.08, %v631_v49 }
  0xe6   : > { %v3870_v17 = vpop.eup %3869  ;;  %v407_v19 = vadd.f32 %v4420_v58, %v4406_v26  ;;  %v708_v24 = vmul.f32 1.442695, %v706_v54  ;;  %3895 = vpow2.f32 %v636_v4  ;;  %v4432_v42 = vmul.f32 0.6411804, %v3864_v37 }
  0xe7   : > { %v3872_v27 = vpop.eup %3871  ;;  %3897 = vpow2.f32 %v690_v60  ;;  %v710_v28 = vmul.f32 1.442695, %v707_v2  ;;  %vm746_vm9 = vcmp.gt.f32.partialorder %v4327_v6, 0.0  ;;  %v4437_v0 = vmul.f32 0.6411804, %v3866_v50 }
  0xe8   : > { %6150 = vst [vmem:[#allocation27_spill] sm:$0xff] %v4432_v42  ;;  %v3874_v30 = vpop.eup %3873  ;;  %3899 = vpow2.f32 %v698_v18  ;;  %v4442_v32 = vstv %s4369_s25  ;;  %v718_v34 = vmul.f32 1.442695, %v716_v7  ;;  %v445_v3 = vadd.f32 %v4432_v42, %v406_v9  ;;  %s4452_s25 = sld [smem:[#allocation2 + $0x181]] }
  0xe9   : > { %6151 = vst [vmem:[#allocation28_spill] sm:$0xff] %v4437_v0  ;;  %6152 = vst [vmem:[#allocation29_spill] sm:$0xff] %v4442_v32  ;;  %v3876_v33 = vpop.eup %3875  ;;  %v4445_v43 = vmul.f32 0.8007374, %v3870_v17  ;;  %3901 = vpow2.f32 %v700_v22  ;;  %v720_v31 = vmul.f32 1.442695, %v717_v14  ;;  %v446_v13 = vadd.f32 %v4437_v0, %v407_v19 }
  0xea   : > { %v3878_v51 = vpop.eup %3877  ;;  %v4450_v46 = vmul.f32 0.8007374, %v3872_v27  ;;  %3903 = vpow2.f32 %v708_v24  ;;  %v4455_v37 = vstv %s4377_s26  ;;  %v4457_v48 = vmul.f32 0.8007374, %v3874_v30  ;;  %s4483_s26 = sld [smem:[#allocation2 + $0x200]] }
  0xeb   : > { %6153 = vst [vmem:[#allocation30_spill] sm:$0xff] %v4445_v43  ;;  %6155 = vst [vmem:[#allocation32_spill] sm:$0xff] %v4455_v37  ;;  %v3880_v47 = vpop.eup %3879  ;;  %3905 = vpow2.f32 %v710_v28  ;;  %v4462_v49 = vstv %s4381_s30  ;;  %v4465_v50 = vstv %s4385_s6  ;;  %v4468_v57 = vmul.f32 0.9231163, %v4404_v38  ;;  %s4491_s30 = sld [smem:[#allocation2 + $0x201]] }
  0xec   : > { %6154 = vst [vmem:[#allocation31_spill] sm:$0xff] %v4450_v46  ;;  %6156 = vst [vmem:[#allocation33_spill] sm:$0xff] %v4462_v49  ;;  %v3882_v53 = vpop.eup %3881  ;;  %v4470_v54 = vmul.f32 0.8007374, %v3876_v33  ;;  %v4475_v15 = vstv %s4388_s7  ;;  %3907 = vpow2.f32 %v718_v34  ;;  %v4478_v2 = vmul.f32 0.9231163, %v4410_v45 }
  0xed   : > { %6157 = vst [vmem:[#allocation34_spill] sm:$0xff] %v4465_v50  ;;  %6158 = vst [vmem:[#allocation35_spill] sm:$0xff] %v4468_v57  ;;  %v3884_v60 = vpop.eup %3883  ;;  %v484_v59 = vadd.f32 %v4445_v43, %v445_v3  ;;  %v4481_v18 = vmul.f32 0.6411804, %v3878_v51  ;;  %3909 = vpow2.f32 %v720_v31  ;;  %v4486_v4 = vmul.f32 0.85214376, %v4391_v11 }
  0xee   : > { %6159 = vst [vmem:[#allocation36_spill] sm:$0xff] %v4475_v15  ;;  %6160 = vst [vmem:[#allocation37_spill] sm:$0xff] %v4478_v2  ;;  %v3886_v38 = vpop.eup %3885  ;;  %v485_v7 = vadd.f32 %v4450_v46, %v446_v13  ;;  %v4489_v9 = vmul.f32 0.6411804, %v3880_v47  ;;  %v4494_v45 = vstv %s4393_s17  ;;  %v4497_v14 = vmul.f32 0.85214376, %v4396_v21 }
  0xef   : > { %6161 = vst [vmem:[#allocation38_spill] sm:$0xff] %v4481_v18  ;;  %6162 = vst [vmem:[#allocation39_spill] sm:$0xff] %v4486_v4  ;;  %v3888_v22 = vpop.eup %3887  ;;  %v523_v17 = vadd.f32 %v4457_v48, %v484_v59  ;;  %v4500_v19 = vmul.f32 0.8007374, %v3884_v60  ;;  %s4502_s6 = sld [smem:[#allocation2 + $0x202]]  ;;  %v4505_v11 = vstv %s4398_s23  ;;  %v664_v27 = vadd.f32 %v4468_v57, %v4486_v4 }
  0xf0   : > { %6163 = vst [vmem:[#allocation40_spill] sm:$0xff] %v4489_v9  ;;  %6164 = vst [vmem:[#allocation41_spill] sm:$0xff] %v4494_v45  ;;  %v3890_v24 = vpop.eup %3889  ;;  %v524_v28 = vadd.f32 %v4470_v54, %v485_v7  ;;  %v4510_v30 = vmul.f32 0.8007374, %v3886_v38  ;;  %s4512_s7 = sld [smem:[#allocation2 + $0x203]]  ;;  %v4515_v21 = vstv %s4408_s16  ;;  %v665_v33 = vadd.f32 %v4478_v2, %v4497_v14 }
  0xf1   : > { %6165 = vst [vmem:[#allocation42_spill] sm:$0xff] %v4497_v14  ;;  %6166 = vst [vmem:[#allocation43_spill] sm:$0xff] %v4500_v19  ;;  %v3892_v34 = vpop.eup %3891  ;;  %v562_v3 = vadd.f32 %v4481_v18, %v523_v17  ;;  %s4520_s17 = sld [smem:[#allocation2 + $0x300]]  ;;  %v4523_v31 = vstv %s4426_s15  ;;  %v4526_v51 = vstv %s4430_s12  ;;  %v4529_v47 = vmul.f32 0.85214376, %v4422_v10 }
  0xf2   : > { %6167 = vst [vmem:[#allocation44_spill] sm:$0xff] %v4505_v11  ;;  %6168 = vst [vmem:[#allocation45_spill] sm:$0xff] %v4510_v30  ;;  %v3894_v13 = vpop.eup %3893  ;;  %v563_v60 = vadd.f32 %v4489_v9, %v524_v28  ;;  %s4532_s16 = sld [smem:[#allocation2 + $0x301]]  ;;  %v749_v59 = vsel %vm746_vm9, %v4362_v25, 0.0  ;;  %v4538_v38 = vstv %s4434_s11  ;;  %v4540_v17 = vmul.f32 0.85214376, %v3882_v53 }
  0xf3   : > { %6169 = vst [vmem:[#allocation46_spill] sm:$0xff] %v4515_v21  ;;  %6170 = vst [vmem:[#allocation47_spill] sm:$0xff] %v4523_v31  ;;  %v3896_v7 = vpop.eup %3895  ;;  %v601_v1 = vadd.f32 %v4500_v19, %v562_v3  ;;  %s4543_s12 = sld [smem:[#allocation2 + $0x302]]  ;;  %v4546_v10 = vstv %s4439_s9  ;;  %v4548_v61 = vmul.f32 0.6411804, %v3894_v13  ;;  %v674_v16 = vadd.f32 %v4529_v47, %v664_v27 }
  0xf4   : > { %6171 = vst [vmem:[#allocation48_spill] sm:$0xff] %v4526_v51  ;;  %6172 = vst [vmem:[#allocation49_spill] sm:$0xff] %v4529_v47  ;;  %v3898_v28 = vpop.eup %3897  ;;  %v4551_v6 = vmul.f32 0.9231163, %v3888_v22  ;;  %v602_v25 = vadd.f32 %v4510_v30, %v563_v60  ;;  %s4554_s11 = sld [smem:[#allocation2 + $0x303]]  ;;  %v675_v35 = vadd.f32 %v4540_v17, %v665_v33  ;;  %v4566_v29 = vstv %s4447_s14 }
  0xf5   : > { %6173 = vst [vmem:[#allocation50_spill] sm:$0xff] %v4538_v38  ;;  %6174 = vst [vmem:[#allocation51_spill] sm:$0xff] %v4540_v17  ;;  %v4556_v53 = vmul.f32 0.6411804, %v3896_v7  ;;  %v3900_v3 = vpop.eup %3899  ;;  %v4561_v13 = vmul.f32 0.9231163, %v3890_v24  ;;  %v640_v22 = vadd.f32 %v4548_v61, %v601_v1  ;;  %v4574_v7 = vstv %s4452_s25 }
  0xf6   : > { %6175 = vst [vmem:[#allocation52_spill] sm:$0xff] %v4546_v10  ;;  %6176 = vst [vmem:[#allocation53_spill] sm:$0xff] %v4551_v6  ;;  %s4563_s9 = sld [smem:[#allocation2 + $0x280]]  ;;  %v3902_v27 = vpop.eup %3901  ;;  %v4569_v60 = vmul.f32 0.9231163, %v3892_v34  ;;  %v4582_v30 = vstv %s4459_s10  ;;  %v684_v19 = vadd.f32 %v4551_v6, %v674_v16  ;;  %v4599_v23 = vstv %s4491_s30 }
  0xf7   : > { %6178 = vst [vmem:[#allocation55_spill] sm:$0xff] %v4561_v13  ;;  %s4571_s15 = sld [smem:[#allocation2 + $0x281]]  ;;  %v970_v44 = vmul.f32 0.6411804, %v749_v59  ;;  %v641_v41 = vadd.f32 %v4556_v53, %v602_v25  ;;  %v3904_v24 = vpop.eup %3903  ;;  %v4577_v33 = vmul.f32 0.9231163, %v3898_v28  ;;  %3911 = vrcp.f32 %v640_v22 }
  0xf8   : > { %v4558_v5 = vpop.permute.xlu0 %2824  ;;  %6179 = vst [vmem:[#allocation56_spill] sm:$0xff] %v4569_v60  ;;  %s4579_s14 = sld [smem:[#allocation2 + $0x282]]  ;;  %v1256_v1 = vmul.f32 0.8007374, %v749_v59  ;;  %v3906_v34 = vpop.eup %3905  ;;  %v4585_v46 = vmul.f32 0.85214376, %v3900_v3  ;;  %v4590_v25 = vstv %s4472_s13  ;;  %v685_v43 = vadd.f32 %v4561_v13, %v675_v35 }
  0xf9   : > { %6177 = vst [vmem:[#allocation54_spill] sm:$0xff] %v4558_v5  ;;  %6180 = vst [vmem:[#allocation57_spill] sm:$0xff] %v4577_v33  ;;  %s4587_s23 = sld [smem:[#allocation2 + $0x283]]  ;;  %3913 = vrcp.f32 %v641_v41  ;;  %v3908_v28 = vpop.eup %3907  ;;  %v4593_v59 = vmul.f32 0.85214376, %v3902_v27  ;;  %v4596_v22 = vstv %s4483_s26  ;;  %v694_v3 = vadd.f32 %v4569_v60, %v684_v19 }
  0xfa   : > { %6181 = vst [vmem:[#allocation58_spill] sm:$0xff] %v4585_v46  ;;  %v3910_v16 = vpop.eup %3909  ;;  %v4602_v6 = vmul.f32 0.9231163, %v3904_v24  ;;  %v4605_v20 = vstv %s4502_s6  ;;  %v971_v41 = vstv %s4520_s17  ;;  %v695_v35 = vadd.f32 %v4577_v33, %v685_v43  ;;  %s5597_s10 = sld [smem:[#allocation5 + $0x1]] }
  0xfb   : > { %6182 = vst [vmem:[#allocation59_spill] sm:$0xff] %v4593_v59  ;;  %v4611_v13 = vmul.f32 0.9231163, %v3906_v34  ;;  %v986_v27 = vstv %s4532_s16  ;;  %v1001_v40 = vstv %s4543_s12  ;;  %v704_v39 = vadd.f32 %v4585_v46, %v694_v3  ;;  %s5599_s13 = sld [smem:[#allocation5 + $0x2]] }
  0xfc   : > { %6183 = vst [vmem:[#allocation60_spill] sm:$0xff] %v4602_v6  ;;  %v4608_v5 = vpop.permute.xlu0 %2837  ;;  %v4617_v9 = vstv %s4512_s7  ;;  %v1016_v19 = vstv %s4554_s11  ;;  %v4620_v24 = vmul.f32 0.85214376, %v3908_v28  ;;  %v705_v18 = vadd.f32 %v4593_v59, %v695_v35  ;;  %s5607_s25 = sld [smem:[#allocation5 + $0x3]] }
  0xfd   : > { %6184 = vst [vmem:[#allocation61_spill] sm:$0xff] %v4608_v5  ;;  %6185 = vst [vmem:[#allocation62_spill] sm:$0xff] %v4611_v13  ;;  %v4624_v17 = vstv %s4563_s9  ;;  %v972_v5 = vmul.f32 %v971_v41, %v970_v44  ;;  %v4626_v43 = vmul.f32 0.85214376, %v3910_v16  ;;  %v714_v34 = vadd.f32 %v4602_v6, %v704_v39  ;;  %v2776_v16 = vpop.permute.xlu1 %2775  ;;  %s5611_s26 = sld [smem:[#allocation5 + $0x80]] }
  0xfe   : > { %v987_v47 = vmul.f32 %v986_v27, %v970_v44  ;;  %v1002_v0 = vmul.f32 %v1001_v40, %v970_v44  ;;  %v1271_v42 = vmul.f32 %v1256_v1, %v986_v27  ;;  %v715_v3 = vadd.f32 %v4611_v13, %v705_v18  ;;  %s5615_s30 = sld [smem:[#allocation5 + $0x82]] }
  0xff   : > { %v4631_v46 = vstv %s4571_s15  ;;  %v4634_v33 = vstv %s4579_s14  ;;  %v1017_v28 = vmul.f32 %v1016_v19, %v970_v44  ;;  %v4637_v60 = vstv %s4587_s23  ;;  %s5619_s6 = sld [smem:[#allocation5 + $0x83]]  ;;  %s6396_s15 = smov 17  }
 0x100   : > { %v1257_v35 = vmul.f32 %v1256_v1, %v971_v41  ;;  %v1285_v59 = vmul.f32 %v1256_v1, %v1001_v40  ;;  %v724_v12 = vadd.f32 %v4620_v24, %v714_v34  ;;  %v2773_v8 = vpop.permute.xlu0 %2772  ;;  %v4641_v39 = vrot.slane %v972_v5, %v4234_v55  ;;  %s5625_s7 = sld [smem:[#allocation5 + $0x100]]  ;;  %s6397_s14 = smov 113  }
 0x101   : > { %v4644_v27 = vrot.slane %v972_v5, %v4236_v56  ;;  %v725_v18 = vadd.f32 %v4626_v43, %v715_v3  ;;  %v1299_v13 = vmul.f32 %v1256_v1, %v1016_v19  ;;  %v4648_v6 = vrot.slane %v987_v47, %v4234_v55  ;;  %s5629_s17 = sld [smem:[#allocation5 + $0x101]]  ;;  %s6398_s23 = smov 16  }
 0x102   : > { %6186 = vst [vmem:[#allocation63_spill] sm:$0xff] %v4641_v39  ;;  %v4651_v44 = vrot.slane %v987_v47, %v4236_v56  ;;  %v4654_v40 = vrot.slane %v1002_v0, %v4234_v55  ;;  %v4657_v41 = vrot.slane %v1271_v42, %v4234_v55  ;;  %v4660_v34 = vrot.slane %v1002_v0, %v4236_v56  ;;  %s5643_s16 = sld [smem:[#allocation5 + $0x103]] }
 0x103   : > { %6187 = vst [vmem:[#allocation64_spill] sm:$0xff] %v4644_v27  ;;  %6188 = vst [vmem:[#allocation65_spill] sm:$0xff] %v4648_v6  ;;  %v4663_v5 = vrot.slane %v1017_v28, %v4234_v55  ;;  %v4666_v1 = vrot.slane %v1017_v28, %v4236_v56  ;;  %v4669_v19 = vrot.slane %v1271_v42, %v4236_v56  ;;  %3915 = vrcp.f32 %v724_v12  ;;  %s3758_s12 = sld [smem:[#allocation5 + $0x180]] }
 0x104   : > { %6189 = vst [vmem:[#allocation66_spill] sm:$0xff] %v4651_v44  ;;  %6190 = vst [vmem:[#allocation67_spill] sm:$0xff] %v4654_v40  ;;  %v4671_v47 = vpop.eup %3911  ;;  %v4674_v3 = vrot.slane %v1257_v35, %v4234_v55  ;;  %v4680_v0 = vrot.slane %v1285_v59, %v4234_v55  ;;  %3917 = vrcp.f32 %v725_v18  ;;  %v4687_v42 = vrot.slane %v1285_v59, %v4236_v56  ;;  %s5659_s11 = sld [smem:[#allocation5 + $0x181]] }
 0x105   : > { %6191 = vst [vmem:[#allocation68_spill] sm:$0xff] %v4657_v41  ;;  %6192 = vst [vmem:[#allocation69_spill] sm:$0xff] %v4660_v34  ;;  %v4677_v41 = vrot.slane %v1257_v35, %v4236_v56  ;;  %v2489_v28 = vmul.f32 %v4671_v47, %v4548_v61  ;;  %v4690_v12 = vrot.slane %v1299_v13, %v4234_v55  ;;  %v2789_v35 = vpop.permute.xlu1 %2788  ;;  %v2786_v61 = vpop.permute.xlu0 %2785  ;;  %s5663_s9 = sld [smem:[#allocation5 + $0x182]] }
 0x106   : > { %6193 = vst [vmem:[#allocation70_spill] sm:$0xff] %v4663_v5  ;;  %6194 = vst [vmem:[#allocation71_spill] sm:$0xff] %v4666_v1  ;;  %v4682_v2 = vpop.eup %3913  ;;  %v4701_v18 = vrot.slane %v1299_v13, %v4236_v56  ;;  %v4705_v59 = vmul.f32 %v4671_v47, %v4402_v36  ;;  %v4709_v55 = vmul.f32 %v4671_v47, %v4416_v52 }
 0x107   : > { %6195 = vst [vmem:[#allocation72_spill] sm:$0xff] %v4669_v19  ;;  %6196 = vst [vmem:[#allocation73_spill] sm:$0xff] %v4671_v47  ;;  %v4723_v56 = vmul.f32 %v4682_v2, %v4420_v58  ;;  %v4727_v36 = vmul.f32 %v4671_v47, %v4457_v48  ;;  %v4731_v52 = vmul.f32 %v4682_v2, %v4470_v54 }
 0x108   : > { %6197 = vst [vmem:[#allocation74_spill] sm:$0xff] %v4674_v3  ;;  %6198 = vst [vmem:[#allocation75_spill] sm:$0xff] %v4677_v41  ;;  %v2490_v3 = vmul.f32 %v4682_v2, %v4556_v53  ;;  %v4695_v41 = vsel %vm334_vm1, %v2776_v16, %v2773_v8  ;;  %v4712_v53 = vsel %vm374_vm2, %v2789_v35, %v2786_v61 }
 0x109   : > { %6199 = vst [vmem:[#allocation76_spill] sm:$0xff] %v4680_v0  ;;  %6200 = vst [vmem:[#allocation77_spill] sm:$0xff] %v4682_v2  ;;  %v4698_v0 = vsel %vm334_vm1, %v2773_v8, %v2776_v16  ;;  %v4719_v8 = vmul.f32 %v4682_v2, %v4406_v26  ;;  %v2507_v13 = vmul.f32 %v2489_v28, %v4475_v15 }
 0x10a   : > { %6201 = vst [vmem:[#allocation78_spill] sm:$0xff] %v4687_v42  ;;  %6202 = vst [vmem:[#allocation79_spill] sm:$0xff] %v4690_v12  ;;  %v4715_v12 = vsel %vm374_vm2, %v2786_v61, %v2789_v35  ;;  %v2508_v16 = vmul.f32 %v2490_v3, %v4475_v15  ;;  %v2517_v35 = vmul.f32 %v2489_v28, %v4494_v45 }
 0x10b   : > { %6203 = vst [vmem:[#allocation80_spill] sm:$0xff] %v4695_v41  ;;  %6204 = vst [vmem:[#allocation81_spill] sm:$0xff] %v4698_v0  ;;  %v2518_v26 = vmul.f32 %v2490_v3, %v4494_v45  ;;  %v2527_v61 = vmul.f32 %v2489_v28, %v4505_v11  ;;  %v2528_v58 = vmul.f32 %v2490_v3, %v4505_v11  ;;  %v2511_v19 = vrot.slane %v2507_v13, 1 }
 0x10c   : > { %6205 = vst [vmem:[#allocation82_spill] sm:$0xff] %v4701_v18  ;;  %6206 = vst [vmem:[#allocation83_spill] sm:$0xff] %v4709_v55  ;;  %v2538_v48 = vmul.f32 %v2490_v3, %v4515_v21  ;;  %v2491_v47 = vmul.f32 %v2489_v28, %v4442_v32  ;;  %v2495_v54 = vmul.f32 %v2489_v28, %v4455_v37  ;;  %v2512_v41 = vrot.slane %v2508_v16, 1 }
 0x10d   : > { %6207 = vst [vmem:[#allocation84_spill] sm:$0xff] %v4712_v53  ;;  %6208 = vst [vmem:[#allocation85_spill] sm:$0xff] %v4715_v12  ;;  %v2537_v53 = vmul.f32 %v2489_v28, %v4515_v21  ;;  %v2499_v2 = vmul.f32 %v2489_v28, %v4462_v49  ;;  %v2503_v12 = vmul.f32 %v2489_v28, %v4465_v50  ;;  %v2521_v0 = vrot.slane %v2517_v35, 1 }
 0x10e   : > { %6209 = vst [vmem:[#allocation86_spill] sm:$0xff] %v4723_v56  ;;  %6210 = vst [vmem:[#allocation87_spill] sm:$0xff] %v4727_v36  ;;  %v2496_v36 = vmul.f32 %v2490_v3, %v4455_v37  ;;  %v2500_v18 = vmul.f32 %v2490_v3, %v4462_v49  ;;  %v2504_v42 = vmul.f32 %v2490_v3, %v4465_v50  ;;  %v2522_v57 = vrot.slane %v2518_v26, 1 }
 0x10f   : > { %6211 = vst [vmem:[#allocation88_spill] sm:$0xff] %v4731_v52  ;;  %v2492_v52 = vmul.f32 %v2490_v3, %v4442_v32  ;;  %v2531_v63 = vrot.slane %v2527_v61, 1  ;;  %v2532_v62 = vrot.slane %v2528_v58, 1  ;;  %v2541_v56 = vrot.slane %v2537_v53, 1 }
 0x110   : > { %v2542_v55 = vrot.slane %v2538_v48, 1  ;;  %v2547_v14 = vmul.f32 %v2489_v28, %v4523_v31  ;;  %v2548_v4 = vmul.f32 %v2490_v3, %v4523_v31  ;;  %v2557_v21 = vmul.f32 %v2489_v28, %v4526_v51  ;;  %v4757_v35 = vpop.eup %3915 }
 0x111   : > { %v2558_v11 = vmul.f32 %v2490_v3, %v4526_v51  ;;  %v2567_v45 = vmul.f32 %v2489_v28, %v4538_v38  ;;  %v2568_v50 = vmul.f32 %v2490_v3, %v4538_v38  ;;  %v2577_v13 = vmul.f32 %v2489_v28, %v4546_v10  ;;  %v4759_v48 = vpop.eup %3917 }
 0x112   : > { %v2578_v16 = vmul.f32 %v2490_v3, %v4546_v10  ;;  %v2515_v53 = vadd.f32 %v2511_v19, %v2491_v47  ;;  %v2516_v26 = vadd.f32 %v2512_v41, %v2492_v52  ;;  %v2525_v61 = vadd.f32 %v2521_v0, %v2495_v54 }
 0x113   : > { %v2526_v58 = vadd.f32 %v2522_v57, %v2496_v36  ;;  %v2535_v31 = vadd.f32 %v2531_v63, %v2499_v2  ;;  %v2536_v15 = vadd.f32 %v2532_v62, %v2500_v18  ;;  %v2545_v27 = vadd.f32 %v2541_v56, %v2503_v12 }
 0x114   : > { %v2546_v51 = vadd.f32 %v2542_v55, %v2504_v42  ;;  %v2551_v39 = vrot.slane %v2547_v14, 2  ;;  %v2552_v1 = vrot.slane %v2548_v4, 2  ;;  %v2561_v5 = vrot.slane %v2557_v21, 2 }
 0x115   : > { %v2562_v38 = vrot.slane %v2558_v11, 2  ;;  %v2571_v49 = vrot.slane %v2567_v45, 2  ;;  %v2572_v28 = vrot.slane %v2568_v50, 2  ;;  %v2581_v34 = vrot.slane %v2577_v13, 2 }
 0x116   : > { %v2582_v3 = vrot.slane %v2578_v16, 2  ;;  %v2565_v10 = vadd.f32 %v2561_v5, %v2525_v61  ;;  %v2587_v41 = vmul.f32 %v4757_v35, %v4620_v24  ;;  %v2588_v57 = vmul.f32 %v4759_v48, %v4626_v43 }
 0x117   : > { %v2566_v40 = vadd.f32 %v2562_v38, %v2526_v58  ;;  %v2575_v63 = vadd.f32 %v2571_v49, %v2535_v31  ;;  %v2576_v62 = vadd.f32 %v2572_v28, %v2536_v15  ;;  %v2585_v2 = vadd.f32 %v2581_v34, %v2545_v27 }
 0x118   : > { %v2586_v19 = vadd.f32 %v2582_v3, %v2546_v51  ;;  %v2555_v14 = vadd.f32 %v2551_v39, %v2515_v53  ;;  %v2556_v4 = vadd.f32 %v2552_v1, %v2516_v26  ;;  %v2593_v11 = vmul.f32 %v2587_v41, %v4574_v7 }
 0x119   : > { %v2594_v50 = vmul.f32 %v2588_v57, %v4574_v7  ;;  %v2597_v45 = vmul.f32 %v2587_v41, %v4582_v30  ;;  %v2598_v21 = vmul.f32 %v2588_v57, %v4582_v30  ;;  %v2601_v38 = vmul.f32 %v2587_v41, %v4590_v25 }
 0x11a   : > { %v2602_v24 = vmul.f32 %v2588_v57, %v4590_v25  ;;  %v2589_v43 = vmul.f32 %v2587_v41, %v4566_v29  ;;  %v2590_v49 = vmul.f32 %v2588_v57, %v4566_v29  ;;  %v2595_v15 = vadd.f32 %v2593_v11, %v2565_v10 }
 0x11b   : > { %v2596_v31 = vadd.f32 %v2594_v50, %v2566_v40  ;;  %v2599_v51 = vadd.f32 %v2597_v45, %v2575_v63  ;;  %v2600_v39 = vadd.f32 %v2598_v21, %v2576_v62  ;;  %v2603_v27 = vadd.f32 %v2601_v38, %v2585_v2 }
 0x11c   : > { %v2604_v34 = vadd.f32 %v2602_v24, %v2586_v19  ;;  %v2605_v5 = vmul.f32 %v2587_v41, %v4596_v22  ;;  %v2606_v1 = vmul.f32 %v2588_v57, %v4596_v22  ;;  %v2615_v47 = vmul.f32 %v2587_v41, %v4599_v23 }
 0x11d   : > { %v2616_v0 = vmul.f32 %v2588_v57, %v4599_v23  ;;  %v2625_v42 = vmul.f32 %v2587_v41, %v4605_v20  ;;  %v2626_v12 = vmul.f32 %v2588_v57, %v4605_v20  ;;  %v2635_v18 = vmul.f32 %v2587_v41, %v4617_v9 }
 0x11e   : > { %v2636_v10 = vmul.f32 %v2588_v57, %v4617_v9  ;;  %v2591_v40 = vadd.f32 %v2589_v43, %v2555_v14  ;;  %v2592_v55 = vadd.f32 %v2590_v49, %v2556_v4  ;;  %v2619_v56 = vrot.slane %v2615_v47, 1 }
 0x11f   : > { %v2620_v36 = vrot.slane %v2616_v0, 1  ;;  %v2629_v52 = vrot.slane %v2625_v42, 1  ;;  %v2630_v54 = vrot.slane %v2626_v12, 1  ;;  %v2639_v13 = vrot.slane %v2635_v18, 1 }
 0x120   : > { %v2640_v16 = vrot.slane %v2636_v10, 1  ;;  %v2609_v53 = vrot.slane %v2605_v5, 1  ;;  %v2610_v26 = vrot.slane %v2606_v1, 1  ;;  %v2623_v61 = vadd.f32 %v2619_v56, %v2595_v15 }
 0x121   : > { %v2624_v58 = vadd.f32 %v2620_v36, %v2596_v31  ;;  %v2633_v28 = vadd.f32 %v2629_v52, %v2599_v51  ;;  %v2634_v3 = vadd.f32 %v2630_v54, %v2600_v39  ;;  %v2643_v63 = vadd.f32 %v2639_v13, %v2603_v27  ;;  %v6212_v52 = vld [vmem:[#allocation67_spill] sm:$0xff]  ;;  %v6213_v13 = vld [vmem:[#allocation69_spill] sm:$0xff] }
 0x122   : > { %v2644_v62 = vadd.f32 %v2640_v16, %v2604_v34  ;;  %v2645_v2 = vmul.f32 %v2587_v41, %v4624_v17  ;;  %v2646_v19 = vmul.f32 %v2588_v57, %v4624_v17  ;;  %v2655_v14 = vmul.f32 %v2587_v41, %v4631_v46 }
 0x123   : > { %v2656_v4 = vmul.f32 %v2588_v57, %v4631_v46  ;;  %v2665_v11 = vmul.f32 %v2587_v41, %v4634_v33  ;;  %v2666_v50 = vmul.f32 %v2588_v57, %v4634_v33  ;;  %v2675_v45 = vmul.f32 %v2587_v41, %v4637_v60 }
 0x124   : > { %v2676_v21 = vmul.f32 %v2588_v57, %v4637_v60  ;;  %v2613_v38 = vadd.f32 %v2609_v53, %v2591_v40  ;;  %v2614_v24 = vadd.f32 %v2610_v26, %v2592_v55  ;;  %v2659_v43 = vrot.slane %v2655_v14, 2  ;;  %v6214_v53 = vld [vmem:[#allocation33_spill] sm:$0xff] }
 0x125   : > { %v2660_v49 = vrot.slane %v2656_v4, 2  ;;  %v2669_v15 = vrot.slane %v2665_v11, 2  ;;  %v2670_v31 = vrot.slane %v2666_v50, 2  ;;  %v2679_v51 = vrot.slane %v2675_v45, 2  ;;  %v6220_v4 = vld [vmem:[#allocation64_spill] sm:$0xff] }
 0x126   : > { %v2680_v39 = vrot.slane %v2676_v21, 2  ;;  %v2649_v27 = vrot.slane %v2645_v2, 2  ;;  %v2650_v34 = vrot.slane %v2646_v19, 2  ;;  %v2663_v5 = vadd.f32 %v2659_v43, %v2623_v61  ;;  %v6219_v19 = vld [vmem:[#allocation63_spill] sm:$0xff]  ;;  %v6221_v50 = vld [vmem:[#allocation36_spill] sm:$0xff] }
 0x127   : > { %v2664_v1 = vadd.f32 %v2660_v49, %v2624_v58  ;;  %v2673_v47 = vadd.f32 %v2669_v15, %v2633_v28  ;;  %v2674_v0 = vadd.f32 %v2670_v31, %v2634_v3  ;;  %v2683_v42 = vadd.f32 %v2679_v51, %v2643_v63  ;;  %v6215_v58 = vld [vmem:[#allocation70_spill] sm:$0xff]  ;;  %v6217_v3 = vld [vmem:[#allocation71_spill] sm:$0xff]  ;;  %v6223_v49 = vld [vmem:[#allocation41_spill] sm:$0xff] }
 0x128   : > { %v2684_v12 = vadd.f32 %v2680_v39, %v2644_v62  ;;  %v2653_v41 = vadd.f32 %v2649_v27, %v2613_v38  ;;  %v2654_v18 = vadd.f32 %v2650_v34, %v2614_v24  ;;  %v2687_v57 = vadd.f32 %v2663_v5, %v4648_v6  ;;  %v6222_v38 = vld [vmem:[#allocation34_spill] sm:$0xff]  ;;  %v6227_v51 = vld [vmem:[#allocation48_spill] sm:$0xff] }
 0x129   : > { %v2688_v10 = vadd.f32 %v2664_v1, %v4651_v44  ;;  %v753_v40 = vmul.f32 %v4442_v32, %v4705_v59  ;;  %v754_v55 = vmul.f32 %v4442_v32, %v4719_v8  ;;  %v758_v56 = vmul.f32 %v4455_v37, %v4705_v59 }
 0x12a   : > { %v759_v36 = vmul.f32 %v4455_v37, %v4719_v8  ;;  %v4800_v54 = vadd.f32 %v2673_v47, %v6212_v52  ;;  %v4803_v16 = vadd.f32 %v2674_v0, %v6213_v13  ;;  %v763_v26 = vmul.f32 %v6214_v53, %v4705_v59 }
 0x12b   : > { %v764_v61 = vmul.f32 %v6214_v53, %v4719_v8  ;;  %v4810_v28 = vadd.f32 %v2683_v42, %v6215_v58  ;;  %v4813_v63 = vadd.f32 %v2684_v12, %v6217_v3  ;;  %v2695_v62 = vrot.slane %v2687_v57, 7 }
 0x12c   : > { %v2696_v2 = vrot.slane %v2688_v10, 7  ;;  %v2685_v14 = vadd.f32 %v2653_v41, %v6219_v19  ;;  %v2686_v11 = vadd.f32 %v2654_v18, %v6220_v4  ;;  %v773_v45 = vmul.f32 %v6221_v50, %v4705_v59  ;;  %v6224_v41 = vld [vmem:[#allocation44_spill] sm:$0xff] }
 0x12d   : > { %6216 = vst [vmem:[#allocation89_spill] sm:$0xff] %v4810_v28  ;;  %6218 = vst [vmem:[#allocation90_spill] sm:$0xff] %v4813_v63  ;;  %v774_v21 = vmul.f32 %v6221_v50, %v4719_v8  ;;  %v768_v24 = vmul.f32 %v6222_v38, %v4705_v59  ;;  %v769_v43 = vmul.f32 %v6222_v38, %v4719_v8 }
 0x12e   : > { %v784_v15 = vmul.f32 %v6223_v49, %v4705_v59  ;;  %v785_v31 = vmul.f32 %v6223_v49, %v4719_v8  ;;  %v777_v27 = vrot.slane %v773_v45, 1  ;;  %v4834_v47 = vsel %vm1049_vm10, %v2685_v14, %v2695_v62 }
 0x12f   : > { %v778_v34 = vrot.slane %v774_v21, 1  ;;  %v4837_v0 = vsel %vm1049_vm10, %v2686_v11, %v2696_v2  ;;  %v795_v18 = vmul.f32 %v6224_v41, %v4705_v59  ;;  %v796_v57 = vmul.f32 %v6224_v41, %v4719_v8  ;;  %v6225_v21 = vld [vmem:[#allocation46_spill] sm:$0xff]  ;;  %v6226_v2 = vld [vmem:[#allocation47_spill] sm:$0xff] }
 0x130   : > { %v788_v42 = vrot.slane %v784_v15, 1  ;;  %v789_v12 = vrot.slane %v785_v31, 1  ;;  %v781_v10 = vadd.f32 %v777_v27, %v753_v40  ;;  %v806_v5 = vmul.f32 %v6225_v21, %v4705_v59 }
 0x131   : > { %v782_v45 = vadd.f32 %v778_v34, %v754_v55  ;;  %v807_v62 = vmul.f32 %v6225_v21, %v4719_v8  ;;  %v799_v14 = vrot.slane %v795_v18, 1  ;;  %v800_v1 = vrot.slane %v796_v57, 1 }
 0x132   : > { %v817_v11 = vmul.f32 %v6226_v2, %v4705_v59  ;;  %v818_v15 = vmul.f32 %v6226_v2, %v4719_v8  ;;  %v810_v31 = vrot.slane %v806_v5, 1  ;;  %v828_v40 = vmul.f32 %v6227_v51, %v4705_v59  ;;  %v6228_v2 = vld [vmem:[#allocation50_spill] sm:$0xff] }
 0x133   : > { %v811_v39 = vrot.slane %v807_v62, 1  ;;  %v829_v55 = vmul.f32 %v6227_v51, %v4719_v8  ;;  %v792_v27 = vadd.f32 %v788_v42, %v758_v56  ;;  %v793_v34 = vadd.f32 %v789_v12, %v759_v36  ;;  %v6229_v51 = vld [vmem:[#allocation52_spill] sm:$0xff] }
 0x134   : > { %v803_v63 = vadd.f32 %v799_v14, %v763_v26  ;;  %v804_v28 = vadd.f32 %v800_v1, %v764_v61  ;;  %v814_v18 = vadd.f32 %v810_v31, %v768_v24  ;;  %v821_v21 = vrot.slane %v817_v11, 2  ;;  %v6230_v24 = vld [vmem:[#allocation39_spill] sm:$0xff] }
 0x135   : > { %v815_v57 = vadd.f32 %v811_v39, %v769_v43  ;;  %v822_v38 = vrot.slane %v818_v15, 2  ;;  %v832_v41 = vrot.slane %v828_v40, 2  ;;  %v833_v49 = vrot.slane %v829_v55, 2  ;;  %v6231_v39 = vld [vmem:[#allocation42_spill] sm:$0xff] }
 0x136   : > { %v839_v5 = vmul.f32 %v6228_v2, %v4705_v59  ;;  %v840_v62 = vmul.f32 %v6228_v2, %v4719_v8  ;;  %v825_v50 = vadd.f32 %v821_v21, %v781_v10  ;;  %v850_v56 = vmul.f32 %v6229_v51, %v4705_v59 }
 0x137   : > { %v826_v53 = vadd.f32 %v822_v38, %v782_v45  ;;  %v851_v36 = vmul.f32 %v6229_v51, %v4719_v8  ;;  %v860_v43 = vmul.f32 %v4757_v35, %v6230_v24  ;;  %v861_v1 = vmul.f32 %v4759_v48, %v6231_v39 }
 0x138   : > { %v843_v26 = vrot.slane %v839_v5, 2  ;;  %v844_v61 = vrot.slane %v840_v62, 2  ;;  %v836_v42 = vadd.f32 %v832_v41, %v792_v27  ;;  %v837_v12 = vadd.f32 %v833_v49, %v793_v34 }
 0x139   : > { %v854_v14 = vrot.slane %v850_v56, 2  ;;  %v855_v11 = vrot.slane %v851_v36, 2  ;;  %v863_v45 = vmul.f32 %v4566_v29, %v860_v43  ;;  %v864_v59 = vmul.f32 %v4566_v29, %v861_v1 }
 0x13a   : > { %v847_v10 = vadd.f32 %v843_v26, %v803_v63  ;;  %v848_v38 = vadd.f32 %v844_v61, %v804_v28  ;;  %v868_v15 = vmul.f32 %v4574_v7, %v860_v43  ;;  %v869_v31 = vmul.f32 %v4574_v7, %v861_v1 }
 0x13b   : > { %v858_v21 = vadd.f32 %v854_v14, %v814_v18  ;;  %v859_v8 = vadd.f32 %v855_v11, %v815_v57  ;;  %v865_v40 = vadd.f32 %v863_v45, %v825_v50  ;;  %v866_v55 = vadd.f32 %v864_v59, %v826_v53 }
 0x13c   : > { %v873_v5 = vmul.f32 %v4582_v30, %v860_v43  ;;  %v874_v49 = vmul.f32 %v4582_v30, %v861_v1  ;;  %v870_v41 = vadd.f32 %v868_v15, %v836_v42  ;;  %v871_v27 = vadd.f32 %v869_v31, %v837_v12 }
 0x13d   : > { %v878_v28 = vmul.f32 %v4590_v25, %v860_v43  ;;  %v879_v63 = vmul.f32 %v4590_v25, %v861_v1  ;;  %v883_v18 = vmul.f32 %v4596_v22, %v860_v43  ;;  %v884_v57 = vmul.f32 %v4596_v22, %v861_v1 }
 0x13e   : > { %v875_v34 = vadd.f32 %v873_v5, %v847_v10  ;;  %v876_v62 = vadd.f32 %v874_v49, %v848_v38  ;;  %v894_v53 = vmul.f32 %v4599_v23, %v860_v43  ;;  %v895_v36 = vmul.f32 %v4599_v23, %v861_v1 }
 0x13f   : > { %v880_v56 = vadd.f32 %v878_v28, %v858_v21  ;;  %v881_v50 = vadd.f32 %v879_v63, %v859_v8  ;;  %v887_v26 = vrot.slane %v883_v18, 1  ;;  %v888_v61 = vrot.slane %v884_v57, 1 }
 0x140   : > { %v905_v24 = vmul.f32 %v4605_v20, %v860_v43  ;;  %v906_v39 = vmul.f32 %v4605_v20, %v861_v1  ;;  %v898_v42 = vrot.slane %v894_v53, 1  ;;  %v899_v12 = vrot.slane %v895_v36, 1 }
 0x141   : > { %v916_v14 = vmul.f32 %v4617_v9, %v860_v43  ;;  %v917_v11 = vmul.f32 %v4617_v9, %v861_v1  ;;  %v891_v10 = vadd.f32 %v887_v26, %v865_v40  ;;  %v892_v38 = vadd.f32 %v888_v61, %v866_v55 }
 0x142   : > { %v909_v45 = vrot.slane %v905_v24, 1  ;;  %v910_v59 = vrot.slane %v906_v39, 1  ;;  %v902_v21 = vadd.f32 %v898_v42, %v870_v41  ;;  %v903_v8 = vadd.f32 %v899_v12, %v871_v27 }
 0x143   : > { %v920_v15 = vrot.slane %v916_v14, 1  ;;  %v921_v31 = vrot.slane %v917_v11, 1  ;;  %v927_v28 = vmul.f32 %v4624_v17, %v860_v43  ;;  %v928_v63 = vmul.f32 %v4624_v17, %v861_v1 }
 0x144   : > { %v913_v5 = vadd.f32 %v909_v45, %v875_v34  ;;  %v914_v49 = vadd.f32 %v910_v59, %v876_v62  ;;  %v938_v53 = vmul.f32 %v4631_v46, %v860_v43  ;;  %v939_v36 = vmul.f32 %v4631_v46, %v861_v1 }
 0x145   : > { %v924_v18 = vadd.f32 %v920_v15, %v880_v56  ;;  %v925_v57 = vadd.f32 %v921_v31, %v881_v50  ;;  %v931_v40 = vrot.slane %v927_v28, 2  ;;  %v932_v55 = vrot.slane %v928_v63, 2 }
 0x146   : > { %v949_v26 = vmul.f32 %v4634_v33, %v860_v43  ;;  %v950_v41 = vmul.f32 %v4634_v33, %v861_v1  ;;  %v942_v27 = vrot.slane %v938_v53, 2  ;;  %v943_v34 = vrot.slane %v939_v36, 2  ;;  %v6235_v53 = vld [vmem:[#allocation83_spill] sm:$0xff] }
 0x147   : > { %v960_v62 = vmul.f32 %v4637_v60, %v860_v43  ;;  %v961_v61 = vmul.f32 %v4637_v60, %v861_v1  ;;  %v935_v24 = vadd.f32 %v931_v40, %v891_v10  ;;  %v936_v56 = vadd.f32 %v932_v55, %v892_v38  ;;  %v6236_v40 = vld [vmem:[#allocation86_spill] sm:$0xff] }
 0x148   : > { %v953_v50 = vrot.slane %v949_v26, 2  ;;  %v954_v39 = vrot.slane %v950_v41, 2  ;;  %v946_v42 = vadd.f32 %v942_v27, %v902_v21  ;;  %v947_v12 = vadd.f32 %v943_v34, %v903_v8 }
 0x149   : > { %v964_v14 = vrot.slane %v960_v62, 2  ;;  %v965_v11 = vrot.slane %v961_v61, 2  ;;  %v6232_v45 = vrot.slane %v4800_v54, 6  ;;  %v6233_v15 = vrot.slane %v4803_v16, 6 }
 0x14a   : > { %v957_v1 = vadd.f32 %v953_v50, %v913_v5  ;;  %v958_v10 = vadd.f32 %v954_v39, %v914_v49  ;;  %v999_v21 = vadd.f32 %v4648_v6, %v946_v42  ;;  %v1000_v8 = vadd.f32 %v4651_v44, %v947_v12  ;;  %v6237_v50 = vld [vmem:[#allocation33_spill] sm:$0xff]  ;;  %v6238_v12 = vld [vmem:[#allocation36_spill] sm:$0xff] }
 0x14b   : > { %v4895_v59 = vsel %vm1052_vm11, %v4834_v47, %v6232_v45  ;;  %v4901_v43 = vsel %vm1052_vm11, %v4837_v0, %v6233_v15  ;;  %v968_v38 = vadd.f32 %v964_v14, %v924_v18  ;;  %v969_v31 = vadd.f32 %v965_v11, %v925_v57 }
 0x14c   : > { %6234 = vst [vmem:[#allocation52_spill] sm:$0xff] %v4901_v43  ;;  %v984_v54 = vadd.f32 %v6219_v19, %v935_v24  ;;  %v985_v28 = vadd.f32 %v6220_v4, %v936_v56  ;;  %v1014_v47 = vadd.f32 %v6212_v52, %v957_v1  ;;  %v1015_v16 = vadd.f32 %v6213_v13, %v958_v10  ;;  %v6239_v1 = vld [vmem:[#allocation41_spill] sm:$0xff]  ;;  %v6249_v43 = vld [vmem:[#allocation35_spill] sm:$0xff] }
 0x14d   : > { %v1029_v63 = vadd.f32 %v6215_v58, %v968_v38  ;;  %v1030_v0 = vadd.f32 %v6217_v3, %v969_v31  ;;  %v1033_v5 = vrot.slane %v999_v21, 7  ;;  %v1034_v49 = vrot.slane %v1000_v8, 7  ;;  %v6240_v8 = vld [vmem:[#allocation44_spill] sm:$0xff] }
 0x14e   : > { %v1039_v18 = vrot.slane %v1014_v47, 6  ;;  %v1040_v57 = vrot.slane %v1015_v16, 6  ;;  %v1062_v36 = vmul.f32 %v6235_v53, %v4442_v32  ;;  %v1063_v55 = vmul.f32 %v6236_v40, %v4442_v32  ;;  %v6241_v47 = vld [vmem:[#allocation34_spill] sm:$0xff] }
 0x14f   : > { %v1050_v26 = vsel %vm1049_vm10, %v984_v54, %v1033_v5  ;;  %v1051_v41 = vsel %vm1049_vm10, %v985_v28, %v1034_v49  ;;  %v1066_v27 = vmul.f32 %v6235_v53, %v4455_v37  ;;  %v1067_v34 = vmul.f32 %v6236_v40, %v4455_v37  ;;  %v6242_v49 = vld [vmem:[#allocation11_spill] sm:$0xff] }
 0x150   : > { %v1045_v62 = vrot.slane %v1029_v63, 5  ;;  %v1046_v61 = vrot.slane %v1030_v0, 5  ;;  %v1053_v24 = vsel %vm1052_vm11, %v1050_v26, %v1039_v18  ;;  %v1054_v56 = vsel %vm1052_vm11, %v1051_v41, %v1040_v57  ;;  %v6244_v57 = vld [vmem:[#allocation12_spill] sm:$0xff] }
 0x151   : > { %v1070_v39 = vmul.f32 %v6235_v53, %v6237_v50  ;;  %v1071_v42 = vmul.f32 %v6236_v40, %v6237_v50  ;;  %v1078_v14 = vmul.f32 %v6235_v53, %v6238_v12  ;;  %v1079_v11 = vmul.f32 %v6236_v40, %v6238_v12 }
 0x152   : > { %v1056_v45 = vsel %vm1055_vm12, %v1053_v24, %v1045_v62  ;;  %v1057_v15 = vsel %vm1055_vm12, %v1054_v56, %v1046_v61  ;;  %v1088_v10 = vmul.f32 %v6235_v53, %v6239_v1  ;;  %v1089_v38 = vmul.f32 %v6236_v40, %v6239_v1  ;;  %v6246_v56 = vld [vmem:[#allocation46_spill] sm:$0xff] }
 0x153   : > { %v1082_v31 = vrot.slane %v1078_v14, 1  ;;  %v1083_v21 = vrot.slane %v1079_v11, 1  ;;  %v1098_v54 = vmul.f32 %v6235_v53, %v6240_v8  ;;  %v1099_v28 = vmul.f32 %v6236_v40, %v6240_v8 }
 0x154   : > { %v1074_v16 = vmul.f32 %v6235_v53, %v6241_v47  ;;  %v1075_v63 = vmul.f32 %v6236_v40, %v6241_v47  ;;  %v1092_v0 = vrot.slane %v1088_v10, 1  ;;  %v1093_v5 = vrot.slane %v1089_v38, 1  ;;  %v6247_v10 = vld [vmem:[#allocation47_spill] sm:$0xff] }
 0x155   : > { %v4946_v18 = vmul.f32 %v1056_v45, %v6242_v49  ;;  %v4949_v26 = vmul.f32 %v1057_v15, %v6244_v57  ;;  %v1086_v41 = vadd.f32 %v1082_v31, %v1062_v36  ;;  %v1087_v62 = vadd.f32 %v1083_v21, %v1063_v55  ;;  %v6248_v36 = vld [vmem:[#allocation48_spill] sm:$0xff] }
 0x156   : > { %v1102_v61 = vrot.slane %v1098_v54, 1  ;;  %v1103_v24 = vrot.slane %v1099_v28, 1  ;;  %v1108_v14 = vmul.f32 %v6235_v53, %v6246_v56  ;;  %v1109_v11 = vmul.f32 %v6236_v40, %v6246_v56 }
 0x157   : > { %6243 = vst [vmem:[#allocation39_spill] sm:$0xff] %v4946_v18  ;;  %6245 = vst [vmem:[#allocation42_spill] sm:$0xff] %v4949_v26  ;;  %v1096_v3 = vadd.f32 %v1092_v0, %v1066_v27  ;;  %v1097_v58 = vadd.f32 %v1093_v5, %v1067_v34  ;;  %v1118_v38 = vmul.f32 %v6235_v53, %v6247_v10 }
 0x158   : > { %v1119_v45 = vmul.f32 %v6236_v40, %v6247_v10  ;;  %v1112_v15 = vrot.slane %v1108_v14, 1  ;;  %v1113_v49 = vrot.slane %v1109_v11, 1  ;;  %v1128_v55 = vmul.f32 %v6235_v53, %v6248_v36 }
 0x159   : > { %v1129_v31 = vmul.f32 %v6236_v40, %v6248_v36  ;;  %v1122_v21 = vrot.slane %v1118_v38, 2  ;;  %v1138_v27 = vmul.f32 %v6235_v53, %v6228_v2  ;;  %v1139_v34 = vmul.f32 %v6236_v40, %v6228_v2 }
 0x15a   : > { %v1123_v54 = vrot.slane %v1119_v45, 2  ;;  %v1106_v28 = vadd.f32 %v1102_v61, %v1070_v39  ;;  %v1107_v0 = vadd.f32 %v1103_v24, %v1071_v42  ;;  %v1116_v5 = vadd.f32 %v1112_v15, %v1074_v16  ;;  %v6250_v42 = vld [vmem:[#allocation37_spill] sm:$0xff] }
 0x15b   : > { %v1117_v57 = vadd.f32 %v1113_v49, %v1075_v63  ;;  %v1126_v14 = vadd.f32 %v1122_v21, %v1086_v41  ;;  %v1132_v4 = vrot.slane %v1128_v55, 2  ;;  %v1133_v19 = vrot.slane %v1129_v31, 2 }
 0x15c   : > { %v1127_v11 = vadd.f32 %v1123_v54, %v1087_v62  ;;  %v1142_v13 = vrot.slane %v1138_v27, 2  ;;  %v1143_v52 = vrot.slane %v1139_v34, 2  ;;  %v1148_v38 = vmul.f32 %v6235_v53, %v6229_v51 }
 0x15d   : > { %v1149_v45 = vmul.f32 %v6236_v40, %v6229_v51  ;;  %v1136_v44 = vadd.f32 %v1132_v4, %v1096_v3  ;;  %v1137_v6 = vadd.f32 %v1133_v19, %v1097_v58  ;;  %v1158_v39 = vmul.f32 %v4757_v35, %v6249_v43 }
 0x15e   : > { %v1159_v16 = vmul.f32 %v4759_v48, %v6250_v42  ;;  %v1146_v63 = vadd.f32 %v1142_v13, %v1106_v28  ;;  %v1147_v41 = vadd.f32 %v1143_v52, %v1107_v0  ;;  %v1152_v62 = vrot.slane %v1148_v38, 2 }
 0x15f   : > { %v1153_v61 = vrot.slane %v1149_v45, 2  ;;  %v1160_v24 = vmul.f32 %v1158_v39, %v4566_v29  ;;  %v1164_v53 = vmul.f32 %v1158_v39, %v4574_v7  ;;  %v1168_v19 = vmul.f32 %v1158_v39, %v4582_v30 }
 0x160   : > { %v1161_v15 = vmul.f32 %v1159_v16, %v4566_v29  ;;  %v1165_v40 = vmul.f32 %v1159_v16, %v4574_v7  ;;  %v1156_v3 = vadd.f32 %v1152_v62, %v1116_v5  ;;  %v1169_v4 = vmul.f32 %v1159_v16, %v4582_v30 }
 0x161   : > { %v1157_v58 = vadd.f32 %v1153_v61, %v1117_v57  ;;  %v1162_v43 = vadd.f32 %v1160_v24, %v1126_v14  ;;  %v1166_v13 = vadd.f32 %v1164_v53, %v1136_v44  ;;  %v1170_v55 = vadd.f32 %v1168_v19, %v1146_v63 }
 0x162   : > { %v1163_v49 = vadd.f32 %v1161_v15, %v1127_v11  ;;  %v1167_v52 = vadd.f32 %v1165_v40, %v1137_v6  ;;  %v1171_v31 = vadd.f32 %v1169_v4, %v1147_v41  ;;  %v1172_v21 = vmul.f32 %v1158_v39, %v4590_v25 }
 0x163   : > { %v1173_v54 = vmul.f32 %v1159_v16, %v4590_v25  ;;  %v1176_v27 = vmul.f32 %v1158_v39, %v4596_v22  ;;  %v1177_v34 = vmul.f32 %v1159_v16, %v4596_v22  ;;  %v1186_v28 = vmul.f32 %v1158_v39, %v4599_v23 }
 0x164   : > { %v1187_v0 = vmul.f32 %v1159_v16, %v4599_v23  ;;  %v1174_v5 = vadd.f32 %v1172_v21, %v1156_v3  ;;  %v1196_v14 = vmul.f32 %v1158_v39, %v4605_v20  ;;  %v1197_v6 = vmul.f32 %v1159_v16, %v4605_v20 }
 0x165   : > { %v1175_v57 = vadd.f32 %v1173_v54, %v1157_v58  ;;  %v1180_v44 = vrot.slane %v1176_v27, 1  ;;  %v1181_v11 = vrot.slane %v1177_v34, 1  ;;  %v1190_v38 = vrot.slane %v1186_v28, 1 }
 0x166   : > { %v1191_v45 = vrot.slane %v1187_v0, 1  ;;  %v1200_v42 = vrot.slane %v1196_v14, 1  ;;  %v1201_v63 = vrot.slane %v1197_v6, 1  ;;  %v1206_v41 = vmul.f32 %v1158_v39, %v4617_v9 }
 0x167   : > { %v1207_v62 = vmul.f32 %v1159_v16, %v4617_v9  ;;  %v1184_v61 = vadd.f32 %v1180_v44, %v1162_v43  ;;  %v1185_v24 = vadd.f32 %v1181_v11, %v1163_v49  ;;  %v1194_v15 = vadd.f32 %v1190_v38, %v1166_v13 }
 0x168   : > { %v1195_v53 = vadd.f32 %v1191_v45, %v1167_v52  ;;  %v1204_v40 = vadd.f32 %v1200_v42, %v1170_v55  ;;  %v1205_v3 = vadd.f32 %v1201_v63, %v1171_v31  ;;  %v1210_v58 = vrot.slane %v1206_v41, 1 }
 0x169   : > { %v1211_v19 = vrot.slane %v1207_v62, 1  ;;  %v1216_v4 = vmul.f32 %v1158_v39, %v4624_v17  ;;  %v1217_v21 = vmul.f32 %v1159_v16, %v4624_v17  ;;  %v1226_v54 = vmul.f32 %v1158_v39, %v4631_v46  ;;  %v6251_v62 = vld [vmem:[#allocation81_spill] sm:$0xff] }
 0x16a   : > { %v1227_v27 = vmul.f32 %v1159_v16, %v4631_v46  ;;  %v1214_v34 = vadd.f32 %v1210_v58, %v1174_v5  ;;  %v1236_v0 = vmul.f32 %v1158_v39, %v4634_v33  ;;  %v1237_v43 = vmul.f32 %v1159_v16, %v4634_v33 }
 0x16b   : > { %v1215_v28 = vadd.f32 %v1211_v19, %v1175_v57  ;;  %v1220_v49 = vrot.slane %v1216_v4, 2  ;;  %v1221_v13 = vrot.slane %v1217_v21, 2  ;;  %v1230_v52 = vrot.slane %v1226_v54, 2  ;;  %v6252_v19 = vld [vmem:[#allocation80_spill] sm:$0xff] }
 0x16c   : > { %v1231_v55 = vrot.slane %v1227_v27, 2  ;;  %v1240_v31 = vrot.slane %v1236_v0, 2  ;;  %v1241_v14 = vrot.slane %v1237_v43, 2  ;;  %v1246_v6 = vmul.f32 %v1158_v39, %v4637_v60  ;;  %v6253_v21 = vld [vmem:[#allocation68_spill] sm:$0xff]  ;;  %v6257_v27 = vld [vmem:[#allocation74_spill] sm:$0xff]  ;;  %v6258_v43 = vld [vmem:[#allocation75_spill] sm:$0xff] }
 0x16d   : > { %v1247_v44 = vmul.f32 %v1159_v16, %v4637_v60  ;;  %v1224_v11 = vadd.f32 %v1220_v49, %v1184_v61  ;;  %v1225_v38 = vadd.f32 %v1221_v13, %v1185_v24  ;;  %v1234_v45 = vadd.f32 %v1230_v52, %v1194_v15  ;;  %v6254_v54 = vld [vmem:[#allocation72_spill] sm:$0xff] }
 0x16e   : > { %v1235_v42 = vadd.f32 %v1231_v55, %v1195_v53  ;;  %v1244_v5 = vadd.f32 %v1240_v31, %v1204_v40  ;;  %v1245_v57 = vadd.f32 %v1241_v14, %v1205_v3  ;;  %v1250_v63 = vrot.slane %v1246_v6, 2  ;;  %v6255_v15 = vld [vmem:[#allocation76_spill] sm:$0xff]  ;;  %v6256_v40 = vld [vmem:[#allocation78_spill] sm:$0xff]  ;;  %v6259_v55 = vld [vmem:[#allocation79_spill] sm:$0xff] }
 0x16f   : > { %v1251_v41 = vrot.slane %v1247_v44, 2  ;;  %v5001_v58 = vmul.f32 %v6251_v62, %v4946_v18  ;;  %v5005_v4 = vmul.f32 %v6252_v19, %v4949_v26  ;;  %v1283_v39 = vadd.f32 %v6253_v21, %v1234_v45  ;;  %v6260_v14 = vld [vmem:[#allocation82_spill] sm:$0xff] }
 0x170   : > { %v1284_v16 = vadd.f32 %v6254_v54, %v1235_v42  ;;  %v1254_v61 = vadd.f32 %v1250_v63, %v1214_v34  ;;  %v1297_v53 = vadd.f32 %v6255_v15, %v1244_v5  ;;  %v1298_v3 = vadd.f32 %v6256_v40, %v1245_v57  ;;  %v6262_v57 = vld [vmem:[#allocation88_spill] sm:$0xff] }
 0x171   : > { %v1255_v24 = vadd.f32 %v1251_v41, %v1215_v28  ;;  %v1269_v0 = vadd.f32 %v6257_v27, %v1224_v11  ;;  %v1270_v49 = vadd.f32 %v6258_v43, %v1225_v38  ;;  %v1315_v13 = vrot.slane %v1283_v39, 7  ;;  %v6261_v28 = vld [vmem:[#allocation87_spill] sm:$0xff] }
 0x172   : > { %v1316_v52 = vrot.slane %v1284_v16, 7  ;;  %v1311_v31 = vadd.f32 %v6259_v55, %v1254_v61  ;;  %v1321_v44 = vrot.slane %v1297_v53, 6  ;;  %v1322_v45 = vrot.slane %v1298_v3, 6 }
 0x173   : > { %v1312_v6 = vadd.f32 %v6260_v14, %v1255_v24  ;;  %v1331_v42 = vsel %vm1049_vm10, %v1269_v0, %v1315_v13  ;;  %v1801_v5 = vmul.f32 %v6261_v28, %v4442_v32  ;;  %v1802_v11 = vmul.f32 %v6262_v57, %v4442_v32  ;;  %v6269_v32 = vld [vmem:[#allocation56_spill] sm:$0xff] }
 0x174   : > { %v1332_v34 = vsel %vm1049_vm10, %v1270_v49, %v1316_v52  ;;  %v1327_v63 = vrot.slane %v1311_v31, 5  ;;  %v1333_v41 = vsel %vm1052_vm11, %v1331_v42, %v1321_v44  ;;  %v1805_v19 = vmul.f32 %v6261_v28, %v4455_v37  ;;  %v6263_v49 = vld [vmem:[#allocation13_spill] sm:$0xff]  ;;  %v6265_v52 = vld [vmem:[#allocation14_spill] sm:$0xff] }
 0x175   : > { %v1328_v38 = vrot.slane %v1312_v6, 5  ;;  %v1334_v62 = vsel %vm1052_vm11, %v1332_v34, %v1322_v45  ;;  %v1806_v39 = vmul.f32 %v6262_v57, %v4455_v37  ;;  %v1817_v16 = vmul.f32 %v6261_v28, %v6238_v12 }
 0x176   : > { %v1818_v61 = vmul.f32 %v6262_v57, %v6238_v12  ;;  %v1335_v24 = vsel %vm1055_vm12, %v1333_v41, %v1327_v63  ;;  %v1827_v3 = vmul.f32 %v6261_v28, %v6239_v1  ;;  %v1828_v0 = vmul.f32 %v6262_v57, %v6239_v1 }
 0x177   : > { %v1336_v53 = vsel %vm1055_vm12, %v1334_v62, %v1328_v38  ;;  %v5038_v13 = vmul.f32 %v1335_v24, %v6263_v49  ;;  %v1821_v6 = vrot.slane %v1817_v16, 1  ;;  %v1837_v34 = vmul.f32 %v6261_v28, %v6240_v8 }
 0x178   : > { %v5041_v31 = vmul.f32 %v1336_v53, %v6265_v52  ;;  %v1822_v44 = vrot.slane %v1818_v61, 1  ;;  %v1831_v45 = vrot.slane %v1827_v3, 1  ;;  %v1832_v42 = vrot.slane %v1828_v0, 1  ;;  %v6267_v61 = vld [vmem:[#allocation85_spill] sm:$0xff]  ;;  %v6268_v53 = vld [vmem:[#allocation84_spill] sm:$0xff] }
 0x179   : > { %6264 = vst [vmem:[#allocation83_spill] sm:$0xff] %v5038_v13  ;;  %v1838_v63 = vmul.f32 %v6262_v57, %v6240_v8  ;;  %v1809_v38 = vmul.f32 %v6261_v28, %v6237_v50  ;;  %v1810_v41 = vmul.f32 %v6262_v57, %v6237_v50  ;;  %v1813_v62 = vmul.f32 %v6261_v28, %v6241_v47 }
 0x17a   : > { %6266 = vst [vmem:[#allocation86_spill] sm:$0xff] %v5041_v31  ;;  %v1814_v16 = vmul.f32 %v6262_v57, %v6241_v47  ;;  %v5057_v24 = vmul.f32 %v6267_v61, %v5038_v13  ;;  %v5061_v3 = vmul.f32 %v6268_v53, %v5041_v31  ;;  %v1825_v0 = vadd.f32 %v1821_v6, %v1801_v5 }
 0x17b   : > { %v1826_v49 = vadd.f32 %v1822_v44, %v1802_v11  ;;  %v1841_v52 = vrot.slane %v1837_v34, 1  ;;  %v1842_v26 = vrot.slane %v1838_v63, 1  ;;  %v1847_v18 = vmul.f32 %v6261_v28, %v6246_v56 }
 0x17c   : > { %v1848_v50 = vmul.f32 %v6262_v57, %v6246_v56  ;;  %v1835_v8 = vadd.f32 %v1831_v45, %v1805_v19  ;;  %v1836_v47 = vadd.f32 %v1832_v42, %v1806_v39  ;;  %v1857_v61 = vmul.f32 %v6261_v28, %v6247_v10 }
 0x17d   : > { %v1858_v13 = vmul.f32 %v6262_v57, %v6247_v10  ;;  %v1851_v53 = vrot.slane %v1847_v18, 1  ;;  %v1867_v5 = vmul.f32 %v6261_v28, %v6248_v36  ;;  %v1868_v11 = vmul.f32 %v6262_v57, %v6248_v36 }
 0x17e   : > { %v1852_v31 = vrot.slane %v1848_v50, 1  ;;  %v1861_v6 = vrot.slane %v1857_v61, 2  ;;  %v1877_v19 = vmul.f32 %v6261_v28, %v6228_v2  ;;  %v1878_v39 = vmul.f32 %v6262_v57, %v6228_v2 }
 0x17f   : > { %v1862_v44 = vrot.slane %v1858_v13, 2  ;;  %v1845_v45 = vadd.f32 %v1841_v52, %v1809_v38  ;;  %v1846_v42 = vadd.f32 %v1842_v26, %v1810_v41  ;;  %v1855_v34 = vadd.f32 %v1851_v53, %v1813_v62  ;;  %v6270_v26 = vld [vmem:[#allocation57_spill] sm:$0xff] }
 0x180   : > { %v1856_v63 = vadd.f32 %v1852_v31, %v1814_v16  ;;  %v1865_v18 = vadd.f32 %v1861_v6, %v1825_v0  ;;  %v1871_v10 = vrot.slane %v1867_v5, 2  ;;  %v1872_v56 = vrot.slane %v1868_v11, 2 }
 0x181   : > { %v1866_v50 = vadd.f32 %v1862_v44, %v1826_v49  ;;  %v1881_v1 = vrot.slane %v1877_v19, 2  ;;  %v1882_v12 = vrot.slane %v1878_v39, 2  ;;  %v1887_v61 = vmul.f32 %v6261_v28, %v6229_v51 }
 0x182   : > { %v1888_v13 = vmul.f32 %v6262_v57, %v6229_v51  ;;  %v1875_v36 = vadd.f32 %v1871_v10, %v1835_v8  ;;  %v1876_v37 = vadd.f32 %v1872_v56, %v1836_v47  ;;  %v1897_v38 = vmul.f32 %v4757_v35, %v6269_v32 }
 0x183   : > { %v1898_v31 = vmul.f32 %v4759_v48, %v6270_v26  ;;  %v1885_v41 = vadd.f32 %v1881_v1, %v1845_v45  ;;  %v1886_v62 = vadd.f32 %v1882_v12, %v1846_v42  ;;  %v1891_v16 = vrot.slane %v1887_v61, 2 }
 0x184   : > { %v1892_v0 = vrot.slane %v1888_v13, 2  ;;  %v1899_v49 = vmul.f32 %v1897_v38, %v4566_v29  ;;  %v1903_v28 = vmul.f32 %v1897_v38, %v4574_v7  ;;  %v1907_v56 = vmul.f32 %v1897_v38, %v4582_v30 }
 0x185   : > { %v1900_v52 = vmul.f32 %v1898_v31, %v4566_v29  ;;  %v1904_v57 = vmul.f32 %v1898_v31, %v4574_v7  ;;  %v1895_v8 = vadd.f32 %v1891_v16, %v1855_v34  ;;  %v1908_v32 = vmul.f32 %v1898_v31, %v4582_v30 }
 0x186   : > { %v1896_v47 = vadd.f32 %v1892_v0, %v1856_v63  ;;  %v1901_v10 = vadd.f32 %v1899_v49, %v1865_v18  ;;  %v1905_v1 = vadd.f32 %v1903_v28, %v1875_v36  ;;  %v1909_v5 = vadd.f32 %v1907_v56, %v1885_v41 }
 0x187   : > { %v1902_v53 = vadd.f32 %v1900_v52, %v1866_v50  ;;  %v1906_v12 = vadd.f32 %v1904_v57, %v1876_v37  ;;  %v1910_v11 = vadd.f32 %v1908_v32, %v1886_v62  ;;  %v1911_v6 = vmul.f32 %v1897_v38, %v4590_v25 }
 0x188   : > { %v1912_v44 = vmul.f32 %v1898_v31, %v4590_v25  ;;  %v1915_v19 = vmul.f32 %v1897_v38, %v4596_v22  ;;  %v1916_v39 = vmul.f32 %v1898_v31, %v4596_v22  ;;  %v1925_v45 = vmul.f32 %v1897_v38, %v4599_v23 }
 0x189   : > { %v1926_v42 = vmul.f32 %v1898_v31, %v4599_v23  ;;  %v1913_v34 = vadd.f32 %v1911_v6, %v1895_v8  ;;  %v1935_v18 = vmul.f32 %v1897_v38, %v4605_v20  ;;  %v1936_v37 = vmul.f32 %v1898_v31, %v4605_v20 }
 0x18a   : > { %v1914_v63 = vadd.f32 %v1912_v44, %v1896_v47  ;;  %v1919_v36 = vrot.slane %v1915_v19, 1  ;;  %v1920_v50 = vrot.slane %v1916_v39, 1  ;;  %v1929_v61 = vrot.slane %v1925_v45, 1 }
 0x18b   : > { %v1930_v13 = vrot.slane %v1926_v42, 1  ;;  %v1939_v26 = vrot.slane %v1935_v18, 1  ;;  %v1940_v41 = vrot.slane %v1936_v37, 1  ;;  %v1945_v62 = vmul.f32 %v1897_v38, %v4617_v9 }
 0x18c   : > { %v1946_v16 = vmul.f32 %v1898_v31, %v4617_v9  ;;  %v1923_v0 = vadd.f32 %v1919_v36, %v1901_v10  ;;  %v1924_v49 = vadd.f32 %v1920_v50, %v1902_v53  ;;  %v1933_v52 = vadd.f32 %v1929_v61, %v1905_v1 }
 0x18d   : > { %v1934_v28 = vadd.f32 %v1930_v13, %v1906_v12  ;;  %v1943_v57 = vadd.f32 %v1939_v26, %v1909_v5  ;;  %v1944_v8 = vadd.f32 %v1940_v41, %v1910_v11  ;;  %v1949_v47 = vrot.slane %v1945_v62, 1 }
 0x18e   : > { %v1950_v56 = vrot.slane %v1946_v16, 1  ;;  %v1955_v32 = vmul.f32 %v1897_v38, %v4624_v17  ;;  %v1956_v6 = vmul.f32 %v1898_v31, %v4624_v17  ;;  %v1965_v44 = vmul.f32 %v1897_v38, %v4631_v46 }
 0x18f   : > { %v1966_v19 = vmul.f32 %v1898_v31, %v4631_v46  ;;  %v1953_v39 = vadd.f32 %v1949_v47, %v1913_v34  ;;  %v1975_v42 = vmul.f32 %v1897_v38, %v4634_v33  ;;  %v1976_v10 = vmul.f32 %v1898_v31, %v4634_v33 }
 0x190   : > { %v1954_v45 = vadd.f32 %v1950_v56, %v1914_v63  ;;  %v1959_v53 = vrot.slane %v1955_v32, 2  ;;  %v1960_v1 = vrot.slane %v1956_v6, 2  ;;  %v1969_v12 = vrot.slane %v1965_v44, 2  ;;  %v6273_v44 = vld [vmem:[#allocation28_spill] sm:$0xff] }
 0x191   : > { %v1970_v5 = vrot.slane %v1966_v19, 2  ;;  %v1979_v11 = vrot.slane %v1975_v42, 2  ;;  %v1980_v18 = vrot.slane %v1976_v10, 2  ;;  %v1985_v37 = vmul.f32 %v1897_v38, %v4637_v60  ;;  %v6274_v19 = vld [vmem:[#allocation77_spill] sm:$0xff] }
 0x192   : > { %v1986_v36 = vmul.f32 %v1898_v31, %v4637_v60  ;;  %v1963_v50 = vadd.f32 %v1959_v53, %v1923_v0  ;;  %v1964_v61 = vadd.f32 %v1960_v1, %v1924_v49  ;;  %v1973_v13 = vadd.f32 %v1969_v12, %v1933_v52 }
 0x193   : > { %v1974_v26 = vadd.f32 %v1970_v5, %v1934_v28  ;;  %v1983_v34 = vadd.f32 %v1979_v11, %v1943_v57  ;;  %v1984_v63 = vadd.f32 %v1980_v18, %v1944_v8  ;;  %v1989_v41 = vrot.slane %v1985_v37, 2  ;;  %v6271_v28 = vld [vmem:[#allocation27_spill] sm:$0xff]  ;;  %v6272_v57 = vld [vmem:[#allocation73_spill] sm:$0xff]  ;;  %v6278_v37 = vld [vmem:[#allocation90_spill] sm:$0xff] }
 0x194   : > { %v1990_v62 = vrot.slane %v1986_v36, 2  ;;  %v1995_v16 = vadd.f32 %v1963_v50, %v6257_v27  ;;  %v1996_v47 = vadd.f32 %v1964_v61, %v6258_v43  ;;  %v1997_v56 = vadd.f32 %v1973_v13, %v6253_v21  ;;  %v6275_v5 = vld [vmem:[#allocation89_spill] sm:$0xff]  ;;  %v6280_v50 = vld [vmem:[#allocation52_spill] sm:$0xff] }
 0x195   : > { %v1998_v32 = vadd.f32 %v1974_v26, %v6254_v54  ;;  %v1993_v6 = vadd.f32 %v1989_v41, %v1953_v39  ;;  %v1999_v31 = vadd.f32 %v1983_v34, %v6255_v15  ;;  %v2000_v0 = vadd.f32 %v1984_v63, %v6256_v40  ;;  %v6284_v34 = vld [vmem:[#allocation29_spill] sm:$0xff] }
 0x196   : > { %v1994_v38 = vadd.f32 %v1990_v62, %v1954_v45  ;;  %v2005_v49 = vrot.slane %v1997_v56, 7  ;;  %v1339_v8 = vmul.f32 %v6272_v57, %v6271_v28  ;;  %v1340_v42 = vmul.f32 %v6274_v19, %v6273_v44  ;;  %v6285_v56 = vld [vmem:[#allocation32_spill] sm:$0xff]  ;;  %v6289_v28 = vld [vmem:[#allocation33_spill] sm:$0xff] }
 0x197   : > { %v2006_v52 = vrot.slane %v1998_v32, 7  ;;  %v2001_v10 = vadd.f32 %v1993_v6, %v6259_v55  ;;  %v2011_v1 = vrot.slane %v1999_v31, 6  ;;  %v2012_v12 = vrot.slane %v2000_v0, 6  ;;  %v6288_v0 = vld [vmem:[#allocation44_spill] sm:$0xff] }
 0x198   : > { %v2002_v53 = vadd.f32 %v1994_v38, %v6260_v14  ;;  %v2021_v39 = vsel %vm1049_vm10, %v1995_v16, %v2005_v49  ;;  %v6276_v11 = vrot.slane %v6275_v5, 5  ;;  %v6279_v36 = vrot.slane %v6278_v37, 5 }
 0x199   : > { %v2022_v45 = vsel %vm1049_vm10, %v1996_v47, %v2006_v52  ;;  %v5139_v13 = vadd.f32 %v5057_v24, %v5001_v58  ;;  %v5143_v26 = vadd.f32 %v5061_v3, %v5005_v4  ;;  %v1341_v63 = vmul.f32 %v1339_v8, %v6284_v34  ;;  %v6286_v58 = vld [vmem:[#allocation36_spill] sm:$0xff]  ;;  %v6287_v4 = vld [vmem:[#allocation41_spill] sm:$0xff] }
 0x19a   : > { %v5129_v18 = vsel %vm1055_vm12, %v4895_v59, %v6276_v11  ;;  %v5135_v61 = vsel %vm1055_vm12, %v6280_v50, %v6279_v36  ;;  %v1342_v41 = vmul.f32 %v1340_v42, %v6284_v34  ;;  %v2017_v59 = vrot.slane %v2001_v10, 5  ;;  %v6290_v36 = vld [vmem:[#allocation46_spill] sm:$0xff] }
 0x19b   : > { %6277 = vst [vmem:[#allocation11_spill] sm:$0xff] %v5129_v18  ;;  %6281 = vst [vmem:[#allocation12_spill] sm:$0xff] %v5135_v61  ;;  %v2018_v62 = vrot.slane %v2002_v53, 5  ;;  %v2023_v16 = vsel %vm1052_vm11, %v2021_v39, %v2011_v1  ;;  %v2024_v47 = vsel %vm1052_vm11, %v2022_v45, %v2012_v12  ;;  %v1345_v32 = vmul.f32 %v1339_v8, %v6285_v56  ;;  %v6291_v18 = vld [vmem:[#allocation34_spill] sm:$0xff] }
 0x19c   : > { %6282 = vst [vmem:[#allocation35_spill] sm:$0xff] %v5139_v13  ;;  %6283 = vst [vmem:[#allocation37_spill] sm:$0xff] %v5143_v26  ;;  %v1346_v6 = vmul.f32 %v1340_v42, %v6285_v56  ;;  %v1357_v24 = vmul.f32 %v1339_v8, %v6286_v58  ;;  %v1358_v38 = vmul.f32 %v1340_v42, %v6286_v58 }
 0x19d   : > { %v1367_v3 = vmul.f32 %v1339_v8, %v6287_v4  ;;  %v1368_v31 = vmul.f32 %v1340_v42, %v6287_v4  ;;  %v1377_v49 = vmul.f32 %v1339_v8, %v6288_v0  ;;  %v1378_v52 = vmul.f32 %v1340_v42, %v6288_v0 }
 0x19e   : > { %v1349_v44 = vmul.f32 %v1339_v8, %v6289_v28  ;;  %v1350_v10 = vmul.f32 %v1340_v42, %v6289_v28  ;;  %v1361_v53 = vrot.slane %v1357_v24, 1  ;;  %v1362_v1 = vrot.slane %v1358_v38, 1 }
 0x19f   : > { %v5160_v12 = vsel %vm1055_vm12, %v2023_v16, %v2017_v59  ;;  %v5163_v39 = vsel %vm1055_vm12, %v2024_v47, %v2018_v62  ;;  %v1371_v45 = vrot.slane %v1367_v3, 1  ;;  %v1372_v5 = vrot.slane %v1368_v31, 1  ;;  %v6292_v16 = vld [vmem:[#allocation47_spill] sm:$0xff]  ;;  %v6293_v47 = vld [vmem:[#allocation48_spill] sm:$0xff] }
 0x1a0   : > { %v1381_v11 = vrot.slane %v1377_v49, 1  ;;  %v1382_v37 = vrot.slane %v1378_v52, 1  ;;  %v1387_v50 = vmul.f32 %v1339_v8, %v6290_v36  ;;  %v1388_v61 = vmul.f32 %v1340_v42, %v6290_v36 }
 0x1a1   : > { %v1353_v14 = vmul.f32 %v1339_v8, %v6291_v18  ;;  %v1354_v55 = vmul.f32 %v1340_v42, %v6291_v18  ;;  %v1365_v24 = vadd.f32 %v1361_v53, %v1341_v63  ;;  %v1366_v38 = vadd.f32 %v1362_v1, %v1342_v41 }
 0x1a2   : > { %v1391_v43 = vrot.slane %v1387_v50, 1  ;;  %v1392_v59 = vrot.slane %v1388_v61, 1  ;;  %v1397_v27 = vmul.f32 %v1339_v8, %v6292_v16  ;;  %v1398_v62 = vmul.f32 %v1340_v42, %v6292_v16 }
 0x1a3   : > { %v1407_v3 = vmul.f32 %v1339_v8, %v6293_v47  ;;  %v1408_v31 = vmul.f32 %v1340_v42, %v6293_v47  ;;  %v1417_v49 = vmul.f32 %v1339_v8, %v6228_v2  ;;  %v1418_v52 = vmul.f32 %v1340_v42, %v6228_v2 }
 0x1a4   : > { %v1375_v40 = vadd.f32 %v1371_v45, %v1345_v32  ;;  %v1376_v15 = vadd.f32 %v1372_v5, %v1346_v6  ;;  %v1385_v54 = vadd.f32 %v1381_v11, %v1349_v44  ;;  %v1386_v21 = vadd.f32 %v1382_v37, %v1350_v10  ;;  %v6294_v32 = vld [vmem:[#allocation49_spill] sm:$0xff]  ;;  %v6295_v44 = vld [vmem:[#allocation51_spill] sm:$0xff] }
 0x1a5   : > { %v1395_v63 = vadd.f32 %v1391_v43, %v1353_v14  ;;  %v1396_v41 = vadd.f32 %v1392_v59, %v1354_v55  ;;  %v1401_v53 = vrot.slane %v1397_v27, 2  ;;  %v1402_v61 = vrot.slane %v1398_v62, 2 }
 0x1a6   : > { %v1411_v1 = vrot.slane %v1407_v3, 2  ;;  %v1412_v50 = vrot.slane %v1408_v31, 2  ;;  %v1427_v26 = vmul.f32 %v1339_v8, %v6229_v51  ;;  %v1428_v13 = vmul.f32 %v1340_v42, %v6229_v51  ;;  %v5191_v3 = vpop.permute.xlu1 %2801 }
 0x1a7   : > { %v1405_v16 = vadd.f32 %v1401_v53, %v1365_v24  ;;  %v1406_v47 = vadd.f32 %v1402_v61, %v1366_v38  ;;  %v1421_v36 = vrot.slane %v1417_v49, 2  ;;  %v1422_v18 = vrot.slane %v1418_v52, 2 }
 0x1a8   : > { %v1431_v28 = vrot.slane %v1427_v26, 2  ;;  %v1432_v2 = vrot.slane %v1428_v13, 2  ;;  %v1437_v6 = vmul.f32 %v4757_v35, %v6294_v32  ;;  %v1438_v43 = vmul.f32 %v4759_v48, %v6295_v44 }
 0x1a9   : > { %v1415_v27 = vadd.f32 %v1411_v1, %v1375_v40  ;;  %v1416_v55 = vadd.f32 %v1412_v50, %v1376_v15  ;;  %v1425_v14 = vadd.f32 %v1421_v36, %v1385_v54  ;;  %v1426_v10 = vadd.f32 %v1422_v18, %v1386_v21 }
 0x1aa   : > { %v1435_v45 = vadd.f32 %v1431_v28, %v1395_v63  ;;  %v1436_v8 = vadd.f32 %v1432_v2, %v1396_v41  ;;  %v1439_v42 = vmul.f32 %v1437_v6, %v4566_v29  ;;  %v1440_v5 = vmul.f32 %v1438_v43, %v4566_v29 }
 0x1ab   : > { %v1443_v11 = vmul.f32 %v1437_v6, %v4574_v7  ;;  %v1444_v13 = vmul.f32 %v1438_v43, %v4574_v7  ;;  %v1447_v26 = vmul.f32 %v1437_v6, %v4582_v30  ;;  %v1448_v37 = vmul.f32 %v1438_v43, %v4582_v30 }
 0x1ac   : > { %v1441_v24 = vadd.f32 %v1439_v42, %v1405_v16  ;;  %v1442_v38 = vadd.f32 %v1440_v5, %v1406_v47  ;;  %v1451_v15 = vmul.f32 %v1437_v6, %v4590_v25  ;;  %v1452_v21 = vmul.f32 %v1438_v43, %v4590_v25 }
 0x1ad   : > { %v1445_v54 = vadd.f32 %v1443_v11, %v1415_v27  ;;  %v1446_v2 = vadd.f32 %v1444_v13, %v1416_v55  ;;  %v1449_v40 = vadd.f32 %v1447_v26, %v1425_v14  ;;  %v1450_v18 = vadd.f32 %v1448_v37, %v1426_v10  ;;  %v5201_v37 = vpop.permute.xlu1 %2814 }
 0x1ae   : > { %v1453_v28 = vadd.f32 %v1451_v15, %v1435_v45  ;;  %v1454_v36 = vadd.f32 %v1452_v21, %v1436_v8  ;;  %v1455_v59 = vmul.f32 %v1437_v6, %v4596_v22  ;;  %v1456_v62 = vmul.f32 %v1438_v43, %v4596_v22  ;;  %6296 = vst [vmem:[#allocation81_spill] sm:$0xff] %v5201_v37 }
 0x1af   : > { %v1465_v31 = vmul.f32 %v1437_v6, %v4599_v23  ;;  %v1466_v16 = vmul.f32 %v1438_v43, %v4599_v23  ;;  %v1475_v47 = vmul.f32 %v1437_v6, %v4605_v20  ;;  %v1476_v49 = vmul.f32 %v1438_v43, %v4605_v20 }
 0x1b0   : > { %v1459_v52 = vrot.slane %v1455_v59, 1  ;;  %v1460_v63 = vrot.slane %v1456_v62, 1  ;;  %v1485_v41 = vmul.f32 %v1437_v6, %v4617_v9  ;;  %v1486_v53 = vmul.f32 %v1438_v43, %v4617_v9 }
 0x1b1   : > { %v1469_v61 = vrot.slane %v1465_v31, 1  ;;  %v1470_v1 = vrot.slane %v1466_v16, 1  ;;  %v1479_v50 = vrot.slane %v1475_v47, 1  ;;  %v1480_v32 = vrot.slane %v1476_v49, 1 }
 0x1b2   : > { %v1463_v44 = vadd.f32 %v1459_v52, %v1441_v24  ;;  %v1464_v27 = vadd.f32 %v1460_v63, %v1442_v38  ;;  %v1489_v55 = vrot.slane %v1485_v41, 1  ;;  %v1490_v14 = vrot.slane %v1486_v53, 1 }
 0x1b3   : > { %v1473_v10 = vadd.f32 %v1469_v61, %v1445_v54  ;;  %v1474_v45 = vadd.f32 %v1470_v1, %v1446_v2  ;;  %v1483_v8 = vadd.f32 %v1479_v50, %v1449_v40  ;;  %v1484_v42 = vadd.f32 %v1480_v32, %v1450_v18  ;;  %v6297_v50 = vld [vmem:[#allocation38_spill] sm:$0xff] }
 0x1b4   : > { %v1493_v5 = vadd.f32 %v1489_v55, %v1453_v28  ;;  %v1494_v11 = vadd.f32 %v1490_v14, %v1454_v36  ;;  %v1495_v13 = vmul.f32 %v1437_v6, %v4624_v17  ;;  %v1496_v26 = vmul.f32 %v1438_v43, %v4624_v17  ;;  %v2827_v55 = vpop.permute.xlu1 %2826  ;;  %v6299_v14 = vld [vmem:[#allocation65_spill] sm:$0xff] }
 0x1b5   : > { %v1505_v15 = vmul.f32 %v1437_v6, %v4631_v46  ;;  %v1506_v21 = vmul.f32 %v1438_v43, %v4631_v46  ;;  %v1515_v24 = vmul.f32 %v1437_v6, %v4634_v33  ;;  %v1516_v38 = vmul.f32 %v1438_v43, %v4634_v33 }
 0x1b6   : > { %v1499_v54 = vrot.slane %v1495_v13, 2  ;;  %v1500_v2 = vrot.slane %v1496_v26, 2  ;;  %v1525_v40 = vmul.f32 %v1437_v6, %v4637_v60  ;;  %v1526_v18 = vmul.f32 %v1438_v43, %v4637_v60  ;;  %v6298_v6 = vld [vmem:[#allocation40_spill] sm:$0xff]  ;;  %v6301_v26 = vld [vmem:[#allocation67_spill] sm:$0xff] }
 0x1b7   : > { %v1509_v28 = vrot.slane %v1505_v15, 2  ;;  %v1510_v36 = vrot.slane %v1506_v21, 2  ;;  %v1519_v59 = vrot.slane %v1515_v24, 2  ;;  %v1520_v62 = vrot.slane %v1516_v38, 2  ;;  %v6305_v21 = vld [vmem:[#allocation70_spill] sm:$0xff]  ;;  %v6306_v38 = vld [vmem:[#allocation71_spill] sm:$0xff] }
 0x1b8   : > { %v1503_v31 = vadd.f32 %v1499_v54, %v1463_v44  ;;  %v1504_v16 = vadd.f32 %v1500_v2, %v1464_v27  ;;  %v1529_v47 = vrot.slane %v1525_v40, 2  ;;  %v1530_v49 = vrot.slane %v1526_v18, 2  ;;  %v6300_v27 = vld [vmem:[#allocation66_spill] sm:$0xff] }
 0x1b9   : > { %v1513_v52 = vadd.f32 %v1509_v28, %v1473_v10  ;;  %v1514_v63 = vadd.f32 %v1510_v36, %v1474_v45  ;;  %v1523_v41 = vadd.f32 %v1519_v59, %v1483_v8  ;;  %v1524_v53 = vadd.f32 %v1520_v62, %v1484_v42  ;;  %v6302_v45 = vld [vmem:[#allocation69_spill] sm:$0xff]  ;;  %v6303_v42 = vld [vmem:[#allocation63_spill] sm:$0xff]  ;;  %v6309_v62 = vld [vmem:[#allocation20_spill] sm:$0xff] }
 0x1ba   : > { %v1533_v61 = vadd.f32 %v1529_v47, %v1493_v5  ;;  %v1534_v1 = vadd.f32 %v1530_v49, %v1494_v11  ;;  %v5211_v32 = vmul.f32 %v6272_v57, %v6297_v50  ;;  %v5215_v43 = vmul.f32 %v6274_v19, %v6298_v6  ;;  %v6304_v11 = vld [vmem:[#allocation64_spill] sm:$0xff]  ;;  %v6307_v36 = vld [vmem:[#allocation19_spill] sm:$0xff]  ;;  %v6311_v49 = vld [vmem:[#allocation54_spill] sm:$0xff] }
 0x1bb   : > { %v1537_v44 = vadd.f32 %v1513_v52, %v6299_v14  ;;  %v1538_v13 = vadd.f32 %v1514_v63, %v6300_v27  ;;  %v1539_v10 = vadd.f32 %v1523_v41, %v6301_v26  ;;  %v1540_v8 = vadd.f32 %v1524_v53, %v6302_v45  ;;  %v2799_v52 = vpop.permute.xlu0 %2798 }
 0x1bc   : > { %v1535_v5 = vadd.f32 %v1503_v31, %v6303_v42  ;;  %v1536_v15 = vadd.f32 %v1504_v16, %v6304_v11  ;;  %v1541_v24 = vadd.f32 %v1533_v61, %v6305_v21  ;;  %v1542_v54 = vadd.f32 %v1534_v1, %v6306_v38 }
 0x1bd   : > { %v1545_v2 = vrot.slane %v1537_v44, 7  ;;  %v1546_v40 = vrot.slane %v1538_v13, 7  ;;  %v1551_v18 = vrot.slane %v1539_v10, 6  ;;  %v1552_v28 = vrot.slane %v1540_v8, 6 }
 0x1be   : > { %v5227_v59 = vmul.f32 %v5160_v12, %v6307_v36  ;;  %v5231_v47 = vmul.f32 %v5163_v39, %v6309_v62  ;;  %v5235_v31 = vsel %vm490_vm5, %v6311_v49, %v2827_v55  ;;  %v5239_v16 = vsel %vm490_vm5, %v2827_v55, %v6311_v49  ;;  %v6315_v49 = vld [vmem:[#allocation15_spill] sm:$0xff] }
 0x1bf   : > { %6312 = vst [vmem:[#allocation88_spill] sm:$0xff] %v5235_v31  ;;  %6313 = vst [vmem:[#allocation13_spill] sm:$0xff] %v5239_v16  ;;  %v1561_v63 = vsel %vm1049_vm10, %v1535_v5, %v1545_v2  ;;  %v1562_v41 = vsel %vm1049_vm10, %v1536_v15, %v1546_v40  ;;  %v5245_v12 = vsel %vm413_vm3, %v5191_v3, %v2799_v52  ;;  %v1557_v53 = vrot.slane %v1541_v24, 5 }
 0x1c0   : > { %6308 = vst [vmem:[#allocation80_spill] sm:$0xff] %v5227_v59  ;;  %6310 = vst [vmem:[#allocation87_spill] sm:$0xff] %v5231_v47  ;;  %v5249_v39 = vsel %vm413_vm3, %v2799_v52, %v5191_v3  ;;  %v1558_v61 = vrot.slane %v1542_v54, 5  ;;  %v1563_v1 = vsel %vm1052_vm11, %v1561_v63, %v1551_v18  ;;  %v1564_v50 = vsel %vm1052_vm11, %v1562_v41, %v1552_v28  ;;  %v6314_v28 = vld [vmem:[#allocation33_spill] sm:$0xff]  ;;  %v6317_v63 = vld [vmem:[#allocation16_spill] sm:$0xff] }
 0x1c1   : > { %v2031_v6 = vmul.f32 %v5211_v32, %v6284_v34  ;;  %v2032_v55 = vmul.f32 %v5215_v43, %v6284_v34  ;;  %v2047_v44 = vmul.f32 %v5211_v32, %v6286_v58  ;;  %v2048_v13 = vmul.f32 %v5215_v43, %v6286_v58  ;;  %v6320_v58 = vld [vmem:[#allocation46_spill] sm:$0xff] }
 0x1c2   : > { %v1565_v3 = vsel %vm1055_vm12, %v1563_v1, %v1557_v53  ;;  %v1566_v10 = vsel %vm1055_vm12, %v1564_v50, %v1558_v61  ;;  %v2057_v8 = vmul.f32 %v5211_v32, %v6287_v4  ;;  %v2058_v5 = vmul.f32 %v5215_v43, %v6287_v4  ;;  %v6319_v53 = vld [vmem:[#allocation34_spill] sm:$0xff] }
 0x1c3   : > { %v2051_v15 = vrot.slane %v2047_v44, 1  ;;  %v2052_v24 = vrot.slane %v2048_v13, 1  ;;  %v2067_v54 = vmul.f32 %v5211_v32, %v6288_v0  ;;  %v2068_v2 = vmul.f32 %v5215_v43, %v6288_v0 }
 0x1c4   : > { %v2035_v40 = vmul.f32 %v5211_v32, %v6285_v56  ;;  %v2036_v18 = vmul.f32 %v5215_v43, %v6285_v56  ;;  %v2039_v36 = vmul.f32 %v5211_v32, %v6314_v28  ;;  %v2040_v62 = vmul.f32 %v5215_v43, %v6314_v28  ;;  %v6322_v56 = vld [vmem:[#allocation48_spill] sm:$0xff] }
 0x1c5   : > { %v5280_v52 = vmul.f32 %v1565_v3, %v6315_v49  ;;  %v5283_v41 = vmul.f32 %v1566_v10, %v6317_v63  ;;  %v2043_v61 = vmul.f32 %v5211_v32, %v6319_v53  ;;  %v2044_v1 = vmul.f32 %v5215_v43, %v6319_v53  ;;  %v6321_v10 = vld [vmem:[#allocation47_spill] sm:$0xff] }
 0x1c6   : > { %v2061_v50 = vrot.slane %v2057_v8, 1  ;;  %v2062_v44 = vrot.slane %v2058_v5, 1  ;;  %v2071_v13 = vrot.slane %v2067_v54, 1  ;;  %v2072_v37 = vrot.slane %v2068_v2, 1 }
 0x1c7   : > { %6316 = vst [vmem:[#allocation14_spill] sm:$0xff] %v5280_v52  ;;  %6318 = vst [vmem:[#allocation85_spill] sm:$0xff] %v5283_v41  ;;  %v2055_v0 = vadd.f32 %v2051_v15, %v2031_v6  ;;  %v2056_v4 = vadd.f32 %v2052_v24, %v2032_v55  ;;  %v2077_v28 = vmul.f32 %v5211_v32, %v6320_v58  ;;  %v6323_v15 = vld [vmem:[#allocation50_spill] sm:$0xff] }
 0x1c8   : > { %v2078_v3 = vmul.f32 %v5215_v43, %v6320_v58  ;;  %v2087_v49 = vmul.f32 %v5211_v32, %v6321_v10  ;;  %v2088_v63 = vmul.f32 %v5215_v43, %v6321_v10  ;;  %v2097_v8 = vmul.f32 %v5211_v32, %v6322_v56 }
 0x1c9   : > { %v2098_v5 = vmul.f32 %v5215_v43, %v6322_v56  ;;  %v2081_v6 = vrot.slane %v2077_v28, 1  ;;  %v2107_v24 = vmul.f32 %v5211_v32, %v6323_v15  ;;  %v2108_v54 = vmul.f32 %v5215_v43, %v6323_v15 }
 0x1ca   : > { %v2082_v55 = vrot.slane %v2078_v3, 1  ;;  %v2065_v2 = vadd.f32 %v2061_v50, %v2035_v40  ;;  %v2066_v58 = vadd.f32 %v2062_v44, %v2036_v18  ;;  %v2075_v53 = vadd.f32 %v2071_v13, %v2039_v36  ;;  %v6324_v36 = vld [vmem:[#allocation58_spill] sm:$0xff] }
 0x1cb   : > { %v2076_v34 = vadd.f32 %v2072_v37, %v2040_v62  ;;  %v2091_v16 = vrot.slane %v2087_v49, 2  ;;  %v2092_v10 = vrot.slane %v2088_v63, 2  ;;  %v2101_v47 = vrot.slane %v2097_v8, 2  ;;  %v6325_v62 = vld [vmem:[#allocation59_spill] sm:$0xff] }
 0x1cc   : > { %v2102_v31 = vrot.slane %v2098_v5, 2  ;;  %v2085_v59 = vadd.f32 %v2081_v6, %v2043_v61  ;;  %v2086_v38 = vadd.f32 %v2082_v55, %v2044_v1  ;;  %v2111_v21 = vrot.slane %v2107_v24, 2 }
 0x1cd   : > { %v2112_v56 = vrot.slane %v2108_v54, 2  ;;  %v2095_v28 = vadd.f32 %v2091_v16, %v2055_v0  ;;  %v2096_v3 = vadd.f32 %v2092_v10, %v2056_v4  ;;  %v2117_v11 = vmul.f32 %v5211_v32, %v6229_v51 }
 0x1ce   : > { %v2118_v15 = vmul.f32 %v5215_v43, %v6229_v51  ;;  %v2105_v40 = vadd.f32 %v2101_v47, %v2065_v2  ;;  %v2106_v18 = vadd.f32 %v2102_v31, %v2066_v58  ;;  %v2127_v37 = vmul.f32 %v4757_v35, %v6324_v36 }
 0x1cf   : > { %v2128_v50 = vmul.f32 %v4759_v48, %v6325_v62  ;;  %v2115_v61 = vadd.f32 %v2111_v21, %v2075_v53  ;;  %v2116_v1 = vadd.f32 %v2112_v56, %v2076_v34  ;;  %v2121_v44 = vrot.slane %v2117_v11, 2 }
 0x1d0   : > { %v2122_v13 = vrot.slane %v2118_v15, 2  ;;  %v2129_v4 = vmul.f32 %v2127_v37, %v4566_v29  ;;  %v2133_v32 = vmul.f32 %v2127_v37, %v4574_v7  ;;  %v2137_v31 = vmul.f32 %v2127_v37, %v4582_v30 }
 0x1d1   : > { %v2130_v0 = vmul.f32 %v2128_v50, %v4566_v29  ;;  %v2134_v43 = vmul.f32 %v2128_v50, %v4574_v7  ;;  %v2125_v47 = vadd.f32 %v2121_v44, %v2085_v59  ;;  %v2138_v16 = vmul.f32 %v2128_v50, %v4582_v30 }
 0x1d2   : > { %v2126_v58 = vadd.f32 %v2122_v13, %v2086_v38  ;;  %v2131_v10 = vadd.f32 %v2129_v4, %v2095_v28  ;;  %v2135_v21 = vadd.f32 %v2133_v32, %v2105_v40  ;;  %v2139_v56 = vadd.f32 %v2137_v31, %v2115_v61 }
 0x1d3   : > { %v2132_v49 = vadd.f32 %v2130_v0, %v2096_v3  ;;  %v2136_v34 = vadd.f32 %v2134_v43, %v2106_v18  ;;  %v2140_v11 = vadd.f32 %v2138_v16, %v2116_v1  ;;  %v2141_v53 = vmul.f32 %v2127_v37, %v4590_v25 }
 0x1d4   : > { %v2142_v63 = vmul.f32 %v2128_v50, %v4590_v25  ;;  %v2145_v8 = vmul.f32 %v2127_v37, %v4596_v22  ;;  %v2146_v5 = vmul.f32 %v2128_v50, %v4596_v22  ;;  %v2155_v38 = vmul.f32 %v2127_v37, %v4599_v23 }
 0x1d5   : > { %v2156_v59 = vmul.f32 %v2128_v50, %v4599_v23  ;;  %v2143_v6 = vadd.f32 %v2141_v53, %v2125_v47  ;;  %v2165_v15 = vmul.f32 %v2127_v37, %v4605_v20  ;;  %v2166_v24 = vmul.f32 %v2128_v50, %v4605_v20 }
 0x1d6   : > { %v2144_v55 = vadd.f32 %v2142_v63, %v2126_v58  ;;  %v2149_v54 = vrot.slane %v2145_v8, 1  ;;  %v2150_v2 = vrot.slane %v2146_v5, 1  ;;  %v2159_v28 = vrot.slane %v2155_v38, 1 }
 0x1d7   : > { %v2160_v3 = vrot.slane %v2156_v59, 1  ;;  %v2169_v40 = vrot.slane %v2165_v15, 1  ;;  %v2170_v18 = vrot.slane %v2166_v24, 1  ;;  %v2175_v36 = vmul.f32 %v2127_v37, %v4617_v9 }
 0x1d8   : > { %v2176_v62 = vmul.f32 %v2128_v50, %v4617_v9  ;;  %v2153_v61 = vadd.f32 %v2149_v54, %v2131_v10  ;;  %v2154_v1 = vadd.f32 %v2150_v2, %v2132_v49  ;;  %v2163_v44 = vadd.f32 %v2159_v28, %v2135_v21 }
 0x1d9   : > { %v2164_v13 = vadd.f32 %v2160_v3, %v2136_v34  ;;  %v2173_v4 = vadd.f32 %v2169_v40, %v2139_v56  ;;  %v2174_v0 = vadd.f32 %v2170_v18, %v2140_v11  ;;  %v2179_v32 = vrot.slane %v2175_v36, 1 }
 0x1da   : > { %v2180_v43 = vrot.slane %v2176_v62, 1  ;;  %v2185_v47 = vmul.f32 %v2127_v37, %v4624_v17  ;;  %v2186_v58 = vmul.f32 %v2128_v50, %v4624_v17  ;;  %v2195_v31 = vmul.f32 %v2127_v37, %v4631_v46 }
 0x1db   : > { %v2196_v16 = vmul.f32 %v2128_v50, %v4631_v46  ;;  %v2183_v53 = vadd.f32 %v2179_v32, %v2143_v6  ;;  %v2205_v8 = vmul.f32 %v2127_v37, %v4634_v33  ;;  %v2206_v10 = vmul.f32 %v2128_v50, %v4634_v33 }
 0x1dc   : > { %v2184_v63 = vadd.f32 %v2180_v43, %v2144_v55  ;;  %v2189_v49 = vrot.slane %v2185_v47, 2  ;;  %v2190_v21 = vrot.slane %v2186_v58, 2  ;;  %v2199_v34 = vrot.slane %v2195_v31, 2  ;;  %v6329_v43 = vld [vmem:[#allocation70_spill] sm:$0xff]  ;;  %v6332_v31 = vld [vmem:[#allocation88_spill] sm:$0xff] }
 0x1dd   : > { %v2200_v56 = vrot.slane %v2196_v16, 2  ;;  %v2209_v11 = vrot.slane %v2205_v8, 2  ;;  %v2210_v5 = vrot.slane %v2206_v10, 2  ;;  %v2215_v38 = vmul.f32 %v2127_v37, %v4637_v60 }
 0x1de   : > { %v2216_v59 = vmul.f32 %v2128_v50, %v4637_v60  ;;  %v2193_v15 = vadd.f32 %v2189_v49, %v2153_v61  ;;  %v2194_v24 = vadd.f32 %v2190_v21, %v2154_v1  ;;  %v2203_v54 = vadd.f32 %v2199_v34, %v2163_v44  ;;  %v6337_v21 = vld [vmem:[#allocation35_spill] sm:$0xff]  ;;  %v6339_v34 = vld [vmem:[#allocation37_spill] sm:$0xff] }
 0x1df   : > { %v2204_v2 = vadd.f32 %v2200_v56, %v2164_v13  ;;  %v2213_v6 = vadd.f32 %v2209_v11, %v2173_v4  ;;  %v2214_v55 = vadd.f32 %v2210_v5, %v2174_v0  ;;  %v2219_v28 = vrot.slane %v2215_v38, 2  ;;  %v6326_v4 = vld [vmem:[#allocation30_spill] sm:$0xff]  ;;  %v6341_v38 = vld [vmem:[#allocation29_spill] sm:$0xff] }
 0x1e0   : > { %v2220_v3 = vrot.slane %v2216_v59, 2  ;;  %v2807_v40 = vmul.f32 %v5249_v39, %v5280_v52  ;;  %v2808_v18 = vmul.f32 %v5245_v12, %v5283_v41  ;;  %v2227_v36 = vadd.f32 %v2203_v54, %v6299_v14  ;;  %v6327_v39 = vld [vmem:[#allocation31_spill] sm:$0xff]  ;;  %v6328_v12 = vld [vmem:[#allocation64_spill] sm:$0xff] }
 0x1e1   : > { %v2228_v37 = vadd.f32 %v2204_v2, %v6300_v27  ;;  %v2223_v62 = vadd.f32 %v2219_v28, %v2183_v53  ;;  %v2229_v61 = vadd.f32 %v2213_v6, %v6301_v26  ;;  %v2230_v1 = vadd.f32 %v2214_v55, %v6302_v45  ;;  %v6330_v26 = vld [vmem:[#allocation71_spill] sm:$0xff]  ;;  %v6331_v45 = vld [vmem:[#allocation80_spill] sm:$0xff] }
 0x1e2   : > { %v2224_v50 = vadd.f32 %v2220_v3, %v2184_v63  ;;  %v2235_v44 = vrot.slane %v2227_v36, 7  ;;  %v5347_v0 = vmul.f32 %v6272_v57, %v6326_v4  ;;  %v5351_v32 = vmul.f32 %v6274_v19, %v6327_v39  ;;  %v6334_v53 = vld [vmem:[#allocation87_spill] sm:$0xff]  ;;  %v6335_v63 = vld [vmem:[#allocation13_spill] sm:$0xff]  ;;  %v6343_v28 = vld [vmem:[#allocation36_spill] sm:$0xff] }
 0x1e3   : > { %v2236_v13 = vrot.slane %v2228_v37, 7  ;;  %v2225_v14 = vadd.f32 %v2193_v15, %v6303_v42  ;;  %v2226_v27 = vadd.f32 %v2194_v24, %v6328_v12  ;;  %v5356_v47 = vadd.f32 %v2223_v62, %v6329_v43  ;;  %v6342_v24 = vld [vmem:[#allocation32_spill] sm:$0xff]  ;;  %v6344_v37 = vld [vmem:[#allocation41_spill] sm:$0xff] }
 0x1e4   : > { %v5359_v58 = vadd.f32 %v2224_v50, %v6330_v26  ;;  %v5363_v16 = vmul.f32 %v6332_v31, %v6331_v45  ;;  %v5367_v8 = vmul.f32 %v6335_v63, %v6334_v53  ;;  %v2241_v10 = vrot.slane %v2229_v61, 6  ;;  %v6346_v39 = vld [vmem:[#allocation33_spill] sm:$0xff]  ;;  %v6347_v26 = vld [vmem:[#allocation34_spill] sm:$0xff] }
 0x1e5   : > { %v2242_v49 = vrot.slane %v2230_v1, 6  ;;  %v5370_v42 = vadd.f32 %v2807_v40, %v6337_v21  ;;  %v5373_v56 = vadd.f32 %v2808_v18, %v6339_v34  ;;  %v2251_v11 = vsel %vm1049_vm10, %v2225_v14, %v2235_v44  ;;  %v6345_v44 = vld [vmem:[#allocation44_spill] sm:$0xff] }
 0x1e6   : > { %6333 = vst [vmem:[#allocation84_spill] sm:$0xff] %v5363_v16  ;;  %6336 = vst [vmem:[#allocation56_spill] sm:$0xff] %v5367_v8  ;;  %v2252_v5 = vsel %vm1049_vm10, %v2226_v27, %v2236_v13  ;;  %v1571_v59 = vmul.f32 %v5347_v0, %v6341_v38  ;;  %v1572_v15 = vmul.f32 %v5351_v32, %v6341_v38 }
 0x1e7   : > { %6338 = vst [vmem:[#allocation57_spill] sm:$0xff] %v5370_v42  ;;  %6340 = vst [vmem:[#allocation27_spill] sm:$0xff] %v5373_v56  ;;  %v1575_v54 = vmul.f32 %v5347_v0, %v6342_v24  ;;  %v1576_v2 = vmul.f32 %v5351_v32, %v6342_v24  ;;  %v1587_v3 = vmul.f32 %v5347_v0, %v6343_v28 }
 0x1e8   : > { %v1588_v40 = vmul.f32 %v5351_v32, %v6343_v28  ;;  %v5392_v18 = vsel %vm1052_vm11, %v2251_v11, %v2241_v10  ;;  %v5395_v36 = vsel %vm1052_vm11, %v2252_v5, %v2242_v49  ;;  %v1597_v62 = vmul.f32 %v5347_v0, %v6344_v37  ;;  %v6348_v11 = vld [vmem:[#allocation46_spill] sm:$0xff] }
 0x1e9   : > { %v1598_v50 = vmul.f32 %v5351_v32, %v6344_v37  ;;  %v1591_v61 = vrot.slane %v1587_v3, 1  ;;  %v1607_v13 = vmul.f32 %v5347_v0, %v6345_v44  ;;  %v1608_v4 = vmul.f32 %v5351_v32, %v6345_v44 }
 0x1ea   : > { %v1592_v1 = vrot.slane %v1588_v40, 1  ;;  %v1579_v14 = vmul.f32 %v5347_v0, %v6346_v39  ;;  %v1580_v12 = vmul.f32 %v5351_v32, %v6346_v39  ;;  %v1601_v27 = vrot.slane %v1597_v62, 1  ;;  %v6349_v62 = vld [vmem:[#allocation47_spill] sm:$0xff] }
 0x1eb   : > { %v1602_v43 = vrot.slane %v1598_v50, 1  ;;  %v1583_v31 = vmul.f32 %v5347_v0, %v6347_v26  ;;  %v1584_v63 = vmul.f32 %v5351_v32, %v6347_v26  ;;  %v1595_v10 = vadd.f32 %v1591_v61, %v1571_v59  ;;  %v6350_v59 = vld [vmem:[#allocation48_spill] sm:$0xff] }
 0x1ec   : > { %v1596_v49 = vadd.f32 %v1592_v1, %v1572_v15  ;;  %v1611_v21 = vrot.slane %v1607_v13, 1  ;;  %v1612_v34 = vrot.slane %v1608_v4, 1  ;;  %v1617_v5 = vmul.f32 %v5347_v0, %v6348_v11  ;;  %v6351_v4 = vld [vmem:[#allocation50_spill] sm:$0xff] }
 0x1ed   : > { %v1618_v3 = vmul.f32 %v5351_v32, %v6348_v11  ;;  %v1605_v40 = vadd.f32 %v1601_v27, %v1575_v54  ;;  %v1606_v55 = vadd.f32 %v1602_v43, %v1576_v2  ;;  %v1627_v50 = vmul.f32 %v5347_v0, %v6349_v62  ;;  %v6352_v11 = vld [vmem:[#allocation53_spill] sm:$0xff] }
 0x1ee   : > { %v1628_v6 = vmul.f32 %v5351_v32, %v6349_v62  ;;  %v1621_v53 = vrot.slane %v1617_v5, 1  ;;  %v1637_v15 = vmul.f32 %v5347_v0, %v6350_v59  ;;  %v1638_v61 = vmul.f32 %v5351_v32, %v6350_v59 }
 0x1ef   : > { %v1622_v45 = vrot.slane %v1618_v3, 1  ;;  %v1631_v1 = vrot.slane %v1627_v50, 2  ;;  %v1647_v54 = vmul.f32 %v5347_v0, %v6351_v4  ;;  %v1648_v2 = vmul.f32 %v5351_v32, %v6351_v4 }
 0x1f0   : > { %v1632_v13 = vrot.slane %v1628_v6, 2  ;;  %v1615_v27 = vadd.f32 %v1611_v21, %v1579_v14  ;;  %v1616_v43 = vadd.f32 %v1612_v34, %v1580_v12  ;;  %v1625_v41 = vadd.f32 %v1621_v53, %v1583_v31  ;;  %v6353_v12 = vld [vmem:[#allocation55_spill] sm:$0xff] }
 0x1f1   : > { %v1626_v52 = vadd.f32 %v1622_v45, %v1584_v63  ;;  %v1635_v5 = vadd.f32 %v1631_v1, %v1595_v10  ;;  %v1641_v8 = vrot.slane %v1637_v15, 2  ;;  %v1642_v16 = vrot.slane %v1638_v61, 2 }
 0x1f2   : > { %v1636_v3 = vadd.f32 %v1632_v13, %v1596_v49  ;;  %v1651_v56 = vrot.slane %v1647_v54, 2  ;;  %v1652_v42 = vrot.slane %v1648_v2, 2  ;;  %v1657_v50 = vmul.f32 %v5347_v0, %v6229_v51 }
 0x1f3   : > { %v1658_v6 = vmul.f32 %v5351_v32, %v6229_v51  ;;  %v1645_v59 = vadd.f32 %v1641_v8, %v1605_v40  ;;  %v1646_v62 = vadd.f32 %v1642_v16, %v1606_v55  ;;  %v1667_v14 = vmul.f32 %v4757_v35, %v6352_v11 }
 0x1f4   : > { %v1668_v45 = vmul.f32 %v4759_v48, %v6353_v12  ;;  %v1655_v53 = vadd.f32 %v1651_v56, %v1615_v27  ;;  %v1656_v31 = vadd.f32 %v1652_v42, %v1616_v43  ;;  %v1661_v63 = vrot.slane %v1657_v50, 2 }
 0x1f5   : > { %v1662_v10 = vrot.slane %v1658_v6, 2  ;;  %v1669_v49 = vmul.f32 %v1667_v14, %v4566_v29  ;;  %v1673_v0 = vmul.f32 %v1667_v14, %v4574_v7  ;;  %v1677_v55 = vmul.f32 %v1667_v14, %v4582_v30 }
 0x1f6   : > { %v1670_v21 = vmul.f32 %v1668_v45, %v4566_v29  ;;  %v1674_v32 = vmul.f32 %v1668_v45, %v4574_v7  ;;  %v1665_v8 = vadd.f32 %v1661_v63, %v1625_v41  ;;  %v1678_v34 = vmul.f32 %v1668_v45, %v4582_v30 }
 0x1f7   : > { %v1666_v16 = vadd.f32 %v1662_v10, %v1626_v52  ;;  %v1671_v11 = vadd.f32 %v1669_v49, %v1635_v5  ;;  %v1675_v56 = vadd.f32 %v1673_v0, %v1645_v59  ;;  %v1679_v15 = vadd.f32 %v1677_v55, %v1655_v53 }
 0x1f8   : > { %v1672_v40 = vadd.f32 %v1670_v21, %v1636_v3  ;;  %v1676_v42 = vadd.f32 %v1674_v32, %v1646_v62  ;;  %v1680_v61 = vadd.f32 %v1678_v34, %v1656_v31  ;;  %v1681_v1 = vmul.f32 %v1667_v14, %v4590_v25 }
 0x1f9   : > { %v1682_v13 = vmul.f32 %v1668_v45, %v4590_v25  ;;  %v1685_v54 = vmul.f32 %v1667_v14, %v4596_v22  ;;  %v1686_v2 = vmul.f32 %v1668_v45, %v4596_v22  ;;  %v1695_v52 = vmul.f32 %v1667_v14, %v4599_v23 }
 0x1fa   : > { %v1696_v41 = vmul.f32 %v1668_v45, %v4599_v23  ;;  %v1683_v27 = vadd.f32 %v1681_v1, %v1665_v8  ;;  %v1705_v5 = vmul.f32 %v1667_v14, %v4605_v20  ;;  %v1706_v62 = vmul.f32 %v1668_v45, %v4605_v20 }
 0x1fb   : > { %v1684_v43 = vadd.f32 %v1682_v13, %v1666_v16  ;;  %v1689_v59 = vrot.slane %v1685_v54, 1  ;;  %v1690_v3 = vrot.slane %v1686_v2, 1  ;;  %v1699_v50 = vrot.slane %v1695_v52, 1 }
 0x1fc   : > { %v1700_v6 = vrot.slane %v1696_v41, 1  ;;  %v1709_v12 = vrot.slane %v1705_v5, 1  ;;  %v1710_v53 = vrot.slane %v1706_v62, 1  ;;  %v1715_v31 = vmul.f32 %v1667_v14, %v4617_v9 }
 0x1fd   : > { %v1716_v63 = vmul.f32 %v1668_v45, %v4617_v9  ;;  %v1693_v10 = vadd.f32 %v1689_v59, %v1671_v11  ;;  %v1694_v49 = vadd.f32 %v1690_v3, %v1672_v40  ;;  %v1703_v21 = vadd.f32 %v1699_v50, %v1675_v56 }
 0x1fe   : > { %v1704_v0 = vadd.f32 %v1700_v6, %v1676_v42  ;;  %v1713_v32 = vadd.f32 %v1709_v12, %v1679_v15  ;;  %v1714_v8 = vadd.f32 %v1710_v53, %v1680_v61  ;;  %v1719_v16 = vrot.slane %v1715_v31, 1 }
 0x1ff   : > { %v1720_v55 = vrot.slane %v1716_v63, 1  ;;  %v1725_v34 = vmul.f32 %v1667_v14, %v4624_v17  ;;  %v1726_v1 = vmul.f32 %v1668_v45, %v4624_v17  ;;  %v1735_v13 = vmul.f32 %v1667_v14, %v4631_v46 }
 0x200   : > { %v1736_v54 = vmul.f32 %v1668_v45, %v4631_v46  ;;  %v1723_v2 = vadd.f32 %v1719_v16, %v1683_v27  ;;  %v1745_v41 = vmul.f32 %v1667_v14, %v4634_v33  ;;  %v1746_v11 = vmul.f32 %v1668_v45, %v4634_v33 }
 0x201   : > { %v1724_v52 = vadd.f32 %v1720_v55, %v1684_v43  ;;  %v1729_v40 = vrot.slane %v1725_v34, 2  ;;  %v1730_v56 = vrot.slane %v1726_v1, 2  ;;  %v1739_v42 = vrot.slane %v1735_v13, 2  ;;  %v6356_v34 = vld [vmem:[#allocation68_spill] sm:$0xff]  ;;  %v6359_v1 = vld [vmem:[#allocation78_spill] sm:$0xff] }
 0x202   : > { %v1740_v15 = vrot.slane %v1736_v54, 2  ;;  %v1749_v61 = vrot.slane %v1745_v41, 2  ;;  %v1750_v5 = vrot.slane %v1746_v11, 2  ;;  %v1755_v62 = vmul.f32 %v1667_v14, %v4637_v60  ;;  %v6360_v54 = vld [vmem:[#allocation74_spill] sm:$0xff]  ;;  %v6361_v41 = vld [vmem:[#allocation75_spill] sm:$0xff] }
 0x203   : > { %v1756_v59 = vmul.f32 %v1668_v45, %v4637_v60  ;;  %v1733_v3 = vadd.f32 %v1729_v40, %v1693_v10  ;;  %v1734_v50 = vadd.f32 %v1730_v56, %v1694_v49  ;;  %v1743_v6 = vadd.f32 %v1739_v42, %v1703_v21  ;;  %v6357_v10 = vld [vmem:[#allocation72_spill] sm:$0xff]  ;;  %v6362_v56 = vld [vmem:[#allocation79_spill] sm:$0xff] }
 0x204   : > { %v1744_v12 = vadd.f32 %v1740_v15, %v1704_v0  ;;  %v1753_v27 = vadd.f32 %v1749_v61, %v1713_v32  ;;  %v1754_v43 = vadd.f32 %v1750_v5, %v1714_v8  ;;  %v1759_v53 = vrot.slane %v1755_v62, 2  ;;  %v6358_v32 = vld [vmem:[#allocation76_spill] sm:$0xff]  ;;  %v6364_v62 = vld [vmem:[#allocation43_spill] sm:$0xff] }
 0x205   : > { %v1760_v31 = vrot.slane %v1756_v59, 2  ;;  %v6354_v63 = vrot.slane %v5356_v47, 5  ;;  %v6355_v55 = vrot.slane %v5359_v58, 5  ;;  %v1767_v45 = vadd.f32 %v1743_v6, %v6356_v34  ;;  %v2840_v58 = vpop.permute.xlu1 %2839 }
 0x206   : > { %v1768_v49 = vadd.f32 %v1744_v12, %v6357_v10  ;;  %v1763_v21 = vadd.f32 %v1759_v53, %v1723_v2  ;;  %v1769_v8 = vadd.f32 %v1753_v27, %v6358_v32  ;;  %v1770_v13 = vadd.f32 %v1754_v43, %v6359_v1  ;;  %v6366_v53 = vld [vmem:[#allocation21_spill] sm:$0xff] }
 0x207   : > { %v2255_v16 = vsel %vm1055_vm12, %v5392_v18, %v6354_v63  ;;  %v2256_v14 = vsel %vm1055_vm12, %v5395_v36, %v6355_v55  ;;  %v1764_v0 = vadd.f32 %v1760_v31, %v1724_v52  ;;  %v1765_v47 = vadd.f32 %v1733_v3, %v6360_v54  ;;  %v6363_v36 = vld [vmem:[#allocation82_spill] sm:$0xff]  ;;  %v6365_v3 = vld [vmem:[#allocation45_spill] sm:$0xff] }
 0x208   : > { %v1766_v11 = vadd.f32 %v1734_v50, %v6361_v41  ;;  %v1775_v18 = vrot.slane %v1767_v45, 7  ;;  %v1776_v40 = vrot.slane %v1768_v49, 7  ;;  %v1771_v42 = vadd.f32 %v1763_v21, %v6362_v56  ;;  %v6367_v63 = vld [vmem:[#allocation22_spill] sm:$0xff]  ;;  %v6369_v45 = vld [vmem:[#allocation61_spill] sm:$0xff]  ;;  %v2812_v49 = vpop.permute.xlu0 %2811 }
 0x209   : > { %v1772_v15 = vadd.f32 %v1764_v0, %v6363_v36  ;;  %v1781_v61 = vrot.slane %v1769_v8, 6  ;;  %v1782_v5 = vrot.slane %v1770_v13, 6  ;;  %v5481_v59 = vmul.f32 %v6272_v57, %v6364_v62  ;;  %v6372_v8 = vld [vmem:[#allocation81_spill] sm:$0xff] }
 0x20a   : > { %v1791_v2 = vsel %vm1049_vm10, %v1765_v47, %v1775_v18  ;;  %v1792_v52 = vsel %vm1049_vm10, %v1766_v11, %v1776_v40  ;;  %v5485_v50 = vmul.f32 %v6274_v19, %v6365_v3  ;;  %v1787_v6 = vrot.slane %v1771_v42, 5  ;;  %v6373_v13 = vld [vmem:[#allocation17_spill] sm:$0xff]  ;;  %v6375_v11 = vld [vmem:[#allocation18_spill] sm:$0xff] }
 0x20b   : > { %v1788_v12 = vrot.slane %v1772_v15, 5  ;;  %v1793_v27 = vsel %vm1052_vm11, %v1791_v2, %v1781_v61  ;;  %v1794_v43 = vsel %vm1052_vm11, %v1792_v52, %v1782_v5  ;;  %v5490_v31 = vmul.f32 %v2255_v16, %v6366_v53 }
 0x20c   : > { %v5493_v55 = vmul.f32 %v2256_v14, %v6367_v63  ;;  %v5497_v57 = vsel %vm529_vm6, %v6369_v45, %v2840_v58  ;;  %v5501_v19 = vsel %vm529_vm6, %v2840_v58, %v6369_v45  ;;  %v1795_v21 = vsel %vm1055_vm12, %v1793_v27, %v1787_v6 }
 0x20d   : > { %6370 = vst [vmem:[#allocation28_spill] sm:$0xff] %v5497_v57  ;;  %6371 = vst [vmem:[#allocation77_spill] sm:$0xff] %v5501_v19  ;;  %v1796_v0 = vsel %vm1055_vm12, %v1794_v43, %v1788_v12  ;;  %v2816_v16 = vsel %vm452_vm4, %v6372_v8, %v2812_v49  ;;  %v2819_v14 = vsel %vm452_vm4, %v2812_v49, %v6372_v8 }
 0x20e   : > { %6368 = vst [vmem:[#allocation73_spill] sm:$0xff] %v5493_v55  ;;  %v5510_v47 = vmul.f32 %v1795_v21, %v6373_v13  ;;  %v5513_v18 = vmul.f32 %v1796_v0, %v6375_v11  ;;  %v2277_v40 = vmul.f32 %v5481_v59, %v6343_v28  ;;  %v2278_v58 = vmul.f32 %v5485_v50, %v6343_v28  ;;  %v6377_v0 = vld [vmem:[#allocation46_spill] sm:$0xff]  ;;  %v6379_v11 = vld [vmem:[#allocation48_spill] sm:$0xff] }
 0x20f   : > { %v2287_v42 = vmul.f32 %v5481_v59, %v6344_v37  ;;  %v2288_v15 = vmul.f32 %v5485_v50, %v6344_v37  ;;  %v2297_v61 = vmul.f32 %v5481_v59, %v6345_v44  ;;  %v2298_v5 = vmul.f32 %v5485_v50, %v6345_v44 }
 0x210   : > { %6374 = vst [vmem:[#allocation89_spill] sm:$0xff] %v5510_v47  ;;  %6376 = vst [vmem:[#allocation90_spill] sm:$0xff] %v5513_v18  ;;  %v2261_v2 = vmul.f32 %v5481_v59, %v6341_v38  ;;  %v2262_v52 = vmul.f32 %v5485_v50, %v6341_v38  ;;  %v2281_v62 = vrot.slane %v2277_v40, 1  ;;  %v2282_v28 = vrot.slane %v2278_v58, 1 }
 0x211   : > { %v2265_v3 = vmul.f32 %v5481_v59, %v6342_v24  ;;  %v2266_v37 = vmul.f32 %v5485_v50, %v6342_v24  ;;  %v2269_v6 = vmul.f32 %v5481_v59, %v6346_v39  ;;  %v2270_v44 = vmul.f32 %v5485_v50, %v6346_v39 }
 0x212   : > { %v5540_v12 = vmul.f32 %v2819_v14, %v5510_v47  ;;  %v5543_v27 = vmul.f32 %v2816_v16, %v5513_v18  ;;  %v2273_v38 = vmul.f32 %v5481_v59, %v6347_v26  ;;  %v2274_v43 = vmul.f32 %v5485_v50, %v6347_v26  ;;  %v6378_v16 = vld [vmem:[#allocation47_spill] sm:$0xff] }
 0x213   : > { %v2291_v53 = vrot.slane %v2287_v42, 1  ;;  %v2292_v24 = vrot.slane %v2288_v15, 1  ;;  %v2301_v63 = vrot.slane %v2297_v61, 1  ;;  %v2302_v45 = vrot.slane %v2298_v5, 1 }
 0x214   : > { %v2285_v49 = vadd.f32 %v2281_v62, %v2261_v2  ;;  %v2286_v21 = vadd.f32 %v2282_v28, %v2262_v52  ;;  %v2307_v39 = vmul.f32 %v5481_v59, %v6377_v0  ;;  %v2308_v8 = vmul.f32 %v5485_v50, %v6377_v0 }
 0x215   : > { %v2317_v14 = vmul.f32 %v5481_v59, %v6378_v16  ;;  %v2318_v13 = vmul.f32 %v5485_v50, %v6378_v16  ;;  %v2327_v26 = vmul.f32 %v5481_v59, %v6379_v11  ;;  %v2328_v40 = vmul.f32 %v5485_v50, %v6379_v11 }
 0x216   : > { %v2311_v58 = vrot.slane %v2307_v39, 1  ;;  %v2312_v42 = vrot.slane %v2308_v8, 1  ;;  %v2337_v15 = vmul.f32 %v5481_v59, %v6351_v4  ;;  %v2338_v61 = vmul.f32 %v5485_v50, %v6351_v4 }
 0x217   : > { %v2295_v5 = vadd.f32 %v2291_v53, %v2265_v3  ;;  %v2296_v2 = vadd.f32 %v2292_v24, %v2266_v37  ;;  %v2305_v52 = vadd.f32 %v2301_v63, %v2269_v6  ;;  %v2306_v62 = vadd.f32 %v2302_v45, %v2270_v44  ;;  %v6380_v6 = vld [vmem:[#allocation60_spill] sm:$0xff]  ;;  %v6381_v53 = vld [vmem:[#allocation62_spill] sm:$0xff] }
 0x218   : > { %v2321_v28 = vrot.slane %v2317_v14, 2  ;;  %v2322_v0 = vrot.slane %v2318_v13, 2  ;;  %v2331_v16 = vrot.slane %v2327_v26, 2  ;;  %v2332_v18 = vrot.slane %v2328_v40, 2 }
 0x219   : > { %v2315_v47 = vadd.f32 %v2311_v58, %v2273_v38  ;;  %v2316_v19 = vadd.f32 %v2312_v42, %v2274_v43  ;;  %v2341_v55 = vrot.slane %v2337_v15, 2  ;;  %v2342_v11 = vrot.slane %v2338_v61, 2 }
 0x21a   : > { %v2325_v39 = vadd.f32 %v2321_v28, %v2285_v49  ;;  %v2326_v8 = vadd.f32 %v2322_v0, %v2286_v21  ;;  %v2347_v57 = vmul.f32 %v5481_v59, %v6229_v51  ;;  %v2348_v4 = vmul.f32 %v5485_v50, %v6229_v51 }
 0x21b   : > { %v2335_v3 = vadd.f32 %v2331_v16, %v2295_v5  ;;  %v2336_v37 = vadd.f32 %v2332_v18, %v2296_v2  ;;  %v2357_v44 = vmul.f32 %v4757_v35, %v6380_v6  ;;  %v2358_v24 = vmul.f32 %v4759_v48, %v6381_v53 }
 0x21c   : > { %v2345_v38 = vadd.f32 %v2341_v55, %v2305_v52  ;;  %v2346_v43 = vadd.f32 %v2342_v11, %v2306_v62  ;;  %v2351_v63 = vrot.slane %v2347_v57, 2  ;;  %v2352_v45 = vrot.slane %v2348_v4, 2 }
 0x21d   : > { %v2359_v49 = vmul.f32 %v2357_v44, %v4566_v29  ;;  %v2360_v21 = vmul.f32 %v2358_v24, %v4566_v29  ;;  %v2363_v59 = vmul.f32 %v2357_v44, %v4574_v7  ;;  %v2364_v51 = vmul.f32 %v2358_v24, %v4574_v7 }
 0x21e   : > { %v2355_v50 = vadd.f32 %v2351_v63, %v2315_v47  ;;  %v2356_v18 = vadd.f32 %v2352_v45, %v2316_v19  ;;  %v2367_v14 = vmul.f32 %v2357_v44, %v4582_v30  ;;  %v2368_v35 = vmul.f32 %v2358_v24, %v4582_v30 }
 0x21f   : > { %v2361_v13 = vadd.f32 %v2359_v49, %v2325_v39  ;;  %v2362_v48 = vadd.f32 %v2360_v21, %v2326_v8  ;;  %v2365_v55 = vadd.f32 %v2363_v59, %v2335_v3  ;;  %v2366_v26 = vadd.f32 %v2364_v51, %v2336_v37 }
 0x220   : > { %v2369_v57 = vadd.f32 %v2367_v14, %v2345_v38  ;;  %v2370_v40 = vadd.f32 %v2368_v35, %v2346_v43  ;;  %v2371_v58 = vmul.f32 %v2357_v44, %v4590_v25  ;;  %v2372_v29 = vmul.f32 %v2358_v24, %v4590_v25 }
 0x221   : > { %v2375_v42 = vmul.f32 %v2357_v44, %v4596_v22  ;;  %v2376_v7 = vmul.f32 %v2358_v24, %v4596_v22  ;;  %v2385_v19 = vmul.f32 %v2357_v44, %v4599_v23  ;;  %v2386_v47 = vmul.f32 %v2358_v24, %v4599_v23 }
 0x222   : > { %v2373_v15 = vadd.f32 %v2371_v58, %v2355_v50  ;;  %v2374_v30 = vadd.f32 %v2372_v29, %v2356_v18  ;;  %v2395_v61 = vmul.f32 %v2357_v44, %v4605_v20  ;;  %v2396_v5 = vmul.f32 %v2358_v24, %v4605_v20  ;;  %v6382_v58 = vld [vmem:[#allocation57_spill] sm:$0xff] }
 0x223   : > { %v2379_v2 = vrot.slane %v2375_v42, 1  ;;  %v2380_v52 = vrot.slane %v2376_v7, 1  ;;  %v2389_v62 = vrot.slane %v2385_v19, 1  ;;  %v2390_v28 = vrot.slane %v2386_v47, 1  ;;  %v6383_v42 = vld [vmem:[#allocation27_spill] sm:$0xff]  ;;  %v2853_v7 = vpop.permute.xlu1 %2852  ;;  %v2851_v19 = vpop.permute.xlu0 %2850 }
 0x224   : > { %v2399_v0 = vrot.slane %v2395_v61, 1  ;;  %v2400_v25 = vrot.slane %v2396_v5, 1  ;;  %v2405_v16 = vmul.f32 %v2357_v44, %v4617_v9  ;;  %v2406_v22 = vmul.f32 %v2358_v24, %v4617_v9 }
 0x225   : > { %v2383_v11 = vadd.f32 %v2379_v2, %v2361_v13  ;;  %v2384_v39 = vadd.f32 %v2380_v52, %v2362_v48  ;;  %v2393_v8 = vadd.f32 %v2389_v62, %v2365_v55  ;;  %v2394_v23 = vadd.f32 %v2390_v28, %v2366_v26  ;;  %v6385_v28 = vld [vmem:[#allocation56_spill] sm:$0xff] }
 0x226   : > { %v2403_v4 = vadd.f32 %v2399_v0, %v2369_v57  ;;  %v2404_v3 = vadd.f32 %v2400_v25, %v2370_v40  ;;  %v2409_v37 = vrot.slane %v2405_v16, 1  ;;  %v2410_v6 = vrot.slane %v2406_v22, 1  ;;  %v6386_v22 = vld [vmem:[#allocation25_spill] sm:$0xff] }
 0x227   : > { %v2415_v20 = vmul.f32 %v2357_v44, %v4624_v17  ;;  %v2416_v53 = vmul.f32 %v2358_v24, %v4624_v17  ;;  %v2425_v38 = vmul.f32 %v2357_v44, %v4631_v46  ;;  %v2426_v43 = vmul.f32 %v2358_v24, %v4631_v46 }
 0x228   : > { %v2413_v63 = vadd.f32 %v2409_v37, %v2373_v15  ;;  %v2414_v45 = vadd.f32 %v2410_v6, %v2374_v30  ;;  %v2435_v9 = vmul.f32 %v2357_v44, %v4634_v33  ;;  %v2436_v49 = vmul.f32 %v2358_v24, %v4634_v33  ;;  %v6391_v6 = vld [vmem:[#allocation73_spill] sm:$0xff] }
 0x229   : > { %v2419_v21 = vrot.slane %v2415_v20, 2  ;;  %v2420_v59 = vrot.slane %v2416_v53, 2  ;;  %v2429_v51 = vrot.slane %v2425_v38, 2  ;;  %v2430_v50 = vrot.slane %v2426_v43, 2  ;;  %v6392_v20 = vld [vmem:[#allocation77_spill] sm:$0xff]  ;;  %v2866_v38 = vpop.permute.xlu1 %2865  ;;  %v2864_v43 = vpop.permute.xlu0 %2863 }
 0x22a   : > { %v2439_v18 = vrot.slane %v2435_v9, 2  ;;  %v2440_v14 = vrot.slane %v2436_v49, 2  ;;  %v2445_v35 = vmul.f32 %v2357_v44, %v4637_v60  ;;  %v2446_v17 = vmul.f32 %v2358_v24, %v4637_v60 }
 0x22b   : > { %v2423_v13 = vadd.f32 %v2419_v21, %v2383_v11  ;;  %v2424_v48 = vadd.f32 %v2420_v59, %v2384_v39  ;;  %v2433_v55 = vadd.f32 %v2429_v51, %v2393_v8  ;;  %v2434_v46 = vadd.f32 %v2430_v50, %v2394_v23  ;;  %v6387_v11 = vld [vmem:[#allocation11_spill] sm:$0xff]  ;;  %v6388_v8 = vld [vmem:[#allocation26_spill] sm:$0xff]  ;;  %v6389_v23 = vld [vmem:[#allocation12_spill] sm:$0xff] }
 0x22c   : > { %v2443_v26 = vadd.f32 %v2439_v18, %v2403_v4  ;;  %v2444_v57 = vadd.f32 %v2440_v14, %v2404_v3  ;;  %v2449_v40 = vrot.slane %v2445_v35, 2  ;;  %v2450_v33 = vrot.slane %v2446_v17, 2  ;;  %v6390_v3 = vld [vmem:[#allocation28_spill] sm:$0xff]  ;;  %v6393_v21 = vld [vmem:[#allocation23_spill] sm:$0xff] }
 0x22d   : > { %v2822_v29 = vadd.f32 %v5540_v12, %v6382_v58  ;;  %v2823_v44 = vadd.f32 %v5543_v27, %v6383_v42  ;;  %v2457_v60 = vadd.f32 %v2433_v55, %v6356_v34  ;;  %v2458_v24 = vadd.f32 %v2434_v46, %v6357_v10  ;;  %v6394_v51 = vld [vmem:[#allocation24_spill] sm:$0xff] }
 0x22e   : > { %v2453_v47 = vadd.f32 %v2449_v40, %v2413_v63  ;;  %v2454_v15 = vadd.f32 %v2450_v33, %v2414_v45  ;;  %v2459_v30 = vadd.f32 %v2443_v26, %v6358_v32  ;;  %v2460_v61 = vadd.f32 %v2444_v57, %v6359_v1  ;;  %v6384_v32 = vld [vmem:[#allocation84_spill] sm:$0xff] }
 0x22f   : > { %v2455_v12 = vadd.f32 %v2423_v13, %v6360_v54  ;;  %v2456_v27 = vadd.f32 %v2424_v48, %v6361_v41  ;;  %v2465_v5 = vrot.slane %v2457_v60, 7  ;;  %v2466_v2 = vrot.slane %v2458_v24, 7 }
 0x230   : > { %v2461_v34 = vadd.f32 %v2453_v47, %v6362_v56  ;;  %v2462_v10 = vadd.f32 %v2454_v15, %v6363_v36  ;;  %v2471_v52 = vrot.slane %v2459_v30, 6  ;;  %v2472_v62 = vrot.slane %v2460_v61, 6 }
 0x231   : > { %v2835_v1 = vadd.f32 %v6384_v32, %v2822_v29  ;;  %v2836_v0 = vadd.f32 %v6385_v28, %v2823_v44  ;;  %v2481_v54 = vsel %vm1049_vm10, %v2455_v12, %v2465_v5  ;;  %v2482_v41 = vsel %vm1049_vm10, %v2456_v27, %v2466_v2 }
 0x232   : > { %v2477_v25 = vrot.slane %v2461_v34, 5  ;;  %v2478_v16 = vrot.slane %v2462_v10, 5  ;;  %v2483_v56 = vsel %vm1052_vm11, %v2481_v54, %v2471_v52  ;;  %v2484_v36 = vsel %vm1052_vm11, %v2482_v41, %v2472_v62 }
 0x233   : > { %v5633_v39 = vmul.f32 %v6387_v11, %v6386_v22  ;;  %v5637_v4 = vmul.f32 %v6389_v23, %v6388_v8  ;;  %v2846_v37 = vmul.f32 %v6390_v3, %v5490_v31  ;;  %v2847_v53 = vmul.f32 %v6392_v20, %v6391_v6 }
 0x234   : > { %v2485_v63 = vsel %vm1055_vm12, %v2483_v56, %v2477_v25  ;;  %v2486_v45 = vsel %vm1055_vm12, %v2484_v36, %v2478_v16  ;;  %v2854_v9 = vsel %vm568_vm7, %v2851_v19, %v2853_v7  ;;  %v2858_v49 = vsel %vm568_vm7, %v2853_v7, %v2851_v19 }
 0x235   : > { %v5650_v59 = vmul.f32 %v2485_v63, %v6393_v21  ;;  %v5653_v50 = vmul.f32 %v2486_v45, %v6394_v51  ;;  %v2848_v18 = vadd.f32 %v2846_v37, %v2835_v1  ;;  %v2849_v14 = vadd.f32 %v2847_v53, %v2836_v0 }
 0x236   : > { %v2867_v35 = vsel %vm607_vm8, %v2864_v43, %v2866_v38  ;;  %v2871_v17 = vsel %vm607_vm8, %v2866_v38, %v2864_v43  ;;  %v5666_v40 = vstv %s5597_s10  ;;  %v5669_v33 = vstv %s5599_s13  ;;  %s6399_s10 = smov 15   ;;  %s6400_s13 = smov 1  }
 0x237   : > { %v2859_v13 = vmul.f32 %v2854_v9, %v5650_v59  ;;  %v2860_v48 = vmul.f32 %v2858_v49, %v5653_v50  ;;  %v2872_v26 = vmul.f32 %v2867_v35, %v5633_v39  ;;  %v2873_v57 = vmul.f32 %v2871_v17, %v5637_v4 }
 0x238   : > { %v5672_v58 = vstv %s5607_s25  ;;  %v5675_v29 = vstv %s5611_s26  ;;  %v5678_v42 = vstv %s5615_s30  ;;  %v5681_v44 = vstv %s5619_s6  ;;  %s6401_s25 = smov 112   ;;  %s6402_s26 = smov 111  }
 0x239   : > { %v2861_v55 = vadd.f32 %v2859_v13, %v2848_v18  ;;  %v2862_v46 = vadd.f32 %v2860_v48, %v2849_v14  ;;  %v5684_v24 = vstv %s5625_s7  ;;  %v5687_v19 = vstv %s5629_s17  ;;  %s257_s30 = sand.u32 1, %s4022_s19   ;;  %s3768_s7 = sshll.u32 %s4094_s22, 7 }
 0x23a   : > { %v5690_v47 = vstv %s5643_s16  ;;  %v5692_v15 = vstv %s3758_s12  ;;  %v5707_v22 = vstv %s5659_s11  ;;  %v5710_v11 = vstv %s5663_s9  ;;  %s3710_s6 = sshll.u32 %s257_s30, 3  ;;  %s3607_s9 = scalar_lea.hbm %s5943_s5, %s3768_s7 }
 0x23b   : > { %v2874_v7 = vadd.f32 %v2872_v26, %v2861_v55  ;;  %v2875_v60 = vadd.f32 %v2873_v57, %v2862_v46  ;;  %s259_s17 = scalar_lea.vmem [#allocation7], %s3710_s6 }
 0x23c   : > { %s3609_s16 = sshll.u32 %s259_s17, 4  ;;  %s3610_s16 = int_to_ptr.vmem [resolvable:$true] %s3609_s16 }
 0x23d   : > { %v2877_v30 = vmul.f32 %v5666_v40, %v2874_v7  ;;  %v2878_v61 = vmul.f32 %v5666_v40, %v2875_v60  ;;  %v2882_v12 = vmul.f32 %v5669_v33, %v2874_v7  ;;  %v2883_v27 = vmul.f32 %v5669_v33, %v2875_v60 }
 0x23e   : > { %v2893_v5 = vmul.f32 %v5672_v58, %v2874_v7  ;;  %v2894_v2 = vmul.f32 %v5672_v58, %v2875_v60  ;;  %v2904_v34 = vmul.f32 %v5675_v29, %v2874_v7  ;;  %v2905_v10 = vmul.f32 %v5675_v29, %v2875_v60 }
 0x23f   : > { %v2886_v52 = vrot.slane %v2882_v12, 1  ;;  %v2887_v62 = vrot.slane %v2883_v27, 1  ;;  %v2909_v32 = vmul.f32 %v5678_v42, %v2874_v7  ;;  %v2910_v1 = vmul.f32 %v5678_v42, %v2875_v60 }
 0x240   : > { %v2897_v28 = vrot.slane %v2893_v5, 2  ;;  %v2898_v0 = vrot.slane %v2894_v2, 2  ;;  %v2920_v54 = vmul.f32 %v5681_v44, %v2874_v7  ;;  %v2921_v41 = vmul.f32 %v5681_v44, %v2875_v60 }
 0x241   : > { %v2890_v25 = vadd.f32 %v2886_v52, %v2877_v30  ;;  %v2891_v16 = vadd.f32 %v2887_v62, %v2878_v61  ;;  %v2913_v56 = vrot.slane %v2909_v32, 2  ;;  %v2914_v36 = vrot.slane %v2910_v1, 2 }
 0x242   : > { %v2924_v8 = vrot.slane %v2920_v54, 3  ;;  %v2925_v23 = vrot.slane %v2921_v41, 3  ;;  %v2936_v38 = vmul.f32 %v5687_v19, %v2874_v7  ;;  %v2937_v43 = vmul.f32 %v5687_v19, %v2875_v60 }
 0x243   : > { %v2901_v3 = vadd.f32 %v2897_v28, %v2890_v25  ;;  %v2902_v37 = vadd.f32 %v2898_v0, %v2891_v16  ;;  %v2917_v20 = vadd.f32 %v2913_v56, %v2904_v34  ;;  %v2918_v53 = vadd.f32 %v2914_v36, %v2905_v10 }
 0x244   : > { %v2947_v63 = vmul.f32 %v5690_v47, %v2874_v7  ;;  %v2948_v45 = vmul.f32 %v5690_v47, %v2875_v60  ;;  %v2931_v21 = vmul.f32 %v5684_v24, %v2874_v7  ;;  %v2932_v51 = vmul.f32 %v5684_v24, %v2875_v60 }
 0x245   : > { %v2928_v9 = vadd.f32 %v2924_v8, %v2917_v20  ;;  %v2929_v49 = vadd.f32 %v2925_v23, %v2918_v53  ;;  %v2940_v18 = vrot.slane %v2936_v38, 1  ;;  %v2941_v14 = vrot.slane %v2937_v43, 1  ;;  %v5731_v53 = vld [vmem:[%s4164_s8] sm:$0xff]  ;;  %s6395_s8 = smov 127  }
 0x246   : > { %v2951_v35 = vrot.slane %v2947_v63, 3  ;;  %v2952_v17 = vrot.slane %v2948_v45, 3  ;;  %v2963_v13 = vmul.f32 %v5707_v22, %v2874_v7  ;;  %v2964_v48 = vmul.f32 %v5707_v22, %v2875_v60 }
 0x247   : > { %v2974_v55 = vmul.f32 %v5710_v11, %v2874_v7  ;;  %v2975_v46 = vmul.f32 %v5710_v11, %v2875_v60  ;;  %v2944_v26 = vadd.f32 %v2940_v18, %v2931_v21  ;;  %v2945_v57 = vadd.f32 %v2941_v14, %v2932_v51 }
 0x248   : > { %v2986_v30 = vrot.slane %v2901_v3, 1  ;;  %v2987_v61 = vrot.slane %v2902_v37, 1  ;;  %v2958_v12 = vmul.f32 %v5692_v15, %v2874_v7  ;;  %v2959_v27 = vmul.f32 %v5692_v15, %v2875_v60 }
 0x249   : > { %v2967_v5 = vrot.slane %v2963_v13, 1  ;;  %v2968_v2 = vrot.slane %v2964_v48, 1  ;;  %v2955_v34 = vadd.f32 %v2951_v35, %v2944_v26  ;;  %v2956_v10 = vadd.f32 %v2952_v17, %v2945_v57 }
 0x24a   : > { %v2992_v52 = vrot.slane %v2928_v9, 7  ;;  %v2993_v62 = vrot.slane %v2929_v49, 7  ;;  %v2978_v28 = vrot.slane %v2974_v55, 2  ;;  %v2979_v0 = vrot.slane %v2975_v46, 2 }
 0x24b   : > { %v2971_v32 = vadd.f32 %v2967_v5, %v2958_v12  ;;  %v2972_v1 = vadd.f32 %v2968_v2, %v2959_v27  ;;  %v2998_v54 = vrot.slane %v2955_v34, 6  ;;  %v2999_v41 = vrot.slane %v2956_v10, 6 }
 0x24c   : > { %v3008_v25 = vsel %vm1049_vm10, %v2986_v30, %v2992_v52  ;;  %v3009_v16 = vsel %vm1049_vm10, %v2987_v61, %v2993_v62 }
 0x24d   : > { %v2982_v7 = vadd.f32 %v2978_v28, %v2971_v32  ;;  %v2983_v56 = vadd.f32 %v2979_v0, %v2972_v1  ;;  %v3010_v60 = vsel %vm1052_vm11, %v3008_v25, %v2998_v54  ;;  %v3011_v36 = vsel %vm1052_vm11, %v3009_v16, %v2999_v41 }
 0x24f   : > { %v3004_v8 = vrot.slane %v2982_v7, 5  ;;  %v3005_v23 = vrot.slane %v2983_v56, 5 }
 0x251   : > { %v3012_v3 = vsel %vm1055_vm12, %v3010_v60, %v3004_v8  ;;  %v3013_v37 = vsel %vm1055_vm12, %v3011_v36, %v3005_v23 }
 0x252   : > { %v3016_v20 = vcombine.low %v3012_v3, %v3013_v37 }
 0x254   : > { %v3018_v38 = vsub.f32 %v5731_v53, %v3016_v20 }
 0x256   : > { %v3020_v43 = vcombine.high %v3018_v38, %v3018_v38  ;;  %v3022_v63 = vsel %vm2722_vm0, %v3018_v38, -inf }
 0x257   : > { %v3023_v45 = vrot.slane %v3022_v63, 4 }
 0x258   : > { %v3029_v9 = vsel %vm2722_vm0, %v3020_v43, -inf }
 0x259   : > { %v3024_v49 = vmax.f32 %v3022_v63, %v3023_v45  ;;  %v3030_v21 = vrot.slane %v3029_v9, 4 }
 0x25b   : > { %v3025_v51 = vrot.slane %v3024_v49, 2  ;;  %v3031_v18 = vmax.f32 %v3029_v9, %v3030_v21 }
 0x25d   : > { %v3026_v14 = vmax.f32 %v3024_v49, %v3025_v51  ;;  %v3032_v35 = vrot.slane %v3031_v18, 2  ;;  %v6403_v51 = vld [vmem:[#allocation83_spill] sm:$0xff] }
 0x25f   : > { %v3027_v17 = vrot.slane %v3026_v14, 1  ;;  %v3033_v13 = vmax.f32 %v3031_v18, %v3032_v35 }
 0x261   : > { %v3034_v48 = vrot.slane %v3033_v13, 1  ;;  %v3028_v55 = vmax.f32 %v3026_v14, %v3027_v17  ;;  %v6404_v14 = vld [vmem:[#allocation86_spill] sm:$0xff] }
 0x263   : > { %v3035_v46 = vmax.f32 %v3033_v13, %v3034_v48 }
 0x265   : > { %v3038_v26 = vcombine.low %v3028_v55, %v3035_v46  ;;  %v6405_v46 = vld [vmem:[#allocation39_spill] sm:$0xff] }
 0x267   : > { %v3040_v57 = vsub.f32 %v3018_v38, %v3038_v26 }
 0x269   : > { %v3041_v30 = vmul.f32 1.442695, %v3040_v57  ;;  %v6406_v57 = vld [vmem:[#allocation42_spill] sm:$0xff] }
 0x26b   : > { %3919 = vpow2.f32 %v3041_v30 }
 0x278   : > { %v3920_v61 = vpop.eup %3919 }
 0x279   : > { %v3044_v12 = vcombine.high %v3920_v61, %v3920_v61  ;;  %v3046_v27 = vsel %vm2722_vm0, %v3920_v61, 0.0 }
 0x27a   : > { %v3047_v5 = vrot.slane %v3046_v27, 4 }
 0x27b   : > { %v3053_v2 = vsel %vm2722_vm0, %v3044_v12, 0.0 }
 0x27c   : > { %v3048_v34 = vadd.f32 %v3047_v5, %v3046_v27  ;;  %v3054_v10 = vrot.slane %v3053_v2, 4  ;;  %v6408_v27 = vld [vmem:[#allocation85_spill] sm:$0xff] }
 0x27e   : > { %v3049_v52 = vrot.slane %v3048_v34, 2  ;;  %v3055_v62 = vadd.f32 %v3054_v10, %v3053_v2 }
 0x280   : > { %v3050_v32 = vadd.f32 %v3049_v52, %v3048_v34  ;;  %v3056_v1 = vrot.slane %v3055_v62, 2 }
 0x282   : > { %v3051_v28 = vrot.slane %v3050_v32, 1  ;;  %v3057_v0 = vadd.f32 %v3056_v1, %v3055_v62 }
 0x284   : > { %v3052_v54 = vadd.f32 %v3051_v28, %v3050_v32  ;;  %v3058_v41 = vrot.slane %v3057_v0, 1 }
 0x286   : > { %v3059_v25 = vadd.f32 %v3058_v41, %v3057_v0  ;;  %3921 = vrcp.f32 %v3052_v54  ;;  %v6409_v41 = vld [vmem:[#allocation89_spill] sm:$0xff] }
 0x288   : > { %3923 = vrcp.f32 %v3059_v25 }
 0x293   : > { %v3922_v16 = vpop.eup %3921 }
 0x295   : > { %v3924_v7 = vpop.eup %3923 }
 0x296   : > { %v3066_v56 = vcombine.low %v3922_v16, %v3924_v7  ;;  %v6410_v16 = vld [vmem:[#allocation90_spill] sm:$0xff] }
 0x298   : > { %v3068_v60 = vmul.f32 %v3920_v61, %v3066_v56  ;;  %v6407_v61 = vld [vmem:[#allocation14_spill] sm:$0xff] }
 0x29a   : > { %3123 = vrot.lane.b32.xlu0 %v3068_v60, %s6395_s8  ;;  %3074 = vrot.lane.b32.xlu1 %v3068_v60, %s6396_s15  ;;  %v3070_v36 = vcombine.high %v3068_v60, %v3068_v60 }
 0x29e   : > { %3136 = vrot.lane.b32.xlu0 %v3068_v60, %s6397_s14  ;;  %3087 = vrot.lane.b32.xlu1 %v3068_v60, %s6398_s23 }
 0x2a2   : > { %3100 = vrot.lane.b32.xlu1 %v3068_v60, %s6399_s10  ;;  %3071 = vrot.lane.b32.xlu0 %v3070_v36, %s6396_s15 }
 0x2a6   : > { %3113 = vrot.lane.b32.xlu1 %v3068_v60, %s6400_s13  ;;  %3084 = vrot.lane.b32.xlu0 %v3070_v36, %s6398_s23 }
 0x2aa   : > { %3125 = vrot.lane.b32.xlu1 %v3070_v36, %s6395_s8  ;;  %3097 = vrot.lane.b32.xlu0 %v3070_v36, %s6399_s10 }
 0x2ae   : > { %3138 = vrot.lane.b32.xlu1 %v3070_v36, %s6397_s14  ;;  %3110 = vrot.lane.b32.xlu0 %v3070_v36, %s6400_s13 }
 0x2b2   : > { %3151 = vrot.lane.b32.xlu1 %v3070_v36, %s6401_s25  ;;  %3149 = vrot.lane.b32.xlu0 %v3068_v60, %s6401_s25 }
 0x2b6   : > { %3164 = vrot.lane.b32.xlu1 %v3070_v36, %s6402_s26  ;;  %3162 = vrot.lane.b32.xlu0 %v3068_v60, %s6402_s26  ;;  %v6411_v36 = vld [vmem:[#allocation80_spill] sm:$0xff] }
 0x30c   : > { %v3124_v8 = vpop.permute.xlu0 %3123  ;;  %v3075_v23 = vpop.permute.xlu1 %3074 }
 0x310   : > { %v3137_v3 = vpop.permute.xlu0 %3136  ;;  %v3088_v37 = vpop.permute.xlu1 %3087 }
 0x314   : > { %v3101_v20 = vpop.permute.xlu1 %3100  ;;  %v3072_v38 = vpop.permute.xlu0 %3071 }
 0x315   : > { %v3076_v49 = vsel %vm334_vm1, %v3075_v23, %v3072_v38  ;;  %v3079_v21 = vsel %vm334_vm1, %v3072_v38, %v3075_v23 }
 0x316   : > { %v3080_v26 = vmul.f32 %v3079_v21, %v6405_v46  ;;  %v3081_v30 = vmul.f32 %v3076_v49, %v6406_v57 }
 0x318   : > { %v3114_v43 = vpop.permute.xlu1 %3113  ;;  %v3085_v63 = vpop.permute.xlu0 %3084 }
 0x319   : > { %v3089_v45 = vsel %vm374_vm2, %v3088_v37, %v3085_v63  ;;  %v3092_v9 = vsel %vm374_vm2, %v3085_v63, %v3088_v37  ;;  %v6412_v37 = vld [vmem:[#allocation87_spill] sm:$0xff] }
 0x31a   : > { %v3093_v18 = vmul.f32 %v3092_v9, %v6403_v51  ;;  %v3094_v35 = vmul.f32 %v3089_v45, %v6404_v14 }
 0x31c   : > { %v3126_v17 = vpop.permute.xlu1 %3125  ;;  %v3098_v13 = vpop.permute.xlu0 %3097  ;;  %v3095_v2 = vadd.f32 %v3093_v18, %v3080_v26  ;;  %v3096_v34 = vadd.f32 %v3094_v35, %v3081_v30 }
 0x31d   : > { %v3102_v48 = vsel %vm413_vm3, %v3101_v20, %v3098_v13  ;;  %v3105_v55 = vsel %vm413_vm3, %v3098_v13, %v3101_v20  ;;  %v3127_v62 = vsel %vm490_vm5, %v3124_v8, %v3126_v17  ;;  %v3131_v32 = vsel %vm490_vm5, %v3126_v17, %v3124_v8 }
 0x31e   : > { %v3106_v12 = vmul.f32 %v3105_v55, %v6407_v61  ;;  %v3107_v5 = vmul.f32 %v3102_v48, %v6408_v27  ;;  %v3132_v23 = vmul.f32 %v3127_v62, %v6411_v36  ;;  %v3133_v20 = vmul.f32 %v3131_v32, %v6412_v37 }
 0x320   : > { %v3139_v10 = vpop.permute.xlu1 %3138  ;;  %v3111_v52 = vpop.permute.xlu0 %3110  ;;  %v3108_v0 = vadd.f32 %v3106_v12, %v3095_v2  ;;  %v3109_v54 = vadd.f32 %v3107_v5, %v3096_v34 }
 0x321   : > { %v3115_v1 = vsel %vm452_vm4, %v3114_v43, %v3111_v52  ;;  %v3118_v28 = vsel %vm452_vm4, %v3111_v52, %v3114_v43  ;;  %v3140_v56 = vsel %vm529_vm6, %v3137_v3, %v3139_v10  ;;  %v3144_v60 = vsel %vm529_vm6, %v3139_v10, %v3137_v3 }
 0x322   : > { %v3119_v25 = vmul.f32 %v3118_v28, %v6409_v41  ;;  %v3120_v7 = vmul.f32 %v3115_v1, %v6410_v16  ;;  %v3145_v49 = vmul.f32 %v3140_v56, %v5490_v31  ;;  %v3146_v21 = vmul.f32 %v3144_v60, %v6391_v6 }
 0x324   : > { %v3121_v38 = vadd.f32 %v3119_v25, %v3108_v0  ;;  %v3122_v8 = vadd.f32 %v3120_v7, %v3109_v54  ;;  %v3152_v63 = vpop.permute.xlu1 %3151  ;;  %v3150_v45 = vpop.permute.xlu0 %3149 }
 0x325   : > { %v3153_v43 = vsel %vm568_vm7, %v3150_v45, %v3152_v63  ;;  %v3157_v9 = vsel %vm568_vm7, %v3152_v63, %v3150_v45 }
 0x326   : > { %v3134_v18 = vadd.f32 %v3132_v23, %v3121_v38  ;;  %v3135_v35 = vadd.f32 %v3133_v20, %v3122_v8  ;;  %v3158_v13 = vmul.f32 %v3153_v43, %v5650_v59  ;;  %v3159_v48 = vmul.f32 %v3157_v9, %v5653_v50 }
 0x328   : > { %v3147_v17 = vadd.f32 %v3145_v49, %v3134_v18  ;;  %v3148_v3 = vadd.f32 %v3146_v21, %v3135_v35  ;;  %v3165_v55 = vpop.permute.xlu1 %3164  ;;  %v3163_v26 = vpop.permute.xlu0 %3162 }
 0x329   : > { %v3166_v30 = vsel %vm607_vm8, %v3163_v26, %v3165_v55  ;;  %v3170_v12 = vsel %vm607_vm8, %v3165_v55, %v3163_v26 }
 0x32a   : > { %v3160_v5 = vadd.f32 %v3158_v13, %v3147_v17  ;;  %v3161_v2 = vadd.f32 %v3159_v48, %v3148_v3  ;;  %v3171_v34 = vmul.f32 %v3166_v30, %v5633_v39  ;;  %v3172_v10 = vmul.f32 %v3170_v12, %v5637_v4 }
 0x32c   : > { %v3173_v52 = vadd.f32 %v3171_v34, %v3160_v5  ;;  %v3174_v62 = vadd.f32 %v3172_v10, %v3161_v2 }
 0x32e   : > { %v3175_v32 = vmul.f32 %v3173_v52, %v5666_v40  ;;  %v3176_v1 = vmul.f32 %v3174_v62, %v5666_v40  ;;  %v3179_v28 = vmul.f32 %v3173_v52, %v5669_v33  ;;  %v3180_v0 = vmul.f32 %v3174_v62, %v5669_v33 }
 0x32f   : > { %v3189_v54 = vmul.f32 %v3173_v52, %v5672_v58  ;;  %v3190_v25 = vmul.f32 %v3174_v62, %v5672_v58  ;;  %v3199_v7 = vmul.f32 %v3173_v52, %v5675_v29  ;;  %v3200_v56 = vmul.f32 %v3174_v62, %v5675_v29 }
 0x330   : > { %v3183_v60 = vrot.slane %v3179_v28, 1  ;;  %v3184_v23 = vrot.slane %v3180_v0, 1  ;;  %v3203_v20 = vmul.f32 %v3173_v52, %v5678_v42  ;;  %v3204_v38 = vmul.f32 %v3174_v62, %v5678_v42 }
 0x331   : > { %v3193_v8 = vrot.slane %v3189_v54, 2  ;;  %v3194_v63 = vrot.slane %v3190_v25, 2  ;;  %v3213_v45 = vmul.f32 %v3173_v52, %v5681_v44  ;;  %v3214_v43 = vmul.f32 %v3174_v62, %v5681_v44 }
 0x332   : > { %v3187_v9 = vadd.f32 %v3183_v60, %v3175_v32  ;;  %v3188_v49 = vadd.f32 %v3184_v23, %v3176_v1  ;;  %v3207_v21 = vrot.slane %v3203_v20, 2  ;;  %v3208_v18 = vrot.slane %v3204_v38, 2 }
 0x333   : > { %v3217_v35 = vrot.slane %v3213_v45, 3  ;;  %v3218_v17 = vrot.slane %v3214_v43, 3  ;;  %v3227_v26 = vmul.f32 %v3173_v52, %v5687_v19  ;;  %v3228_v30 = vmul.f32 %v3174_v62, %v5687_v19 }
 0x334   : > { %v3197_v3 = vadd.f32 %v3193_v8, %v3187_v9  ;;  %v3198_v13 = vadd.f32 %v3194_v63, %v3188_v49  ;;  %v3211_v48 = vadd.f32 %v3207_v21, %v3199_v7  ;;  %v3212_v55 = vadd.f32 %v3208_v18, %v3200_v56 }
 0x335   : > { %v3237_v12 = vmul.f32 %v3173_v52, %v5690_v47  ;;  %v3238_v5 = vmul.f32 %v3174_v62, %v5690_v47  ;;  %v3223_v10 = vmul.f32 %v3173_v52, %v5684_v24  ;;  %v3224_v32 = vmul.f32 %v3174_v62, %v5684_v24 }
 0x336   : > { %v3221_v2 = vadd.f32 %v3217_v35, %v3211_v48  ;;  %v3222_v34 = vadd.f32 %v3218_v17, %v3212_v55  ;;  %v3231_v1 = vrot.slane %v3227_v26, 1  ;;  %v3232_v28 = vrot.slane %v3228_v30, 1 }
 0x337   : > { %v3241_v0 = vrot.slane %v3237_v12, 3  ;;  %v3242_v54 = vrot.slane %v3238_v5, 3  ;;  %v3251_v25 = vmul.f32 %v3173_v52, %v5707_v22  ;;  %v3252_v7 = vmul.f32 %v3174_v62, %v5707_v22 }
 0x338   : > { %v3261_v56 = vmul.f32 %v3173_v52, %v5710_v11  ;;  %v3262_v60 = vmul.f32 %v3174_v62, %v5710_v11  ;;  %v3235_v23 = vadd.f32 %v3231_v1, %v3223_v10  ;;  %v3236_v20 = vadd.f32 %v3232_v28, %v3224_v32 }
 0x339   : > { %v3273_v38 = vrot.slane %v3197_v3, 1  ;;  %v3274_v8 = vrot.slane %v3198_v13, 1  ;;  %v3247_v63 = vmul.f32 %v3173_v52, %v5692_v15  ;;  %v3248_v45 = vmul.f32 %v3174_v62, %v5692_v15 }
 0x33a   : > { %v3255_v43 = vrot.slane %v3251_v25, 1  ;;  %v3256_v9 = vrot.slane %v3252_v7, 1  ;;  %v3245_v49 = vadd.f32 %v3241_v0, %v3235_v23  ;;  %v3246_v21 = vadd.f32 %v3242_v54, %v3236_v20 }
 0x33b   : > { %v3279_v18 = vrot.slane %v3221_v2, 7  ;;  %v3280_v35 = vrot.slane %v3222_v34, 7  ;;  %v3265_v55 = vrot.slane %v3261_v56, 2  ;;  %v3266_v26 = vrot.slane %v3262_v60, 2 }
 0x33c   : > { %v3259_v17 = vadd.f32 %v3255_v43, %v3247_v63  ;;  %v3260_v48 = vadd.f32 %v3256_v9, %v3248_v45  ;;  %v3285_v30 = vrot.slane %v3245_v49, 6  ;;  %v3286_v12 = vrot.slane %v3246_v21, 6 }
 0x33d   : > { %v3295_v5 = vsel %vm1049_vm10, %v3273_v38, %v3279_v18  ;;  %v3296_v3 = vsel %vm1049_vm10, %v3274_v8, %v3280_v35 }
 0x33e   : > { %v3269_v13 = vadd.f32 %v3265_v55, %v3259_v17  ;;  %v3270_v52 = vadd.f32 %v3266_v26, %v3260_v48  ;;  %v3297_v62 = vsel %vm1052_vm11, %v3295_v5, %v3285_v30  ;;  %v3298_v10 = vsel %vm1052_vm11, %v3296_v3, %v3286_v12 }
 0x340   : > { %v3291_v32 = vrot.slane %v3269_v13, 5  ;;  %v3292_v1 = vrot.slane %v3270_v52, 5 }
 0x342   : > { %v3299_v2 = vsel %vm1055_vm12, %v3297_v62, %v3291_v32  ;;  %v3300_v34 = vsel %vm1055_vm12, %v3298_v10, %v3292_v1 }
 0x343   : > { %v3303_v28 = vcombine.low %v3299_v2, %v3300_v34 }
 0x345   : > { %v3305_v0 = vsub.f32 %v5731_v53, %v3303_v28 }
 0x347   : > { %v3307_v54 = vcombine.high %v3305_v0, %v3305_v0  ;;  %v3309_v25 = vsel %vm2722_vm0, %v3305_v0, -inf }
 0x348   : > { %v3310_v7 = vrot.slane %v3309_v25, 4 }
 0x349   : > { %v3316_v56 = vsel %vm2722_vm0, %v3307_v54, -inf }
 0x34a   : > { %v3311_v60 = vmax.f32 %v3309_v25, %v3310_v7  ;;  %v3317_v23 = vrot.slane %v3316_v56, 4 }
 0x34c   : > { %v3312_v20 = vrot.slane %v3311_v60, 2  ;;  %v3318_v38 = vmax.f32 %v3316_v56, %v3317_v23 }
 0x34e   : > { %v3313_v8 = vmax.f32 %v3311_v60, %v3312_v20  ;;  %v3319_v63 = vrot.slane %v3318_v38, 2 }
 0x350   : > { %v3314_v45 = vrot.slane %v3313_v8, 1  ;;  %v3320_v43 = vmax.f32 %v3318_v38, %v3319_v63 }
 0x352   : > { %v3321_v9 = vrot.slane %v3320_v43, 1  ;;  %v3315_v49 = vmax.f32 %v3313_v8, %v3314_v45 }
 0x354   : > { %v3322_v21 = vmax.f32 %v3320_v43, %v3321_v9 }
 0x356   : > { %v3325_v18 = vcombine.low %v3315_v49, %v3322_v21 }
 0x358   : > { %v3327_v35 = vsub.f32 %v3305_v0, %v3325_v18 }
 0x35a   : > { %v3328_v17 = vmul.f32 1.442695, %v3327_v35 }
 0x35c   : > { %3925 = vpow2.f32 %v3328_v17 }
 0x369   : > { %v3926_v48 = vpop.eup %3925 }
 0x36a   : > { %v3331_v55 = vcombine.high %v3926_v48, %v3926_v48  ;;  %v3333_v26 = vsel %vm2722_vm0, %v3926_v48, 0.0 }
 0x36b   : > { %v3334_v30 = vrot.slane %v3333_v26, 4 }
 0x36c   : > { %v3340_v12 = vsel %vm2722_vm0, %v3331_v55, 0.0 }
 0x36d   : > { %v3335_v5 = vadd.f32 %v3334_v30, %v3333_v26  ;;  %v3341_v3 = vrot.slane %v3340_v12, 4 }
 0x36f   : > { %v3336_v13 = vrot.slane %v3335_v5, 2  ;;  %v3342_v52 = vadd.f32 %v3341_v3, %v3340_v12 }
 0x371   : > { %v3337_v62 = vadd.f32 %v3336_v13, %v3335_v5  ;;  %v3343_v10 = vrot.slane %v3342_v52, 2 }
 0x373   : > { %v3338_v32 = vrot.slane %v3337_v62, 1  ;;  %v3344_v1 = vadd.f32 %v3343_v10, %v3342_v52 }
 0x375   : > { %v3339_v2 = vadd.f32 %v3338_v32, %v3337_v62  ;;  %v3345_v34 = vrot.slane %v3344_v1, 1 }
 0x377   : > { %v3346_v28 = vadd.f32 %v3345_v34, %v3344_v1  ;;  %3927 = vrcp.f32 %v3339_v2 }
 0x379   : > { %3929 = vrcp.f32 %v3346_v28 }
 0x384   : > { %v3928_v0 = vpop.eup %3927 }
 0x386   : > { %v3930_v54 = vpop.eup %3929 }
 0x387   : > { %v3353_v25 = vcombine.low %v3928_v0, %v3930_v54 }
 0x389   : > { %v3355_v7 = vmul.f32 %v3926_v48, %v3353_v25 }
 0x38b   : > { %3410 = vrot.lane.b32.xlu0 %v3355_v7, %s6395_s8  ;;  %3361 = vrot.lane.b32.xlu1 %v3355_v7, %s6396_s15  ;;  %v3357_v56 = vcombine.high %v3355_v7, %v3355_v7 }
 0x38f   : > { %3423 = vrot.lane.b32.xlu0 %v3355_v7, %s6397_s14  ;;  %3374 = vrot.lane.b32.xlu1 %v3355_v7, %s6398_s23 }
 0x393   : > { %3387 = vrot.lane.b32.xlu1 %v3355_v7, %s6399_s10  ;;  %3358 = vrot.lane.b32.xlu0 %v3357_v56, %s6396_s15  ;;  %s3962_s15 = scalar_lea.vmem %s3610_s16, 128 }
 0x394   : > { %p3963_p10 = scmp.ne.s32.totalorder %s3610_s16, %s3962_s15 }
 0x396   : > { %p3964_p0 = pnand %p3963_p10, %p6413_p12 }
 0x397   : > { %3400 = vrot.lane.b32.xlu1 %v3355_v7, %s6400_s13  ;;  %3371 = vrot.lane.b32.xlu0 %v3357_v56, %s6398_s23 }
 0x398   : > { %p3965_p7 = pneg %p3964_p0 }
 0x39b   : > { %3412 = vrot.lane.b32.xlu1 %v3357_v56, %s6395_s8  ;;  %3384 = vrot.lane.b32.xlu0 %v3357_v56, %s6399_s10  ;;  %s3595_s8 = scalar_lea.sflag [#allocation3], %s257_s30 }
 0x39f   : > { %3425 = vrot.lane.b32.xlu1 %v3357_v56, %s6397_s14  ;;  %3397 = vrot.lane.b32.xlu0 %v3357_v56, %s6400_s13  ;;  %s4042_s14 = smov [#allocation7]  }
 0x3a0   : > { %s3966_s22 = sshll.u32 %s4042_s14, 4  ;;  %s3967_s22 = int_to_ptr.vmem [resolvable:$false] %s3966_s22 }
 0x3a1   : > { %s3968_s23 = scalar_lea.vmem %s3967_s22, 256  ;;  %p3969_p8 = scmp.lt.s32.totalorder %s3610_s16, %s3967_s22 }
 0x3a2   : > { %p3970_p11 = scmp.lt.s32.totalorder %s3968_s23, %s3962_s15 }
 0x3a3   : > { %3438 = vrot.lane.b32.xlu1 %v3357_v56, %s6401_s25  ;;  %3436 = vrot.lane.b32.xlu0 %v3355_v7, %s6401_s25 }
 0x3a4   : > { %p3971_p13 = por %p3970_p11, %p3969_p8 }
 0x3a6   : > { %p3972_p1 = pnand %p3971_p13, %p3965_p7 }
 0x3a7   : > { %3451 = vrot.lane.b32.xlu1 %v3357_v56, %s6402_s26  ;;  %3449 = vrot.lane.b32.xlu0 %v3355_v7, %s6402_s26 }
 0x3fd   : > { %v3411_v60 = vpop.permute.xlu0 %3410  ;;  %v3362_v23 = vpop.permute.xlu1 %3361 }
 0x401   : > { %v3424_v20 = vpop.permute.xlu0 %3423  ;;  %v3375_v38 = vpop.permute.xlu1 %3374 }
 0x405   : > { %v3388_v8 = vpop.permute.xlu1 %3387  ;;  %v3359_v63 = vpop.permute.xlu0 %3358 }
 0x406   : > { %v3363_v21 = vsel %vm334_vm1, %v3362_v23, %v3359_v63  ;;  %v3366_v18 = vsel %vm334_vm1, %v3359_v63, %v3362_v23 }
 0x407   : > { %v3367_v12 = vmul.f32 %v3366_v18, %v6405_v46  ;;  %v3368_v5 = vmul.f32 %v3363_v21, %v6406_v57 }
 0x409   : > { %v3401_v45 = vpop.permute.xlu1 %3400  ;;  %v3372_v43 = vpop.permute.xlu0 %3371 }
 0x40a   : > { %v3376_v9 = vsel %vm374_vm2, %v3375_v38, %v3372_v43  ;;  %v3379_v49 = vsel %vm374_vm2, %v3372_v43, %v3375_v38 }
 0x40b   : > { %v3380_v35 = vmul.f32 %v3379_v49, %v6403_v51  ;;  %v3381_v17 = vmul.f32 %v3376_v9, %v6404_v14 }
 0x40d   : > { %v3413_v48 = vpop.permute.xlu1 %3412  ;;  %v3385_v55 = vpop.permute.xlu0 %3384  ;;  %v3382_v52 = vadd.f32 %v3380_v35, %v3367_v12  ;;  %v3383_v62 = vadd.f32 %v3381_v17, %v3368_v5 }
 0x40e   : > { %v3389_v26 = vsel %vm413_vm3, %v3388_v8, %v3385_v55  ;;  %v3392_v30 = vsel %vm413_vm3, %v3385_v55, %v3388_v8  ;;  %v3414_v14 = vsel %vm490_vm5, %v3411_v60, %v3413_v48  ;;  %v3418_v32 = vsel %vm490_vm5, %v3413_v48, %v3411_v60 }
 0x40f   : > { %v3393_v3 = vmul.f32 %v3392_v30, %v6407_v61  ;;  %v3394_v13 = vmul.f32 %v3389_v26, %v6408_v27  ;;  %v3419_v0 = vmul.f32 %v3414_v14, %v6411_v36  ;;  %v3420_v54 = vmul.f32 %v3418_v32, %v6412_v37 }
 0x411   : > { %v3426_v10 = vpop.permute.xlu1 %3425  ;;  %v3398_v51 = vpop.permute.xlu0 %3397  ;;  %v3395_v34 = vadd.f32 %v3393_v3, %v3382_v52  ;;  %v3396_v46 = vadd.f32 %v3394_v13, %v3383_v62 }
 0x412   : > { %v3402_v1 = vsel %vm452_vm4, %v3401_v45, %v3398_v51  ;;  %v3405_v2 = vsel %vm452_vm4, %v3398_v51, %v3401_v45  ;;  %v3427_v27 = vsel %vm529_vm6, %v3424_v20, %v3426_v10  ;;  %v3431_v28 = vsel %vm529_vm6, %v3426_v10, %v3424_v20 }
 0x413   : > { %v3406_v57 = vmul.f32 %v3405_v2, %v6409_v41  ;;  %v3407_v61 = vmul.f32 %v3402_v1, %v6410_v16  ;;  %v3432_v41 = vmul.f32 %v3427_v27, %v5490_v31  ;;  %v3433_v16 = vmul.f32 %v3431_v28, %v6391_v6 }
 0x415   : > { %v3408_v25 = vadd.f32 %v3406_v57, %v3395_v34  ;;  %v3409_v7 = vadd.f32 %v3407_v61, %v3396_v46  ;;  %v3439_v56 = vpop.permute.xlu1 %3438  ;;  %v3437_v60 = vpop.permute.xlu0 %3436 }
 0x416   : > { %v3440_v23 = vsel %vm568_vm7, %v3437_v60, %v3439_v56  ;;  %v3444_v38 = vsel %vm568_vm7, %v3439_v56, %v3437_v60 }
 0x417   : > { %v3421_v8 = vadd.f32 %v3419_v0, %v3408_v25  ;;  %v3422_v63 = vadd.f32 %v3420_v54, %v3409_v7  ;;  %v3445_v36 = vmul.f32 %v3440_v23, %v5650_v59  ;;  %v3446_v37 = vmul.f32 %v3444_v38, %v5653_v50 }
 0x419   : > { %v3434_v45 = vadd.f32 %v3432_v41, %v3421_v8  ;;  %v3435_v20 = vadd.f32 %v3433_v16, %v3422_v63  ;;  %v3452_v43 = vpop.permute.xlu1 %3451  ;;  %v3450_v9 = vpop.permute.xlu0 %3449 }
 0x41a   : > { %v3453_v49 = vsel %vm607_vm8, %v3450_v9, %v3452_v43  ;;  %v3457_v21 = vsel %vm607_vm8, %v3452_v43, %v3450_v9 }
 0x41b   : > { %v3447_v18 = vadd.f32 %v3445_v36, %v3434_v45  ;;  %v3448_v35 = vadd.f32 %v3446_v37, %v3435_v20  ;;  %v3458_v31 = vmul.f32 %v3453_v49, %v5633_v39  ;;  %v3459_v6 = vmul.f32 %v3457_v21, %v5637_v4 }
 0x41d   : > { %v3460_v17 = vadd.f32 %v3458_v31, %v3447_v18  ;;  %v3461_v48 = vadd.f32 %v3459_v6, %v3448_v35 }
 0x41f   : > { %v3462_v55 = vmul.f32 %v3460_v17, %v5666_v40  ;;  %v3463_v59 = vmul.f32 %v3461_v48, %v5666_v40  ;;  %v3466_v50 = vmul.f32 %v3460_v17, %v5669_v33  ;;  %v3467_v26 = vmul.f32 %v3461_v48, %v5669_v33 }
 0x420   : > { %v3476_v30 = vmul.f32 %v3460_v17, %v5672_v58  ;;  %v3477_v12 = vmul.f32 %v3461_v48, %v5672_v58  ;;  %v3486_v5 = vmul.f32 %v3460_v17, %v5675_v29  ;;  %v3487_v39 = vmul.f32 %v3461_v48, %v5675_v29 }
 0x421   : > { %v3470_v3 = vrot.slane %v3466_v50, 1  ;;  %v3471_v4 = vrot.slane %v3467_v26, 1  ;;  %v3490_v13 = vmul.f32 %v3460_v17, %v5678_v42  ;;  %v3491_v52 = vmul.f32 %v3461_v48, %v5678_v42 }
 0x422   : > { %v3480_v62 = vrot.slane %v3476_v30, 2  ;;  %v3481_v40 = vrot.slane %v3477_v12, 2  ;;  %v3500_v10 = vmul.f32 %v3460_v17, %v5681_v44  ;;  %v3501_v33 = vmul.f32 %v3461_v48, %v5681_v44 }
 0x423   : > { %v3474_v51 = vadd.f32 %v3470_v3, %v3462_v55  ;;  %v3475_v14 = vadd.f32 %v3471_v4, %v3463_v59  ;;  %v3494_v32 = vrot.slane %v3490_v13, 2  ;;  %v3495_v58 = vrot.slane %v3491_v52, 2 }
 0x424   : > { %v3504_v1 = vrot.slane %v3500_v10, 3  ;;  %v3505_v2 = vrot.slane %v3501_v33, 3  ;;  %v3514_v61 = vmul.f32 %v3460_v17, %v5687_v19  ;;  %v3515_v42 = vmul.f32 %v3461_v48, %v5687_v19 }
 0x425   : > { %v3484_v34 = vadd.f32 %v3480_v62, %v3474_v51  ;;  %v3485_v29 = vadd.f32 %v3481_v40, %v3475_v14  ;;  %v3498_v46 = vadd.f32 %v3494_v32, %v3486_v5  ;;  %v3499_v57 = vadd.f32 %v3495_v58, %v3487_v39 }
 0x426   : > { %v3524_v27 = vmul.f32 %v3460_v17, %v5690_v47  ;;  %v3525_v28 = vmul.f32 %v3461_v48, %v5690_v47  ;;  %v3510_v54 = vmul.f32 %v3460_v17, %v5684_v24  ;;  %v3511_v25 = vmul.f32 %v3461_v48, %v5684_v24 }
 0x427   : > { %v3508_v44 = vadd.f32 %v3504_v1, %v3498_v46  ;;  %v3509_v0 = vadd.f32 %v3505_v2, %v3499_v57  ;;  %v3518_v7 = vrot.slane %v3514_v61, 1  ;;  %v3519_v56 = vrot.slane %v3515_v42, 1 }
 0x428   : > { %v3528_v60 = vrot.slane %v3524_v27, 3  ;;  %v3529_v23 = vrot.slane %v3525_v28, 3  ;;  %v3538_v38 = vmul.f32 %v3460_v17, %v5707_v22  ;;  %v3539_v41 = vmul.f32 %v3461_v48, %v5707_v22 }
 0x429   : > { %v3548_v19 = vmul.f32 %v3460_v17, %v5710_v11  ;;  %v3549_v16 = vmul.f32 %v3461_v48, %v5710_v11  ;;  %v3522_v47 = vadd.f32 %v3518_v7, %v3510_v54  ;;  %v3523_v8 = vadd.f32 %v3519_v56, %v3511_v25 }
 0x42a   : > { %v3560_v63 = vrot.slane %v3484_v34, 1  ;;  %v3561_v45 = vrot.slane %v3485_v29, 1  ;;  %v3534_v24 = vmul.f32 %v3460_v17, %v5692_v15  ;;  %v3535_v20 = vmul.f32 %v3461_v48, %v5692_v15 }
 0x42b   : > { %v3542_v36 = vrot.slane %v3538_v38, 1  ;;  %v3543_v37 = vrot.slane %v3539_v41, 1  ;;  %v3532_v43 = vadd.f32 %v3528_v60, %v3522_v47  ;;  %v3533_v9 = vadd.f32 %v3529_v23, %v3523_v8 }
 0x42c   : > { %v3566_v49 = vrot.slane %v3508_v44, 7  ;;  %v3567_v22 = vrot.slane %v3509_v0, 7  ;;  %v3552_v18 = vrot.slane %v3548_v19, 2  ;;  %v3553_v35 = vrot.slane %v3549_v16, 2 }
 0x42d   : > { %v3546_v21 = vadd.f32 %v3542_v36, %v3534_v24  ;;  %v3547_v11 = vadd.f32 %v3543_v37, %v3535_v20  ;;  %v3572_v31 = vrot.slane %v3532_v43, 6  ;;  %v3573_v6 = vrot.slane %v3533_v9, 6 }
 0x42e   : > { %v3582_v55 = vsel %vm1049_vm10, %v3560_v63, %v3566_v49  ;;  %v3583_v17 = vsel %vm1049_vm10, %v3561_v45, %v3567_v22 }
 0x42f   : > { %v3556_v15 = vadd.f32 %v3552_v18, %v3546_v21  ;;  %v3557_v48 = vadd.f32 %v3553_v35, %v3547_v11  ;;  %v3584_v59 = vsel %vm1052_vm11, %v3582_v55, %v3572_v31  ;;  %v3585_v50 = vsel %vm1052_vm11, %v3583_v17, %v3573_v6 }
 0x431   : > { %v3578_v26 = vrot.slane %v3556_v15, 5  ;;  %v3579_v30 = vrot.slane %v3557_v48, 5 }
 0x433   : > { %v3586_v12 = vsel %vm1055_vm12, %v3584_v59, %v3578_v26  ;;  %v3587_v5 = vsel %vm1055_vm12, %v3585_v50, %v3579_v30 }
 0x434   : > { %v3590_v39 = vcombine.low %v3586_v12, %v3587_v5 }
 0x436   : > { %v3592_v3 = vsub.f32 %v5731_v53, %v3590_v39 }
 0x438   : > { %3593 = vst [vmem:[%s259_s17] sm:$0xff] %v3592_v3 }
 0x439   : > { %3975 = shalt.err (!%p3972_p1)
}
 0x43a   : > { %s3976_s10 = scalar_lea.hbm %s3607_s9, 128  ;;  %s3980_s26 = scalar_lea.hbm %s5943_s5, 256 }
 0x43b   : > { %p3977_p2 = scmp.ne.s32.totalorder %s3607_s9, %s3976_s10  ;;  %p3981_p9 = scmp.lt.s32.totalorder %s3607_s9, %s5943_s5 }
 0x43c   : > { %p3982_p5 = scmp.lt.s32.totalorder %s3980_s26, %s3976_s10 }
 0x43d   : > { %p3978_p3 = pnand %p3977_p2, %p6413_p12 }
 0x43e   : > { %p3983_p6 = por %p3982_p5, %p3981_p9 }
 0x43f   : > { %p3979_p4 = pneg %p3978_p3 }
 0x441   : > { %p3984_p10 = pnand %p3983_p6, %p3979_p4 }
 0x443   : > { %3987 = shalt.err (!%p3984_p10)
}
 0x444   : > { %3777 = dma.vmem_to_hbm [thread:$0]  (%p6413_p12), %s3610_s16, 128, %s3607_s9, %s3595_s8  }
 0x445 PF: > { %p3794_p0 = scmp.ge.s32.totalorder %s4030_s21, 2  ;;  %s3621_s7 = sand.u32 1, %s4018_s18  }
 0x446   : > { %p6414_p7 = scmp.ne.s32.totalorder %s6126_s29, 0  ;;  %s3622_s17 = scalar_lea.sflag [#allocation3], %s3621_s7 }
 0x448   : > { %p3787_p8 = pnand %p3794_p0, %p6414_p7 }
 0x44a   : > { %p3788_p11 = pneg %p3787_p8 }
 0x44c   : > { %4013 = dma.done.wait (%p3788_p11), %s3622_s17, 128  }
 0x44d   : > { %4015 = vsyncadd (%p3788_p11), %s3622_s17, 4294967168  ;;  %p17_p13 = scmp.ge.s32.totalorder %s4098_s24, 4   ;;  %s6415_s18 = smov %s4022_s19 }
 0x44e   : > { %s6416_s19 = smov %s4026_s20  ;;  %s6417_s20 = smov %s4109_s27 }
 0x44f   : > { %s6418_s21 = smov %s4098_s24  ;;  %19 = sbr.rel (!%p17_p13) target bundleno = 5 (0x5), region = 94 }
 0x454   :  { %3627 = vsyncpa [#allocation3], 1 }
 0x455   :  { %3629 = vsyncpa [#allocation3 + $0x1], 1 }
 0x456   :  { %3630 = vsyncpa [#allocation4], 1 }
 0x457   :  { %3632 = vsyncpa [#allocation4 + $0x1], 1 }
 0x458   :  { %3633 = vsyncpa [#allocation6], 1 }

</bundles_post_ra>
